<compile_context>
chip_gen: v7x
topology: tpu7x:2x2x1
jax: 0.10.0
libtpu: 0.0.40
codegen_flags: <defaults>
</compile_context>

<pallas_src>
import jax
import jax.numpy as jnp
from jax import lax
from jax.experimental import pallas as pl
from jax.experimental.pallas import tpu as pltpu


def _align16(n):
    return (n + 15) // 16 * 16


def make_cnn_gru_kernel(cfg, layout):
    """Build the kernel closed over static dims / slab row offsets."""
    T, TB, C = cfg["T"], cfg["TB"], cfg["C"]
    H, G, RC, Hf, OUT = cfg["H"], cfg["G"], cfg["RC"], cfg["Hf"], cfg["OUT"]
    r_g1, r_fc0, r_fc1 = layout["r_g1"], layout["r_fc0"], layout["r_fc1"]
    r_se1, r_se2 = layout["r_se1"], layout["r_se2"]

    def kernel(x_ref,        # [T, TB, C]  f32 (time-major: lane-dense per-step reads)
               wrec_ref,     # [2G, 9G]    bf16 fused block-diag recurrent weight
               wmat_ref,     # [R, 3G]     bf16 matrix slab (g1_wih / fc / se)
               bias_ref,     # [8, 3G]     f32 bias slab
               out_ref):     # [TB, OUT]
        x = x_ref[...].astype(jnp.float32)                     # [T, TB, C]

        # ---- loop-invariant weight / bias views (one-time, off the serial chain)
        wrec = wrec_ref[...]                                   # bf16 [2G, 9G]
        g1_wih = wmat_ref[r_g1:r_g1 + C, :]                    # bf16 [C, 3G]
        fc_w0 = wmat_ref[r_fc0:r_fc0 + G, 0:Hf]                # bf16 [G, Hf] (rows H:G zero)
        fc_w1 = wmat_ref[r_fc1:r_fc1 + Hf, 0:OUT]              # bf16 [Hf, OUT]
        se_w1 = wmat_ref[r_se1:r_se1 + C, 0:RC]                # bf16 [C, RC]
        se_w2 = wmat_ref[r_se2:r_se2 + RC, 0:C]                # bf16 [RC, C]
        b1i = bias_ref[0:1, :]                                 # f32 [1, 3G]
        b2i = bias_ref[1:2, :]                                 # f32 [1, 3G]
        b1hn = bias_ref[2:3, 0:G]                              # f32 [1, G]
        b2hn = bias_ref[3:4, 0:G]                              # f32 [1, G]
        se_b1 = bias_ref[4:5, 0:RC]
        se_b2 = bias_ref[5:6, 0:C]
        fc_b0 = bias_ref[6:7, 0:Hf]
        fc_b1 = bias_ref[7:8, 0:OUT]

        # ---- SEModule on x.permute(0,2,1): AdaptiveAvgPool1d(1) over time,
        # two Conv1d(k=3, pad=1) on a length-1 signal (only the centre tap
        # contributes), ReLU + Sigmoid, then `input * s + s` broadcast over time.
        avg = jnp.mean(x, axis=0)                              # [TB, C]
        y1 = jnp.maximum(
            jnp.dot(avg.astype(jnp.bfloat16), se_w1,
                    preferred_element_type=jnp.float32) + se_b1, 0.0)
        gate = jax.nn.sigmoid(
            jnp.dot(y1.astype(jnp.bfloat16), se_w2,
                    preferred_element_type=jnp.float32) + se_b2)      # [TB, C]
        xe = x * gate[None, :, :] + gate[None, :, :]           # [T, TB, C]

        # ---- Hoisted GRU1 input projection for ALL timesteps (off the serial
        # chain): one [T*TB, C] @ [C, 3G] matmul; gates lane-aligned at 0/G/2G,
        # r/z input+hidden biases pre-summed into b1i, bhh_n kept separate.
        proj1 = (jnp.dot(xe.reshape(T * TB, C).astype(jnp.bfloat16), g1_wih,
                         preferred_element_type=jnp.float32)
                 + b1i).reshape(T, TB, 3 * G)                  # [T, TB, 3G]

        def gru_gates(pi, hh, h_prev, bhn):
            # pi = x @ Wih_gates + (bih_r+bhh_r | bih_z+bhh_z | bih_n)
            # hh = h_prev @ Whh_gates          (no bias; bhh_n added below)
            # every gate sits at its own 128-lane block -> slices are vreg picks
            rz = jax.nn.sigmoid(pi[:, :2 * G] + hh[:, :2 * G])
            r = rz[:, :G]
            z = rz[:, G:]
            n = jnp.tanh(pi[:, 2 * G:] + r * (hh[:, 2 * G:] + bhn))
            return (1.0 - z) * n + z * h_prev                  # [TB, G]

        h1 = jnp.zeros((TB, G), jnp.float32)
        h2 = jnp.zeros((TB, G), jnp.float32)
        hh1 = jnp.zeros((TB, 3 * G), jnp.float32)              # h1(-1) @ W1hh == 0

        # ---- Fused gru1 + gru2 recurrence, fully unrolled over static T.
        for t in range(T):
            h1 = gru_gates(proj1[t], hh1, h1, b1hn)
            # One MXU push per step: [h1(t) | h2(t-1)] @ block-diag RHS gives
            # hh1(t+1), proj2(t) (no bias) and hh2(t) in a single pop.
            lhs = jnp.concatenate([h1, h2], axis=-1).astype(jnp.bfloat16)  # [TB, 2G]
            fused = jnp.dot(lhs, wrec,
                            preferred_element_type=jnp.float32)           # [TB, 9G]
            hh1 = fused[:, :3 * G]
            proj2 = fused[:, 3 * G:6 * G] + b2i
            hh2 = fused[:, 6 * G:]
            h2 = gru_gates(proj2, hh2, h2, b2hn)

        # ---- Forecasting_Model (n_layers=1): Linear -> ReLU -> (Dropout: eval
        # no-op) -> Linear.  fc_w0 is row-padded to G so h2 feeds it directly.
        z0 = jnp.maximum(
            jnp.dot(h2.astype(jnp.bfloat16), fc_w0,
                    preferred_element_type=jnp.float32) + fc_b0, 0.0)
        pred = (jnp.dot(z0.astype(jnp.bfloat16), fc_w1,
                        preferred_element_type=jnp.float32) + fc_b1)
        out_ref[...] = pred.astype(out_ref.dtype)

    return kernel


def cnn_gru_forward(x, slabs, layout, cfg):
    """x: [B, T, C] (PyTorch layout). slabs: packed params. Returns [B, out_dim]."""
    B, T, C = x.shape
    TB, OUT = cfg["TB"], cfg["OUT"]
    assert B % TB == 0, "batch must be a multiple of the batch tile"
    assert T == cfg["T"] and C == cfg["C"]

    # Time-major layout so the per-step read inside the kernel is a
    # leading-axis index (wrapper-side layout plumbing, off the critical path).
    x_t = jnp.transpose(x, (1, 0, 2))                          # [T, B, C]

    wrec, wmat, biases = slabs["wrec"], slabs["wmat"], slabs["biases"]
    kernel = make_cnn_gru_kernel(cfg, layout)

    return pl.pallas_call(
        kernel,
        out_shape=jax.ShapeDtypeStruct((B, OUT), jnp.float32),
        grid=(B // TB,),                   # batch tiles; "parallel" -> both TCs on v7x
        in_specs=[
            pl.BlockSpec((T, TB, C), lambda i: (0, i, 0)),
            pl.BlockSpec(wrec.shape, lambda i: (0, 0)),        # resident across grid
            pl.BlockSpec(wmat.shape, lambda i: (0, 0)),
            pl.BlockSpec(biases.shape, lambda i: (0, 0)),
        ],
        out_specs=pl.BlockSpec((TB, OUT), lambda i: (i, 0)),
        compiler_params=pltpu.CompilerParams(
            dimension_semantics=("parallel",)),
    )(x_t, wrec, wmat, biases)


def init_params(key, n_features, gru_hid_dim, forecast_hid_dim, out_dim,
                reduction=16):
    """Raw PyTorch-style params (per-gate GRU weights), used by the reference."""
    C, H, Hf = n_features, gru_hid_dim, forecast_hid_dim
    RC = C // reduction                                        # SE reduced channels
    ks = jax.random.split(key, 16)

    def w(k, shape, scale=0.1):
        return (scale * jax.random.normal(k, shape)).astype(jnp.float32)

    return dict(
        # SEModule: fc1 = Conv1d(C, RC, k=3, pad=1), fc2 = Conv1d(RC, C, k=3, pad=1).
        # On the length-1 pooled signal only the centre tap W[:, :, 1] matters,
        # so only that tap is materialized (stored transposed).
        se_w1=w(ks[0], (C, RC)),  se_b1=w(ks[1], (1, RC)),
        se_w2=w(ks[2], (RC, C)),  se_b2=w(ks[3], (1, C)),
        # GRU1: nn.GRU(C, H) — weight_ih/hh split into (r,z,n), transposed.
        g1_wih=w(ks[4], (3, C, H)), g1_whh=w(ks[5], (3, H, H)),
        g1_bih=w(ks[6], (3, 1, H)), g1_bhh=w(ks[7], (3, 1, H)),
        # GRU2: nn.GRU(H, H)
        g2_wih=w(ks[8], (3, H, H)), g2_whh=w(ks[9], (3, H, H)),
        g2_bih=w(ks[10], (3, 1, H)), g2_bhh=w(ks[11], (3, 1, H)),
        # Forecasting_Model: Linear(H, Hf) -> ReLU -> Linear(Hf, out_dim)
        fc_w0=w(ks[12], (H, Hf)), fc_b0=w(ks[13], (1, Hf)),
        fc_w1=w(ks[14], (Hf, out_dim)), fc_b1=w(ks[15], (1, out_dim)),
    )


def pack_params(p, cfg):
    """Pack raw params into 3 slabs for the kernel.

    * wrec  (bf16 [2G, 9G]): block-diagonal fused recurrent weight.
        rows 0:H      -> W1hh gates in cols [0,3G) and W2ih gates in cols [3G,6G)
        rows G:G+H    -> W2hh gates in cols [6G,9G)
      Every gate occupies its own 128-lane block (lane-aligned slicing).
    * wmat  (bf16 [R, 3G]): g1_wih (gate-padded), fc_w0 (row-padded to G),
      fc_w1, se_w1, se_w2 at 16-aligned row offsets.
    * biases (f32 [8, 3G]): gate-padded GRU biases (r/z input+hidden pre-summed,
      bhh_n kept separate) plus SE / forecaster biases, one row each.
    """
    C, H, G = cfg["C"], cfg["H"], cfg["G"]
    RC, Hf, OUT = cfg["RC"], cfg["Hf"], cfg["OUT"]

    def gate_cols(w3, in_dim):                     # [3, in, H] -> [in, 3G]
        w = jnp.zeros((in_dim, 3 * G), jnp.float32)
        for g in range(3):
            w = w.at[:, g * G:g * G + H].set(w3[g])
        return w

    # --- fused block-diagonal recurrent weight
    wrec = jnp.zeros((2 * G, 9 * G), jnp.float32)
    for g in range(3):
        wrec = wrec.at[0:H, g * G:g * G + H].set(p["g1_whh"][g])
        wrec = wrec.at[0:H, 3 * G + g * G:3 * G + g * G + H].set(p["g2_wih"][g])
        wrec = wrec.at[G:G + H, 6 * G + g * G:6 * G + g * G + H].set(p["g2_whh"][g])

    # --- bf16 matrix slab (16-aligned row offsets, lanes from 0)
    r_g1 = 0
    r_fc0 = _align16(r_g1 + C)
    r_fc1 = _align16(r_fc0 + G)
    r_se1 = _align16(r_fc1 + Hf)
    r_se2 = _align16(r_se1 + C)
    rows = _align16(r_se2 + RC)

    wmat = jnp.zeros((rows, 3 * G), jnp.float32)
    wmat = wmat.at[r_g1:r_g1 + C, :].set(gate_cols(p["g1_wih"], C))
    wmat = wmat.at[r_fc0:r_fc0 + H, 0:Hf].set(p["fc_w0"])      # rows H:G stay zero
    wmat = wmat.at[r_fc1:r_fc1 + Hf, 0:OUT].set(p["fc_w1"])
    wmat = wmat.at[r_se1:r_se1 + C, 0:RC].set(p["se_w1"])
    wmat = wmat.at[r_se2:r_se2 + RC, 0:C].set(p["se_w2"])

    # --- f32 bias slab
    def bias_i(bih, bhh):                          # -> [3G] gate-padded
        b = jnp.zeros((3 * G,), jnp.float32)
        b = b.at[0 * G:0 * G + H].set(bih[0, 0] + bhh[0, 0])
        b = b.at[1 * G:1 * G + H].set(bih[1, 0] + bhh[1, 0])
        b = b.at[2 * G:2 * G + H].set(bih[2, 0])
        return b

    biases = jnp.zeros((8, 3 * G), jnp.float32)
    biases = biases.at[0, :].set(bias_i(p["g1_bih"], p["g1_bhh"]))
    biases = biases.at[1, :].set(bias_i(p["g2_bih"], p["g2_bhh"]))
    biases = biases.at[2, 0:H].set(p["g1_bhh"][2, 0])
    biases = biases.at[3, 0:H].set(p["g2_bhh"][2, 0])
    biases = biases.at[4, 0:RC].set(p["se_b1"][0])
    biases = biases.at[5, 0:C].set(p["se_b2"][0])
    biases = biases.at[6, 0:Hf].set(p["fc_b0"][0])
    biases = biases.at[7, 0:OUT].set(p["fc_b1"][0])

    slabs = dict(wrec=wrec.astype(jnp.bfloat16),
                 wmat=wmat.astype(jnp.bfloat16),
                 biases=biases)
    layout = dict(r_g1=r_g1, r_fc0=r_fc0, r_fc1=r_fc1, r_se1=r_se1, r_se2=r_se2)
    return slabs, layout


def reference_forward(x, p):
    """Pure-JAX f32 reference of the same forward, for a numerical sanity check."""
    xf = x.astype(jnp.float32)
    avg = jnp.mean(xf, axis=1)
    y1 = jnp.maximum(avg @ p["se_w1"] + p["se_b1"], 0.0)
    gate = jax.nn.sigmoid(y1 @ p["se_w2"] + p["se_b2"])
    x_e = xf * gate[:, None, :] + gate[:, None, :]

    def gru(seq, wih, whh, bih, bhh):
        B = seq.shape[0]
        H = whh.shape[-1]

        def cell(h, x_t):
            i_r = x_t @ wih[0] + bih[0]
            i_z = x_t @ wih[1] + bih[1]
            i_n = x_t @ wih[2] + bih[2]
            h_r = h @ whh[0] + bhh[0]
            h_z = h @ whh[1] + bhh[1]
            h_n = h @ whh[2] + bhh[2]
            r = jax.nn.sigmoid(i_r + h_r)
            z = jax.nn.sigmoid(i_z + h_z)
            n = jnp.tanh(i_n + r * h_n)
            h_new = (1.0 - z) * n + z * h
            return h_new, h_new

        h_last, outs = lax.scan(cell, jnp.zeros((B, H), jnp.float32),
                                jnp.swapaxes(seq, 0, 1))
        return jnp.swapaxes(outs, 0, 1), h_last

    out1, _ = gru(x_e, p["g1_wih"], p["g1_whh"], p["g1_bih"], p["g1_bhh"])
    _, h_end = gru(out1, p["g2_wih"], p["g2_whh"], p["g2_bih"], p["g2_bhh"])
    z = jnp.maximum(h_end @ p["fc_w0"] + p["fc_b0"], 0.0)
    return z @ p["fc_w1"] + p["fc_b1"]


if __name__ == "__main__":
    key = jax.random.PRNGKey(0)
    kx, kp = jax.random.split(key)

    # n_features is pinned to 38 by Action()'s hard-coded in_channels.
    # B=16 fills all 8 sublanes per batch tile and gives 2 parallel grid steps
    # (both TensorCores on v7x; harmless elsewhere).
    B, T, C = 16, 8, 38
    H, Hf, OUT = 32, 32, 4
    G = 128                                   # per-gate lane stride (vreg-aligned)
    cfg = dict(T=T, TB=8, C=C, H=H, G=G, RC=C // 16, Hf=Hf, OUT=OUT)

    x = jax.random.normal(kx, (B, T, C), dtype=jnp.float32)
    params = init_params(kp, n_features=C, gru_hid_dim=H,
                         forecast_hid_dim=Hf, out_dim=OUT)
    slabs, layout = pack_params(params, cfg)

    pred = jax.block_until_ready(cnn_gru_forward(x, slabs, layout, cfg))
    ref = jax.block_until_ready(reference_forward(x, params))

    assert pred.shape == (B, OUT)
    assert bool(jnp.all(jnp.isfinite(pred)))
    # Kernel uses bf16 MXU operands throughout (f32 accumulation) per the perf
    # review; tolerance is modestly relaxed vs. the pure-f32 reference.
    max_err = float(jnp.max(jnp.abs(pred - ref)))
    assert bool(jnp.allclose(pred, ref, atol=3e-2, rtol=3e-2)), max_err
    print("KERNEL_OK")
</pallas_src>

<mosaic_0001>
module attributes {stable_mosaic.version = 11 : i64} {
  func.func @kernel(%arg0: i32, %arg1: memref<8x8x38xf32, #tpu.memory_space<vmem>>, %arg2: memref<256x1152xbf16, #tpu.memory_space<vmem>>, %arg3: memref<272x384xbf16, #tpu.memory_space<vmem>>, %arg4: memref<8x384xf32, #tpu.memory_space<vmem>>, %arg5: memref<8x4xf32, #tpu.memory_space<vmem>>) attributes {dimension_semantics = [#tpu.dimension_semantics<parallel>], iteration_bounds = array<i64: 2>, scalar_prefetch = 0 : i64, scratch_operands = 0 : i64, tpu.core_type = #tpu.core_type<tc>, window_params = [{transform_indices = @transform_0, window_bounds = array<i64: 8, 8, 38>}, {pipeline_mode = #tpu.pipeline_mode<synchronous>, transform_indices = @transform_1, window_bounds = array<i64: 256, 1152>}, {pipeline_mode = #tpu.pipeline_mode<synchronous>, transform_indices = @transform_2, window_bounds = array<i64: 272, 384>}, {pipeline_mode = #tpu.pipeline_mode<synchronous>, transform_indices = @transform_3, window_bounds = array<i64: 8, 384>}, {transform_indices = @transform_4, window_bounds = array<i64: 8, 4>}]} {
    %c0 = arith.constant 0 : index
    %c0_0 = arith.constant 0 : index
    %c0_1 = arith.constant 0 : index
    %0 = vector.load %arg1[%c0, %c0_0, %c0_1] : memref<8x8x38xf32, #tpu.memory_space<vmem>>, vector<8x8x38xf32>
    %c0_2 = arith.constant 0 : index
    %c0_3 = arith.constant 0 : index
    %1 = vector.load %arg2[%c0_2, %c0_3] : memref<256x1152xbf16, #tpu.memory_space<vmem>>, vector<256x1152xbf16>
    %c0_4 = arith.constant 0 : index
    %c0_5 = arith.constant 0 : index
    %2 = vector.load %arg3[%c0_4, %c0_5] : memref<272x384xbf16, #tpu.memory_space<vmem>>, vector<38x384xbf16>
    %c48 = arith.constant 48 : index
    %c0_6 = arith.constant 0 : index
    %3 = vector.load %arg3[%c48, %c0_6] : memref<272x384xbf16, #tpu.memory_space<vmem>>, vector<128x32xbf16>
    %c176 = arith.constant 176 : index
    %c0_7 = arith.constant 0 : index
    %4 = vector.load %arg3[%c176, %c0_7] : memref<272x384xbf16, #tpu.memory_space<vmem>>, vector<32x4xbf16>
    %c208 = arith.constant 208 : index
    %c0_8 = arith.constant 0 : index
    %5 = vector.load %arg3[%c208, %c0_8] : memref<272x384xbf16, #tpu.memory_space<vmem>>, vector<38x2xbf16>
    %c256 = arith.constant 256 : index
    %c0_9 = arith.constant 0 : index
    %6 = vector.load %arg3[%c256, %c0_9] : memref<272x384xbf16, #tpu.memory_space<vmem>>, vector<2x38xbf16>
    %c0_10 = arith.constant 0 : index
    %c0_11 = arith.constant 0 : index
    %7 = vector.load %arg4[%c0_10, %c0_11] : memref<8x384xf32, #tpu.memory_space<vmem>>, vector<1x384xf32>
    %c1 = arith.constant 1 : index
    %c0_12 = arith.constant 0 : index
    %8 = vector.load %arg4[%c1, %c0_12] : memref<8x384xf32, #tpu.memory_space<vmem>>, vector<1x384xf32>
    %c2 = arith.constant 2 : index
    %c0_13 = arith.constant 0 : index
    %9 = vector.load %arg4[%c2, %c0_13] : memref<8x384xf32, #tpu.memory_space<vmem>>, vector<1x128xf32>
    %c3 = arith.constant 3 : index
    %c0_14 = arith.constant 0 : index
    %10 = vector.load %arg4[%c3, %c0_14] : memref<8x384xf32, #tpu.memory_space<vmem>>, vector<1x128xf32>
    %c4 = arith.constant 4 : index
    %c0_15 = arith.constant 0 : index
    %11 = vector.load %arg4[%c4, %c0_15] : memref<8x384xf32, #tpu.memory_space<vmem>>, vector<1x2xf32>
    %c5 = arith.constant 5 : index
    %c0_16 = arith.constant 0 : index
    %12 = vector.load %arg4[%c5, %c0_16] : memref<8x384xf32, #tpu.memory_space<vmem>>, vector<1x38xf32>
    %c6 = arith.constant 6 : index
    %c0_17 = arith.constant 0 : index
    %13 = vector.load %arg4[%c6, %c0_17] : memref<8x384xf32, #tpu.memory_space<vmem>>, vector<1x32xf32>
    %c7 = arith.constant 7 : index
    %c0_18 = arith.constant 0 : index
    %14 = vector.load %arg4[%c7, %c0_18] : memref<8x384xf32, #tpu.memory_space<vmem>>, vector<1x4xf32>
    %cst = arith.constant dense<0.000000e+00> : vector<8x38xf32>
    %15 = vector.multi_reduction <add>, %0, %cst [0] : vector<8x8x38xf32> to vector<8x38xf32>
    %cst_19 = arith.constant 8.000000e+00 : f32
    %16 = vector.broadcast %cst_19 : f32 to vector<8x38xf32>
    %17 = arith.divf %15, %16 : vector<8x38xf32>
    %18 = arith.truncf %17 : vector<8x38xf32> to vector<8x38xbf16>
    %cst_20 = arith.constant dense<0.000000e+00> : vector<8x2xf32>
    %19 = tpu.matmul %18, %5, %cst_20 {dimension_numbers = #tpu.dot_dimension_numbers<[1], [0], [0], [1], [0, 0, 1, 1], [], []>} : vector<8x38xbf16>, vector<38x2xbf16>, vector<8x2xf32> -> vector<8x2xf32>
    %20 = vector.broadcast %11 : vector<1x2xf32> to vector<8x2xf32>
    %21 = arith.addf %19, %20 : vector<8x2xf32>
    %cst_21 = arith.constant 0.000000e+00 : f32
    %22 = vector.broadcast %cst_21 : f32 to vector<8x2xf32>
    %23 = arith.maximumf %21, %22 : vector<8x2xf32>
    %24 = arith.truncf %23 : vector<8x2xf32> to vector<8x2xbf16>
    %cst_22 = arith.constant dense<0.000000e+00> : vector<8x38xf32>
    %25 = tpu.matmul %24, %6, %cst_22 {dimension_numbers = #tpu.dot_dimension_numbers<[1], [0], [0], [1], [0, 0, 1, 1], [], []>} : vector<8x2xbf16>, vector<2x38xbf16>, vector<8x38xf32> -> vector<8x38xf32>
    %26 = vector.broadcast %12 : vector<1x38xf32> to vector<8x38xf32>
    %27 = arith.addf %25, %26 : vector<8x38xf32>
    %28 = arith.negf %27 : vector<8x38xf32>
    %29 = math.exp %28 : vector<8x38xf32>
    %cst_23 = arith.constant 1.000000e+00 : f32
    %30 = vector.broadcast %cst_23 : f32 to vector<8x38xf32>
    %31 = arith.addf %30, %29 : vector<8x38xf32>
    %32 = arith.divf %30, %31 : vector<8x38xf32>
    %33 = vector.shape_cast %32 : vector<8x38xf32> to vector<1x8x38xf32>
    %34 = vector.broadcast %33 : vector<1x8x38xf32> to vector<8x8x38xf32>
    %35 = arith.mulf %0, %34 : vector<8x8x38xf32>
    %36 = vector.shape_cast %32 : vector<8x38xf32> to vector<1x8x38xf32>
    %37 = vector.broadcast %36 : vector<1x8x38xf32> to vector<8x8x38xf32>
    %38 = arith.addf %35, %37 : vector<8x8x38xf32>
    %39 = vector.shape_cast %38 : vector<8x8x38xf32> to vector<64x38xf32>
    %40 = arith.truncf %39 : vector<64x38xf32> to vector<64x38xbf16>
    %cst_24 = arith.constant dense<0.000000e+00> : vector<64x384xf32>
    %41 = tpu.matmul %40, %2, %cst_24 {dimension_numbers = #tpu.dot_dimension_numbers<[1], [0], [0], [1], [0, 0, 1, 1], [], []>} : vector<64x38xbf16>, vector<38x384xbf16>, vector<64x384xf32> -> vector<64x384xf32>
    %42 = vector.broadcast %7 : vector<1x384xf32> to vector<64x384xf32>
    %43 = arith.addf %41, %42 : vector<64x384xf32>
    %44 = vector.shape_cast %43 : vector<64x384xf32> to vector<8x8x384xf32>
    %cst_25 = arith.constant 0.000000e+00 : f32
    %45 = vector.broadcast %cst_25 : f32 to vector<8x128xf32>
    %cst_26 = arith.constant 0.000000e+00 : f32
    %46 = vector.broadcast %cst_26 : f32 to vector<8x128xf32>
    %cst_27 = arith.constant 0.000000e+00 : f32
    %47 = vector.broadcast %cst_27 : f32 to vector<8x384xf32>
    %48 = vector.extract_strided_slice %44 {offsets = [0, 0, 0], sizes = [1, 8, 384], strides = [1, 1, 1]} : vector<8x8x384xf32> to vector<1x8x384xf32>
    %49 = vector.shape_cast %48 : vector<1x8x384xf32> to vector<8x384xf32>
    %50 = vector.extract_strided_slice %49 {offsets = [0, 0], sizes = [8, 256], strides = [1, 1]} : vector<8x384xf32> to vector<8x256xf32>
    %51 = vector.extract_strided_slice %47 {offsets = [0, 0], sizes = [8, 256], strides = [1, 1]} : vector<8x384xf32> to vector<8x256xf32>
    %52 = arith.addf %50, %51 : vector<8x256xf32>
    %53 = arith.negf %52 : vector<8x256xf32>
    %54 = math.exp %53 : vector<8x256xf32>
    %cst_28 = arith.constant 1.000000e+00 : f32
    %55 = vector.broadcast %cst_28 : f32 to vector<8x256xf32>
    %56 = arith.addf %55, %54 : vector<8x256xf32>
    %57 = arith.divf %55, %56 : vector<8x256xf32>
    %58 = vector.extract_strided_slice %57 {offsets = [0, 0], sizes = [8, 128], strides = [1, 1]} : vector<8x256xf32> to vector<8x128xf32>
    %59 = vector.extract_strided_slice %57 {offsets = [0, 128], sizes = [8, 128], strides = [1, 1]} : vector<8x256xf32> to vector<8x128xf32>
    %60 = vector.extract_strided_slice %49 {offsets = [0, 256], sizes = [8, 128], strides = [1, 1]} : vector<8x384xf32> to vector<8x128xf32>
    %61 = vector.extract_strided_slice %47 {offsets = [0, 256], sizes = [8, 128], strides = [1, 1]} : vector<8x384xf32> to vector<8x128xf32>
    %62 = vector.broadcast %9 : vector<1x128xf32> to vector<8x128xf32>
    %63 = arith.addf %61, %62 : vector<8x128xf32>
    %64 = arith.mulf %58, %63 : vector<8x128xf32>
    %65 = arith.addf %60, %64 : vector<8x128xf32>
    %66 = math.tanh %65 : vector<8x128xf32>
    %cst_29 = arith.constant 1.000000e+00 : f32
    %67 = vector.broadcast %cst_29 : f32 to vector<8x128xf32>
    %68 = arith.subf %67, %59 : vector<8x128xf32>
    %69 = arith.mulf %68, %66 : vector<8x128xf32>
    %70 = arith.mulf %59, %45 : vector<8x128xf32>
    %71 = arith.addf %69, %70 : vector<8x128xf32>
    %72 = tpu.concatenate %71, %46 in 1 : vector<8x128xf32>, vector<8x128xf32> -> vector<8x256xf32>
    %73 = arith.truncf %72 : vector<8x256xf32> to vector<8x256xbf16>
    %cst_30 = arith.constant dense<0.000000e+00> : vector<8x1152xf32>
    %74 = tpu.matmul %73, %1, %cst_30 {dimension_numbers = #tpu.dot_dimension_numbers<[1], [0], [0], [1], [0, 0, 1, 1], [], []>} : vector<8x256xbf16>, vector<256x1152xbf16>, vector<8x1152xf32> -> vector<8x1152xf32>
    %75 = vector.extract_strided_slice %74 {offsets = [0, 0], sizes = [8, 384], strides = [1, 1]} : vector<8x1152xf32> to vector<8x384xf32>
    %76 = vector.extract_strided_slice %74 {offsets = [0, 384], sizes = [8, 384], strides = [1, 1]} : vector<8x1152xf32> to vector<8x384xf32>
    %77 = vector.broadcast %8 : vector<1x384xf32> to vector<8x384xf32>
    %78 = arith.addf %76, %77 : vector<8x384xf32>
    %79 = vector.extract_strided_slice %74 {offsets = [0, 768], sizes = [8, 384], strides = [1, 1]} : vector<8x1152xf32> to vector<8x384xf32>
    %80 = vector.extract_strided_slice %78 {offsets = [0, 0], sizes = [8, 256], strides = [1, 1]} : vector<8x384xf32> to vector<8x256xf32>
    %81 = vector.extract_strided_slice %79 {offsets = [0, 0], sizes = [8, 256], strides = [1, 1]} : vector<8x384xf32> to vector<8x256xf32>
    %82 = arith.addf %80, %81 : vector<8x256xf32>
    %83 = arith.negf %82 : vector<8x256xf32>
    %84 = math.exp %83 : vector<8x256xf32>
    %cst_31 = arith.constant 1.000000e+00 : f32
    %85 = vector.broadcast %cst_31 : f32 to vector<8x256xf32>
    %86 = arith.addf %85, %84 : vector<8x256xf32>
    %87 = arith.divf %85, %86 : vector<8x256xf32>
    %88 = vector.extract_strided_slice %87 {offsets = [0, 0], sizes = [8, 128], strides = [1, 1]} : vector<8x256xf32> to vector<8x128xf32>
    %89 = vector.extract_strided_slice %87 {offsets = [0, 128], sizes = [8, 128], strides = [1, 1]} : vector<8x256xf32> to vector<8x128xf32>
    %90 = vector.extract_strided_slice %78 {offsets = [0, 256], sizes = [8, 128], strides = [1, 1]} : vector<8x384xf32> to vector<8x128xf32>
    %91 = vector.extract_strided_slice %79 {offsets = [0, 256], sizes = [8, 128], strides = [1, 1]} : vector<8x384xf32> to vector<8x128xf32>
    %92 = vector.broadcast %10 : vector<1x128xf32> to vector<8x128xf32>
    %93 = arith.addf %91, %92 : vector<8x128xf32>
    %94 = arith.mulf %88, %93 : vector<8x128xf32>
    %95 = arith.addf %90, %94 : vector<8x128xf32>
    %96 = math.tanh %95 : vector<8x128xf32>
    %cst_32 = arith.constant 1.000000e+00 : f32
    %97 = vector.broadcast %cst_32 : f32 to vector<8x128xf32>
    %98 = arith.subf %97, %89 : vector<8x128xf32>
    %99 = arith.mulf %98, %96 : vector<8x128xf32>
    %100 = arith.mulf %89, %46 : vector<8x128xf32>
    %101 = arith.addf %99, %100 : vector<8x128xf32>
    %102 = vector.extract_strided_slice %44 {offsets = [1, 0, 0], sizes = [1, 8, 384], strides = [1, 1, 1]} : vector<8x8x384xf32> to vector<1x8x384xf32>
    %103 = vector.shape_cast %102 : vector<1x8x384xf32> to vector<8x384xf32>
    %104 = vector.extract_strided_slice %103 {offsets = [0, 0], sizes = [8, 256], strides = [1, 1]} : vector<8x384xf32> to vector<8x256xf32>
    %105 = vector.extract_strided_slice %75 {offsets = [0, 0], sizes = [8, 256], strides = [1, 1]} : vector<8x384xf32> to vector<8x256xf32>
    %106 = arith.addf %104, %105 : vector<8x256xf32>
    %107 = arith.negf %106 : vector<8x256xf32>
    %108 = math.exp %107 : vector<8x256xf32>
    %cst_33 = arith.constant 1.000000e+00 : f32
    %109 = vector.broadcast %cst_33 : f32 to vector<8x256xf32>
    %110 = arith.addf %109, %108 : vector<8x256xf32>
    %111 = arith.divf %109, %110 : vector<8x256xf32>
    %112 = vector.extract_strided_slice %111 {offsets = [0, 0], sizes = [8, 128], strides = [1, 1]} : vector<8x256xf32> to vector<8x128xf32>
    %113 = vector.extract_strided_slice %111 {offsets = [0, 128], sizes = [8, 128], strides = [1, 1]} : vector<8x256xf32> to vector<8x128xf32>
    %114 = vector.extract_strided_slice %103 {offsets = [0, 256], sizes = [8, 128], strides = [1, 1]} : vector<8x384xf32> to vector<8x128xf32>
    %115 = vector.extract_strided_slice %75 {offsets = [0, 256], sizes = [8, 128], strides = [1, 1]} : vector<8x384xf32> to vector<8x128xf32>
    %116 = vector.broadcast %9 : vector<1x128xf32> to vector<8x128xf32>
    %117 = arith.addf %115, %116 : vector<8x128xf32>
    %118 = arith.mulf %112, %117 : vector<8x128xf32>
    %119 = arith.addf %114, %118 : vector<8x128xf32>
    %120 = math.tanh %119 : vector<8x128xf32>
    %cst_34 = arith.constant 1.000000e+00 : f32
    %121 = vector.broadcast %cst_34 : f32 to vector<8x128xf32>
    %122 = arith.subf %121, %113 : vector<8x128xf32>
    %123 = arith.mulf %122, %120 : vector<8x128xf32>
    %124 = arith.mulf %113, %71 : vector<8x128xf32>
    %125 = arith.addf %123, %124 : vector<8x128xf32>
    %126 = tpu.concatenate %125, %101 in 1 : vector<8x128xf32>, vector<8x128xf32> -> vector<8x256xf32>
    %127 = arith.truncf %126 : vector<8x256xf32> to vector<8x256xbf16>
    %cst_35 = arith.constant dense<0.000000e+00> : vector<8x1152xf32>
    %128 = tpu.matmul %127, %1, %cst_35 {dimension_numbers = #tpu.dot_dimension_numbers<[1], [0], [0], [1], [0, 0, 1, 1], [], []>} : vector<8x256xbf16>, vector<256x1152xbf16>, vector<8x1152xf32> -> vector<8x1152xf32>
    %129 = vector.extract_strided_slice %128 {offsets = [0, 0], sizes = [8, 384], strides = [1, 1]} : vector<8x1152xf32> to vector<8x384xf32>
    %130 = vector.extract_strided_slice %128 {offsets = [0, 384], sizes = [8, 384], strides = [1, 1]} : vector<8x1152xf32> to vector<8x384xf32>
    %131 = vector.broadcast %8 : vector<1x384xf32> to vector<8x384xf32>
    %132 = arith.addf %130, %131 : vector<8x384xf32>
    %133 = vector.extract_strided_slice %128 {offsets = [0, 768], sizes = [8, 384], strides = [1, 1]} : vector<8x1152xf32> to vector<8x384xf32>
    %134 = vector.extract_strided_slice %132 {offsets = [0, 0], sizes = [8, 256], strides = [1, 1]} : vector<8x384xf32> to vector<8x256xf32>
    %135 = vector.extract_strided_slice %133 {offsets = [0, 0], sizes = [8, 256], strides = [1, 1]} : vector<8x384xf32> to vector<8x256xf32>
    %136 = arith.addf %134, %135 : vector<8x256xf32>
    %137 = arith.negf %136 : vector<8x256xf32>
    %138 = math.exp %137 : vector<8x256xf32>
    %cst_36 = arith.constant 1.000000e+00 : f32
    %139 = vector.broadcast %cst_36 : f32 to vector<8x256xf32>
    %140 = arith.addf %139, %138 : vector<8x256xf32>
    %141 = arith.divf %139, %140 : vector<8x256xf32>
    %142 = vector.extract_strided_slice %141 {offsets = [0, 0], sizes = [8, 128], strides = [1, 1]} : vector<8x256xf32> to vector<8x128xf32>
    %143 = vector.extract_strided_slice %141 {offsets = [0, 128], sizes = [8, 128], strides = [1, 1]} : vector<8x256xf32> to vector<8x128xf32>
    %144 = vector.extract_strided_slice %132 {offsets = [0, 256], sizes = [8, 128], strides = [1, 1]} : vector<8x384xf32> to vector<8x128xf32>
    %145 = vector.extract_strided_slice %133 {offsets = [0, 256], sizes = [8, 128], strides = [1, 1]} : vector<8x384xf32> to vector<8x128xf32>
    %146 = vector.broadcast %10 : vector<1x128xf32> to vector<8x128xf32>
    %147 = arith.addf %145, %146 : vector<8x128xf32>
    %148 = arith.mulf %142, %147 : vector<8x128xf32>
    %149 = arith.addf %144, %148 : vector<8x128xf32>
    %150 = math.tanh %149 : vector<8x128xf32>
    %cst_37 = arith.constant 1.000000e+00 : f32
    %151 = vector.broadcast %cst_37 : f32 to vector<8x128xf32>
    %152 = arith.subf %151, %143 : vector<8x128xf32>
    %153 = arith.mulf %152, %150 : vector<8x128xf32>
    %154 = arith.mulf %143, %101 : vector<8x128xf32>
    %155 = arith.addf %153, %154 : vector<8x128xf32>
    %156 = vector.extract_strided_slice %44 {offsets = [2, 0, 0], sizes = [1, 8, 384], strides = [1, 1, 1]} : vector<8x8x384xf32> to vector<1x8x384xf32>
    %157 = vector.shape_cast %156 : vector<1x8x384xf32> to vector<8x384xf32>
    %158 = vector.extract_strided_slice %157 {offsets = [0, 0], sizes = [8, 256], strides = [1, 1]} : vector<8x384xf32> to vector<8x256xf32>
    %159 = vector.extract_strided_slice %129 {offsets = [0, 0], sizes = [8, 256], strides = [1, 1]} : vector<8x384xf32> to vector<8x256xf32>
    %160 = arith.addf %158, %159 : vector<8x256xf32>
    %161 = arith.negf %160 : vector<8x256xf32>
    %162 = math.exp %161 : vector<8x256xf32>
    %cst_38 = arith.constant 1.000000e+00 : f32
    %163 = vector.broadcast %cst_38 : f32 to vector<8x256xf32>
    %164 = arith.addf %163, %162 : vector<8x256xf32>
    %165 = arith.divf %163, %164 : vector<8x256xf32>
    %166 = vector.extract_strided_slice %165 {offsets = [0, 0], sizes = [8, 128], strides = [1, 1]} : vector<8x256xf32> to vector<8x128xf32>
    %167 = vector.extract_strided_slice %165 {offsets = [0, 128], sizes = [8, 128], strides = [1, 1]} : vector<8x256xf32> to vector<8x128xf32>
    %168 = vector.extract_strided_slice %157 {offsets = [0, 256], sizes = [8, 128], strides = [1, 1]} : vector<8x384xf32> to vector<8x128xf32>
    %169 = vector.extract_strided_slice %129 {offsets = [0, 256], sizes = [8, 128], strides = [1, 1]} : vector<8x384xf32> to vector<8x128xf32>
    %170 = vector.broadcast %9 : vector<1x128xf32> to vector<8x128xf32>
    %171 = arith.addf %169, %170 : vector<8x128xf32>
    %172 = arith.mulf %166, %171 : vector<8x128xf32>
    %173 = arith.addf %168, %172 : vector<8x128xf32>
    %174 = math.tanh %173 : vector<8x128xf32>
    %cst_39 = arith.constant 1.000000e+00 : f32
    %175 = vector.broadcast %cst_39 : f32 to vector<8x128xf32>
    %176 = arith.subf %175, %167 : vector<8x128xf32>
    %177 = arith.mulf %176, %174 : vector<8x128xf32>
    %178 = arith.mulf %167, %125 : vector<8x128xf32>
    %179 = arith.addf %177, %178 : vector<8x128xf32>
    %180 = tpu.concatenate %179, %155 in 1 : vector<8x128xf32>, vector<8x128xf32> -> vector<8x256xf32>
    %181 = arith.truncf %180 : vector<8x256xf32> to vector<8x256xbf16>
    %cst_40 = arith.constant dense<0.000000e+00> : vector<8x1152xf32>
    %182 = tpu.matmul %181, %1, %cst_40 {dimension_numbers = #tpu.dot_dimension_numbers<[1], [0], [0], [1], [0, 0, 1, 1], [], []>} : vector<8x256xbf16>, vector<256x1152xbf16>, vector<8x1152xf32> -> vector<8x1152xf32>
    %183 = vector.extract_strided_slice %182 {offsets = [0, 0], sizes = [8, 384], strides = [1, 1]} : vector<8x1152xf32> to vector<8x384xf32>
    %184 = vector.extract_strided_slice %182 {offsets = [0, 384], sizes = [8, 384], strides = [1, 1]} : vector<8x1152xf32> to vector<8x384xf32>
    %185 = vector.broadcast %8 : vector<1x384xf32> to vector<8x384xf32>
    %186 = arith.addf %184, %185 : vector<8x384xf32>
    %187 = vector.extract_strided_slice %182 {offsets = [0, 768], sizes = [8, 384], strides = [1, 1]} : vector<8x1152xf32> to vector<8x384xf32>
    %188 = vector.extract_strided_slice %186 {offsets = [0, 0], sizes = [8, 256], strides = [1, 1]} : vector<8x384xf32> to vector<8x256xf32>
    %189 = vector.extract_strided_slice %187 {offsets = [0, 0], sizes = [8, 256], strides = [1, 1]} : vector<8x384xf32> to vector<8x256xf32>
    %190 = arith.addf %188, %189 : vector<8x256xf32>
    %191 = arith.negf %190 : vector<8x256xf32>
    %192 = math.exp %191 : vector<8x256xf32>
    %cst_41 = arith.constant 1.000000e+00 : f32
    %193 = vector.broadcast %cst_41 : f32 to vector<8x256xf32>
    %194 = arith.addf %193, %192 : vector<8x256xf32>
    %195 = arith.divf %193, %194 : vector<8x256xf32>
    %196 = vector.extract_strided_slice %195 {offsets = [0, 0], sizes = [8, 128], strides = [1, 1]} : vector<8x256xf32> to vector<8x128xf32>
    %197 = vector.extract_strided_slice %195 {offsets = [0, 128], sizes = [8, 128], strides = [1, 1]} : vector<8x256xf32> to vector<8x128xf32>
    %198 = vector.extract_strided_slice %186 {offsets = [0, 256], sizes = [8, 128], strides = [1, 1]} : vector<8x384xf32> to vector<8x128xf32>
    %199 = vector.extract_strided_slice %187 {offsets = [0, 256], sizes = [8, 128], strides = [1, 1]} : vector<8x384xf32> to vector<8x128xf32>
    %200 = vector.broadcast %10 : vector<1x128xf32> to vector<8x128xf32>
    %201 = arith.addf %199, %200 : vector<8x128xf32>
    %202 = arith.mulf %196, %201 : vector<8x128xf32>
    %203 = arith.addf %198, %202 : vector<8x128xf32>
    %204 = math.tanh %203 : vector<8x128xf32>
    %cst_42 = arith.constant 1.000000e+00 : f32
    %205 = vector.broadcast %cst_42 : f32 to vector<8x128xf32>
    %206 = arith.subf %205, %197 : vector<8x128xf32>
    %207 = arith.mulf %206, %204 : vector<8x128xf32>
    %208 = arith.mulf %197, %155 : vector<8x128xf32>
    %209 = arith.addf %207, %208 : vector<8x128xf32>
    %210 = vector.extract_strided_slice %44 {offsets = [3, 0, 0], sizes = [1, 8, 384], strides = [1, 1, 1]} : vector<8x8x384xf32> to vector<1x8x384xf32>
    %211 = vector.shape_cast %210 : vector<1x8x384xf32> to vector<8x384xf32>
    %212 = vector.extract_strided_slice %211 {offsets = [0, 0], sizes = [8, 256], strides = [1, 1]} : vector<8x384xf32> to vector<8x256xf32>
    %213 = vector.extract_strided_slice %183 {offsets = [0, 0], sizes = [8, 256], strides = [1, 1]} : vector<8x384xf32> to vector<8x256xf32>
    %214 = arith.addf %212, %213 : vector<8x256xf32>
    %215 = arith.negf %214 : vector<8x256xf32>
    %216 = math.exp %215 : vector<8x256xf32>
    %cst_43 = arith.constant 1.000000e+00 : f32
    %217 = vector.broadcast %cst_43 : f32 to vector<8x256xf32>
    %218 = arith.addf %217, %216 : vector<8x256xf32>
    %219 = arith.divf %217, %218 : vector<8x256xf32>
    %220 = vector.extract_strided_slice %219 {offsets = [0, 0], sizes = [8, 128], strides = [1, 1]} : vector<8x256xf32> to vector<8x128xf32>
    %221 = vector.extract_strided_slice %219 {offsets = [0, 128], sizes = [8, 128], strides = [1, 1]} : vector<8x256xf32> to vector<8x128xf32>
    %222 = vector.extract_strided_slice %211 {offsets = [0, 256], sizes = [8, 128], strides = [1, 1]} : vector<8x384xf32> to vector<8x128xf32>
    %223 = vector.extract_strided_slice %183 {offsets = [0, 256], sizes = [8, 128], strides = [1, 1]} : vector<8x384xf32> to vector<8x128xf32>
    %224 = vector.broadcast %9 : vector<1x128xf32> to vector<8x128xf32>
    %225 = arith.addf %223, %224 : vector<8x128xf32>
    %226 = arith.mulf %220, %225 : vector<8x128xf32>
    %227 = arith.addf %222, %226 : vector<8x128xf32>
    %228 = math.tanh %227 : vector<8x128xf32>
    %cst_44 = arith.constant 1.000000e+00 : f32
    %229 = vector.broadcast %cst_44 : f32 to vector<8x128xf32>
    %230 = arith.subf %229, %221 : vector<8x128xf32>
    %231 = arith.mulf %230, %228 : vector<8x128xf32>
    %232 = arith.mulf %221, %179 : vector<8x128xf32>
    %233 = arith.addf %231, %232 : vector<8x128xf32>
    %234 = tpu.concatenate %233, %209 in 1 : vector<8x128xf32>, vector<8x128xf32> -> vector<8x256xf32>
    %235 = arith.truncf %234 : vector<8x256xf32> to vector<8x256xbf16>
    %cst_45 = arith.constant dense<0.000000e+00> : vector<8x1152xf32>
    %236 = tpu.matmul %235, %1, %cst_45 {dimension_numbers = #tpu.dot_dimension_numbers<[1], [0], [0], [1], [0, 0, 1, 1], [], []>} : vector<8x256xbf16>, vector<256x1152xbf16>, vector<8x1152xf32> -> vector<8x1152xf32>
    %237 = vector.extract_strided_slice %236 {offsets = [0, 0], sizes = [8, 384], strides = [1, 1]} : vector<8x1152xf32> to vector<8x384xf32>
    %238 = vector.extract_strided_slice %236 {offsets = [0, 384], sizes = [8, 384], strides = [1, 1]} : vector<8x1152xf32> to vector<8x384xf32>
    %239 = vector.broadcast %8 : vector<1x384xf32> to vector<8x384xf32>
    %240 = arith.addf %238, %239 : vector<8x384xf32>
    %241 = vector.extract_strided_slice %236 {offsets = [0, 768], sizes = [8, 384], strides = [1, 1]} : vector<8x1152xf32> to vector<8x384xf32>
    %242 = vector.extract_strided_slice %240 {offsets = [0, 0], sizes = [8, 256], strides = [1, 1]} : vector<8x384xf32> to vector<8x256xf32>
    %243 = vector.extract_strided_slice %241 {offsets = [0, 0], sizes = [8, 256], strides = [1, 1]} : vector<8x384xf32> to vector<8x256xf32>
    %244 = arith.addf %242, %243 : vector<8x256xf32>
    %245 = arith.negf %244 : vector<8x256xf32>
    %246 = math.exp %245 : vector<8x256xf32>
    %cst_46 = arith.constant 1.000000e+00 : f32
    %247 = vector.broadcast %cst_46 : f32 to vector<8x256xf32>
    %248 = arith.addf %247, %246 : vector<8x256xf32>
    %249 = arith.divf %247, %248 : vector<8x256xf32>
    %250 = vector.extract_strided_slice %249 {offsets = [0, 0], sizes = [8, 128], strides = [1, 1]} : vector<8x256xf32> to vector<8x128xf32>
    %251 = vector.extract_strided_slice %249 {offsets = [0, 128], sizes = [8, 128], strides = [1, 1]} : vector<8x256xf32> to vector<8x128xf32>
    %252 = vector.extract_strided_slice %240 {offsets = [0, 256], sizes = [8, 128], strides = [1, 1]} : vector<8x384xf32> to vector<8x128xf32>
    %253 = vector.extract_strided_slice %241 {offsets = [0, 256], sizes = [8, 128], strides = [1, 1]} : vector<8x384xf32> to vector<8x128xf32>
    %254 = vector.broadcast %10 : vector<1x128xf32> to vector<8x128xf32>
    %255 = arith.addf %253, %254 : vector<8x128xf32>
    %256 = arith.mulf %250, %255 : vector<8x128xf32>
    %257 = arith.addf %252, %256 : vector<8x128xf32>
    %258 = math.tanh %257 : vector<8x128xf32>
    %cst_47 = arith.constant 1.000000e+00 : f32
    %259 = vector.broadcast %cst_47 : f32 to vector<8x128xf32>
    %260 = arith.subf %259, %251 : vector<8x128xf32>
    %261 = arith.mulf %260, %258 : vector<8x128xf32>
    %262 = arith.mulf %251, %209 : vector<8x128xf32>
    %263 = arith.addf %261, %262 : vector<8x128xf32>
    %264 = vector.extract_strided_slice %44 {offsets = [4, 0, 0], sizes = [1, 8, 384], strides = [1, 1, 1]} : vector<8x8x384xf32> to vector<1x8x384xf32>
    %265 = vector.shape_cast %264 : vector<1x8x384xf32> to vector<8x384xf32>
    %266 = vector.extract_strided_slice %265 {offsets = [0, 0], sizes = [8, 256], strides = [1, 1]} : vector<8x384xf32> to vector<8x256xf32>
    %267 = vector.extract_strided_slice %237 {offsets = [0, 0], sizes = [8, 256], strides = [1, 1]} : vector<8x384xf32> to vector<8x256xf32>
    %268 = arith.addf %266, %267 : vector<8x256xf32>
    %269 = arith.negf %268 : vector<8x256xf32>
    %270 = math.exp %269 : vector<8x256xf32>
    %cst_48 = arith.constant 1.000000e+00 : f32
    %271 = vector.broadcast %cst_48 : f32 to vector<8x256xf32>
    %272 = arith.addf %271, %270 : vector<8x256xf32>
    %273 = arith.divf %271, %272 : vector<8x256xf32>
    %274 = vector.extract_strided_slice %273 {offsets = [0, 0], sizes = [8, 128], strides = [1, 1]} : vector<8x256xf32> to vector<8x128xf32>
    %275 = vector.extract_strided_slice %273 {offsets = [0, 128], sizes = [8, 128], strides = [1, 1]} : vector<8x256xf32> to vector<8x128xf32>
    %276 = vector.extract_strided_slice %265 {offsets = [0, 256], sizes = [8, 128], strides = [1, 1]} : vector<8x384xf32> to vector<8x128xf32>
    %277 = vector.extract_strided_slice %237 {offsets = [0, 256], sizes = [8, 128], strides = [1, 1]} : vector<8x384xf32> to vector<8x128xf32>
    %278 = vector.broadcast %9 : vector<1x128xf32> to vector<8x128xf32>
    %279 = arith.addf %277, %278 : vector<8x128xf32>
    %280 = arith.mulf %274, %279 : vector<8x128xf32>
    %281 = arith.addf %276, %280 : vector<8x128xf32>
    %282 = math.tanh %281 : vector<8x128xf32>
    %cst_49 = arith.constant 1.000000e+00 : f32
    %283 = vector.broadcast %cst_49 : f32 to vector<8x128xf32>
    %284 = arith.subf %283, %275 : vector<8x128xf32>
    %285 = arith.mulf %284, %282 : vector<8x128xf32>
    %286 = arith.mulf %275, %233 : vector<8x128xf32>
    %287 = arith.addf %285, %286 : vector<8x128xf32>
    %288 = tpu.concatenate %287, %263 in 1 : vector<8x128xf32>, vector<8x128xf32> -> vector<8x256xf32>
    %289 = arith.truncf %288 : vector<8x256xf32> to vector<8x256xbf16>
    %cst_50 = arith.constant dense<0.000000e+00> : vector<8x1152xf32>
    %290 = tpu.matmul %289, %1, %cst_50 {dimension_numbers = #tpu.dot_dimension_numbers<[1], [0], [0], [1], [0, 0, 1, 1], [], []>} : vector<8x256xbf16>, vector<256x1152xbf16>, vector<8x1152xf32> -> vector<8x1152xf32>
    %291 = vector.extract_strided_slice %290 {offsets = [0, 0], sizes = [8, 384], strides = [1, 1]} : vector<8x1152xf32> to vector<8x384xf32>
    %292 = vector.extract_strided_slice %290 {offsets = [0, 384], sizes = [8, 384], strides = [1, 1]} : vector<8x1152xf32> to vector<8x384xf32>
    %293 = vector.broadcast %8 : vector<1x384xf32> to vector<8x384xf32>
    %294 = arith.addf %292, %293 : vector<8x384xf32>
    %295 = vector.extract_strided_slice %290 {offsets = [0, 768], sizes = [8, 384], strides = [1, 1]} : vector<8x1152xf32> to vector<8x384xf32>
    %296 = vector.extract_strided_slice %294 {offsets = [0, 0], sizes = [8, 256], strides = [1, 1]} : vector<8x384xf32> to vector<8x256xf32>
    %297 = vector.extract_strided_slice %295 {offsets = [0, 0], sizes = [8, 256], strides = [1, 1]} : vector<8x384xf32> to vector<8x256xf32>
    %298 = arith.addf %296, %297 : vector<8x256xf32>
    %299 = arith.negf %298 : vector<8x256xf32>
    %300 = math.exp %299 : vector<8x256xf32>
    %cst_51 = arith.constant 1.000000e+00 : f32
    %301 = vector.broadcast %cst_51 : f32 to vector<8x256xf32>
    %302 = arith.addf %301, %300 : vector<8x256xf32>
    %303 = arith.divf %301, %302 : vector<8x256xf32>
    %304 = vector.extract_strided_slice %303 {offsets = [0, 0], sizes = [8, 128], strides = [1, 1]} : vector<8x256xf32> to vector<8x128xf32>
    %305 = vector.extract_strided_slice %303 {offsets = [0, 128], sizes = [8, 128], strides = [1, 1]} : vector<8x256xf32> to vector<8x128xf32>
    %306 = vector.extract_strided_slice %294 {offsets = [0, 256], sizes = [8, 128], strides = [1, 1]} : vector<8x384xf32> to vector<8x128xf32>
    %307 = vector.extract_strided_slice %295 {offsets = [0, 256], sizes = [8, 128], strides = [1, 1]} : vector<8x384xf32> to vector<8x128xf32>
    %308 = vector.broadcast %10 : vector<1x128xf32> to vector<8x128xf32>
    %309 = arith.addf %307, %308 : vector<8x128xf32>
    %310 = arith.mulf %304, %309 : vector<8x128xf32>
    %311 = arith.addf %306, %310 : vector<8x128xf32>
    %312 = math.tanh %311 : vector<8x128xf32>
    %cst_52 = arith.constant 1.000000e+00 : f32
    %313 = vector.broadcast %cst_52 : f32 to vector<8x128xf32>
    %314 = arith.subf %313, %305 : vector<8x128xf32>
    %315 = arith.mulf %314, %312 : vector<8x128xf32>
    %316 = arith.mulf %305, %263 : vector<8x128xf32>
    %317 = arith.addf %315, %316 : vector<8x128xf32>
    %318 = vector.extract_strided_slice %44 {offsets = [5, 0, 0], sizes = [1, 8, 384], strides = [1, 1, 1]} : vector<8x8x384xf32> to vector<1x8x384xf32>
    %319 = vector.shape_cast %318 : vector<1x8x384xf32> to vector<8x384xf32>
    %320 = vector.extract_strided_slice %319 {offsets = [0, 0], sizes = [8, 256], strides = [1, 1]} : vector<8x384xf32> to vector<8x256xf32>
    %321 = vector.extract_strided_slice %291 {offsets = [0, 0], sizes = [8, 256], strides = [1, 1]} : vector<8x384xf32> to vector<8x256xf32>
    %322 = arith.addf %320, %321 : vector<8x256xf32>
    %323 = arith.negf %322 : vector<8x256xf32>
    %324 = math.exp %323 : vector<8x256xf32>
    %cst_53 = arith.constant 1.000000e+00 : f32
    %325 = vector.broadcast %cst_53 : f32 to vector<8x256xf32>
    %326 = arith.addf %325, %324 : vector<8x256xf32>
    %327 = arith.divf %325, %326 : vector<8x256xf32>
    %328 = vector.extract_strided_slice %327 {offsets = [0, 0], sizes = [8, 128], strides = [1, 1]} : vector<8x256xf32> to vector<8x128xf32>
    %329 = vector.extract_strided_slice %327 {offsets = [0, 128], sizes = [8, 128], strides = [1, 1]} : vector<8x256xf32> to vector<8x128xf32>
    %330 = vector.extract_strided_slice %319 {offsets = [0, 256], sizes = [8, 128], strides = [1, 1]} : vector<8x384xf32> to vector<8x128xf32>
    %331 = vector.extract_strided_slice %291 {offsets = [0, 256], sizes = [8, 128], strides = [1, 1]} : vector<8x384xf32> to vector<8x128xf32>
    %332 = vector.broadcast %9 : vector<1x128xf32> to vector<8x128xf32>
    %333 = arith.addf %331, %332 : vector<8x128xf32>
    %334 = arith.mulf %328, %333 : vector<8x128xf32>
    %335 = arith.addf %330, %334 : vector<8x128xf32>
    %336 = math.tanh %335 : vector<8x128xf32>
    %cst_54 = arith.constant 1.000000e+00 : f32
    %337 = vector.broadcast %cst_54 : f32 to vector<8x128xf32>
    %338 = arith.subf %337, %329 : vector<8x128xf32>
    %339 = arith.mulf %338, %336 : vector<8x128xf32>
    %340 = arith.mulf %329, %287 : vector<8x128xf32>
    %341 = arith.addf %339, %340 : vector<8x128xf32>
    %342 = tpu.concatenate %341, %317 in 1 : vector<8x128xf32>, vector<8x128xf32> -> vector<8x256xf32>
    %343 = arith.truncf %342 : vector<8x256xf32> to vector<8x256xbf16>
    %cst_55 = arith.constant dense<0.000000e+00> : vector<8x1152xf32>
    %344 = tpu.matmul %343, %1, %cst_55 {dimension_numbers = #tpu.dot_dimension_numbers<[1], [0], [0], [1], [0, 0, 1, 1], [], []>} : vector<8x256xbf16>, vector<256x1152xbf16>, vector<8x1152xf32> -> vector<8x1152xf32>
    %345 = vector.extract_strided_slice %344 {offsets = [0, 0], sizes = [8, 384], strides = [1, 1]} : vector<8x1152xf32> to vector<8x384xf32>
    %346 = vector.extract_strided_slice %344 {offsets = [0, 384], sizes = [8, 384], strides = [1, 1]} : vector<8x1152xf32> to vector<8x384xf32>
    %347 = vector.broadcast %8 : vector<1x384xf32> to vector<8x384xf32>
    %348 = arith.addf %346, %347 : vector<8x384xf32>
    %349 = vector.extract_strided_slice %344 {offsets = [0, 768], sizes = [8, 384], strides = [1, 1]} : vector<8x1152xf32> to vector<8x384xf32>
    %350 = vector.extract_strided_slice %348 {offsets = [0, 0], sizes = [8, 256], strides = [1, 1]} : vector<8x384xf32> to vector<8x256xf32>
    %351 = vector.extract_strided_slice %349 {offsets = [0, 0], sizes = [8, 256], strides = [1, 1]} : vector<8x384xf32> to vector<8x256xf32>
    %352 = arith.addf %350, %351 : vector<8x256xf32>
    %353 = arith.negf %352 : vector<8x256xf32>
    %354 = math.exp %353 : vector<8x256xf32>
    %cst_56 = arith.constant 1.000000e+00 : f32
    %355 = vector.broadcast %cst_56 : f32 to vector<8x256xf32>
    %356 = arith.addf %355, %354 : vector<8x256xf32>
    %357 = arith.divf %355, %356 : vector<8x256xf32>
    %358 = vector.extract_strided_slice %357 {offsets = [0, 0], sizes = [8, 128], strides = [1, 1]} : vector<8x256xf32> to vector<8x128xf32>
    %359 = vector.extract_strided_slice %357 {offsets = [0, 128], sizes = [8, 128], strides = [1, 1]} : vector<8x256xf32> to vector<8x128xf32>
    %360 = vector.extract_strided_slice %348 {offsets = [0, 256], sizes = [8, 128], strides = [1, 1]} : vector<8x384xf32> to vector<8x128xf32>
    %361 = vector.extract_strided_slice %349 {offsets = [0, 256], sizes = [8, 128], strides = [1, 1]} : vector<8x384xf32> to vector<8x128xf32>
    %362 = vector.broadcast %10 : vector<1x128xf32> to vector<8x128xf32>
    %363 = arith.addf %361, %362 : vector<8x128xf32>
    %364 = arith.mulf %358, %363 : vector<8x128xf32>
    %365 = arith.addf %360, %364 : vector<8x128xf32>
    %366 = math.tanh %365 : vector<8x128xf32>
    %cst_57 = arith.constant 1.000000e+00 : f32
    %367 = vector.broadcast %cst_57 : f32 to vector<8x128xf32>
    %368 = arith.subf %367, %359 : vector<8x128xf32>
    %369 = arith.mulf %368, %366 : vector<8x128xf32>
    %370 = arith.mulf %359, %317 : vector<8x128xf32>
    %371 = arith.addf %369, %370 : vector<8x128xf32>
    %372 = vector.extract_strided_slice %44 {offsets = [6, 0, 0], sizes = [1, 8, 384], strides = [1, 1, 1]} : vector<8x8x384xf32> to vector<1x8x384xf32>
    %373 = vector.shape_cast %372 : vector<1x8x384xf32> to vector<8x384xf32>
    %374 = vector.extract_strided_slice %373 {offsets = [0, 0], sizes = [8, 256], strides = [1, 1]} : vector<8x384xf32> to vector<8x256xf32>
    %375 = vector.extract_strided_slice %345 {offsets = [0, 0], sizes = [8, 256], strides = [1, 1]} : vector<8x384xf32> to vector<8x256xf32>
    %376 = arith.addf %374, %375 : vector<8x256xf32>
    %377 = arith.negf %376 : vector<8x256xf32>
    %378 = math.exp %377 : vector<8x256xf32>
    %cst_58 = arith.constant 1.000000e+00 : f32
    %379 = vector.broadcast %cst_58 : f32 to vector<8x256xf32>
    %380 = arith.addf %379, %378 : vector<8x256xf32>
    %381 = arith.divf %379, %380 : vector<8x256xf32>
    %382 = vector.extract_strided_slice %381 {offsets = [0, 0], sizes = [8, 128], strides = [1, 1]} : vector<8x256xf32> to vector<8x128xf32>
    %383 = vector.extract_strided_slice %381 {offsets = [0, 128], sizes = [8, 128], strides = [1, 1]} : vector<8x256xf32> to vector<8x128xf32>
    %384 = vector.extract_strided_slice %373 {offsets = [0, 256], sizes = [8, 128], strides = [1, 1]} : vector<8x384xf32> to vector<8x128xf32>
    %385 = vector.extract_strided_slice %345 {offsets = [0, 256], sizes = [8, 128], strides = [1, 1]} : vector<8x384xf32> to vector<8x128xf32>
    %386 = vector.broadcast %9 : vector<1x128xf32> to vector<8x128xf32>
    %387 = arith.addf %385, %386 : vector<8x128xf32>
    %388 = arith.mulf %382, %387 : vector<8x128xf32>
    %389 = arith.addf %384, %388 : vector<8x128xf32>
    %390 = math.tanh %389 : vector<8x128xf32>
    %cst_59 = arith.constant 1.000000e+00 : f32
    %391 = vector.broadcast %cst_59 : f32 to vector<8x128xf32>
    %392 = arith.subf %391, %383 : vector<8x128xf32>
    %393 = arith.mulf %392, %390 : vector<8x128xf32>
    %394 = arith.mulf %383, %341 : vector<8x128xf32>
    %395 = arith.addf %393, %394 : vector<8x128xf32>
    %396 = tpu.concatenate %395, %371 in 1 : vector<8x128xf32>, vector<8x128xf32> -> vector<8x256xf32>
    %397 = arith.truncf %396 : vector<8x256xf32> to vector<8x256xbf16>
    %cst_60 = arith.constant dense<0.000000e+00> : vector<8x1152xf32>
    %398 = tpu.matmul %397, %1, %cst_60 {dimension_numbers = #tpu.dot_dimension_numbers<[1], [0], [0], [1], [0, 0, 1, 1], [], []>} : vector<8x256xbf16>, vector<256x1152xbf16>, vector<8x1152xf32> -> vector<8x1152xf32>
    %399 = vector.extract_strided_slice %398 {offsets = [0, 0], sizes = [8, 384], strides = [1, 1]} : vector<8x1152xf32> to vector<8x384xf32>
    %400 = vector.extract_strided_slice %398 {offsets = [0, 384], sizes = [8, 384], strides = [1, 1]} : vector<8x1152xf32> to vector<8x384xf32>
    %401 = vector.broadcast %8 : vector<1x384xf32> to vector<8x384xf32>
    %402 = arith.addf %400, %401 : vector<8x384xf32>
    %403 = vector.extract_strided_slice %398 {offsets = [0, 768], sizes = [8, 384], strides = [1, 1]} : vector<8x1152xf32> to vector<8x384xf32>
    %404 = vector.extract_strided_slice %402 {offsets = [0, 0], sizes = [8, 256], strides = [1, 1]} : vector<8x384xf32> to vector<8x256xf32>
    %405 = vector.extract_strided_slice %403 {offsets = [0, 0], sizes = [8, 256], strides = [1, 1]} : vector<8x384xf32> to vector<8x256xf32>
    %406 = arith.addf %404, %405 : vector<8x256xf32>
    %407 = arith.negf %406 : vector<8x256xf32>
    %408 = math.exp %407 : vector<8x256xf32>
    %cst_61 = arith.constant 1.000000e+00 : f32
    %409 = vector.broadcast %cst_61 : f32 to vector<8x256xf32>
    %410 = arith.addf %409, %408 : vector<8x256xf32>
    %411 = arith.divf %409, %410 : vector<8x256xf32>
    %412 = vector.extract_strided_slice %411 {offsets = [0, 0], sizes = [8, 128], strides = [1, 1]} : vector<8x256xf32> to vector<8x128xf32>
    %413 = vector.extract_strided_slice %411 {offsets = [0, 128], sizes = [8, 128], strides = [1, 1]} : vector<8x256xf32> to vector<8x128xf32>
    %414 = vector.extract_strided_slice %402 {offsets = [0, 256], sizes = [8, 128], strides = [1, 1]} : vector<8x384xf32> to vector<8x128xf32>
    %415 = vector.extract_strided_slice %403 {offsets = [0, 256], sizes = [8, 128], strides = [1, 1]} : vector<8x384xf32> to vector<8x128xf32>
    %416 = vector.broadcast %10 : vector<1x128xf32> to vector<8x128xf32>
    %417 = arith.addf %415, %416 : vector<8x128xf32>
    %418 = arith.mulf %412, %417 : vector<8x128xf32>
    %419 = arith.addf %414, %418 : vector<8x128xf32>
    %420 = math.tanh %419 : vector<8x128xf32>
    %cst_62 = arith.constant 1.000000e+00 : f32
    %421 = vector.broadcast %cst_62 : f32 to vector<8x128xf32>
    %422 = arith.subf %421, %413 : vector<8x128xf32>
    %423 = arith.mulf %422, %420 : vector<8x128xf32>
    %424 = arith.mulf %413, %371 : vector<8x128xf32>
    %425 = arith.addf %423, %424 : vector<8x128xf32>
    %426 = vector.extract_strided_slice %44 {offsets = [7, 0, 0], sizes = [1, 8, 384], strides = [1, 1, 1]} : vector<8x8x384xf32> to vector<1x8x384xf32>
    %427 = vector.shape_cast %426 : vector<1x8x384xf32> to vector<8x384xf32>
    %428 = vector.extract_strided_slice %427 {offsets = [0, 0], sizes = [8, 256], strides = [1, 1]} : vector<8x384xf32> to vector<8x256xf32>
    %429 = vector.extract_strided_slice %399 {offsets = [0, 0], sizes = [8, 256], strides = [1, 1]} : vector<8x384xf32> to vector<8x256xf32>
    %430 = arith.addf %428, %429 : vector<8x256xf32>
    %431 = arith.negf %430 : vector<8x256xf32>
    %432 = math.exp %431 : vector<8x256xf32>
    %cst_63 = arith.constant 1.000000e+00 : f32
    %433 = vector.broadcast %cst_63 : f32 to vector<8x256xf32>
    %434 = arith.addf %433, %432 : vector<8x256xf32>
    %435 = arith.divf %433, %434 : vector<8x256xf32>
    %436 = vector.extract_strided_slice %435 {offsets = [0, 0], sizes = [8, 128], strides = [1, 1]} : vector<8x256xf32> to vector<8x128xf32>
    %437 = vector.extract_strided_slice %435 {offsets = [0, 128], sizes = [8, 128], strides = [1, 1]} : vector<8x256xf32> to vector<8x128xf32>
    %438 = vector.extract_strided_slice %427 {offsets = [0, 256], sizes = [8, 128], strides = [1, 1]} : vector<8x384xf32> to vector<8x128xf32>
    %439 = vector.extract_strided_slice %399 {offsets = [0, 256], sizes = [8, 128], strides = [1, 1]} : vector<8x384xf32> to vector<8x128xf32>
    %440 = vector.broadcast %9 : vector<1x128xf32> to vector<8x128xf32>
    %441 = arith.addf %439, %440 : vector<8x128xf32>
    %442 = arith.mulf %436, %441 : vector<8x128xf32>
    %443 = arith.addf %438, %442 : vector<8x128xf32>
    %444 = math.tanh %443 : vector<8x128xf32>
    %cst_64 = arith.constant 1.000000e+00 : f32
    %445 = vector.broadcast %cst_64 : f32 to vector<8x128xf32>
    %446 = arith.subf %445, %437 : vector<8x128xf32>
    %447 = arith.mulf %446, %444 : vector<8x128xf32>
    %448 = arith.mulf %437, %395 : vector<8x128xf32>
    %449 = arith.addf %447, %448 : vector<8x128xf32>
    %450 = tpu.concatenate %449, %425 in 1 : vector<8x128xf32>, vector<8x128xf32> -> vector<8x256xf32>
    %451 = arith.truncf %450 : vector<8x256xf32> to vector<8x256xbf16>
    %cst_65 = arith.constant dense<0.000000e+00> : vector<8x1152xf32>
    %452 = tpu.matmul %451, %1, %cst_65 {dimension_numbers = #tpu.dot_dimension_numbers<[1], [0], [0], [1], [0, 0, 1, 1], [], []>} : vector<8x256xbf16>, vector<256x1152xbf16>, vector<8x1152xf32> -> vector<8x1152xf32>
    %453 = vector.extract_strided_slice %452 {offsets = [0, 384], sizes = [8, 384], strides = [1, 1]} : vector<8x1152xf32> to vector<8x384xf32>
    %454 = vector.broadcast %8 : vector<1x384xf32> to vector<8x384xf32>
    %455 = arith.addf %453, %454 : vector<8x384xf32>
    %456 = vector.extract_strided_slice %452 {offsets = [0, 768], sizes = [8, 384], strides = [1, 1]} : vector<8x1152xf32> to vector<8x384xf32>
    %457 = vector.extract_strided_slice %455 {offsets = [0, 0], sizes = [8, 256], strides = [1, 1]} : vector<8x384xf32> to vector<8x256xf32>
    %458 = vector.extract_strided_slice %456 {offsets = [0, 0], sizes = [8, 256], strides = [1, 1]} : vector<8x384xf32> to vector<8x256xf32>
    %459 = arith.addf %457, %458 : vector<8x256xf32>
    %460 = arith.negf %459 : vector<8x256xf32>
    %461 = math.exp %460 : vector<8x256xf32>
    %cst_66 = arith.constant 1.000000e+00 : f32
    %462 = vector.broadcast %cst_66 : f32 to vector<8x256xf32>
    %463 = arith.addf %462, %461 : vector<8x256xf32>
    %464 = arith.divf %462, %463 : vector<8x256xf32>
    %465 = vector.extract_strided_slice %464 {offsets = [0, 0], sizes = [8, 128], strides = [1, 1]} : vector<8x256xf32> to vector<8x128xf32>
    %466 = vector.extract_strided_slice %464 {offsets = [0, 128], sizes = [8, 128], strides = [1, 1]} : vector<8x256xf32> to vector<8x128xf32>
    %467 = vector.extract_strided_slice %455 {offsets = [0, 256], sizes = [8, 128], strides = [1, 1]} : vector<8x384xf32> to vector<8x128xf32>
    %468 = vector.extract_strided_slice %456 {offsets = [0, 256], sizes = [8, 128], strides = [1, 1]} : vector<8x384xf32> to vector<8x128xf32>
    %469 = vector.broadcast %10 : vector<1x128xf32> to vector<8x128xf32>
    %470 = arith.addf %468, %469 : vector<8x128xf32>
    %471 = arith.mulf %465, %470 : vector<8x128xf32>
    %472 = arith.addf %467, %471 : vector<8x128xf32>
    %473 = math.tanh %472 : vector<8x128xf32>
    %cst_67 = arith.constant 1.000000e+00 : f32
    %474 = vector.broadcast %cst_67 : f32 to vector<8x128xf32>
    %475 = arith.subf %474, %466 : vector<8x128xf32>
    %476 = arith.mulf %475, %473 : vector<8x128xf32>
    %477 = arith.mulf %466, %425 : vector<8x128xf32>
    %478 = arith.addf %476, %477 : vector<8x128xf32>
    %479 = arith.truncf %478 : vector<8x128xf32> to vector<8x128xbf16>
    %cst_68 = arith.constant dense<0.000000e+00> : vector<8x32xf32>
    %480 = tpu.matmul %479, %3, %cst_68 {dimension_numbers = #tpu.dot_dimension_numbers<[1], [0], [0], [1], [0, 0, 1, 1], [], []>} : vector<8x128xbf16>, vector<128x32xbf16>, vector<8x32xf32> -> vector<8x32xf32>
    %481 = vector.broadcast %13 : vector<1x32xf32> to vector<8x32xf32>
    %482 = arith.addf %480, %481 : vector<8x32xf32>
    %cst_69 = arith.constant 0.000000e+00 : f32
    %483 = vector.broadcast %cst_69 : f32 to vector<8x32xf32>
    %484 = arith.maximumf %482, %483 : vector<8x32xf32>
    %485 = arith.truncf %484 : vector<8x32xf32> to vector<8x32xbf16>
    %cst_70 = arith.constant dense<0.000000e+00> : vector<8x4xf32>
    %486 = tpu.matmul %485, %4, %cst_70 {dimension_numbers = #tpu.dot_dimension_numbers<[1], [0], [0], [1], [0, 0, 1, 1], [], []>} : vector<8x32xbf16>, vector<32x4xbf16>, vector<8x4xf32> -> vector<8x4xf32>
    %487 = vector.broadcast %14 : vector<1x4xf32> to vector<8x4xf32>
    %488 = arith.addf %486, %487 : vector<8x4xf32>
    %c0_71 = arith.constant 0 : index
    %c0_72 = arith.constant 0 : index
    %489 = vector.load %arg5[%c0_71, %c0_72] : memref<8x4xf32, #tpu.memory_space<vmem>>, vector<8x4xf32>
    tpu.vector_store %arg5[%c0_71, %c0_72], %488 {strides = array<i32>} : memref<8x4xf32, #tpu.memory_space<vmem>>, vector<8x4xf32>,
    return
  }
  func.func @transform_0(%arg0: i32) -> (i32, i32, i32) {
    %c0_i32 = arith.constant 0 : i32
    %c0_i32_0 = arith.constant 0 : i32
    %c0_i32_1 = arith.constant 0 : i32
    return %c0_i32, %arg0, %c0_i32_0 : i32, i32, i32
  }
  func.func @transform_1(%arg0: i32) -> (i32, i32) {
    %c0_i32 = arith.constant 0 : i32
    %c0_i32_0 = arith.constant 0 : i32
    %c0_i32_1 = arith.constant 0 : i32
    return %c0_i32, %c0_i32_0 : i32, i32
  }
  func.func @transform_2(%arg0: i32) -> (i32, i32) {
    %c0_i32 = arith.constant 0 : i32
    %c0_i32_0 = arith.constant 0 : i32
    %c0_i32_1 = arith.constant 0 : i32
    return %c0_i32, %c0_i32_0 : i32, i32
  }
  func.func @transform_3(%arg0: i32) -> (i32, i32) {
    %c0_i32 = arith.constant 0 : i32
    %c0_i32_0 = arith.constant 0 : i32
    %c0_i32_1 = arith.constant 0 : i32
    return %c0_i32, %c0_i32_0 : i32, i32
  }
  func.func @transform_4(%arg0: i32) -> (i32, i32) {
    %c0_i32 = arith.constant 0 : i32
    %c0_i32_0 = arith.constant 0 : i32
    return %arg0, %c0_i32 : i32, i32
  }
}

</mosaic_0001>

<bundles_post_ra>
// kernel: tpu_custom_call.1
= control target key start
LH: loop header
LB: loop body
LE: loop exit
PB: predicated region body
PF: predicated region fallthrough
CT: control target
= control target key end

     0   :  { %s7842_s0 = inlined_call_operand.hbm [shape: f32[8,16,38], index: 0, kind: input, shape index: {}]   ;;  %s7843_s1 = inlined_call_operand.hbm [shape: bf16[256,1152], index: 1, kind: input, shape index: {}]   ;;  %s7844_s2 = inlined_call_operand.hbm [shape: bf16[272,384], index: 2, kind: input, shape index: {}]   ;;  %s7845_s3 = inlined_call_operand.hbm [shape: f32[8,384], index: 3, kind: input, shape index: {}]   ;;  %s7846_s4 = inlined_call_operand.vmem [shape: f32[16,4], index: 4, kind: output, shape index: {}]  }
   0x1   :  { %8357 = sst [smem:[#allocation123_spill]] %s7843_s1 }
   0x2   :  { %9 = vsyncpa [#allocation3], 0 }
   0x3   :  { %11 = vsyncpa [#allocation3 + $0x1], 0 }
   0x4   :  { %12 = vsyncpa [#allocation5], 0 }
   0x5   :  { %13 = vsyncpa [#allocation8], 0  ;;  %s5274_s15 = smov 0   ;;  %s5276_s16 = smov 0  }
   0x6   :  { %s5278_s17 = smov 0   ;;  %s5280_s18 = smov 0  }
   0x7 LB: > { %s5293_s19 = sadd.s32 4294967295, %s5232_s18   ;;  %s5296_s20 = sadd.s32 1, %s5232_s18   ;;  %s5232_s18 = sphi %s5280_s18, %s9114_s18   ;;  %s5228_s17 = sphi %s5278_s17, %s9113_s17   ;;  %s5224_s16 = sphi %s5276_s16, %s9112_s16   ;;  %s5220_s15 = sphi %s5274_s15, %s9111_s15  }
   0x8   : > { %s23_s21 = ssub.s32 %s5232_s18, %s5296_s20  ;;  %s26_s22 = sadd.s32 1, %s5228_s17 }
   0x9   : > { %p24_p0 = scmp.eq.s32.totalorder %s23_s21, 0  ;;  %p33_p1 = scmp.ne.s32.totalorder %s5228_s17, %s5224_s16 }
   0xa   : > { %p34_p2 = scmp.eq.s32.totalorder %s5232_s18, 0  ;;  %p39_p3 = scmp.ne.s32.totalorder %s5224_s16, %s5220_s15 }
   0xb   : > { %s5306_s23 = scalar_select %p24_p0, %s5228_s17, %s26_s22  }
   0xc   : > { %p35_p4 = por %p34_p2, %p33_p1  ;;  %p7847_p5 = scmp.eq.s32.totalorder %s5293_s19, 0 }
   0xd   : > { %p3821_p6 = scmp.ge.s32.totalorder %s5232_s18, 1  ;;  %p139_p7 = scmp.lt.s32.totalorder %s5232_s18, 3 }
   0xe   : > { %p5313_p8 = por %p7847_p5, %p39_p3  ;;  %s5234_s26 = smov [#allocation4]  }
   0xf   : > { %p5317_p9 = pnand %p3821_p6, %p139_p7  ;;  %s151_s27 = sshll.u32 %s5234_s26, 4  ;;  %s152_s27 = int_to_ptr.vmem [resolvable:$true] %s151_s27 }
  0x10   : > { %s8358_s24 = scalar_select %p5313_p8, 1, 0 }
  0x11   : > { %s8359_s25 = scalar_select %p5317_p9, 1, 0 }
  0x12   : > { %p4321_p10 = pneg %p5317_p9  ;;  %p4338_p12 = scmp.lt.s32.totalorder %s5232_s18, 2 }
  0x13   : > { %s8362_s1 = sld [smem:[#allocation123_spill]] }
  0x14   : > { %p5325_p11 = pnand %p4321_p10, %p7847_p5  ;;  %p5330_p13 = pnand %p4338_p12, %p35_p4 }
  0x16   : > { %s8361_s29 = scalar_select %p5330_p13, 1, 0 }
  0x17   : > { %p5342_p1 = pneg %p5325_p11 }
  0x19   : > { %s5076_s6 = scalar_lea.hbm %s8362_s1, 18432 }
  0x1a   : > { %p5077_p0 = scmp.ne.s32.totalorder %s8362_s1, %s5076_s6  ;;  %p5083_p4 = scmp.lt.u32.totalorder %s5076_s6, %s8362_s1 }
  0x1c   : > { %p5079_p2 = pnand %p5342_p1, %p5077_p0 }
  0x1e   : > { %p5080_p3 = pneg %p5079_p2 }
  0x20   : > { %p5085_p6 = pnand %p5083_p4, %p5080_p3 }
  0x22   : > { %5088 = shalt.err (!%p5085_p6)
}
  0x23   : > { %s5089_s12 = scalar_lea.vmem %s152_s27, 18432  ;;  %p5097_p5 = scmp.lt.s32.totalorder %s152_s27, %s152_s27 }
  0x24   : > { %p5090_p7 = scmp.ne.s32.totalorder %s152_s27, %s5089_s12  ;;  %p5098_p8 = scmp.lt.s32.totalorder %s5089_s12, %s5089_s12 }
  0x26   : > { %p5092_p10 = pnand %p5090_p7, %p5342_p1  ;;  %p5099_p9 = por %p5098_p8, %p5097_p5 }
  0x28   : > { %p5093_p12 = pneg %p5092_p10 }
  0x2a   : > { %p5100_p13 = pnand %p5099_p9, %p5093_p12 }
  0x2c   : > { %5103 = shalt.err (!%p5100_p13)
}
  0x2d   : > { %s5235_s13 = smov 576   ;;  %s5236_s14 = smov 36  }
  0x2e   : > { %4324 = dma.hbm_to_vmem [thread:$0]  (!%p5325_p11), %s8362_s1, 18432, %s152_s27, [#allocation5], %s5235_s13, %s5235_s13, %s5236_s14  }
  0x2f   : > { %s5237_s22 = smov [#allocation6]   ;;  %s5104_s6 = scalar_lea.hbm %s7844_s2, 6528 }
  0x30   : > { %s164_s26 = sshll.u32 %s5237_s22, 4  ;;  %p5105_p5 = scmp.ne.s32.totalorder %s7844_s2, %s5104_s6  ;;  %s165_s26 = int_to_ptr.vmem [resolvable:$true] %s164_s26 }
  0x31   : > { %p5111_p13 = scmp.lt.u32.totalorder %s5104_s6, %s7844_s2 }
  0x32   : > { %p5107_p8 = pnand %p5105_p5, %p5342_p1 }
  0x34   : > { %p5108_p9 = pneg %p5107_p8 }
  0x36   : > { %p5113_p0 = pnand %p5111_p13, %p5108_p9 }
  0x38   : > { %5116 = shalt.err (!%p5113_p0)
}
  0x39   : > { %s5117_s27 = scalar_lea.vmem %s165_s26, 6528  ;;  %p5125_p6 = scmp.lt.s32.totalorder %s165_s26, %s165_s26 }
  0x3a   : > { %p5118_p2 = scmp.ne.s32.totalorder %s165_s26, %s5117_s27  ;;  %p5126_p7 = scmp.lt.s32.totalorder %s5117_s27, %s5117_s27 }
  0x3c   : > { %p5120_p3 = pnand %p5118_p2, %p5342_p1  ;;  %p5127_p10 = por %p5126_p7, %p5125_p6 }
  0x3e   : > { %p5121_p4 = pneg %p5120_p3 }
  0x40   : > { %p5128_p12 = pnand %p5127_p10, %p5121_p4 }
  0x42   : > { %5131 = shalt.err (!%p5128_p12)
}
  0x43   : > { %s5238_s12 = smov 192   ;;  %s5239_s13 = smov 12  }
  0x44   : > { %4327 = dma.hbm_to_vmem [thread:$0]  (!%p5325_p11), %s7844_s2, 6528, %s165_s26, [#allocation5], %s5238_s12, %s5238_s12, %s5239_s13  }
  0x45   : > { %s189_s21 = sand.u32 1, %s5228_s17   ;;  %s5240_s22 = smov [#allocation7]  }
  0x46   : > { %s178_s30 = sshll.u32 %s5240_s22, 4  ;;  %s3826_s5 = sshll.u32 %s189_s21, 6  ;;  %s179_s30 = int_to_ptr.vmem [resolvable:$true] %s178_s30 }
  0x47   : > { %s5132_s8 = scalar_lea.hbm %s7845_s3, 384 }
  0x48   : > { %p5133_p5 = scmp.ne.s32.totalorder %s7845_s3, %s5132_s8  ;;  %p5139_p13 = scmp.lt.u32.totalorder %s5132_s8, %s7845_s3 }
  0x4a   : > { %p5135_p8 = pnand %p5133_p5, %p5342_p1 }
  0x4c   : > { %p5136_p9 = pneg %p5135_p8 }
  0x4e   : > { %p5141_p0 = pnand %p5139_p13, %p5136_p9 }
  0x50   : > { %5144 = shalt.err (!%p5141_p0)
}
  0x51   : > { %s5145_s26 = scalar_lea.vmem %s179_s30, 384  ;;  %p5153_p6 = scmp.lt.s32.totalorder %s179_s30, %s179_s30 }
  0x52   : > { %p5146_p2 = scmp.ne.s32.totalorder %s179_s30, %s5145_s26  ;;  %p5154_p7 = scmp.lt.s32.totalorder %s5145_s26, %s5145_s26 }
  0x54   : > { %p5148_p3 = pnand %p5146_p2, %p5342_p1  ;;  %p5155_p10 = por %p5154_p7, %p5153_p6 }
  0x56   : > { %p5149_p4 = pneg %p5148_p3 }
  0x58   : > { %p5156_p12 = pnand %p5155_p10, %p5149_p4 }
  0x5a   : > { %5159 = shalt.err (!%p5156_p12)
}
  0x5b   : > { %4330 = dma.hbm_to_vmem [thread:$0]  (!%p5325_p11), %s7845_s3, 384, %s179_s30, [#allocation8]  }
  0x5c   : > { %s3827_s1 = sshll.u32 %s5232_s18, 7  ;;  %s193_s22 = scalar_lea.vmem [#allocation2], %s3826_s5 }
  0x5d   : > { %s5399_s9 = scalar_lea.hbm %s7842_s0, %s3827_s1  ;;  %s199_s6 = sshll.u32 %s193_s22, 4  ;;  %s5401_s6 = int_to_ptr.vmem [resolvable:$true] %s199_s6 }
  0x5e   : > { %s5403_s28 = scalar_lea.sflag [#allocation3], %s189_s21  ;;  %s5160_s7 = scalar_lea.hbm %s5399_s9, 1024 }
  0x5f   : > { %p5161_p1 = scmp.ne.s32.totalorder %s5399_s9, %s5160_s7  ;;  %p8364_p5 = scmp.ne.s32.totalorder %s8361_s29, 0 }
  0x60   : > { %s5165_s8 = scalar_lea.hbm %s7842_s0, 2048  ;;  %p5166_p13 = scmp.lt.u32.totalorder %s5399_s9, %s7842_s0 }
  0x61   : > { %p5162_p11 = pneg %p8364_p5  ;;  %p5167_p0 = scmp.lt.u32.totalorder %s5165_s8, %s5160_s7 }
  0x62   : > { %p5169_p3 = scmp.lt.u32.totalorder %s5160_s7, %s5399_s9 }
  0x63   : > { %p5163_p8 = pnand %p5162_p11, %p5161_p1  ;;  %p5168_p2 = por %p5167_p0, %p5166_p13 }
  0x65   : > { %p5164_p9 = pneg %p5163_p8  ;;  %p5170_p4 = por %p5169_p3, %p5168_p2 }
  0x67   : > { %p5171_p6 = pnand %p5170_p4, %p5164_p9 }
  0x69   : > { %5174 = shalt.err (!%p5171_p6)
}
  0x6a   : > { %s5175_s21 = scalar_lea.vmem %s5401_s6, 1024  ;;  %s5241_s5 = smov [#allocation2]  }
  0x6b   : > { %p5176_p7 = scmp.ne.s32.totalorder %s5401_s6, %s5175_s21  ;;  %s5180_s27 = sshll.u32 %s5241_s5, 4  ;;  %s5181_s27 = int_to_ptr.vmem [resolvable:$false] %s5180_s27 }
  0x6c   : > { %s5182_s26 = scalar_lea.vmem %s5181_s27, 2048  ;;  %p5183_p1 = scmp.lt.s32.totalorder %s5401_s6, %s5181_s27 }
  0x6d   : > { %p5178_p10 = pnand %p5176_p7, %p5162_p11  ;;  %p5184_p8 = scmp.lt.s32.totalorder %s5182_s26, %s5175_s21 }
  0x6f   : > { %p5179_p12 = pneg %p5178_p10  ;;  %p5185_p13 = por %p5184_p8, %p5183_p1 }
  0x71   : > { %p5186_p0 = pnand %p5185_p13, %p5179_p12 }
  0x73   : > { %5189 = shalt.err (!%p5186_p0)
}
  0x74   : > { %s5242_s12 = smov 256   ;;  %s5243_s13 = smov 128  }
  0x75   : > { %s5244_s1 = smov 8   ;;  %p8365_p11 = scmp.ne.s32.totalorder %s8359_s25, 0 }
  0x76   : > { %4334 = dma.hbm_to_vmem [thread:$0]  (!%p8364_p5), %s5399_s9, 1024, %s5401_s6, %s5403_s28, %s5242_s12, %s5243_s13, %s5244_s1  }
  0x77   : > { %211 = sbr.rel (%p8365_p11) target bundleno = 3986 (0xf92), region = 36 }
  0x7e   : > { %s213_s14 = sand.u32 1, %s5224_s16   ;;  %p8366_p9 = scmp.ne.s32.totalorder %s8358_s24, 0 }
  0x7f   : > { %s3829_s15 = sshll.u32 %s213_s14, 6  ;;  %s214_s22 = scalar_lea.sflag [#allocation3], %s213_s14 }
  0x80   : > { %s5434_s7 = scalar_lea.vmem [#allocation2], %s3829_s15 }
  0x81   : > { %5207 = dma.done.wait (%p8366_p9), %s214_s22, 1024  }
  0x82   : > { %5209 = vsyncadd (%p8366_p9), %s214_s22, 4294966272  ;;  %p8367_p2 = scmp.eq.s32.totalorder %s5293_s19, 0 }
  0x84   : > { %5211 = dma.done.wait (%p8367_p2), [#allocation5], 24960   ;;  %p8368_p5 = pmov %p8367_p2 }
  0x85   : > { %p8369_p3 = pmov %p8367_p2 }
  0x86   : > { %5213 = vsyncadd (%p8368_p5), [#allocation5], 4294942336 }
  0x87   : > { %5215 = dma.done.wait (%p8369_p3), [#allocation8], 384   ;;  %p8370_p4 = pmov %p8367_p2 }
  0x88   : > { %v7851_v0 = vmov 0.0   ;;  %vm5246_vm0 = vmmov 0   ;;  %vm471_vm1 = vcmask 310272   ;;  %v4388_v1 = vld [vmem:[#allocation6 + $0x138] ss:$12 sps:$4 sm:$0xff]   ;;  %v5456_v5 = vld [vmem:[%s5434_s7 + $0x8] sm:$0xff] }
  0x89   : > { %5217 = vsyncadd (%p8370_p4), [#allocation8], 4294966912  ;;  %4248 = vmatprep.subr.bf16.mxu0 %v7851_v0  ;;  %4254 = vmatprep.mubr.msk.bf16.mxu0 %vm5246_vm0, %v7851_v0  ;;  %v4389_v2 = vld [vmem:[#allocation6 + $0x150] ss:$12 sps:$4 sm:$0xff]   ;;  %v5452_v4 = vld [vmem:[%s5434_s7] sm:$0xff]  ;;  %vm508_vm2 = vcmask 1042432  }
  0x8a   : > { %4249 = vmatpush3.bf16.msra.mxu0 %v4388_v1  ;;  %v4390_v3 = vld [vmem:[#allocation6 + $0x168] ss:$0 sps:$4 sm:$0x77]   ;;  %v5459_v6 = vld [vmem:[%s5434_s7 + $0x10] sm:$0xff]  ;;  %v5462_v7 = vld [vmem:[%s5434_s7 + $0x18] sm:$0xff]  ;;  %v472_v8 = vsel %vm471_vm1, %v5452_v4, 0.0 }
  0x8b   : > { %4250 = vmatprep.subr.bf16.mxu0 %v7851_v0  ;;  %v473_v9 = vsel %vm471_vm1, %v5456_v5, 0.0  ;;  %v475_v10 = vsel %vm471_vm1, %v5459_v6, 0.0  ;;  %v5471_v11 = vld [vmem:[%s5434_s7 + $0x20] sm:$0xff]  ;;  %v5474_v13 = vld [vmem:[%s5434_s7 + $0x28] sm:$0xff]  ;;  %v477_v14 = vsel %vm471_vm1, %v5462_v7, 0.0  ;;  %v510_v15 = vsel %vm508_vm2, %v4390_v3, 0 }
  0x8c   : > { %v474_v12 = vadd.f32 %v473_v9, %v472_v8  ;;  %v5481_v16 = vld [vmem:[%s5434_s7 + $0x30] sm:$0xff]  ;;  %v479_v18 = vsel %vm471_vm1, %v5471_v11, 0.0  ;;  %v5486_v19 = vld [vmem:[%s5434_s7 + $0x38] sm:$0xff]  ;;  %v481_v21 = vsel %vm471_vm1, %v5474_v13, 0.0  ;;  %v461_v27 = vld [vmem:[#allocation6 + $0x180] sm:$0x1] }
  0x8d   : > { %v483_v23 = vsel %vm471_vm1, %v5481_v16, 0.0  ;;  %v485_v25 = vsel %vm471_vm1, %v5486_v19, 0.0  ;;  %vm558_vm3 = vcmask 1040384   ;;  %v467_v32 = vld [vmem:[#allocation7 + $0x4] ss:$0 sm:$0xff]  ;;  %vm554_vm4 = vcmask 15360  }
  0x8e   : > { %4251 = vmatpush3.bf16.msra.mxu0 %v4389_v2  ;;  %v476_v17 = vadd.f32 %v475_v10, %v474_v12  ;;  %v560_v31 = vsel %vm558_vm3, %v461_v27, 0  ;;  %v4391_v40 = vld [vmem:[#allocation6 + $0x4] ss:$12 sps:$4 sm:$0xff]   ;;  %v4393_v41 = vld [vmem:[#allocation6] ss:$12 sps:$4 sm:$0xff]   ;;  %v5247_v50 = vmov 0  }
  0x8f   : > { %4252 = vmatprep.subr.bf16.mxu0 %v7851_v0  ;;  %v4394_v42 = vld [vmem:[#allocation6 + $0x8] ss:$12 sps:$4 sm:$0xff]   ;;  %v4398_v44 = vld [vmem:[#allocation6 + $0x20] ss:$12 sps:$4 sm:$0xff]   ;;  %705 = vmatprep.subr.bf16.mxu1 %v4391_v40  ;;  %v4397_v46 = vld [vmem:[#allocation6 + $0x18] ss:$12 sps:$4 sm:$0xff]  }
  0x90   : > { %v478_v20 = vadd.f32 %v477_v14, %v476_v17  ;;  %v4395_v43 = vld [vmem:[#allocation6 + $0x1c] ss:$12 sps:$4 sm:$0xff]   ;;  %v434_v45 = vld [vmem:[#allocation6 + $0x30] sm:$0x77]  ;;  %706 = vmatpush1.bf16.msra.mxu1 %v4393_v41  ;;  %737 = vmatprep.mubr.bf16.mxu1 %v5247_v50  ;;  %vm3680_vm5 = vcmask 261120   ;;  %p253_p6 = scmp.lt.s32.totalorder %s5293_s19, 1 }
  0x91   : > { %707 = vmatprep.subr.bf16.mxu1 %v4395_v43  ;;  %v3847_v47 = vcombine.high %v434_v45, %v434_v45  ;;  %v3846_v48 = vcombine.low %v434_v45, %v434_v45  ;;  %v4401_v49 = vld [vmem:[#allocation6 + $0x38] ss:$0 sps:$4 sm:$0x77]   ;;  %v5503_v53 = vld [vmem:[#allocation4 + $0x4] ss:$36 sps:$4 sm:$0xff]   ;;  %vm3724_vm6 = vcmask 31744  }
  0x92   : > { %4253 = vmatpush3.bf16.msra.mxu0 %v510_v15  ;;  %v480_v22 = vadd.f32 %v479_v18, %v478_v20  ;;  %v703_v52 = vsel %vm508_vm2, %v4401_v49, 0  ;;  %v5505_v54 = vld [vmem:[#allocation4 + $0xc] ss:$36 sps:$4 sm:$0xff]   ;;  %v468_v55 = vld [vmem:[#allocation7 + $0x5] ss:$0 sm:$0xff]  ;;  %s9116_s19 = smov (!%p253_p6, %s5293_s19), 1 }
  0x93   : > { %4258 = vmatprep.subr.bf16.mxu0 %v7851_v0  ;;  %v697_v51 = vsel %vm508_vm2, %v3846_v48, 0  ;;  %v5537_v27 = vld [vmem:[#allocation4 + $0x94] ss:$36 sps:$4 sm:$0xff]   ;;  %v5582_v40 = vld [vmem:[#allocation4 + $0x16c] ss:$36 sps:$4 sm:$0xff]   ;;  %s3833_s24 = sshll.u32 %s9116_s19, 3 }
  0x94   : > { %v482_v24 = vadd.f32 %v481_v21, %v480_v22  ;;  %708 = vmatpush1.bf16.msra.mxu1 %v4397_v46  ;;  %v5584_v41 = vld [vmem:[#allocation4 + $0x174] ss:$36 sps:$4 sm:$0xff]   ;;  %v5596_v45 = vld [vmem:[#allocation4 + $0x1bc] ss:$36 sps:$4 sm:$0xff]   ;;  %s256_s9 = scalar_lea.vmem %s7846_s4, %s3833_s24 }
  0x95   : > { %3849 = vmatprep.subr.msk.bf16.mxu1 %vm508_vm2, %v3847_v47  ;;  %v5588_v43 = vld [vmem:[#allocation4 + $0x170] ss:$36 sps:$4 sm:$0xff]   ;;  %v5600_v47 = vld [vmem:[#allocation4 + $0x1b8] ss:$36 sps:$4 sm:$0xff]  }
  0x96   : > { %v484_v26 = vadd.f32 %v483_v23, %v482_v24  ;;  %v5515_v24 = vld [vmem:[#allocation4] ss:$36 sps:$4 sm:$0xff]   ;;  %v5598_v46 = vld [vmem:[#allocation4 + $0x1b0] ss:$36 sps:$4 sm:$0xff]  }
  0x97   : > { %v5606_v48 = vld [vmem:[#allocation4 + $0x1fc] ss:$36 sps:$4 sm:$0xff]  }
  0x98   : > { %v486_v28 = vadd.f32 %v485_v25, %v484_v26  ;;  %710 = vmatpush1.bf16.msra.mxu1 %v697_v51  ;;  %v5535_v26 = vld [vmem:[#allocation4 + $0x50] ss:$36 sps:$4 sm:$0xff]   ;;  %v5612_v51 = vld [vmem:[#allocation4 + $0x200] ss:$36 sps:$4 sm:$0xff]  }
  0x99   : > { %1603 = vmatprep.subr.bf16.mxu1 %v5503_v53  ;;  %8372 = vst [vmem:[#allocation13_spill] sm:$0xff] %v5612_v51 }
  0x9a   : > { %v488_v29 = vmul.f32 0.125, %v486_v28  ;;  %v5540_v28 = vld [vmem:[#allocation4 + $0x9c] ss:$36 sps:$4 sm:$0xff]  }
  0x9c   : > { %v489_v30 = vpack.c.bf16 %v488_v29, %v488_v29  ;;  %v5543_v29 = vld [vmem:[#allocation4 + $0x90] ss:$36 sps:$4 sm:$0xff]  }
  0x9e   : > { %4255 = vmatmul.mubr.msk.bf16.vlgmr.msra.gmra.mrb[0].mxu0 %vm471_vm1, %v489_v30 }
  0x9f   : > { %4259 = vmatpush3.bf16.msra.mxu0 %v560_v31  ;;  %4260 = vmatprep.mubr.msk.bf16.mxu0 %vm5246_vm0, %v7851_v0  ;;  %v5547_v31 = vld [vmem:[#allocation4 + $0x98] ss:$36 sps:$4 sm:$0xff]   ;;  %v5708_v0 = vld [vmem:[#allocation4 + $0x440] ss:$36 sps:$4 sm:$0xff]  }
  0xa0   : > { %4264 = vmatprep.subr.bf16.mxu0 %v4394_v42  ;;  %8391 = vst [vmem:[#allocation32_spill] sm:$0xff] %v5708_v0 }
 0x171   : > { %v546_v33 = vpop.f32.mrb[0].mxu0 }
 0x172   : > { %v547_v34 = vadd.f32 %v546_v33, %v467_v32  ;;  %v4256_v35 = vpop.f32.mrb[1].mxu0  ;;  %v5549_v32 = vld [vmem:[#allocation4 + $0xdc] ss:$36 sps:$4 sm:$0xff]   ;;  %v5553_v33 = vld [vmem:[#allocation4 + $0xe4] ss:$36 sps:$4 sm:$0xff]  }
 0x173   : > { %v549_v36 = vpop.f32.mrb[2].mxu0  ;;  %v5562_v35 = vld [vmem:[#allocation4 + $0xe0] ss:$36 sps:$4 sm:$0xff]  }
 0x174   : > { %v552_v37 = vmax.f32 %v547_v34, 0.0  ;;  %v4257_v38 = vpop.f32.mrb[3].mxu0  ;;  %v5558_v34 = vld [vmem:[#allocation4 + $0xd8] ss:$36 sps:$4 sm:$0xff]   ;;  %v5570_v36 = vld [vmem:[#allocation4 + $0x124] ss:$36 sps:$4 sm:$0xff]  }
 0x175   : > { %v5574_v38 = vld [vmem:[#allocation4 + $0x120] ss:$36 sps:$4 sm:$0xff]  }
 0x176   : > { %v553_v39 = vpack.c.bf16 %v552_v37, %v552_v37  ;;  %v5572_v37 = vld [vmem:[#allocation4 + $0x12c] ss:$36 sps:$4 sm:$0xff]  }
 0x178   : > { %4261 = vmatmul.mubr.msk.bf16.vlgmr.msra.gmra.mrb[4].mxu0 %vm554_vm4, %v553_v39  ;;  %v5576_v39 = vld [vmem:[#allocation4 + $0x128] ss:$36 sps:$4 sm:$0xff]  }
 0x179   : > { %4265 = vmatpush3.bf16.msra.mxu0 %v4394_v42  ;;  %v5586_v42 = vld [vmem:[#allocation4 + $0x168] ss:$36 sps:$4 sm:$0xff]  }
 0x17a   : > { %4266 = vmatprep.subr.bf16.mxu0 %v4398_v44 }
 0x17d   : > { %4267 = vmatpush3.bf16.msra.mxu0 %v4398_v44  ;;  %v5594_v44 = vld [vmem:[#allocation4 + $0x1b4] ss:$36 sps:$4 sm:$0xff]  }
 0x17e   : > { %4306 = vmatprep.subr.msk.bf16.mxu0 %vm508_vm2, %v4401_v49  ;;  %v5608_v49 = vld [vmem:[#allocation4 + $0x204] ss:$36 sps:$4 sm:$0xff]  }
 0x17f   : > { %8371 = vst [vmem:[#allocation12_spill] sm:$0xff] %v5608_v49 }
 0x181   : > { %4269 = vmatpush3.bf16.msra.mxu0 %v703_v52  ;;  %v5618_v52 = vld [vmem:[#allocation4 + $0x244] ss:$36 sps:$4 sm:$0xff]  }
 0x182   : > { %1644 = vmatprep.subr.bf16.mxu0 %v5505_v54 }
 0x24b   : > { %v596_v56 = vpop.f32.mrb[4].mxu0 }
 0x24c   : > { %v597_v57 = vadd.f32 %v596_v56, %v468_v55  ;;  %v4262_v58 = vpop.f32.mrb[5].mxu0  ;;  %v5620_v55 = vld [vmem:[#allocation4 + $0x24c] ss:$36 sps:$4 sm:$0xff]   ;;  %v5622_v56 = vld [vmem:[#allocation4 + $0x240] ss:$36 sps:$4 sm:$0xff]  }
 0x24d   : > { %v599_v59 = vpop.f32.mrb[6].mxu0  ;;  %8373 = vst [vmem:[#allocation14_spill] sm:$0xff] %v5620_v55  ;;  %v5630_v58 = vld [vmem:[#allocation4 + $0x28c] ss:$36 sps:$4 sm:$0xff]  }
 0x24e   : > { %v3839_v60 = vmul.f32 -1.442695, %v597_v57  ;;  %v4263_v61 = vpop.f32.mrb[7].mxu0  ;;  %v5624_v57 = vld [vmem:[#allocation4 + $0x248] ss:$36 sps:$4 sm:$0xff]  }
 0x24f   : > { %8374 = vst [vmem:[#allocation15_spill] sm:$0xff] %v5624_v57  ;;  %v5632_v59 = vld [vmem:[#allocation4 + $0x294] ss:$36 sps:$4 sm:$0xff]  }
 0x250   : > { %4620 = vpow2.f32 %v3839_v60  ;;  %8375 = vst [vmem:[#allocation16_spill] sm:$0xff] %v5632_v59  ;;  %v5634_v60 = vld [vmem:[#allocation4 + $0x288] ss:$36 sps:$4 sm:$0xff]   ;;  %v5636_v61 = vld [vmem:[#allocation4 + $0x290] ss:$36 sps:$4 sm:$0xff]  }
 0x251   : > { %8376 = vst [vmem:[#allocation17_spill] sm:$0xff] %v5636_v61 }
 0x25a   : > { %v4621_v62 = vpop.eup %4620 }
 0x25b   : > { %v605_v63 = vadd.f32 1.0, %v4621_v62  ;;  %v5642_v62 = vld [vmem:[#allocation4 + $0x2d4] ss:$36 sps:$4 sm:$0xff]  }
 0x25d   : > { %4622 = vrcp.f32 %v605_v63  ;;  %v5644_v63 = vld [vmem:[#allocation4 + $0x2dc] ss:$36 sps:$4 sm:$0xff]  }
 0x25e   : > { %8377 = vst [vmem:[#allocation18_spill] sm:$0xff] %v5644_v63 }
 0x267   : > { %v4623_v1 = vpop.eup %4622 }
 0x268   : > { %v608_v2 = vmul.f32 %v4623_v1, %v5452_v4  ;;  %v609_v3 = vmul.f32 %v4623_v1, %v5456_v5  ;;  %v610_v8 = vmul.f32 %v4623_v1, %v5459_v6  ;;  %v611_v9 = vmul.f32 %v4623_v1, %v5462_v7  ;;  %v5519_v6 = vld [vmem:[#allocation4 + $0x8] ss:$36 sps:$4 sm:$0xff]  }
 0x269   : > { %v612_v10 = vmul.f32 %v4623_v1, %v5471_v11  ;;  %v613_v12 = vmul.f32 %v4623_v1, %v5474_v13  ;;  %v614_v4 = vmul.f32 %v4623_v1, %v5481_v16  ;;  %v615_v5 = vmul.f32 %v4623_v1, %v5486_v19  ;;  %v5521_v7 = vld [vmem:[#allocation4 + $0x4c] ss:$36 sps:$4 sm:$0xff]   ;;  %v5525_v13 = vld [vmem:[#allocation4 + $0x54] ss:$36 sps:$4 sm:$0xff]  }
 0x26a   : > { %v616_v14 = vadd.f32 %v4623_v1, %v608_v2  ;;  %v617_v15 = vadd.f32 %v4623_v1, %v609_v3  ;;  %v618_v17 = vadd.f32 %v4623_v1, %v610_v8  ;;  %v619_v18 = vadd.f32 %v4623_v1, %v611_v9  ;;  %v5531_v16 = vld [vmem:[#allocation4 + $0x48] ss:$36 sps:$4 sm:$0xff]   ;;  %v5648_v2 = vld [vmem:[#allocation4 + $0x2d8] ss:$36 sps:$4 sm:$0xff]  }
 0x26b   : > { %v620_v20 = vadd.f32 %v4623_v1, %v612_v10  ;;  %v621_v21 = vadd.f32 %v4623_v1, %v613_v12  ;;  %v622_v19 = vadd.f32 %v4623_v1, %v614_v4  ;;  %v623_v25 = vadd.f32 %v4623_v1, %v615_v5  ;;  %v5646_v1 = vld [vmem:[#allocation4 + $0x2d0] ss:$36 sps:$4 sm:$0xff]   ;;  %8378 = vst [vmem:[#allocation19_spill] sm:$0xff] %v5648_v2  ;;  %v5654_v3 = vld [vmem:[#allocation4 + $0x31c] ss:$36 sps:$4 sm:$0xff]  }
 0x26c   : > { %v624_v22 = vpack.c.bf16 %v617_v15, %v616_v14  ;;  %v625_v23 = vpack.c.bf16 %v619_v18, %v618_v17  ;;  %v5656_v8 = vld [vmem:[#allocation4 + $0x324] ss:$36 sps:$4 sm:$0xff]   ;;  %v5658_v9 = vld [vmem:[#allocation4 + $0x318] ss:$36 sps:$4 sm:$0xff]   ;;  %v5668_v14 = vld [vmem:[#allocation4 + $0x36c] ss:$36 sps:$4 sm:$0xff]  }
 0x26d   : > { %v626_v11 = vpack.c.bf16 %v621_v21, %v620_v20  ;;  %v627_v30 = vpack.c.bf16 %v623_v25, %v622_v19  ;;  %8379 = vst [vmem:[#allocation20_spill] sm:$0xff] %v5656_v8  ;;  %v5660_v10 = vld [vmem:[#allocation4 + $0x320] ss:$36 sps:$4 sm:$0xff]   ;;  %8381 = vst [vmem:[#allocation22_spill] sm:$0xff] %v5668_v14  ;;  %v5672_v17 = vld [vmem:[#allocation4 + $0x368] ss:$36 sps:$4 sm:$0xff]  }
 0x26e   : > { %3850 = vmatmul.mubr.msk.bf16.vlgmr.msra.gmra.mrb[0].mxu1 %vm471_vm1, %v624_v22  ;;  %4270 = vmatprep.mubr.msk.bf16.mxu0 %vm471_vm1, %v624_v22  ;;  %8380 = vst [vmem:[#allocation21_spill] sm:$0xff] %v5660_v10  ;;  %v5666_v12 = vld [vmem:[#allocation4 + $0x364] ss:$36 sps:$4 sm:$0xff]   ;;  %8382 = vst [vmem:[#allocation23_spill] sm:$0xff] %v5672_v17  ;;  %v5678_v18 = vld [vmem:[#allocation4 + $0x3ac] ss:$36 sps:$4 sm:$0xff]  }
 0x26f   : > { %4271 = vmatmul.mubr.msk.bf16.vlgmr.msra.gmra.mrb[8].mxu0 %vm471_vm1, %v625_v23  ;;  %747 = vmatprep.mubr.bf16.mxu1 %v5247_v50  ;;  %v5670_v15 = vld [vmem:[#allocation4 + $0x360] ss:$36 sps:$4 sm:$0xff]   ;;  %v5680_v20 = vld [vmem:[#allocation4 + $0x3b4] ss:$36 sps:$4 sm:$0xff]   ;;  %v5682_v21 = vld [vmem:[#allocation4 + $0x3a8] ss:$36 sps:$4 sm:$0xff]  }
 0x270   : > { %4274 = vmatprep.mubr.msk.bf16.mxu0 %vm471_vm1, %v626_v11  ;;  %1604 = vmatpush1.bf16.msra.mxu1 %v5515_v24  ;;  %8383 = vst [vmem:[#allocation24_spill] sm:$0xff] %v5680_v20  ;;  %v5684_v22 = vld [vmem:[#allocation4 + $0x3b0] ss:$36 sps:$4 sm:$0xff]   ;;  %v5692_v4 = vld [vmem:[#allocation4 + $0x3fc] ss:$36 sps:$4 sm:$0xff]  }
 0x271   : > { %1645 = vmatpush1.bf16.msra.mxu0 %v5519_v6  ;;  %1605 = vmatprep.subr.bf16.mxu1 %v5521_v7  ;;  %8384 = vst [vmem:[#allocation25_spill] sm:$0xff] %v5684_v22  ;;  %8385 = vst [vmem:[#allocation26_spill] sm:$0xff] %v5692_v4  ;;  %v5694_v5 = vld [vmem:[#allocation4 + $0x3f0] ss:$36 sps:$4 sm:$0xff]   ;;  %v5702_v19 = vld [vmem:[#allocation4 + $0x43c] ss:$36 sps:$4 sm:$0xff]  }
 0x272   : > { %1646 = vmatprep.subr.bf16.mxu0 %v5525_v13  ;;  %8386 = vst [vmem:[#allocation27_spill] sm:$0xff] %v5694_v5  ;;  %8388 = vst [vmem:[#allocation29_spill] sm:$0xff] %v5702_v19  ;;  %v5704_v25 = vld [vmem:[#allocation4 + $0x444] ss:$36 sps:$4 sm:$0xff]  }
 0x273   : > { %8389 = vst [vmem:[#allocation30_spill] sm:$0xff] %v5704_v25 }
 0x274   : > { %1606 = vmatpush1.bf16.msra.mxu1 %v5531_v16 }
 0x275   : > { %1647 = vmatpush1.bf16.msra.mxu0 %v5535_v26  ;;  %1607 = vmatprep.subr.bf16.mxu1 %v5537_v27 }
 0x276   : > { %3851 = vmatmul.mubr.msk.bf16.gmra.mrb[4].mxu1 %vm471_vm1, %v625_v23  ;;  %1648 = vmatprep.subr.bf16.mxu0 %v5540_v28  ;;  %v5690_v23 = vld [vmem:[#allocation4 + $0x3f4] ss:$36 sps:$4 sm:$0xff]  }
 0x277   : > { %4275 = vmatmul.mubr.msk.bf16.gmra.mrb[12].mxu0 %vm471_vm1, %v627_v30  ;;  %757 = vmatprep.mubr.bf16.mxu1 %v5247_v50 }
 0x278   : > { %1608 = vmatpush1.bf16.msra.mxu1 %v5543_v29 }
 0x279   : > { %1649 = vmatpush1.bf16.msra.mxu0 %v5547_v31  ;;  %1609 = vmatprep.subr.bf16.mxu1 %v5549_v32 }
 0x27a   : > { %1650 = vmatprep.subr.bf16.mxu0 %v5553_v33 }
 0x27c   : > { %1610 = vmatpush1.bf16.msra.mxu1 %v5558_v34 }
 0x27d   : > { %1651 = vmatpush1.bf16.msra.mxu0 %v5562_v35  ;;  %1611 = vmatprep.subr.bf16.mxu1 %v5570_v36 }
 0x27e   : > { %3852 = vmatmul.mubr.msk.bf16.gmra.mrb[8].mxu1 %vm471_vm1, %v626_v11  ;;  %1652 = vmatprep.subr.bf16.mxu0 %v5572_v37  ;;  %v5696_v11 = vld [vmem:[#allocation4 + $0x3f8] ss:$36 sps:$4 sm:$0xff]  }
 0x27f   : > { %767 = vmatprep.mubr.bf16.mxu1 %v5247_v50  ;;  %v5610_v50 = vld [vmem:[#allocation4 + $0x1f8] ss:$36 sps:$4 sm:$0xff]   ;;  %8387 = vst [vmem:[#allocation28_spill] sm:$0xff] %v5696_v11 }
 0x280   : > { %1612 = vmatpush1.bf16.msra.mxu1 %v5574_v38 }
 0x281   : > { %1653 = vmatpush1.bf16.msra.mxu0 %v5576_v39  ;;  %1613 = vmatprep.subr.bf16.mxu1 %v5582_v40 }
 0x282   : > { %1654 = vmatprep.subr.bf16.mxu0 %v5584_v41 }
 0x284   : > { %1614 = vmatpush1.bf16.msra.mxu1 %v5586_v42 }
 0x285   : > { %1655 = vmatpush1.bf16.msra.mxu0 %v5588_v43  ;;  %1615 = vmatprep.subr.bf16.mxu1 %v5594_v44 }
 0x286   : > { %3853 = vmatmul.mubr.msk.bf16.gmra.mrb[12].mxu1 %vm471_vm1, %v627_v30  ;;  %1656 = vmatprep.subr.bf16.mxu0 %v5596_v45  ;;  %v5706_v30 = vld [vmem:[#allocation4 + $0x438] ss:$36 sps:$4 sm:$0xff]  }
 0x287   : > { %8390 = vst [vmem:[#allocation31_spill] sm:$0xff] %v5706_v30 }
 0x288   : > { %1616 = vmatpush1.bf16.msra.mxu1 %v5598_v46 }
 0x289   : > { %1657 = vmatpush1.bf16.msra.mxu0 %v5600_v47  ;;  %1617 = vmatprep.subr.bf16.mxu1 %v5606_v48 }
 0x28a   : > { %1658 = vmatprep.subr.bf16.mxu0 %v5608_v49 }
 0x28c   : > { %1618 = vmatpush1.bf16.msra.mxu1 %v5610_v50 }
 0x28d   : > { %1659 = vmatpush1.bf16.msra.mxu0 %v5612_v51  ;;  %1619 = vmatprep.subr.bf16.mxu1 %v5618_v52 }
 0x28e   : > { %1660 = vmatprep.subr.bf16.mxu0 %v5620_v55 }
 0x290   : > { %1620 = vmatpush1.bf16.msra.mxu1 %v5622_v56 }
 0x291   : > { %1661 = vmatpush1.bf16.msra.mxu0 %v5624_v57  ;;  %1621 = vmatprep.subr.bf16.mxu1 %v5630_v58 }
 0x292   : > { %1662 = vmatprep.subr.bf16.mxu0 %v5632_v59 }
 0x294   : > { %1622 = vmatpush1.bf16.msra.mxu1 %v5634_v60 }
 0x295   : > { %1663 = vmatpush1.bf16.msra.mxu0 %v5636_v61  ;;  %1623 = vmatprep.subr.bf16.mxu1 %v5642_v62 }
 0x296   : > { %1664 = vmatprep.subr.bf16.mxu0 %v5644_v63 }
 0x298   : > { %1624 = vmatpush1.bf16.msra.mxu1 %v5646_v1 }
 0x299   : > { %1665 = vmatpush1.bf16.msra.mxu0 %v5648_v2  ;;  %1625 = vmatprep.subr.bf16.mxu1 %v5654_v3 }
 0x29a   : > { %1666 = vmatprep.subr.bf16.mxu0 %v5656_v8 }
 0x29c   : > { %1626 = vmatpush1.bf16.msra.mxu1 %v5658_v9 }
 0x29d   : > { %1667 = vmatpush1.bf16.msra.mxu0 %v5660_v10  ;;  %1627 = vmatprep.subr.bf16.mxu1 %v5666_v12 }
 0x29e   : > { %1668 = vmatprep.subr.bf16.mxu0 %v5668_v14  ;;  %v462_v14 = vld [vmem:[#allocation7] ss:$8 sm:$0x7] }
 0x2a0   : > { %1628 = vmatpush1.bf16.msra.mxu1 %v5670_v15 }
 0x2a1   : > { %1669 = vmatpush1.bf16.msra.mxu0 %v5672_v17  ;;  %1629 = vmatprep.subr.bf16.mxu1 %v5678_v18 }
 0x2a2   : > { %1670 = vmatprep.subr.bf16.mxu0 %v5680_v20  ;;  %v5714_v20 = vld [vmem:[#allocation4 + $0x1c] ss:$36 sps:$4 sm:$0xff]  }
 0x2a3   : > { %8393 = vst [vmem:[#allocation34_spill] sm:$0xff] %v5714_v20 }
 0x2a4   : > { %1630 = vmatpush1.bf16.msra.mxu1 %v5682_v21 }
 0x2a5   : > { %1671 = vmatpush1.bf16.msra.mxu0 %v5684_v22  ;;  %1631 = vmatprep.subr.bf16.mxu1 %v5690_v23  ;;  %v5710_v22 = vld [vmem:[#allocation4 + $0x14] ss:$36 sps:$4 sm:$0xff]  }
 0x2a6   : > { %1672 = vmatprep.subr.bf16.mxu0 %v5692_v4  ;;  %8392 = vst [vmem:[#allocation33_spill] sm:$0xff] %v5710_v22  ;;  %v629_v4 = vlaneseq }
 0x2a8   : > { %1632 = vmatpush1.bf16.msra.mxu1 %v5694_v5  ;;  %v5722_v17 = vshrl.u32 %v629_v4, 7 }
 0x2a9   : > { %1673 = vmatpush1.bf16.msra.mxu0 %v5696_v11  ;;  %1633 = vmatprep.subr.bf16.mxu1 %v5702_v19  ;;  %v7863_v11 = vmov 0.0|0.0  }
 0x2aa   : > { %1674 = vmatprep.subr.bf16.mxu0 %v5704_v25  ;;  %1635 = vmatprep.mubr.bf16.mxu1 %v7863_v11  ;;  %8394 = vst [vmem:[#allocation35_spill] sm:$0xff] %v5722_v17  ;;  %v7876_v25 = vsub.s32 0, %v5722_v17  ;;  %v7878_v10 = vsub.s32 2, %v5722_v17  ;;  %v7880_v8 = vsub.s32 1, %v5722_v17 }
 0x2ab   : > { %1676 = vmatprep.mubr.bf16.mxu0 %v7863_v11 }
 0x2ac   : > { %1634 = vmatpush1.bf16.msra.mxu1 %v5706_v30  ;;  %v640_v11 = vrot.slane %v462_v14, %v7878_v10 }
 0x2ad   : > { %1675 = vmatpush1.bf16.msra.mxu0 %v5708_v0  ;;  %1685 = vmatprep.subr.bf16.mxu1 %v5710_v22  ;;  %v632_v0 = vrot.slane %v462_v14, %v7876_v25 }
 0x2ae   : > { %1726 = vmatprep.subr.bf16.mxu0 %v5714_v20  ;;  %v636_v20 = vrot.slane %v462_v14, %v7880_v8 }
 0x341   : > { %v739_v2 = vpop.f32.mrb[0].mxu1 }
 0x342   : > { %v740_v63 = vadd.f32 %v739_v2, %v632_v0  ;;  %v741_v4 = vpop.f32.mrb[1].mxu1  ;;  %v4272_v61 = vpop.f32.mrb[8].mxu0 }
 0x343   : > { %v5733_v59 = vadd.f32 %v4272_v61, %v640_v11  ;;  %v743_v57 = vpop.f32.mrb[2].mxu1  ;;  %v812_v22 = vpop.f32.mrb[9].mxu0  ;;  %v742_v25 = vadd.f32 %v741_v4, %v636_v20 }
 0x344   : > { %v3858_v30 = vmul.f32 -1.442695, %v740_v63  ;;  %v5735_v55 = vadd.f32 %v743_v57, %v632_v0  ;;  %v745_v51 = vpop.f32.mrb[3].mxu1  ;;  %v4273_v19 = vpop.f32.mrb[10].mxu0 }
 0x345   : > { %8395 = vst [vmem:[#allocation36_spill] sm:$0xff] %v5733_v59  ;;  %v5737_v5 = vadd.f32 %v745_v51, %v636_v20  ;;  %v5739_v10 = vadd.f32 %v4273_v19, %v640_v11  ;;  %v815_v49 = vpop.f32.mrb[11].mxu0  ;;  %v3859_v2 = vmul.f32 -1.442695, %v742_v25 }
 0x346   : > { %8396 = vst [vmem:[#allocation37_spill] sm:$0xff] %v5735_v55  ;;  %4624 = vpow2.f32 %v3858_v30  ;;  %v5741_v14 = vadd.f32 %v815_v49, %v640_v11 }
 0x347   : > { %8397 = vst [vmem:[#allocation38_spill] sm:$0xff] %v5737_v5  ;;  %8398 = vst [vmem:[#allocation39_spill] sm:$0xff] %v5739_v10  ;;  %4626 = vpow2.f32 %v3859_v2 }
 0x348   : > { %8399 = vst [vmem:[#allocation40_spill] sm:$0xff] %v5741_v14 }
 0x349   : > { %v749_v8 = vpop.f32.mrb[4].mxu1 }
 0x34a   : > { %v5743_v61 = vadd.f32 %v749_v8, %v632_v0  ;;  %v751_v59 = vpop.f32.mrb[5].mxu1  ;;  %v4276_v17 = vpop.f32.mrb[12].mxu0 }
 0x34b   : > { %v5745_v63 = vadd.f32 %v751_v59, %v636_v20  ;;  %v5747_v57 = vadd.f32 %v4276_v17, %v640_v11  ;;  %v753_v55 = vpop.f32.mrb[6].mxu1  ;;  %v828_v4 = vpop.f32.mrb[13].mxu0 }
 0x34c   : > { %8400 = vst [vmem:[#allocation41_spill] sm:$0xff] %v5743_v61  ;;  %v5749_v51 = vadd.f32 %v753_v55, %v632_v0  ;;  %v5751_v19 = vadd.f32 %v828_v4, %v640_v11  ;;  %v755_v10 = vpop.f32.mrb[7].mxu1  ;;  %v4277_v30 = vpop.f32.mrb[14].mxu0 }
 0x34d   : > { %8401 = vst [vmem:[#allocation42_spill] sm:$0xff] %v5745_v63  ;;  %8402 = vst [vmem:[#allocation43_spill] sm:$0xff] %v5747_v57  ;;  %v5753_v49 = vadd.f32 %v755_v10, %v636_v20  ;;  %v5755_v25 = vadd.f32 %v4277_v30, %v640_v11  ;;  %v831_v8 = vpop.f32.mrb[15].mxu0 }
 0x34e   : > { %8403 = vst [vmem:[#allocation44_spill] sm:$0xff] %v5749_v51  ;;  %8404 = vst [vmem:[#allocation45_spill] sm:$0xff] %v5751_v19  ;;  %v5757_v61 = vadd.f32 %v831_v8, %v640_v11 }
 0x34f   : > { %8405 = vst [vmem:[#allocation46_spill] sm:$0xff] %v5753_v49  ;;  %8406 = vst [vmem:[#allocation47_spill] sm:$0xff] %v5755_v25 }
 0x350   : > { %8407 = vst [vmem:[#allocation48_spill] sm:$0xff] %v5757_v61  ;;  %v4625_v59 = vpop.eup %4624 }
 0x351   : > { %v851_v63 = vadd.f32 1.0, %v4625_v59  ;;  %v759_v17 = vpop.f32.mrb[8].mxu1  ;;  %v4627_v30 = vpop.eup %4626  ;;  %v5769_v59 = vld [vmem:[#allocation7 + $0x2] ss:$0 sm:$0xff] }
 0x352   : > { %v5759_v57 = vadd.f32 %v759_v17, %v632_v0  ;;  %v761_v14 = vpop.f32.mrb[9].mxu1  ;;  %v852_v49 = vadd.f32 1.0, %v4627_v30 }
 0x353   : > { %4628 = vrcp.f32 %v851_v63  ;;  %v5761_v55 = vadd.f32 %v761_v14, %v636_v20  ;;  %v763_v4 = vpop.f32.mrb[10].mxu1 }
 0x354   : > { %8408 = vst [vmem:[#allocation49_spill] sm:$0xff] %v5759_v57  ;;  %v5763_v19 = vadd.f32 %v763_v4, %v632_v0  ;;  %v765_v2 = vpop.f32.mrb[11].mxu1  ;;  %4630 = vrcp.f32 %v852_v49  ;;  %v8416_v49 = vmov 0.0|0.0  }
 0x355   : > { %8409 = vst [vmem:[#allocation50_spill] sm:$0xff] %v5761_v55  ;;  %v5765_v10 = vadd.f32 %v765_v2, %v636_v20  ;;  %v813_v2 = vadd.f32 %v812_v22, %v640_v11  ;;  %v5788_v22 = vld [vmem:[#allocation4 + $0x5c] ss:$36 sps:$4 sm:$0xff]   ;;  %v5790_v11 = vld [vmem:[#allocation4 + $0x64] ss:$36 sps:$4 sm:$0xff]  }
 0x356   : > { %8410 = vst [vmem:[#allocation51_spill] sm:$0xff] %v5763_v19 }
 0x357   : > { %8411 = vst [vmem:[#allocation52_spill] sm:$0xff] %v5765_v10 }
 0x359   : > { %v769_v25 = vpop.f32.mrb[12].mxu1 }
 0x35a   : > { %v5767_v8 = vadd.f32 %v769_v25, %v632_v0  ;;  %v771_v61 = vpop.f32.mrb[13].mxu1 }
 0x35b   : > { %v5771_v17 = vadd.f32 %v771_v61, %v636_v20  ;;  %v773_v57 = vpop.f32.mrb[14].mxu1 }
 0x35c   : > { %8412 = vst [vmem:[#allocation53_spill] sm:$0xff] %v5767_v8  ;;  %v5773_v63 = vadd.f32 %v773_v57, %v632_v0  ;;  %v775_v14 = vpop.f32.mrb[15].mxu1  ;;  %v5782_v0 = vld [vmem:[#allocation4 + $0x18] ss:$36 sps:$4 sm:$0xff]   ;;  %v5798_v57 = vld [vmem:[#allocation4 + $0x60] ss:$36 sps:$4 sm:$0xff]  }
 0x35d   : > { %8413 = vst [vmem:[#allocation54_spill] sm:$0xff] %v5771_v17  ;;  %v4629_v55 = vpop.eup %4628  ;;  %v5775_v4 = vadd.f32 %v775_v14, %v636_v20  ;;  %v5780_v17 = vld [vmem:[#allocation4 + $0x10] ss:$36 sps:$4 sm:$0xff]  }
 0x35e   : > { %8414 = vst [vmem:[#allocation55_spill] sm:$0xff] %v5773_v63  ;;  %v858_v10 = vmul.f32 %v4629_v55, %v5769_v59  ;;  %v4631_v25 = vpop.eup %4630  ;;  %v5810_v55 = vld [vmem:[#allocation4 + $0xa0] ss:$36 sps:$4 sm:$0xff]   ;;  %v5818_v14 = vld [vmem:[#allocation4 + $0xf4] ss:$36 sps:$4 sm:$0xff]  }
 0x35f   : > { %8415 = vst [vmem:[#allocation56_spill] sm:$0xff] %v5775_v4  ;;  %v861_v30 = vsub.f32 1.0, %v4631_v25  ;;  %v863_v51 = vmul.f32 0.0, %v4631_v25  ;;  %8417 = vst [vmem:[#allocation57_spill] sm:$0xff] %v5810_v55  ;;  %v5824_v25 = vld [vmem:[#allocation4 + $0xf0] ss:$36 sps:$4 sm:$0xff]  }
 0x360   : > { %v859_v19 = vadd.f32 %v858_v10, %v813_v2  ;;  %v5812_v10 = vld [vmem:[#allocation4 + $0xa8] ss:$36 sps:$4 sm:$0xff]   ;;  %8420 = vst [vmem:[#allocation60_spill] sm:$0xff] %v5818_v14  ;;  %8422 = vst [vmem:[#allocation62_spill] sm:$0xff] %v5824_v25  ;;  %v5830_v4 = vld [vmem:[#allocation4 + $0x13c] ss:$36 sps:$4 sm:$0xff]  }
 0x361   : > { %8418 = vst [vmem:[#allocation58_spill] sm:$0xff] %v5812_v10  ;;  %v5822_v2 = vld [vmem:[#allocation4 + $0xe8] ss:$36 sps:$4 sm:$0xff]   ;;  %8424 = vst [vmem:[#allocation64_spill] sm:$0xff] %v5830_v4  ;;  %v5834_v63 = vld [vmem:[#allocation4 + $0x130] ss:$36 sps:$4 sm:$0xff]  }
 0x362   : > { %4632 = vtanh.f32 %v859_v19  ;;  %v5804_v19 = vld [vmem:[#allocation4 + $0xac] ss:$36 sps:$4 sm:$0xff]   ;;  %8421 = vst [vmem:[#allocation61_spill] sm:$0xff] %v5822_v2  ;;  %8425 = vst [vmem:[#allocation65_spill] sm:$0xff] %v5834_v63 }
 0x36c   : > { %v4633_v8 = vpop.eup %4632 }
 0x36d   : > { %v862_v5 = vmul.f32 %v4633_v8, %v861_v30  ;;  %v5816_v8 = vld [vmem:[#allocation4 + $0xec] ss:$36 sps:$4 sm:$0xff]   ;;  %v5828_v30 = vld [vmem:[#allocation4 + $0x134] ss:$36 sps:$4 sm:$0xff]  }
 0x36e   : > { %8419 = vst [vmem:[#allocation59_spill] sm:$0xff] %v5816_v8  ;;  %8423 = vst [vmem:[#allocation63_spill] sm:$0xff] %v5828_v30 }
 0x36f   : > { %v5778_v61 = vadd.f32 %v863_v51, %v862_v5  ;;  %v5796_v5 = vld [vmem:[#allocation4 + $0x58] ss:$36 sps:$4 sm:$0xff]   ;;  %v5802_v51 = vld [vmem:[#allocation4 + $0xa4] ss:$36 sps:$4 sm:$0xff]  }
 0x371   : > { %v5786_v20 = vpack.c.bf16 %v5778_v61, %v5778_v61 }
 0x373   : > { %1636 = vmatmul.mubr.bf16.vlgmr.msra.gmra.mrb[16].mxu1 %v5786_v20  ;;  %1677 = vmatmul.mubr.bf16.vlgmr.msra.gmra.mrb[16].mxu0 %v5786_v20 }
 0x374   : > { %1686 = vmatpush1.bf16.msra.mxu1 %v5780_v17  ;;  %1727 = vmatpush1.bf16.msra.mxu0 %v5782_v0 }
 0x375   : > { %1687 = vmatprep.subr.bf16.mxu1 %v5788_v22  ;;  %1728 = vmatprep.subr.bf16.mxu0 %v5790_v11 }
 0x376   : > { %1717 = vmatprep.mubr.bf16.mxu1 %v8416_v49  ;;  %1758 = vmatprep.mubr.bf16.mxu0 %v8416_v49 }
 0x378   : > { %1688 = vmatpush1.bf16.msra.mxu1 %v5796_v5  ;;  %1729 = vmatpush1.bf16.msra.mxu0 %v5798_v57 }
 0x379   : > { %1689 = vmatprep.subr.bf16.mxu1 %v5802_v51  ;;  %1730 = vmatprep.subr.bf16.mxu0 %v5804_v19 }
 0x37c   : > { %1690 = vmatpush1.bf16.msra.mxu1 %v5810_v55  ;;  %1731 = vmatpush1.bf16.msra.mxu0 %v5812_v10  ;;  %v5836_v55 = vld [vmem:[#allocation4 + $0x138] ss:$36 sps:$4 sm:$0xff]  }
 0x37d   : > { %1691 = vmatprep.subr.bf16.mxu1 %v5816_v8  ;;  %1732 = vmatprep.subr.bf16.mxu0 %v5818_v14  ;;  %8426 = vst [vmem:[#allocation66_spill] sm:$0xff] %v5836_v55  ;;  %v5840_v10 = vld [vmem:[#allocation4 + $0x17c] ss:$36 sps:$4 sm:$0xff]   ;;  %v5842_v8 = vld [vmem:[#allocation4 + $0x184] ss:$36 sps:$4 sm:$0xff]  }
 0x37e   : > { %8427 = vst [vmem:[#allocation67_spill] sm:$0xff] %v5840_v10  ;;  %8428 = vst [vmem:[#allocation68_spill] sm:$0xff] %v5842_v8  ;;  %v5846_v14 = vld [vmem:[#allocation4 + $0x178] ss:$36 sps:$4 sm:$0xff]  }
 0x37f   : > { %8429 = vst [vmem:[#allocation69_spill] sm:$0xff] %v5846_v14 }
 0x380   : > { %1692 = vmatpush1.bf16.msra.mxu1 %v5822_v2  ;;  %1733 = vmatpush1.bf16.msra.mxu0 %v5824_v25  ;;  %v5848_v2 = vld [vmem:[#allocation4 + $0x180] ss:$36 sps:$4 sm:$0xff]  }
 0x381   : > { %1693 = vmatprep.subr.bf16.mxu1 %v5828_v30  ;;  %1734 = vmatprep.subr.bf16.mxu0 %v5830_v4  ;;  %8430 = vst [vmem:[#allocation70_spill] sm:$0xff] %v5848_v2  ;;  %v5852_v25 = vld [vmem:[#allocation4 + $0x1c4] ss:$36 sps:$4 sm:$0xff]   ;;  %v5854_v30 = vld [vmem:[#allocation4 + $0x1cc] ss:$36 sps:$4 sm:$0xff]  }
 0x382   : > { %8431 = vst [vmem:[#allocation71_spill] sm:$0xff] %v5852_v25  ;;  %8432 = vst [vmem:[#allocation72_spill] sm:$0xff] %v5854_v30  ;;  %v5858_v4 = vld [vmem:[#allocation4 + $0x1c0] ss:$36 sps:$4 sm:$0xff]  }
 0x383   : > { %8433 = vst [vmem:[#allocation73_spill] sm:$0xff] %v5858_v4 }
 0x384   : > { %1694 = vmatpush1.bf16.msra.mxu1 %v5834_v63  ;;  %1735 = vmatpush1.bf16.msra.mxu0 %v5836_v55  ;;  %v5860_v63 = vld [vmem:[#allocation4 + $0x1c8] ss:$36 sps:$4 sm:$0xff]  }
 0x385   : > { %1695 = vmatprep.subr.bf16.mxu1 %v5840_v10  ;;  %1736 = vmatprep.subr.bf16.mxu0 %v5842_v8  ;;  %8434 = vst [vmem:[#allocation74_spill] sm:$0xff] %v5860_v63  ;;  %v5864_v55 = vld [vmem:[#allocation4 + $0x20c] ss:$36 sps:$4 sm:$0xff]   ;;  %v5866_v10 = vld [vmem:[#allocation4 + $0x214] ss:$36 sps:$4 sm:$0xff]  }
 0x386   : > { %8435 = vst [vmem:[#allocation75_spill] sm:$0xff] %v5864_v55  ;;  %8436 = vst [vmem:[#allocation76_spill] sm:$0xff] %v5866_v10  ;;  %v5870_v8 = vld [vmem:[#allocation4 + $0x208] ss:$36 sps:$4 sm:$0xff]  }
 0x387   : > { %8437 = vst [vmem:[#allocation77_spill] sm:$0xff] %v5870_v8 }
 0x388   : > { %1696 = vmatpush1.bf16.msra.mxu1 %v5846_v14  ;;  %1737 = vmatpush1.bf16.msra.mxu0 %v5848_v2  ;;  %v5872_v14 = vld [vmem:[#allocation4 + $0x210] ss:$36 sps:$4 sm:$0xff]  }
 0x389   : > { %1697 = vmatprep.subr.bf16.mxu1 %v5852_v25  ;;  %1738 = vmatprep.subr.bf16.mxu0 %v5854_v30  ;;  %8438 = vst [vmem:[#allocation78_spill] sm:$0xff] %v5872_v14  ;;  %v5876_v2 = vld [vmem:[#allocation4 + $0x254] ss:$36 sps:$4 sm:$0xff]   ;;  %v5878_v25 = vld [vmem:[#allocation4 + $0x25c] ss:$36 sps:$4 sm:$0xff]  }
 0x38a   : > { %8439 = vst [vmem:[#allocation79_spill] sm:$0xff] %v5876_v2  ;;  %8440 = vst [vmem:[#allocation80_spill] sm:$0xff] %v5878_v25  ;;  %v5882_v30 = vld [vmem:[#allocation4 + $0x250] ss:$36 sps:$4 sm:$0xff]  }
 0x38b   : > { %8441 = vst [vmem:[#allocation81_spill] sm:$0xff] %v5882_v30 }
 0x38c   : > { %1698 = vmatpush1.bf16.msra.mxu1 %v5858_v4  ;;  %1739 = vmatpush1.bf16.msra.mxu0 %v5860_v63  ;;  %v5884_v4 = vld [vmem:[#allocation4 + $0x258] ss:$36 sps:$4 sm:$0xff]  }
 0x38d   : > { %1699 = vmatprep.subr.bf16.mxu1 %v5864_v55  ;;  %1740 = vmatprep.subr.bf16.mxu0 %v5866_v10  ;;  %8442 = vst [vmem:[#allocation82_spill] sm:$0xff] %v5884_v4  ;;  %v5888_v63 = vld [vmem:[#allocation4 + $0x29c] ss:$36 sps:$4 sm:$0xff]   ;;  %v5890_v55 = vld [vmem:[#allocation4 + $0x2a4] ss:$36 sps:$4 sm:$0xff]  }
 0x38e   : > { %8443 = vst [vmem:[#allocation83_spill] sm:$0xff] %v5888_v63  ;;  %8444 = vst [vmem:[#allocation84_spill] sm:$0xff] %v5890_v55  ;;  %v5894_v10 = vld [vmem:[#allocation4 + $0x298] ss:$36 sps:$4 sm:$0xff]  }
 0x38f   : > { %8445 = vst [vmem:[#allocation85_spill] sm:$0xff] %v5894_v10 }
 0x390   : > { %1700 = vmatpush1.bf16.msra.mxu1 %v5870_v8  ;;  %1741 = vmatpush1.bf16.msra.mxu0 %v5872_v14  ;;  %v5896_v8 = vld [vmem:[#allocation4 + $0x2a0] ss:$36 sps:$4 sm:$0xff]  }
 0x391   : > { %1701 = vmatprep.subr.bf16.mxu1 %v5876_v2  ;;  %1742 = vmatprep.subr.bf16.mxu0 %v5878_v25  ;;  %8446 = vst [vmem:[#allocation86_spill] sm:$0xff] %v5896_v8  ;;  %v5900_v14 = vld [vmem:[#allocation4 + $0x2e4] ss:$36 sps:$4 sm:$0xff]   ;;  %v5902_v2 = vld [vmem:[#allocation4 + $0x2ec] ss:$36 sps:$4 sm:$0xff]  }
 0x392   : > { %8447 = vst [vmem:[#allocation87_spill] sm:$0xff] %v5900_v14  ;;  %8448 = vst [vmem:[#allocation88_spill] sm:$0xff] %v5902_v2  ;;  %v5906_v25 = vld [vmem:[#allocation4 + $0x2e0] ss:$36 sps:$4 sm:$0xff]  }
 0x393   : > { %8449 = vst [vmem:[#allocation89_spill] sm:$0xff] %v5906_v25 }
 0x394   : > { %1702 = vmatpush1.bf16.msra.mxu1 %v5882_v30  ;;  %1743 = vmatpush1.bf16.msra.mxu0 %v5884_v4  ;;  %v5908_v30 = vld [vmem:[#allocation4 + $0x2e8] ss:$36 sps:$4 sm:$0xff]  }
 0x395   : > { %1703 = vmatprep.subr.bf16.mxu1 %v5888_v63  ;;  %1744 = vmatprep.subr.bf16.mxu0 %v5890_v55  ;;  %8450 = vst [vmem:[#allocation90_spill] sm:$0xff] %v5908_v30  ;;  %v5912_v4 = vld [vmem:[#allocation4 + $0x32c] ss:$36 sps:$4 sm:$0xff]   ;;  %v5914_v63 = vld [vmem:[#allocation4 + $0x334] ss:$36 sps:$4 sm:$0xff]  }
 0x396   : > { %8451 = vst [vmem:[#allocation91_spill] sm:$0xff] %v5912_v4  ;;  %8452 = vst [vmem:[#allocation92_spill] sm:$0xff] %v5914_v63  ;;  %v5918_v55 = vld [vmem:[#allocation4 + $0x328] ss:$36 sps:$4 sm:$0xff]  }
 0x397   : > { %8453 = vst [vmem:[#allocation93_spill] sm:$0xff] %v5918_v55 }
 0x398   : > { %1704 = vmatpush1.bf16.msra.mxu1 %v5894_v10  ;;  %1745 = vmatpush1.bf16.msra.mxu0 %v5896_v8  ;;  %v5920_v10 = vld [vmem:[#allocation4 + $0x330] ss:$36 sps:$4 sm:$0xff]  }
 0x399   : > { %1705 = vmatprep.subr.bf16.mxu1 %v5900_v14  ;;  %1746 = vmatprep.subr.bf16.mxu0 %v5902_v2  ;;  %8454 = vst [vmem:[#allocation94_spill] sm:$0xff] %v5920_v10  ;;  %v5924_v8 = vld [vmem:[#allocation4 + $0x374] ss:$36 sps:$4 sm:$0xff]   ;;  %v5926_v14 = vld [vmem:[#allocation4 + $0x37c] ss:$36 sps:$4 sm:$0xff]  }
 0x39a   : > { %8455 = vst [vmem:[#allocation95_spill] sm:$0xff] %v5924_v8  ;;  %8456 = vst [vmem:[#allocation96_spill] sm:$0xff] %v5926_v14  ;;  %v5930_v2 = vld [vmem:[#allocation4 + $0x370] ss:$36 sps:$4 sm:$0xff]  }
 0x39b   : > { %8457 = vst [vmem:[#allocation97_spill] sm:$0xff] %v5930_v2 }
 0x39c   : > { %1706 = vmatpush1.bf16.msra.mxu1 %v5906_v25  ;;  %1747 = vmatpush1.bf16.msra.mxu0 %v5908_v30  ;;  %v5932_v25 = vld [vmem:[#allocation4 + $0x378] ss:$36 sps:$4 sm:$0xff]  }
 0x39d   : > { %1707 = vmatprep.subr.bf16.mxu1 %v5912_v4  ;;  %1748 = vmatprep.subr.bf16.mxu0 %v5914_v63  ;;  %8458 = vst [vmem:[#allocation98_spill] sm:$0xff] %v5932_v25  ;;  %v5936_v30 = vld [vmem:[#allocation4 + $0x3bc] ss:$36 sps:$4 sm:$0xff]   ;;  %v5938_v4 = vld [vmem:[#allocation4 + $0x3c4] ss:$36 sps:$4 sm:$0xff]  }
 0x39e   : > { %8459 = vst [vmem:[#allocation99_spill] sm:$0xff] %v5936_v30  ;;  %8460 = vst [vmem:[#allocation100_spill] sm:$0xff] %v5938_v4  ;;  %v5942_v63 = vld [vmem:[#allocation4 + $0x3b8] ss:$36 sps:$4 sm:$0xff]  }
 0x39f   : > { %8461 = vst [vmem:[#allocation101_spill] sm:$0xff] %v5942_v63 }
 0x3a0   : > { %1708 = vmatpush1.bf16.msra.mxu1 %v5918_v55  ;;  %1749 = vmatpush1.bf16.msra.mxu0 %v5920_v10  ;;  %v5944_v55 = vld [vmem:[#allocation4 + $0x3c0] ss:$36 sps:$4 sm:$0xff]  }
 0x3a1   : > { %1709 = vmatprep.subr.bf16.mxu1 %v5924_v8  ;;  %1750 = vmatprep.subr.bf16.mxu0 %v5926_v14  ;;  %8462 = vst [vmem:[#allocation102_spill] sm:$0xff] %v5944_v55  ;;  %v5948_v10 = vld [vmem:[#allocation4 + $0x404] ss:$36 sps:$4 sm:$0xff]   ;;  %v5950_v8 = vld [vmem:[#allocation4 + $0x40c] ss:$36 sps:$4 sm:$0xff]  }
 0x3a2   : > { %8463 = vst [vmem:[#allocation103_spill] sm:$0xff] %v5950_v8  ;;  %v5954_v14 = vld [vmem:[#allocation4 + $0x400] ss:$36 sps:$4 sm:$0xff]  }
 0x3a3   : > { %8464 = vst [vmem:[#allocation104_spill] sm:$0xff] %v5954_v14 }
 0x3a4   : > { %1710 = vmatpush1.bf16.msra.mxu1 %v5930_v2  ;;  %1751 = vmatpush1.bf16.msra.mxu0 %v5932_v25  ;;  %v5956_v2 = vld [vmem:[#allocation4 + $0x408] ss:$36 sps:$4 sm:$0xff]  }
 0x3a5   : > { %1711 = vmatprep.subr.bf16.mxu1 %v5936_v30  ;;  %1752 = vmatprep.subr.bf16.mxu0 %v5938_v4  ;;  %v5960_v25 = vld [vmem:[#allocation4 + $0x44c] ss:$36 sps:$4 sm:$0xff]   ;;  %v5962_v30 = vld [vmem:[#allocation4 + $0x454] ss:$36 sps:$4 sm:$0xff]  }
 0x3a6   : > { %8465 = vst [vmem:[#allocation105_spill] sm:$0xff] %v5962_v30  ;;  %v5966_v4 = vld [vmem:[#allocation4 + $0x448] ss:$36 sps:$4 sm:$0xff]  }
 0x3a8   : > { %1712 = vmatpush1.bf16.msra.mxu1 %v5942_v63  ;;  %1753 = vmatpush1.bf16.msra.mxu0 %v5944_v55  ;;  %v5968_v63 = vld [vmem:[#allocation4 + $0x450] ss:$36 sps:$4 sm:$0xff]   ;;  %v5972_v55 = vld [vmem:[#allocation4 + $0x260] ss:$36 sps:$4 sm:$0xff]  }
 0x3a9   : > { %1713 = vmatprep.subr.bf16.mxu1 %v5948_v10  ;;  %1754 = vmatprep.subr.bf16.mxu0 %v5950_v8  ;;  %8466 = vst [vmem:[#allocation106_spill] sm:$0xff] %v5968_v63  ;;  %8467 = vst [vmem:[#allocation107_spill] sm:$0xff] %v5972_v55  ;;  %v5976_v8 = vld [vmem:[#allocation4 + $0x20] ss:$36 sps:$4 sm:$0xff]  }
 0x3aa   : > { %8468 = vst [vmem:[#allocation108_spill] sm:$0xff] %v5976_v8 }
 0x3ac   : > { %1714 = vmatpush1.bf16.msra.mxu1 %v5954_v14  ;;  %1755 = vmatpush1.bf16.msra.mxu0 %v5956_v2  ;;  %v5979_v14 = vld [vmem:[#allocation4 + $0x2a8] ss:$36 sps:$4 sm:$0xff]  }
 0x3ad   : > { %1715 = vmatprep.subr.bf16.mxu1 %v5960_v25  ;;  %1756 = vmatprep.subr.bf16.mxu0 %v5962_v30  ;;  %8469 = vst [vmem:[#allocation109_spill] sm:$0xff] %v5979_v14  ;;  %v5985_v30 = vld [vmem:[#allocation4 + $0x68] ss:$36 sps:$4 sm:$0xff]  }
 0x3ae   : > { %8470 = vst [vmem:[#allocation110_spill] sm:$0xff] %v5985_v30 }
 0x3b0   : > { %1716 = vmatpush1.bf16.msra.mxu1 %v5966_v4  ;;  %1757 = vmatpush1.bf16.msra.mxu0 %v5968_v63  ;;  %v5989_v63 = vld [vmem:[#allocation4 + $0x2f0] ss:$36 sps:$4 sm:$0xff]  }
 0x3b1   : > { %4060 = vmatprep.subr.bf16.mxu1 %v5972_v55  ;;  %1872 = vmatprep.subr.bf16.mxu0 %v5503_v53  ;;  %8471 = vst [vmem:[#allocation111_spill] sm:$0xff] %v5989_v63  ;;  %v5994_v53 = vld [vmem:[#allocation4 + $0xb0] ss:$36 sps:$4 sm:$0xff]   ;;  %v5997_v55 = vld [vmem:[#allocation4 + $0x338] ss:$36 sps:$4 sm:$0xff]  }
 0x3b2   : > { %8472 = vst [vmem:[#allocation112_spill] sm:$0xff] %v5994_v53  ;;  %8473 = vst [vmem:[#allocation113_spill] sm:$0xff] %v5997_v55 }
 0x3b3   : > { %1718 = vmatmul.mubr.bf16.vlgmr.msra.gmra.mrb[20].mxu1 %v5786_v20  ;;  %1759 = vmatmul.mubr.bf16.vlgmr.msra.gmra.mrb[20].mxu0 %v5786_v20 }
 0x3b4   : > { %4061 = vmatpush3.bf16.msra.mxu1 %v5976_v8  ;;  %1799 = vmatprep.mubr.bf16.mxu1 %v8416_v49  ;;  %v6002_v49 = vld [vmem:[#allocation4 + $0xf8] ss:$36 sps:$4 sm:$0xff]  }
 0x3b5   : > { %4062 = vmatprep.subr.bf16.mxu1 %v5979_v14  ;;  %1873 = vmatpush1.bf16.msra.mxu0 %v5515_v24  ;;  %8474 = vst [vmem:[#allocation114_spill] sm:$0xff] %v6002_v49  ;;  %v6005_v24 = vld [vmem:[#allocation4 + $0x380] ss:$36 sps:$4 sm:$0xff]  }
 0x3b6   : > { %1874 = vmatprep.subr.bf16.mxu0 %v5521_v7  ;;  %8475 = vst [vmem:[#allocation115_spill] sm:$0xff] %v6005_v24  ;;  %v6010_v7 = vld [vmem:[#allocation4 + $0x140] ss:$36 sps:$4 sm:$0xff]  }
 0x3b7   : > { %8476 = vst [vmem:[#allocation116_spill] sm:$0xff] %v6010_v7 }
 0x3b8   : > { %4063 = vmatpush3.bf16.msra.mxu1 %v5985_v30 }
 0x3b9   : > { %4064 = vmatprep.subr.bf16.mxu1 %v5989_v63  ;;  %1875 = vmatpush1.bf16.msra.mxu0 %v5531_v16  ;;  %v6013_v16 = vld [vmem:[#allocation4 + $0x3c8] ss:$36 sps:$4 sm:$0xff]  }
 0x3ba   : > { %1876 = vmatprep.subr.bf16.mxu0 %v5537_v27  ;;  %8477 = vst [vmem:[#allocation117_spill] sm:$0xff] %v6013_v16  ;;  %v6018_v27 = vld [vmem:[#allocation4 + $0x188] ss:$36 sps:$4 sm:$0xff]  }
 0x3bb   : > { %8478 = vst [vmem:[#allocation118_spill] sm:$0xff] %v6018_v27 }
 0x3bc   : > { %4065 = vmatpush3.bf16.msra.mxu1 %v5994_v53 }
 0x3bd   : > { %4066 = vmatprep.subr.bf16.mxu1 %v5997_v55  ;;  %1877 = vmatpush1.bf16.msra.mxu0 %v5543_v29  ;;  %v6021_v29 = vld [vmem:[#allocation4 + $0x410] ss:$36 sps:$4 sm:$0xff]  }
 0x3be   : > { %1878 = vmatprep.subr.bf16.mxu0 %v5549_v32  ;;  %8479 = vst [vmem:[#allocation119_spill] sm:$0xff] %v6021_v29  ;;  %v6026_v32 = vld [vmem:[#allocation4 + $0x1d0] ss:$36 sps:$4 sm:$0xff]  }
 0x3bf   : > { %8480 = vst [vmem:[#allocation120_spill] sm:$0xff] %v6026_v32 }
 0x3c0   : > { %4067 = vmatpush3.bf16.msra.mxu1 %v6002_v49 }
 0x3c1   : > { %4068 = vmatprep.subr.bf16.mxu1 %v6005_v24  ;;  %1879 = vmatpush1.bf16.msra.mxu0 %v5558_v34  ;;  %v6029_v34 = vld [vmem:[#allocation4 + $0x458] ss:$36 sps:$4 sm:$0xff]  }
 0x3c2   : > { %1880 = vmatprep.subr.bf16.mxu0 %v5570_v36  ;;  %8481 = vst [vmem:[#allocation121_spill] sm:$0xff] %v6029_v34  ;;  %v6034_v36 = vld [vmem:[#allocation4 + $0x218] ss:$36 sps:$4 sm:$0xff]  }
 0x3c3   : > { %8482 = vst [vmem:[#allocation122_spill] sm:$0xff] %v6034_v36 }
 0x3c4   : > { %4069 = vmatpush3.bf16.msra.mxu1 %v6010_v7 }
 0x3c5   : > { %4070 = vmatprep.subr.bf16.mxu1 %v6013_v16  ;;  %1881 = vmatpush1.bf16.msra.mxu0 %v5574_v38  ;;  %v8492_v38 = vld [vmem:[#allocation17_spill] sm:$0xff] }
 0x3c6   : > { %1882 = vmatprep.subr.bf16.mxu0 %v5582_v40  ;;  %v8494_v40 = vld [vmem:[#allocation19_spill] sm:$0xff] }
 0x3c8   : > { %4071 = vmatpush3.bf16.msra.mxu1 %v6018_v27 }
 0x3c9   : > { %4072 = vmatprep.subr.bf16.mxu1 %v6021_v29  ;;  %1883 = vmatpush1.bf16.msra.mxu0 %v5586_v42  ;;  %v8496_v42 = vld [vmem:[#allocation21_spill] sm:$0xff] }
 0x3ca   : > { %1884 = vmatprep.subr.bf16.mxu0 %v5594_v44  ;;  %v8498_v44 = vld [vmem:[#allocation23_spill] sm:$0xff] }
 0x3cc   : > { %4073 = vmatpush3.bf16.msra.mxu1 %v6026_v32 }
 0x3cd   : > { %4074 = vmatprep.subr.bf16.mxu1 %v6029_v34  ;;  %1885 = vmatpush1.bf16.msra.mxu0 %v5598_v46  ;;  %v8500_v46 = vld [vmem:[#allocation25_spill] sm:$0xff] }
 0x3ce   : > { %1886 = vmatprep.subr.bf16.mxu0 %v5606_v48  ;;  %v8502_v48 = vld [vmem:[#allocation28_spill] sm:$0xff] }
 0x3d0   : > { %4075 = vmatpush3.bf16.msra.mxu1 %v6034_v36 }
 0x3d1   : > { %1913 = vmatprep.subr.bf16.mxu1 %v5505_v54  ;;  %1887 = vmatpush1.bf16.msra.mxu0 %v5610_v50  ;;  %v8483_v54 = vld [vmem:[#allocation12_spill] sm:$0xff]  ;;  %v8503_v50 = vld [vmem:[#allocation30_spill] sm:$0xff] }
 0x3d2   : > { %1888 = vmatprep.subr.bf16.mxu0 %v5618_v52  ;;  %v8504_v52 = vld [vmem:[#allocation32_spill] sm:$0xff] }
 0x3d3   : > { %1800 = vmatmul.mubr.bf16.vlgmr.msra.gmra.mrb[24].mxu1 %v5786_v20 }
 0x3d4   : > { %1914 = vmatpush1.bf16.msra.mxu1 %v5519_v6  ;;  %v8484_v6 = vld [vmem:[#allocation27_spill] sm:$0xff] }
 0x3d5   : > { %1915 = vmatprep.subr.bf16.mxu1 %v5525_v13  ;;  %1889 = vmatpush1.bf16.msra.mxu0 %v5622_v56  ;;  %v8485_v13 = vld [vmem:[#allocation29_spill] sm:$0xff]  ;;  %v8505_v56 = vld [vmem:[#allocation34_spill] sm:$0xff] }
 0x3d6   : > { %1890 = vmatprep.subr.bf16.mxu0 %v5630_v58 }
 0x3d8   : > { %1916 = vmatpush1.bf16.msra.mxu1 %v5535_v26  ;;  %v8486_v26 = vld [vmem:[#allocation13_spill] sm:$0xff] }
 0x3d9   : > { %1917 = vmatprep.subr.bf16.mxu1 %v5540_v28  ;;  %1891 = vmatpush1.bf16.msra.mxu0 %v5634_v60  ;;  %v8487_v28 = vld [vmem:[#allocation14_spill] sm:$0xff] }
 0x3da   : > { %1892 = vmatprep.subr.bf16.mxu0 %v5642_v62  ;;  %v8506_v62 = vld [vmem:[#allocation37_spill] sm:$0xff] }
 0x3dc   : > { %1918 = vmatpush1.bf16.msra.mxu1 %v5547_v31  ;;  %v8488_v31 = vld [vmem:[#allocation31_spill] sm:$0xff] }
 0x3dd   : > { %1919 = vmatprep.subr.bf16.mxu1 %v5553_v33  ;;  %1893 = vmatpush1.bf16.msra.mxu0 %v5646_v1  ;;  %v8489_v33 = vld [vmem:[#allocation33_spill] sm:$0xff] }
 0x3de   : > { %1894 = vmatprep.subr.bf16.mxu0 %v5654_v3 }
 0x3e0   : > { %1920 = vmatpush1.bf16.msra.mxu1 %v5562_v35  ;;  %v8490_v35 = vld [vmem:[#allocation15_spill] sm:$0xff] }
 0x3e1   : > { %1921 = vmatprep.subr.bf16.mxu1 %v5572_v37  ;;  %1895 = vmatpush1.bf16.msra.mxu0 %v5658_v9  ;;  %v8491_v37 = vld [vmem:[#allocation16_spill] sm:$0xff] }
 0x3e2   : > { %1896 = vmatprep.subr.bf16.mxu0 %v5666_v12  ;;  %v8507_v12 = vld [vmem:[#allocation38_spill] sm:$0xff] }
 0x3e4   : > { %1922 = vmatpush1.bf16.msra.mxu1 %v5576_v39  ;;  %v8493_v39 = vld [vmem:[#allocation18_spill] sm:$0xff] }
 0x3e5   : > { %1923 = vmatprep.subr.bf16.mxu1 %v5584_v41  ;;  %1897 = vmatpush1.bf16.msra.mxu0 %v5670_v15  ;;  %v8495_v41 = vld [vmem:[#allocation20_spill] sm:$0xff] }
 0x3e6   : > { %1898 = vmatprep.subr.bf16.mxu0 %v5678_v18 }
 0x3e8   : > { %1924 = vmatpush1.bf16.msra.mxu1 %v5588_v43  ;;  %v8497_v43 = vld [vmem:[#allocation22_spill] sm:$0xff] }
 0x3e9   : > { %1925 = vmatprep.subr.bf16.mxu1 %v5596_v45  ;;  %1899 = vmatpush1.bf16.msra.mxu0 %v5682_v21  ;;  %v8499_v45 = vld [vmem:[#allocation24_spill] sm:$0xff] }
 0x3ea   : > { %1900 = vmatprep.subr.bf16.mxu0 %v5690_v23 }
 0x3ec   : > { %1926 = vmatpush1.bf16.msra.mxu1 %v5600_v47  ;;  %v8501_v47 = vld [vmem:[#allocation26_spill] sm:$0xff] }
 0x3ed   : > { %1927 = vmatprep.subr.bf16.mxu1 %v8483_v54  ;;  %1901 = vmatpush1.bf16.msra.mxu0 %v8484_v6 }
 0x3ee   : > { %1902 = vmatprep.subr.bf16.mxu0 %v8485_v13 }
 0x3f0   : > { %1928 = vmatpush1.bf16.msra.mxu1 %v8486_v26 }
 0x3f1   : > { %1929 = vmatprep.subr.bf16.mxu1 %v8487_v28  ;;  %1903 = vmatpush1.bf16.msra.mxu0 %v8488_v31 }
 0x3f2   : > { %1954 = vmatprep.subr.bf16.mxu0 %v8489_v33 }
 0x3f4   : > { %1930 = vmatpush1.bf16.msra.mxu1 %v8490_v35 }
 0x3f5   : > { %1931 = vmatprep.subr.bf16.mxu1 %v8491_v37 }
 0x3f8   : > { %1932 = vmatpush1.bf16.msra.mxu1 %v8492_v38  ;;  %v8508_v38 = vld [vmem:[#allocation40_spill] sm:$0xff] }
 0x3f9   : > { %1933 = vmatprep.subr.bf16.mxu1 %v8493_v39 }
 0x3fc   : > { %1934 = vmatpush1.bf16.msra.mxu1 %v8494_v40 }
 0x3fd   : > { %1935 = vmatprep.subr.bf16.mxu1 %v8495_v41 }
 0x400   : > { %1936 = vmatpush1.bf16.msra.mxu1 %v8496_v42 }
 0x401   : > { %1937 = vmatprep.subr.bf16.mxu1 %v8497_v43 }
 0x404   : > { %1938 = vmatpush1.bf16.msra.mxu1 %v8498_v44 }
 0x405   : > { %1939 = vmatprep.subr.bf16.mxu1 %v8499_v45 }
 0x408   : > { %1940 = vmatpush1.bf16.msra.mxu1 %v8500_v46  ;;  %v464_v46 = vld [vmem:[#allocation7 + $0x1] ss:$8 sm:$0x7] }
 0x409   : > { %1941 = vmatprep.subr.bf16.mxu1 %v8501_v47  ;;  %v8509_v47 = vld [vmem:[#allocation35_spill] sm:$0xff] }
 0x40c   : > { %1942 = vmatpush1.bf16.msra.mxu1 %v8502_v48  ;;  %v8510_v48 = vsub.s32 0, %v8509_v47 }
 0x40d   : > { %1943 = vmatprep.subr.bf16.mxu1 %v8503_v50 }
 0x40e   : > { %v6101_v50 = vrot.slane %v464_v46, %v8510_v48 }
 0x410   : > { %1944 = vmatpush1.bf16.msra.mxu1 %v8504_v52  ;;  %v8511_v52 = vsub.s32 1, %v8509_v47 }
 0x411   : > { %1995 = vmatprep.subr.bf16.mxu1 %v8505_v56 }
 0x412   : > { %v6105_v56 = vrot.slane %v464_v46, %v8511_v52 }
 0x414   : > { %8512 = vst [vmem:[#allocation12_spill] sm:$0xff] %v6105_v56 }
 0x446   : > { %v1637_v58 = vpop.f32.mrb[16].mxu1  ;;  %v1678_v60 = vpop.f32.mrb[16].mxu0 }
 0x447   : > { %v1848_v1 = vadd.f32 %v1637_v58, %v8506_v62  ;;  %v1639_v3 = vpop.f32.mrb[17].mxu1  ;;  %v1680_v9 = vpop.f32.mrb[17].mxu0  ;;  %v1862_v33 = vadd.f32 %v1678_v60, %v5769_v59 }
 0x448   : > { %v1849_v15 = vadd.f32 %v1639_v3, %v8507_v12  ;;  %v1641_v18 = vpop.f32.mrb[18].mxu1  ;;  %v1682_v21 = vpop.f32.mrb[18].mxu0  ;;  %v1823_v58 = vadd.f32 %v6101_v50, %v1680_v9 }
 0x449   : > { %v4006_v23 = vmul.f32 -1.442695, %v1848_v1  ;;  %v1642_v20 = vpop.f32.mrb[19].mxu1  ;;  %v1683_v54 = vpop.f32.mrb[19].mxu0 }
 0x44a   : > { %v4007_v6 = vmul.f32 -1.442695, %v1849_v15 }
 0x44b   : > { %4634 = vpow2.f32 %v4006_v23 }
 0x44c   : > { %4636 = vpow2.f32 %v4007_v6 }
 0x455   : > { %v4635_v13 = vpop.eup %4634 }
 0x456   : > { %v1856_v26 = vadd.f32 1.0, %v4635_v13  ;;  %v4637_v28 = vpop.eup %4636 }
 0x457   : > { %v1857_v31 = vadd.f32 1.0, %v4637_v28 }
 0x458   : > { %4638 = vrcp.f32 %v1856_v26 }
 0x459   : > { %4640 = vrcp.f32 %v1857_v31  ;;  %v6109_v31 = vld [vmem:[#allocation7 + $0x3] ss:$0 sm:$0xff] }
 0x462   : > { %v4639_v35 = vpop.eup %4638 }
 0x463   : > { %v1863_v37 = vmul.f32 %v4639_v35, %v1862_v33  ;;  %v4641_v40 = vpop.eup %4640  ;;  %v8513_v35 = vsub.s32 2, %v8509_v47 }
 0x464   : > { %v1866_v41 = vsub.f32 1.0, %v4641_v40  ;;  %v1868_v43 = vmul.f32 %v4641_v40, %v5778_v61 }
 0x465   : > { %v1864_v39 = vadd.f32 %v1863_v37, %v8508_v38  ;;  %v6113_v37 = vrot.slane %v464_v46, %v8513_v35  ;;  %v8535_v35 = vld [vmem:[#allocation78_spill] sm:$0xff] }
 0x467   : > { %4642 = vtanh.f32 %v1864_v39 }
 0x471   : > { %v4643_v42 = vpop.eup %4642 }
 0x472   : > { %v1867_v44 = vmul.f32 %v4643_v42, %v1866_v41 }
 0x474   : > { %v6097_v45 = vadd.f32 %v1868_v43, %v1867_v44 }
 0x486   : > { %v1719_v60 = vpop.f32.mrb[20].mxu1  ;;  %v1760_v62 = vpop.f32.mrb[20].mxu0 }
 0x487   : > { %v1824_v1 = vadd.f32 %v6105_v56, %v1719_v60  ;;  %v1826_v3 = vadd.f32 %v1823_v58, %v1760_v62  ;;  %v1721_v61 = vpop.f32.mrb[21].mxu1  ;;  %v1762_v12 = vpop.f32.mrb[21].mxu0 }
 0x488   : > { %v1723_v15 = vpop.f32.mrb[22].mxu1  ;;  %v1764_v18 = vpop.f32.mrb[22].mxu0  ;;  %v1825_v44 = vadd.f32 %v6113_v37, %v1721_v61  ;;  %v8514_v61 = vld [vmem:[#allocation57_spill] sm:$0xff] }
 0x489   : > { %v1827_v21 = vadd.f32 %v1824_v1, %v1762_v12  ;;  %v1724_v23 = vpop.f32.mrb[23].mxu1  ;;  %v1765_v20 = vpop.f32.mrb[23].mxu0  ;;  %v4004_v54 = vmul.f32 -1.442695, %v1826_v3  ;;  %v6125_v12 = vpack.c.bf16 %v6097_v45, %v6097_v45  ;;  %v8517_v15 = vld [vmem:[#allocation60_spill] sm:$0xff]  ;;  %v8518_v18 = vld [vmem:[#allocation61_spill] sm:$0xff] }
 0x48a   : > { %v8526_v23 = vld [vmem:[#allocation69_spill] sm:$0xff]  ;;  %v8527_v20 = vld [vmem:[#allocation70_spill] sm:$0xff] }
 0x48b   : > { %4644 = vpow2.f32 %v4004_v54  ;;  %v4005_v6 = vmul.f32 -1.442695, %v1827_v21  ;;  %v8525_v21 = vld [vmem:[#allocation68_spill] sm:$0xff]  ;;  %v8528_v54 = vld [vmem:[#allocation71_spill] sm:$0xff] }
 0x48d   : > { %4646 = vpow2.f32 %v4005_v6  ;;  %v8529_v6 = vld [vmem:[#allocation72_spill] sm:$0xff] }
 0x495   : > { %v4645_v13 = vpop.eup %4644 }
 0x496   : > { %v1834_v26 = vadd.f32 1.0, %v4645_v13  ;;  %v8530_v13 = vld [vmem:[#allocation73_spill] sm:$0xff] }
 0x497   : > { %v4647_v9 = vpop.eup %4646 }
 0x498   : > { %4648 = vrcp.f32 %v1834_v26  ;;  %v1835_v38 = vadd.f32 1.0, %v4647_v9  ;;  %v8531_v26 = vld [vmem:[#allocation74_spill] sm:$0xff]  ;;  %v8532_v9 = vld [vmem:[#allocation75_spill] sm:$0xff] }
 0x49a   : > { %4650 = vrcp.f32 %v1835_v38  ;;  %v8536_v38 = vld [vmem:[#allocation79_spill] sm:$0xff] }
 0x4a2   : > { %v4649_v43 = vpop.eup %4648 }
 0x4a4   : > { %v4651_v58 = vpop.eup %4650 }
 0x4a5   : > { %v1844_v60 = vsub.f32 1.0, %v4651_v58  ;;  %v1846_v1 = vmul.f32 0.0, %v4651_v58  ;;  %v8545_v58 = vld [vmem:[#allocation88_spill] sm:$0xff] }
 0x4a6   : > { %v4076_v28 = vpop.f32.mrb[24].mxu1 }
 0x4a7   : > { %v4077_v33 = vpop.f32.mrb[25].mxu1 }
 0x4a8   : > { %v4078_v39 = vadd.f32 %v4077_v33, %v4076_v28  ;;  %v4079_v40 = vpop.f32.mrb[26].mxu1  ;;  %v8533_v28 = vld [vmem:[#allocation76_spill] sm:$0xff]  ;;  %v8534_v33 = vld [vmem:[#allocation77_spill] sm:$0xff] }
 0x4a9   : > { %v4080_v41 = vpop.f32.mrb[27].mxu1  ;;  %v8538_v40 = vld [vmem:[#allocation81_spill] sm:$0xff] }
 0x4aa   : > { %v1840_v42 = vadd.f32 %v4078_v39, %v6109_v31  ;;  %v8537_v39 = vld [vmem:[#allocation80_spill] sm:$0xff]  ;;  %v8539_v41 = vld [vmem:[#allocation82_spill] sm:$0xff] }
 0x4ac   : > { %v1841_v48 = vmul.f32 %v4649_v43, %v1840_v42  ;;  %v8540_v42 = vld [vmem:[#allocation83_spill] sm:$0xff]  ;;  %v8541_v43 = vld [vmem:[#allocation84_spill] sm:$0xff] }
 0x4ae   : > { %v1842_v52 = vadd.f32 %v1841_v48, %v1825_v44  ;;  %v8542_v44 = vld [vmem:[#allocation85_spill] sm:$0xff]  ;;  %v8543_v48 = vld [vmem:[#allocation86_spill] sm:$0xff] }
 0x4b0   : > { %4652 = vtanh.f32 %v1842_v52  ;;  %v8544_v52 = vld [vmem:[#allocation87_spill] sm:$0xff] }
 0x4ba   : > { %v4653_v62 = vpop.eup %4652 }
 0x4bb   : > { %v1845_v47 = vmul.f32 %v4653_v62, %v1844_v60  ;;  %v8546_v60 = vld [vmem:[#allocation89_spill] sm:$0xff]  ;;  %v8547_v62 = vld [vmem:[#allocation90_spill] sm:$0xff] }
 0x4bd   : > { %v6117_v46 = vadd.f32 %v1846_v1, %v1845_v47  ;;  %v8548_v1 = vld [vmem:[#allocation91_spill] sm:$0xff]  ;;  %v8549_v47 = vld [vmem:[#allocation92_spill] sm:$0xff] }
 0x4bf   : > { %v6121_v3 = vpack.c.bf16 %v6117_v46, %v6117_v46 }
 0x4c1   : > { %1904 = vmatprep.mubr.bf16.mxu0 %v6121_v3  ;;  %1945 = vmatprep.mubr.bf16.mxu1 %v6121_v3 }
 0x4c2   : > { %1905 = vmatmul.mubr.bf16.vlgmr.msra.gmra.mrb[24].mxu0 %v6125_v12  ;;  %1946 = vmatmul.mubr.bf16.vlgmr.msra.gmra.mrb[28].mxu1 %v6125_v12 }
 0x4c3   : > { %1955 = vmatpush1.bf16.msra.mxu0 %v5780_v17  ;;  %1996 = vmatpush1.bf16.msra.mxu1 %v5782_v0  ;;  %v8515_v17 = vld [vmem:[#allocation58_spill] sm:$0xff]  ;;  %v8516_v0 = vld [vmem:[#allocation59_spill] sm:$0xff] }
 0x4c4   : > { %1986 = vmatprep.mubr.bf16.mxu0 %v6121_v3  ;;  %2027 = vmatprep.mubr.bf16.mxu1 %v6121_v3 }
 0x4c5   : > { %1956 = vmatprep.subr.bf16.mxu0 %v5788_v22  ;;  %1997 = vmatprep.subr.bf16.mxu1 %v5790_v11  ;;  %v8519_v22 = vld [vmem:[#allocation62_spill] sm:$0xff]  ;;  %v8520_v11 = vld [vmem:[#allocation63_spill] sm:$0xff] }
 0x4c7   : > { %1957 = vmatpush1.bf16.msra.mxu0 %v5796_v5  ;;  %1998 = vmatpush1.bf16.msra.mxu1 %v5798_v57  ;;  %v8521_v5 = vld [vmem:[#allocation64_spill] sm:$0xff]  ;;  %v8522_v57 = vld [vmem:[#allocation65_spill] sm:$0xff] }
 0x4c8   : > { %1958 = vmatprep.subr.bf16.mxu0 %v5802_v51  ;;  %1999 = vmatprep.subr.bf16.mxu1 %v5804_v19  ;;  %v8523_v51 = vld [vmem:[#allocation66_spill] sm:$0xff]  ;;  %v8524_v19 = vld [vmem:[#allocation67_spill] sm:$0xff] }
 0x4cb   : > { %1959 = vmatpush1.bf16.msra.mxu0 %v8514_v61  ;;  %2000 = vmatpush1.bf16.msra.mxu1 %v8515_v17  ;;  %v8550_v61 = vld [vmem:[#allocation93_spill] sm:$0xff]  ;;  %v8551_v17 = vld [vmem:[#allocation94_spill] sm:$0xff] }
 0x4cc   : > { %1960 = vmatprep.subr.bf16.mxu0 %v8516_v0  ;;  %2001 = vmatprep.subr.bf16.mxu1 %v8517_v15  ;;  %v8552_v0 = vld [vmem:[#allocation95_spill] sm:$0xff]  ;;  %v8553_v15 = vld [vmem:[#allocation96_spill] sm:$0xff] }
 0x4cf   : > { %1961 = vmatpush1.bf16.msra.mxu0 %v8518_v18  ;;  %2002 = vmatpush1.bf16.msra.mxu1 %v8519_v22  ;;  %v8554_v18 = vld [vmem:[#allocation97_spill] sm:$0xff]  ;;  %v8555_v22 = vld [vmem:[#allocation98_spill] sm:$0xff] }
 0x4d0   : > { %1962 = vmatprep.subr.bf16.mxu0 %v8520_v11  ;;  %2003 = vmatprep.subr.bf16.mxu1 %v8521_v5  ;;  %v8556_v11 = vld [vmem:[#allocation99_spill] sm:$0xff]  ;;  %v8557_v5 = vld [vmem:[#allocation100_spill] sm:$0xff] }
 0x4d3   : > { %1963 = vmatpush1.bf16.msra.mxu0 %v8522_v57  ;;  %2004 = vmatpush1.bf16.msra.mxu1 %v8523_v51  ;;  %v8558_v57 = vld [vmem:[#allocation101_spill] sm:$0xff]  ;;  %v8559_v51 = vld [vmem:[#allocation102_spill] sm:$0xff] }
 0x4d4   : > { %1964 = vmatprep.subr.bf16.mxu0 %v8524_v19  ;;  %2005 = vmatprep.subr.bf16.mxu1 %v8525_v21  ;;  %v8560_v19 = vld [vmem:[#allocation103_spill] sm:$0xff]  ;;  %v8561_v21 = vld [vmem:[#allocation104_spill] sm:$0xff] }
 0x4d7   : > { %1965 = vmatpush1.bf16.msra.mxu0 %v8526_v23  ;;  %2006 = vmatpush1.bf16.msra.mxu1 %v8527_v20  ;;  %v8562_v23 = vld [vmem:[#allocation105_spill] sm:$0xff]  ;;  %v8563_v20 = vld [vmem:[#allocation106_spill] sm:$0xff] }
 0x4d8   : > { %1966 = vmatprep.subr.bf16.mxu0 %v8528_v54  ;;  %2007 = vmatprep.subr.bf16.mxu1 %v8529_v6  ;;  %v8564_v54 = vld [vmem:[#allocation107_spill] sm:$0xff] }
 0x4d9   : > { %v6196_v6 = vld [vmem:[#allocation4 + $0x4] ss:$36 sps:$4 sm:$0xff]  }
 0x4da   : > { %8565 = vst [vmem:[#allocation27_spill] sm:$0xff] %v6196_v6 }
 0x4db   : > { %1967 = vmatpush1.bf16.msra.mxu0 %v8530_v13  ;;  %2008 = vmatpush1.bf16.msra.mxu1 %v8531_v26  ;;  %v6204_v13 = vld [vmem:[#allocation4] ss:$36 sps:$4 sm:$0xff]   ;;  %v6207_v26 = vld [vmem:[#allocation4 + $0x4c] ss:$36 sps:$4 sm:$0xff]  }
 0x4dc   : > { %1968 = vmatprep.subr.bf16.mxu0 %v8532_v9  ;;  %2009 = vmatprep.subr.bf16.mxu1 %v8533_v28  ;;  %8566 = vst [vmem:[#allocation29_spill] sm:$0xff] %v6204_v13  ;;  %8567 = vst [vmem:[#allocation13_spill] sm:$0xff] %v6207_v26 }
 0x4df   : > { %1969 = vmatpush1.bf16.msra.mxu0 %v8534_v33  ;;  %2010 = vmatpush1.bf16.msra.mxu1 %v8535_v35 }
 0x4e0   : > { %1970 = vmatprep.subr.bf16.mxu0 %v8536_v38  ;;  %2011 = vmatprep.subr.bf16.mxu1 %v8537_v39 }
 0x4e3   : > { %1971 = vmatpush1.bf16.msra.mxu0 %v8538_v40  ;;  %2012 = vmatpush1.bf16.msra.mxu1 %v8539_v41 }
 0x4e4   : > { %1972 = vmatprep.subr.bf16.mxu0 %v8540_v42  ;;  %2013 = vmatprep.subr.bf16.mxu1 %v8541_v43 }
 0x4e7   : > { %1973 = vmatpush1.bf16.msra.mxu0 %v8542_v44  ;;  %2014 = vmatpush1.bf16.msra.mxu1 %v8543_v48 }
 0x4e8   : > { %1974 = vmatprep.subr.bf16.mxu0 %v8544_v52  ;;  %2015 = vmatprep.subr.bf16.mxu1 %v8545_v58 }
 0x4eb   : > { %1975 = vmatpush1.bf16.msra.mxu0 %v8546_v60  ;;  %2016 = vmatpush1.bf16.msra.mxu1 %v8547_v62 }
 0x4ec   : > { %1976 = vmatprep.subr.bf16.mxu0 %v8548_v1  ;;  %2017 = vmatprep.subr.bf16.mxu1 %v8549_v47 }
 0x4ef   : > { %1977 = vmatpush1.bf16.msra.mxu0 %v8550_v61  ;;  %2018 = vmatpush1.bf16.msra.mxu1 %v8551_v17 }
 0x4f0   : > { %1978 = vmatprep.subr.bf16.mxu0 %v8552_v0  ;;  %2019 = vmatprep.subr.bf16.mxu1 %v8553_v15 }
 0x4f3   : > { %1979 = vmatpush1.bf16.msra.mxu0 %v8554_v18  ;;  %2020 = vmatpush1.bf16.msra.mxu1 %v8555_v22 }
 0x4f4   : > { %1980 = vmatprep.subr.bf16.mxu0 %v8556_v11  ;;  %2021 = vmatprep.subr.bf16.mxu1 %v8557_v5 }
 0x4f7   : > { %1981 = vmatpush1.bf16.msra.mxu0 %v8558_v57  ;;  %2022 = vmatpush1.bf16.msra.mxu1 %v8559_v51 }
 0x4f8   : > { %1982 = vmatprep.subr.bf16.mxu0 %v5948_v10  ;;  %2023 = vmatprep.subr.bf16.mxu1 %v8560_v19 }
 0x4fb   : > { %1983 = vmatpush1.bf16.msra.mxu0 %v8561_v21  ;;  %2024 = vmatpush1.bf16.msra.mxu1 %v5956_v2 }
 0x4fc   : > { %1984 = vmatprep.subr.bf16.mxu0 %v5960_v25  ;;  %2025 = vmatprep.subr.bf16.mxu1 %v8562_v23 }
 0x4ff   : > { %1985 = vmatpush1.bf16.msra.mxu0 %v5966_v4  ;;  %2026 = vmatpush1.bf16.msra.mxu1 %v8563_v20 }
 0x500   : > { %4082 = vmatprep.subr.bf16.mxu0 %v8564_v54  ;;  %2125 = vmatprep.subr.bf16.mxu1 %v6196_v6  ;;  %v6212_v6 = vld [vmem:[#allocation4 + $0x48] ss:$36 sps:$4 sm:$0xff]  }
 0x501   : > { %8568 = vst [vmem:[#allocation14_spill] sm:$0xff] %v6212_v6 }
 0x502   : > { %1987 = vmatmul.mubr.bf16.vlgmr.msra.gmra.mrb[28].mxu0 %v6125_v12  ;;  %2028 = vmatmul.mubr.bf16.vlgmr.msra.gmra.mrb[32].mxu1 %v6125_v12 }
 0x503   : > { %4083 = vmatpush3.bf16.msra.mxu0 %v5976_v8  ;;  %2068 = vmatprep.mubr.bf16.mxu0 %v6121_v3  ;;  %v6215_v8 = vld [vmem:[#allocation4 + $0x94] ss:$36 sps:$4 sm:$0xff]  }
 0x504   : > { %4084 = vmatprep.subr.bf16.mxu0 %v5979_v14  ;;  %2126 = vmatpush1.bf16.msra.mxu1 %v6204_v13  ;;  %8569 = vst [vmem:[#allocation31_spill] sm:$0xff] %v6215_v8  ;;  %v6220_v3 = vld [vmem:[#allocation4 + $0x90] ss:$36 sps:$4 sm:$0xff]  }
 0x505   : > { %2127 = vmatprep.subr.bf16.mxu1 %v6207_v26  ;;  %8570 = vst [vmem:[#allocation33_spill] sm:$0xff] %v6220_v3  ;;  %v6223_v26 = vld [vmem:[#allocation4 + $0xdc] ss:$36 sps:$4 sm:$0xff]   ;;  %v8633_v14 = vld [vmem:[#allocation36_spill] sm:$0xff] }
 0x506   : > { %8571 = vst [vmem:[#allocation15_spill] sm:$0xff] %v6223_v26 }
 0x507   : > { %4085 = vmatpush3.bf16.msra.mxu0 %v5985_v30 }
 0x508   : > { %4086 = vmatprep.subr.bf16.mxu0 %v5989_v63  ;;  %2128 = vmatpush1.bf16.msra.mxu1 %v6212_v6  ;;  %v6228_v6 = vld [vmem:[#allocation4 + $0xd8] ss:$36 sps:$4 sm:$0xff]  }
 0x509   : > { %2129 = vmatprep.subr.bf16.mxu1 %v6215_v8  ;;  %8572 = vst [vmem:[#allocation16_spill] sm:$0xff] %v6228_v6  ;;  %v6231_v8 = vld [vmem:[#allocation4 + $0x124] ss:$36 sps:$4 sm:$0xff]  }
 0x50a   : > { %8573 = vst [vmem:[#allocation17_spill] sm:$0xff] %v6231_v8 }
 0x50b   : > { %4087 = vmatpush3.bf16.msra.mxu0 %v5994_v53 }
 0x50c   : > { %4088 = vmatprep.subr.bf16.mxu0 %v5997_v55  ;;  %2130 = vmatpush1.bf16.msra.mxu1 %v6220_v3  ;;  %v6236_v3 = vld [vmem:[#allocation4 + $0x120] ss:$36 sps:$4 sm:$0xff]  }
 0x50d   : > { %2131 = vmatprep.subr.bf16.mxu1 %v6223_v26  ;;  %8574 = vst [vmem:[#allocation18_spill] sm:$0xff] %v6236_v3  ;;  %v6239_v26 = vld [vmem:[#allocation4 + $0x16c] ss:$36 sps:$4 sm:$0xff]  }
 0x50e   : > { %8575 = vst [vmem:[#allocation19_spill] sm:$0xff] %v6239_v26 }
 0x50f   : > { %4089 = vmatpush3.bf16.msra.mxu0 %v6002_v49 }
 0x510   : > { %4090 = vmatprep.subr.bf16.mxu0 %v6005_v24  ;;  %2132 = vmatpush1.bf16.msra.mxu1 %v6228_v6  ;;  %v6244_v6 = vld [vmem:[#allocation4 + $0x168] ss:$36 sps:$4 sm:$0xff]  }
 0x511   : > { %2133 = vmatprep.subr.bf16.mxu1 %v6231_v8  ;;  %8576 = vst [vmem:[#allocation20_spill] sm:$0xff] %v6244_v6  ;;  %v6247_v8 = vld [vmem:[#allocation4 + $0x1b4] ss:$36 sps:$4 sm:$0xff]  }
 0x512   : > { %8577 = vst [vmem:[#allocation21_spill] sm:$0xff] %v6247_v8 }
 0x513   : > { %4091 = vmatpush3.bf16.msra.mxu0 %v6010_v7 }
 0x514   : > { %4092 = vmatprep.subr.bf16.mxu0 %v6013_v16  ;;  %2134 = vmatpush1.bf16.msra.mxu1 %v6236_v3  ;;  %v6252_v3 = vld [vmem:[#allocation4 + $0x1b0] ss:$36 sps:$4 sm:$0xff]   ;;  %v8632_v16 = vld [vmem:[#allocation42_spill] sm:$0xff] }
 0x515   : > { %2135 = vmatprep.subr.bf16.mxu1 %v6239_v26  ;;  %8578 = vst [vmem:[#allocation22_spill] sm:$0xff] %v6252_v3  ;;  %v6255_v26 = vld [vmem:[#allocation4 + $0x1fc] ss:$36 sps:$4 sm:$0xff]  }
 0x516   : > { %8579 = vst [vmem:[#allocation23_spill] sm:$0xff] %v6255_v26 }
 0x517   : > { %4093 = vmatpush3.bf16.msra.mxu0 %v6018_v27 }
 0x518   : > { %4094 = vmatprep.subr.bf16.mxu0 %v6021_v29  ;;  %2136 = vmatpush1.bf16.msra.mxu1 %v6244_v6  ;;  %v6259_v29 = vld [vmem:[#allocation4 + $0xc] ss:$36 sps:$4 sm:$0xff]   ;;  %v6262_v6 = vld [vmem:[#allocation4 + $0x1f8] ss:$36 sps:$4 sm:$0xff]  }
 0x519   : > { %2137 = vmatprep.subr.bf16.mxu1 %v6247_v8  ;;  %8580 = vst [vmem:[#allocation24_spill] sm:$0xff] %v6259_v29  ;;  %8581 = vst [vmem:[#allocation25_spill] sm:$0xff] %v6262_v6 }
 0x51b   : > { %4095 = vmatpush3.bf16.msra.mxu0 %v6026_v32  ;;  %v6265_v32 = vld [vmem:[#allocation4 + $0x244] ss:$36 sps:$4 sm:$0xff]  }
 0x51c   : > { %4096 = vmatprep.subr.bf16.mxu0 %v6029_v34  ;;  %2138 = vmatpush1.bf16.msra.mxu1 %v6252_v3  ;;  %8582 = vst [vmem:[#allocation26_spill] sm:$0xff] %v6265_v32  ;;  %v6269_v3 = vld [vmem:[#allocation4 + $0x8] ss:$36 sps:$4 sm:$0xff]   ;;  %v8631_v34 = vld [vmem:[#allocation41_spill] sm:$0xff] }
 0x51d   : > { %2139 = vmatprep.subr.bf16.mxu1 %v6255_v26  ;;  %8583 = vst [vmem:[#allocation28_spill] sm:$0xff] %v6269_v3  ;;  %v6272_v26 = vld [vmem:[#allocation4 + $0x54] ss:$36 sps:$4 sm:$0xff]  }
 0x51e   : > { %8584 = vst [vmem:[#allocation30_spill] sm:$0xff] %v6272_v26 }
 0x51f   : > { %4097 = vmatpush3.bf16.msra.mxu0 %v6034_v36  ;;  %v6275_v36 = vld [vmem:[#allocation4 + $0x240] ss:$36 sps:$4 sm:$0xff]  }
 0x520   : > { %2166 = vmatprep.subr.bf16.mxu0 %v6259_v29  ;;  %2140 = vmatpush1.bf16.msra.mxu1 %v6262_v6  ;;  %8585 = vst [vmem:[#allocation32_spill] sm:$0xff] %v6275_v36  ;;  %v6278_v29 = vld [vmem:[#allocation4 + $0x28c] ss:$36 sps:$4 sm:$0xff]  }
 0x521   : > { %2141 = vmatprep.subr.bf16.mxu1 %v6265_v32  ;;  %8586 = vst [vmem:[#allocation34_spill] sm:$0xff] %v6278_v29  ;;  %v6281_v6 = vld [vmem:[#allocation4 + $0x50] ss:$36 sps:$4 sm:$0xff]  }
 0x522   : > { %2069 = vmatmul.mubr.bf16.vlgmr.msra.gmra.mrb[32].mxu0 %v6125_v12  ;;  %8587 = vst [vmem:[#allocation37_spill] sm:$0xff] %v6281_v6  ;;  %v6284_v12 = vld [vmem:[#allocation4 + $0x9c] ss:$36 sps:$4 sm:$0xff]  }
 0x523   : > { %2167 = vmatpush1.bf16.msra.mxu0 %v6269_v3  ;;  %8588 = vst [vmem:[#allocation38_spill] sm:$0xff] %v6284_v12  ;;  %v6287_v3 = vld [vmem:[#allocation4 + $0x288] ss:$36 sps:$4 sm:$0xff]  }
 0x524   : > { %2168 = vmatprep.subr.bf16.mxu0 %v6272_v26  ;;  %2142 = vmatpush1.bf16.msra.mxu1 %v6275_v36  ;;  %8589 = vst [vmem:[#allocation40_spill] sm:$0xff] %v6287_v3  ;;  %v6290_v26 = vld [vmem:[#allocation4 + $0x2d4] ss:$36 sps:$4 sm:$0xff]  }
 0x525   : > { %2143 = vmatprep.subr.bf16.mxu1 %v6278_v29  ;;  %8590 = vst [vmem:[#allocation35_spill] sm:$0xff] %v6290_v26  ;;  %v6293_v36 = vld [vmem:[#allocation4 + $0x98] ss:$36 sps:$4 sm:$0xff]   ;;  %v6296_v29 = vld [vmem:[#allocation4 + $0xe4] ss:$36 sps:$4 sm:$0xff]  }
 0x526   : > { %8591 = vst [vmem:[#allocation57_spill] sm:$0xff] %v6293_v36  ;;  %8592 = vst [vmem:[#allocation58_spill] sm:$0xff] %v6296_v29 }
 0x527   : > { %2169 = vmatpush1.bf16.msra.mxu0 %v6281_v6  ;;  %v6299_v6 = vld [vmem:[#allocation4 + $0x2d0] ss:$36 sps:$4 sm:$0xff]  }
 0x528   : > { %2170 = vmatprep.subr.bf16.mxu0 %v6284_v12  ;;  %2144 = vmatpush1.bf16.msra.mxu1 %v6287_v3  ;;  %8593 = vst [vmem:[#allocation59_spill] sm:$0xff] %v6299_v6  ;;  %v6302_v12 = vld [vmem:[#allocation4 + $0x31c] ss:$36 sps:$4 sm:$0xff]  }
 0x529   : > { %2145 = vmatprep.subr.bf16.mxu1 %v6290_v26  ;;  %8594 = vst [vmem:[#allocation60_spill] sm:$0xff] %v6302_v12  ;;  %v6305_v3 = vld [vmem:[#allocation4 + $0xe0] ss:$36 sps:$4 sm:$0xff]   ;;  %v6308_v26 = vld [vmem:[#allocation4 + $0x12c] ss:$36 sps:$4 sm:$0xff]  }
 0x52a   : > { %8595 = vst [vmem:[#allocation61_spill] sm:$0xff] %v6305_v3  ;;  %8596 = vst [vmem:[#allocation62_spill] sm:$0xff] %v6308_v26 }
 0x52b   : > { %2171 = vmatpush1.bf16.msra.mxu0 %v6293_v36  ;;  %v6311_v36 = vld [vmem:[#allocation4 + $0x318] ss:$36 sps:$4 sm:$0xff]  }
 0x52c   : > { %2172 = vmatprep.subr.bf16.mxu0 %v6296_v29  ;;  %2146 = vmatpush1.bf16.msra.mxu1 %v6299_v6  ;;  %8597 = vst [vmem:[#allocation63_spill] sm:$0xff] %v6311_v36  ;;  %v6314_v29 = vld [vmem:[#allocation4 + $0x364] ss:$36 sps:$4 sm:$0xff]  }
 0x52d   : > { %2147 = vmatprep.subr.bf16.mxu1 %v6302_v12  ;;  %8598 = vst [vmem:[#allocation64_spill] sm:$0xff] %v6314_v29  ;;  %v6317_v6 = vld [vmem:[#allocation4 + $0x128] ss:$36 sps:$4 sm:$0xff]   ;;  %v6320_v12 = vld [vmem:[#allocation4 + $0x174] ss:$36 sps:$4 sm:$0xff]  }
 0x52e   : > { %8599 = vst [vmem:[#allocation65_spill] sm:$0xff] %v6317_v6  ;;  %8600 = vst [vmem:[#allocation66_spill] sm:$0xff] %v6320_v12 }
 0x52f   : > { %2173 = vmatpush1.bf16.msra.mxu0 %v6305_v3  ;;  %v6323_v3 = vld [vmem:[#allocation4 + $0x360] ss:$36 sps:$4 sm:$0xff]  }
 0x530   : > { %2174 = vmatprep.subr.bf16.mxu0 %v6308_v26  ;;  %2148 = vmatpush1.bf16.msra.mxu1 %v6311_v36  ;;  %8601 = vst [vmem:[#allocation67_spill] sm:$0xff] %v6323_v3  ;;  %v6326_v26 = vld [vmem:[#allocation4 + $0x3ac] ss:$36 sps:$4 sm:$0xff]  }
 0x531   : > { %2149 = vmatprep.subr.bf16.mxu1 %v6314_v29  ;;  %8602 = vst [vmem:[#allocation68_spill] sm:$0xff] %v6326_v26  ;;  %v6329_v36 = vld [vmem:[#allocation4 + $0x170] ss:$36 sps:$4 sm:$0xff]   ;;  %v6332_v29 = vld [vmem:[#allocation4 + $0x1bc] ss:$36 sps:$4 sm:$0xff]  }
 0x532   : > { %8603 = vst [vmem:[#allocation69_spill] sm:$0xff] %v6329_v36  ;;  %8604 = vst [vmem:[#allocation70_spill] sm:$0xff] %v6332_v29 }
 0x533   : > { %2175 = vmatpush1.bf16.msra.mxu0 %v6317_v6  ;;  %v6335_v6 = vld [vmem:[#allocation4 + $0x3a8] ss:$36 sps:$4 sm:$0xff]  }
 0x534   : > { %2176 = vmatprep.subr.bf16.mxu0 %v6320_v12  ;;  %2150 = vmatpush1.bf16.msra.mxu1 %v6323_v3  ;;  %8605 = vst [vmem:[#allocation71_spill] sm:$0xff] %v6335_v6  ;;  %v6338_v12 = vld [vmem:[#allocation4 + $0x3f4] ss:$36 sps:$4 sm:$0xff]  }
 0x535   : > { %2151 = vmatprep.subr.bf16.mxu1 %v6326_v26  ;;  %8606 = vst [vmem:[#allocation72_spill] sm:$0xff] %v6338_v12  ;;  %v6341_v3 = vld [vmem:[#allocation4 + $0x1b8] ss:$36 sps:$4 sm:$0xff]   ;;  %v6344_v26 = vld [vmem:[#allocation4 + $0x204] ss:$36 sps:$4 sm:$0xff]  }
 0x536   : > { %8607 = vst [vmem:[#allocation73_spill] sm:$0xff] %v6341_v3  ;;  %8608 = vst [vmem:[#allocation74_spill] sm:$0xff] %v6344_v26 }
 0x537   : > { %2177 = vmatpush1.bf16.msra.mxu0 %v6329_v36  ;;  %v6347_v36 = vld [vmem:[#allocation4 + $0x3f0] ss:$36 sps:$4 sm:$0xff]  }
 0x538   : > { %2178 = vmatprep.subr.bf16.mxu0 %v6332_v29  ;;  %2152 = vmatpush1.bf16.msra.mxu1 %v6335_v6  ;;  %8609 = vst [vmem:[#allocation75_spill] sm:$0xff] %v6347_v36  ;;  %v6350_v29 = vld [vmem:[#allocation4 + $0x43c] ss:$36 sps:$4 sm:$0xff]  }
 0x539   : > { %2153 = vmatprep.subr.bf16.mxu1 %v6338_v12  ;;  %8610 = vst [vmem:[#allocation76_spill] sm:$0xff] %v6350_v29  ;;  %v6353_v6 = vld [vmem:[#allocation4 + $0x200] ss:$36 sps:$4 sm:$0xff]   ;;  %v6356_v12 = vld [vmem:[#allocation4 + $0x24c] ss:$36 sps:$4 sm:$0xff]  }
 0x53a   : > { %8611 = vst [vmem:[#allocation77_spill] sm:$0xff] %v6353_v6  ;;  %8612 = vst [vmem:[#allocation78_spill] sm:$0xff] %v6356_v12 }
 0x53b   : > { %2179 = vmatpush1.bf16.msra.mxu0 %v6341_v3  ;;  %v6359_v3 = vld [vmem:[#allocation4 + $0x438] ss:$36 sps:$4 sm:$0xff]  }
 0x53c   : > { %2180 = vmatprep.subr.bf16.mxu0 %v6344_v26  ;;  %2154 = vmatpush1.bf16.msra.mxu1 %v6347_v36  ;;  %8613 = vst [vmem:[#allocation79_spill] sm:$0xff] %v6359_v3  ;;  %v6362_v26 = vld [vmem:[#allocation4 + $0x14] ss:$36 sps:$4 sm:$0xff]   ;;  %v6365_v36 = vld [vmem:[#allocation4 + $0x248] ss:$36 sps:$4 sm:$0xff]  }
 0x53d   : > { %2155 = vmatprep.subr.bf16.mxu1 %v6350_v29  ;;  %8614 = vst [vmem:[#allocation80_spill] sm:$0xff] %v6362_v26  ;;  %8615 = vst [vmem:[#allocation81_spill] sm:$0xff] %v6365_v36  ;;  %v6368_v29 = vld [vmem:[#allocation4 + $0x294] ss:$36 sps:$4 sm:$0xff]  }
 0x53e   : > { %8616 = vst [vmem:[#allocation82_spill] sm:$0xff] %v6368_v29 }
 0x53f   : > { %2181 = vmatpush1.bf16.msra.mxu0 %v6353_v6  ;;  %v6371_v6 = vld [vmem:[#allocation4 + $0x290] ss:$36 sps:$4 sm:$0xff]  }
 0x540   : > { %2182 = vmatprep.subr.bf16.mxu0 %v6356_v12  ;;  %2156 = vmatpush1.bf16.msra.mxu1 %v6359_v3  ;;  %8617 = vst [vmem:[#allocation83_spill] sm:$0xff] %v6371_v6  ;;  %v6374_v12 = vld [vmem:[#allocation4 + $0x2dc] ss:$36 sps:$4 sm:$0xff]  }
 0x541   : > { %2207 = vmatprep.subr.bf16.mxu1 %v6362_v26  ;;  %8618 = vst [vmem:[#allocation84_spill] sm:$0xff] %v6374_v12  ;;  %v6377_v3 = vld [vmem:[#allocation4 + $0x2d8] ss:$36 sps:$4 sm:$0xff]   ;;  %v6380_v26 = vld [vmem:[#allocation4 + $0x324] ss:$36 sps:$4 sm:$0xff]  }
 0x542   : > { %8619 = vst [vmem:[#allocation85_spill] sm:$0xff] %v6377_v3  ;;  %8620 = vst [vmem:[#allocation86_spill] sm:$0xff] %v6380_v26 }
 0x543   : > { %2183 = vmatpush1.bf16.msra.mxu0 %v6365_v36  ;;  %v6383_v36 = vld [vmem:[#allocation4 + $0x320] ss:$36 sps:$4 sm:$0xff]  }
 0x544   : > { %2184 = vmatprep.subr.bf16.mxu0 %v6368_v29  ;;  %8621 = vst [vmem:[#allocation87_spill] sm:$0xff] %v6383_v36  ;;  %v6386_v29 = vld [vmem:[#allocation4 + $0x36c] ss:$36 sps:$4 sm:$0xff]  }
 0x545   : > { %8622 = vst [vmem:[#allocation88_spill] sm:$0xff] %v6386_v29 }
 0x547   : > { %2185 = vmatpush1.bf16.msra.mxu0 %v6371_v6  ;;  %v6389_v6 = vld [vmem:[#allocation4 + $0x368] ss:$36 sps:$4 sm:$0xff]  }
 0x548   : > { %2186 = vmatprep.subr.bf16.mxu0 %v6374_v12  ;;  %8623 = vst [vmem:[#allocation89_spill] sm:$0xff] %v6389_v6  ;;  %v6392_v12 = vld [vmem:[#allocation4 + $0x3b4] ss:$36 sps:$4 sm:$0xff]  }
 0x549   : > { %8624 = vst [vmem:[#allocation90_spill] sm:$0xff] %v6392_v12 }
 0x54b   : > { %2187 = vmatpush1.bf16.msra.mxu0 %v6377_v3  ;;  %v6395_v3 = vld [vmem:[#allocation4 + $0x3b0] ss:$36 sps:$4 sm:$0xff]  }
 0x54c   : > { %2188 = vmatprep.subr.bf16.mxu0 %v6380_v26  ;;  %8625 = vst [vmem:[#allocation91_spill] sm:$0xff] %v6395_v3  ;;  %v6398_v26 = vld [vmem:[#allocation4 + $0x3fc] ss:$36 sps:$4 sm:$0xff]  }
 0x54d   : > { %8626 = vst [vmem:[#allocation92_spill] sm:$0xff] %v6398_v26 }
 0x54f   : > { %2189 = vmatpush1.bf16.msra.mxu0 %v6383_v36  ;;  %v6401_v36 = vld [vmem:[#allocation4 + $0x3f8] ss:$36 sps:$4 sm:$0xff]  }
 0x550   : > { %2190 = vmatprep.subr.bf16.mxu0 %v6386_v29  ;;  %8627 = vst [vmem:[#allocation93_spill] sm:$0xff] %v6401_v36  ;;  %v6404_v29 = vld [vmem:[#allocation4 + $0x444] ss:$36 sps:$4 sm:$0xff]  }
 0x551   : > { %8628 = vst [vmem:[#allocation94_spill] sm:$0xff] %v6404_v29 }
 0x553   : > { %2191 = vmatpush1.bf16.msra.mxu0 %v6389_v6  ;;  %v6407_v6 = vld [vmem:[#allocation4 + $0x440] ss:$36 sps:$4 sm:$0xff]  }
 0x554   : > { %2192 = vmatprep.subr.bf16.mxu0 %v6392_v12  ;;  %8629 = vst [vmem:[#allocation95_spill] sm:$0xff] %v6407_v6  ;;  %v6410_v12 = vld [vmem:[#allocation4 + $0x1c] ss:$36 sps:$4 sm:$0xff]  }
 0x555   : > { %8630 = vst [vmem:[#allocation96_spill] sm:$0xff] %v6410_v12 }
 0x557   : > { %2193 = vmatpush1.bf16.msra.mxu0 %v6395_v3 }
 0x558   : > { %2194 = vmatprep.subr.bf16.mxu0 %v6398_v26 }
 0x55b   : > { %2195 = vmatpush1.bf16.msra.mxu0 %v6401_v36 }
 0x55c   : > { %2196 = vmatprep.subr.bf16.mxu0 %v6404_v29 }
 0x55f   : > { %2197 = vmatpush1.bf16.msra.mxu0 %v6407_v6 }
 0x560   : > { %2248 = vmatprep.subr.bf16.mxu0 %v6410_v12 }
 0x595   : > { %v1906_v3 = vpop.f32.mrb[24].mxu0  ;;  %v1947_v32 = vpop.f32.mrb[28].mxu1 }
 0x596   : > { %v2101_v26 = vadd.f32 %v1906_v3, %v8631_v34  ;;  %v1908_v8 = vpop.f32.mrb[25].mxu0  ;;  %v1949_v27 = vpop.f32.mrb[29].mxu1  ;;  %v2115_v13 = vadd.f32 %v1947_v32, %v5769_v59 }
 0x597   : > { %v2102_v36 = vadd.f32 %v1908_v8, %v8632_v16  ;;  %v1910_v7 = vpop.f32.mrb[26].mxu0  ;;  %v1951_v24 = vpop.f32.mrb[30].mxu1 }
 0x598   : > { %v4010_v49 = vmul.f32 -1.442695, %v2101_v26  ;;  %v1911_v29 = vpop.f32.mrb[27].mxu0  ;;  %v1952_v55 = vpop.f32.mrb[31].mxu1 }
 0x599   : > { %v4011_v53 = vmul.f32 -1.442695, %v2102_v36 }
 0x59a   : > { %4654 = vpow2.f32 %v4010_v49 }
 0x59b   : > { %4656 = vpow2.f32 %v4011_v53 }
 0x5a4   : > { %v4655_v6 = vpop.eup %4654 }
 0x5a5   : > { %v2109_v63 = vadd.f32 1.0, %v4655_v6  ;;  %v4657_v12 = vpop.eup %4656 }
 0x5a6   : > { %v2110_v30 = vadd.f32 1.0, %v4657_v12 }
 0x5a7   : > { %4658 = vrcp.f32 %v2109_v63  ;;  %v2076_v63 = vadd.f32 %v1949_v27, %v6101_v50 }
 0x5a8   : > { %4660 = vrcp.f32 %v2110_v30 }
 0x5b1   : > { %v4659_v34 = vpop.eup %4658 }
 0x5b2   : > { %v2116_v3 = vmul.f32 %v4659_v34, %v2115_v13  ;;  %v4661_v24 = vpop.eup %4660 }
 0x5b3   : > { %v2119_v7 = vsub.f32 1.0, %v4661_v24  ;;  %v2121_v55 = vmul.f32 %v4661_v24, %v6097_v45 }
 0x5b4   : > { %v2117_v8 = vadd.f32 %v2116_v3, %v8633_v14 }
 0x5b6   : > { %4662 = vtanh.f32 %v2117_v8 }
 0x5c0   : > { %v4663_v16 = vpop.eup %4662 }
 0x5c1   : > { %v2120_v49 = vmul.f32 %v4663_v16, %v2119_v7 }
 0x5c3   : > { %v6418_v53 = vadd.f32 %v2121_v55, %v2120_v49 }
 0x5d5   : > { %v1988_v29 = vpop.f32.mrb[28].mxu0  ;;  %v2029_v36 = vpop.f32.mrb[32].mxu1 }
 0x5d6   : > { %v2077_v59 = vadd.f32 %v1988_v29, %v6105_v56  ;;  %v2079_v32 = vadd.f32 %v2076_v63, %v2029_v36  ;;  %v1990_v6 = vpop.f32.mrb[29].mxu0  ;;  %v2031_v30 = vpop.f32.mrb[33].mxu1 }
 0x5d7   : > { %v1992_v13 = vpop.f32.mrb[30].mxu0  ;;  %v2033_v14 = vpop.f32.mrb[34].mxu1 }
 0x5d8   : > { %v2080_v26 = vadd.f32 %v2077_v59, %v2031_v30  ;;  %v1993_v12 = vpop.f32.mrb[31].mxu0  ;;  %v2034_v34 = vpop.f32.mrb[35].mxu1  ;;  %v4008_v3 = vmul.f32 -1.442695, %v2079_v32  ;;  %v2078_v59 = vadd.f32 %v1990_v6, %v6113_v37  ;;  %v6442_v6 = vld [vmem:[#allocation4 + $0x18] ss:$36 sps:$4 sm:$0xff]  }
 0x5da   : > { %4664 = vpow2.f32 %v4008_v3  ;;  %v4009_v45 = vmul.f32 -1.442695, %v2080_v26 }
 0x5dc   : > { %4666 = vpow2.f32 %v4009_v45 }
 0x5e4   : > { %v4665_v8 = vpop.eup %4664 }
 0x5e5   : > { %v2087_v24 = vadd.f32 1.0, %v4665_v8 }
 0x5e6   : > { %v4667_v27 = vpop.eup %4666 }
 0x5e7   : > { %4668 = vrcp.f32 %v2087_v24  ;;  %v2088_v55 = vadd.f32 1.0, %v4667_v27  ;;  %v6433_v24 = vpack.c.bf16 %v6418_v53, %v6418_v53  ;;  %v6447_v27 = vld [vmem:[#allocation4 + $0x5c] ss:$36 sps:$4 sm:$0xff]  }
 0x5e9   : > { %4670 = vrcp.f32 %v2088_v55  ;;  %v6456_v55 = vld [vmem:[#allocation4 + $0x60] ss:$36 sps:$4 sm:$0xff]  }
 0x5f1   : > { %v4669_v13 = vpop.eup %4668 }
 0x5f3   : > { %v4671_v14 = vpop.eup %4670 }
 0x5f4   : > { %v2097_v26 = vsub.f32 1.0, %v4671_v14  ;;  %v2099_v34 = vmul.f32 %v4671_v14, %v6117_v46  ;;  %v6439_v46 = vld [vmem:[#allocation4 + $0x10] ss:$36 sps:$4 sm:$0xff]  }
 0x5f5   : > { %v4098_v7 = vpop.f32.mrb[32].mxu0  ;;  %v6483_v14 = vld [vmem:[#allocation4 + $0x134] ss:$36 sps:$4 sm:$0xff]  }
 0x5f6   : > { %v4099_v16 = vpop.f32.mrb[33].mxu0  ;;  %8635 = vst [vmem:[#allocation98_spill] sm:$0xff] %v6483_v14 }
 0x5f7   : > { %v4100_v49 = vadd.f32 %v4099_v16, %v4098_v7  ;;  %v4101_v63 = vpop.f32.mrb[34].mxu0  ;;  %v6450_v7 = vld [vmem:[#allocation4 + $0x64] ss:$36 sps:$4 sm:$0xff]   ;;  %v6453_v16 = vld [vmem:[#allocation4 + $0x58] ss:$36 sps:$4 sm:$0xff]  }
 0x5f8   : > { %v4102_v29 = vpop.f32.mrb[35].mxu0  ;;  %v6462_v63 = vld [vmem:[#allocation4 + $0xac] ss:$36 sps:$4 sm:$0xff]  }
 0x5f9   : > { %v2093_v36 = vadd.f32 %v4100_v49, %v6109_v31  ;;  %v6459_v49 = vld [vmem:[#allocation4 + $0xa4] ss:$36 sps:$4 sm:$0xff]  }
 0x5fa   : > { %v6465_v29 = vld [vmem:[#allocation4 + $0xa0] ss:$36 sps:$4 sm:$0xff]  }
 0x5fb   : > { %v2094_v32 = vmul.f32 %v4669_v13, %v2093_v36  ;;  %v6468_v36 = vld [vmem:[#allocation4 + $0xa8] ss:$36 sps:$4 sm:$0xff]  }
 0x5fc   : > { %v6471_v13 = vld [vmem:[#allocation4 + $0xec] ss:$36 sps:$4 sm:$0xff]  }
 0x5fd   : > { %v2095_v30 = vadd.f32 %v2094_v32, %v2078_v59  ;;  %v6474_v59 = vld [vmem:[#allocation4 + $0xf4] ss:$36 sps:$4 sm:$0xff]   ;;  %v6477_v32 = vld [vmem:[#allocation4 + $0xe8] ss:$36 sps:$4 sm:$0xff]  }
 0x5ff   : > { %4672 = vtanh.f32 %v2095_v30  ;;  %v6480_v30 = vld [vmem:[#allocation4 + $0xf0] ss:$36 sps:$4 sm:$0xff]  }
 0x600   : > { %8634 = vst [vmem:[#allocation97_spill] sm:$0xff] %v6480_v30 }
 0x609   : > { %v4673_v12 = vpop.eup %4672 }
 0x60a   : > { %v2098_v3 = vmul.f32 %v4673_v12, %v2097_v26  ;;  %v6486_v26 = vld [vmem:[#allocation4 + $0x13c] ss:$36 sps:$4 sm:$0xff]   ;;  %v6489_v12 = vld [vmem:[#allocation4 + $0x130] ss:$36 sps:$4 sm:$0xff]  }
 0x60b   : > { %8636 = vst [vmem:[#allocation99_spill] sm:$0xff] %v6486_v26  ;;  %8637 = vst [vmem:[#allocation100_spill] sm:$0xff] %v6489_v12 }
 0x60c   : > { %v6425_v45 = vadd.f32 %v2099_v34, %v2098_v3  ;;  %v6492_v34 = vld [vmem:[#allocation4 + $0x138] ss:$36 sps:$4 sm:$0xff]  }
 0x60d   : > { %8638 = vst [vmem:[#allocation101_spill] sm:$0xff] %v6492_v34  ;;  %v6495_v3 = vld [vmem:[#allocation4 + $0x17c] ss:$36 sps:$4 sm:$0xff]  }
 0x60e   : > { %v6429_v8 = vpack.c.bf16 %v6425_v45, %v6425_v45  ;;  %8639 = vst [vmem:[#allocation102_spill] sm:$0xff] %v6495_v3 }
 0x610   : > { %2157 = vmatprep.mubr.bf16.mxu1 %v6429_v8  ;;  %2198 = vmatprep.mubr.bf16.mxu0 %v6429_v8 }
 0x611   : > { %2158 = vmatmul.mubr.bf16.vlgmr.msra.gmra.mrb[36].mxu1 %v6433_v24  ;;  %2199 = vmatmul.mubr.bf16.vlgmr.msra.gmra.mrb[36].mxu0 %v6433_v24 }
 0x612   : > { %2208 = vmatpush1.bf16.msra.mxu1 %v6439_v46  ;;  %2249 = vmatpush1.bf16.msra.mxu0 %v6442_v6 }
 0x613   : > { %2239 = vmatprep.mubr.bf16.mxu1 %v6429_v8  ;;  %2280 = vmatprep.mubr.bf16.mxu0 %v6429_v8 }
 0x614   : > { %2209 = vmatprep.subr.bf16.mxu1 %v6447_v27  ;;  %2250 = vmatprep.subr.bf16.mxu0 %v6450_v7 }
 0x616   : > { %2210 = vmatpush1.bf16.msra.mxu1 %v6453_v16  ;;  %2251 = vmatpush1.bf16.msra.mxu0 %v6456_v55 }
 0x617   : > { %2211 = vmatprep.subr.bf16.mxu1 %v6459_v49  ;;  %2252 = vmatprep.subr.bf16.mxu0 %v6462_v63 }
 0x61a   : > { %2212 = vmatpush1.bf16.msra.mxu1 %v6465_v29  ;;  %2253 = vmatpush1.bf16.msra.mxu0 %v6468_v36 }
 0x61b   : > { %2213 = vmatprep.subr.bf16.mxu1 %v6471_v13  ;;  %2254 = vmatprep.subr.bf16.mxu0 %v6474_v59 }
 0x61e   : > { %2214 = vmatpush1.bf16.msra.mxu1 %v6477_v32  ;;  %2255 = vmatpush1.bf16.msra.mxu0 %v6480_v30  ;;  %v6498_v30 = vld [vmem:[#allocation4 + $0x184] ss:$36 sps:$4 sm:$0xff]  }
 0x61f   : > { %2215 = vmatprep.subr.bf16.mxu1 %v6483_v14  ;;  %2256 = vmatprep.subr.bf16.mxu0 %v6486_v26  ;;  %8640 = vst [vmem:[#allocation103_spill] sm:$0xff] %v6498_v30  ;;  %v6501_v14 = vld [vmem:[#allocation4 + $0x178] ss:$36 sps:$4 sm:$0xff]   ;;  %v6504_v26 = vld [vmem:[#allocation4 + $0x180] ss:$36 sps:$4 sm:$0xff]  }
 0x622   : > { %2216 = vmatpush1.bf16.msra.mxu1 %v6489_v12  ;;  %2257 = vmatpush1.bf16.msra.mxu0 %v6492_v34  ;;  %v6507_v12 = vld [vmem:[#allocation4 + $0x1c4] ss:$36 sps:$4 sm:$0xff]   ;;  %v6510_v34 = vld [vmem:[#allocation4 + $0x1cc] ss:$36 sps:$4 sm:$0xff]  }
 0x623   : > { %2217 = vmatprep.subr.bf16.mxu1 %v6495_v3  ;;  %2258 = vmatprep.subr.bf16.mxu0 %v6498_v30  ;;  %v6513_v3 = vld [vmem:[#allocation4 + $0x1c0] ss:$36 sps:$4 sm:$0xff]   ;;  %v6516_v30 = vld [vmem:[#allocation4 + $0x1c8] ss:$36 sps:$4 sm:$0xff]  }
 0x626   : > { %2218 = vmatpush1.bf16.msra.mxu1 %v6501_v14  ;;  %2259 = vmatpush1.bf16.msra.mxu0 %v6504_v26 }
 0x627   : > { %2219 = vmatprep.subr.bf16.mxu1 %v6507_v12  ;;  %2260 = vmatprep.subr.bf16.mxu0 %v6510_v34 }
 0x62a   : > { %2220 = vmatpush1.bf16.msra.mxu1 %v6513_v3  ;;  %2261 = vmatpush1.bf16.msra.mxu0 %v6516_v30 }
 0x62b   : > { %2221 = vmatprep.subr.bf16.mxu1 %v8532_v9  ;;  %2262 = vmatprep.subr.bf16.mxu0 %v8533_v28  ;;  %v8641_v9 = vld [vmem:[#allocation27_spill] sm:$0xff]  ;;  %v8645_v28 = vld [vmem:[#allocation13_spill] sm:$0xff] }
 0x62e   : > { %2222 = vmatpush1.bf16.msra.mxu1 %v8534_v33  ;;  %2263 = vmatpush1.bf16.msra.mxu0 %v8535_v35  ;;  %v8647_v33 = vld [vmem:[#allocation111_spill] sm:$0xff]  ;;  %v8648_v35 = vld [vmem:[#allocation14_spill] sm:$0xff] }
 0x62f   : > { %2223 = vmatprep.subr.bf16.mxu1 %v8536_v38  ;;  %2264 = vmatprep.subr.bf16.mxu0 %v8537_v39  ;;  %v8649_v38 = vld [vmem:[#allocation31_spill] sm:$0xff]  ;;  %v8650_v39 = vld [vmem:[#allocation112_spill] sm:$0xff] }
 0x632   : > { %2224 = vmatpush1.bf16.msra.mxu1 %v8538_v40  ;;  %2265 = vmatpush1.bf16.msra.mxu0 %v8539_v41  ;;  %v8651_v40 = vld [vmem:[#allocation113_spill] sm:$0xff] }
 0x633   : > { %2225 = vmatprep.subr.bf16.mxu1 %v8540_v42  ;;  %2266 = vmatprep.subr.bf16.mxu0 %v8541_v43  ;;  %v8652_v41 = vld [vmem:[#allocation33_spill] sm:$0xff]  ;;  %v8653_v42 = vld [vmem:[#allocation15_spill] sm:$0xff]  ;;  %v8654_v43 = vld [vmem:[#allocation114_spill] sm:$0xff] }
 0x636   : > { %2226 = vmatpush1.bf16.msra.mxu1 %v8542_v44  ;;  %2267 = vmatpush1.bf16.msra.mxu0 %v8543_v48  ;;  %v8655_v44 = vld [vmem:[#allocation115_spill] sm:$0xff]  ;;  %v8656_v48 = vld [vmem:[#allocation16_spill] sm:$0xff] }
 0x637   : > { %2227 = vmatprep.subr.bf16.mxu1 %v8544_v52  ;;  %2268 = vmatprep.subr.bf16.mxu0 %v8545_v58  ;;  %v8657_v52 = vld [vmem:[#allocation17_spill] sm:$0xff]  ;;  %v8658_v58 = vld [vmem:[#allocation116_spill] sm:$0xff] }
 0x63a   : > { %2228 = vmatpush1.bf16.msra.mxu1 %v8546_v60  ;;  %2269 = vmatpush1.bf16.msra.mxu0 %v8547_v62  ;;  %v8659_v60 = vld [vmem:[#allocation117_spill] sm:$0xff]  ;;  %v8660_v62 = vld [vmem:[#allocation18_spill] sm:$0xff] }
 0x63b   : > { %2229 = vmatprep.subr.bf16.mxu1 %v8548_v1  ;;  %2270 = vmatprep.subr.bf16.mxu0 %v8549_v47  ;;  %v8661_v1 = vld [vmem:[#allocation19_spill] sm:$0xff]  ;;  %v8662_v47 = vld [vmem:[#allocation118_spill] sm:$0xff] }
 0x63e   : > { %2230 = vmatpush1.bf16.msra.mxu1 %v8550_v61  ;;  %2271 = vmatpush1.bf16.msra.mxu0 %v8551_v17  ;;  %v8663_v61 = vld [vmem:[#allocation119_spill] sm:$0xff]  ;;  %v8664_v17 = vld [vmem:[#allocation20_spill] sm:$0xff] }
 0x63f   : > { %2231 = vmatprep.subr.bf16.mxu1 %v8552_v0  ;;  %2272 = vmatprep.subr.bf16.mxu0 %v8553_v15  ;;  %v8665_v0 = vld [vmem:[#allocation21_spill] sm:$0xff]  ;;  %v8666_v15 = vld [vmem:[#allocation120_spill] sm:$0xff] }
 0x642   : > { %2232 = vmatpush1.bf16.msra.mxu1 %v8554_v18  ;;  %2273 = vmatpush1.bf16.msra.mxu0 %v8555_v22  ;;  %v8667_v18 = vld [vmem:[#allocation121_spill] sm:$0xff]  ;;  %v8668_v22 = vld [vmem:[#allocation22_spill] sm:$0xff] }
 0x643   : > { %2233 = vmatprep.subr.bf16.mxu1 %v8556_v11  ;;  %2274 = vmatprep.subr.bf16.mxu0 %v8557_v5  ;;  %v8669_v11 = vld [vmem:[#allocation23_spill] sm:$0xff]  ;;  %v8670_v5 = vld [vmem:[#allocation122_spill] sm:$0xff] }
 0x646   : > { %2234 = vmatpush1.bf16.msra.mxu1 %v8558_v57  ;;  %2275 = vmatpush1.bf16.msra.mxu0 %v8559_v51  ;;  %v8671_v57 = vld [vmem:[#allocation24_spill] sm:$0xff]  ;;  %v8672_v51 = vld [vmem:[#allocation25_spill] sm:$0xff] }
 0x647   : > { %2235 = vmatprep.subr.bf16.mxu1 %v5948_v10  ;;  %2276 = vmatprep.subr.bf16.mxu0 %v8560_v19  ;;  %v8642_v10 = vld [vmem:[#allocation108_spill] sm:$0xff]  ;;  %v8673_v19 = vld [vmem:[#allocation26_spill] sm:$0xff] }
 0x64a   : > { %2236 = vmatpush1.bf16.msra.mxu1 %v8561_v21  ;;  %2277 = vmatpush1.bf16.msra.mxu0 %v5956_v2  ;;  %v8643_v2 = vld [vmem:[#allocation109_spill] sm:$0xff]  ;;  %v8674_v21 = vld [vmem:[#allocation28_spill] sm:$0xff] }
 0x64b   : > { %2237 = vmatprep.subr.bf16.mxu1 %v5960_v25  ;;  %2278 = vmatprep.subr.bf16.mxu0 %v8562_v23  ;;  %v8644_v25 = vld [vmem:[#allocation29_spill] sm:$0xff]  ;;  %v8675_v23 = vld [vmem:[#allocation30_spill] sm:$0xff] }
 0x64e   : > { %2238 = vmatpush1.bf16.msra.mxu1 %v5966_v4  ;;  %2279 = vmatpush1.bf16.msra.mxu0 %v8563_v20  ;;  %v8646_v4 = vld [vmem:[#allocation110_spill] sm:$0xff]  ;;  %v8676_v20 = vld [vmem:[#allocation32_spill] sm:$0xff] }
 0x64f   : > { %4104 = vmatprep.subr.bf16.mxu1 %v8564_v54  ;;  %2378 = vmatprep.subr.bf16.mxu0 %v8641_v9  ;;  %v8677_v54 = vld [vmem:[#allocation34_spill] sm:$0xff] }
 0x651   : > { %2240 = vmatmul.mubr.bf16.vlgmr.msra.gmra.mrb[40].mxu1 %v6433_v24  ;;  %2281 = vmatmul.mubr.bf16.vlgmr.msra.gmra.mrb[40].mxu0 %v6433_v24 }
 0x652   : > { %4105 = vmatpush3.bf16.msra.mxu1 %v8642_v10  ;;  %2321 = vmatprep.mubr.bf16.mxu1 %v6429_v8  ;;  %v8678_v8 = vld [vmem:[#allocation37_spill] sm:$0xff]  ;;  %v8679_v10 = vld [vmem:[#allocation38_spill] sm:$0xff] }
 0x653   : > { %4106 = vmatprep.subr.bf16.mxu1 %v8643_v2  ;;  %2379 = vmatpush1.bf16.msra.mxu0 %v8644_v25  ;;  %v8680_v2 = vld [vmem:[#allocation40_spill] sm:$0xff] }
 0x654   : > { %2380 = vmatprep.subr.bf16.mxu0 %v8645_v28 }
 0x656   : > { %4107 = vmatpush3.bf16.msra.mxu1 %v8646_v4  ;;  %v8681_v4 = vld [vmem:[#allocation35_spill] sm:$0xff] }
 0x657   : > { %4108 = vmatprep.subr.bf16.mxu1 %v8647_v33  ;;  %2381 = vmatpush1.bf16.msra.mxu0 %v8648_v35  ;;  %v8682_v33 = vld [vmem:[#allocation57_spill] sm:$0xff] }
 0x658   : > { %2382 = vmatprep.subr.bf16.mxu0 %v8649_v38 }
 0x65a   : > { %4109 = vmatpush3.bf16.msra.mxu1 %v8650_v39  ;;  %v8683_v39 = vld [vmem:[#allocation58_spill] sm:$0xff] }
 0x65b   : > { %4110 = vmatprep.subr.bf16.mxu1 %v8651_v40  ;;  %2383 = vmatpush1.bf16.msra.mxu0 %v8652_v41  ;;  %v8685_v40 = vld [vmem:[#allocation60_spill] sm:$0xff] }
 0x65c   : > { %2384 = vmatprep.subr.bf16.mxu0 %v8653_v42 }
 0x65e   : > { %4111 = vmatpush3.bf16.msra.mxu1 %v8654_v43  ;;  %v8686_v43 = vld [vmem:[#allocation61_spill] sm:$0xff] }
 0x65f   : > { %4112 = vmatprep.subr.bf16.mxu1 %v8655_v44  ;;  %2385 = vmatpush1.bf16.msra.mxu0 %v8656_v48  ;;  %v8687_v44 = vld [vmem:[#allocation62_spill] sm:$0xff] }
 0x660   : > { %2386 = vmatprep.subr.bf16.mxu0 %v8657_v52 }
 0x662   : > { %4113 = vmatpush3.bf16.msra.mxu1 %v8658_v58  ;;  %v8688_v58 = vld [vmem:[#allocation63_spill] sm:$0xff] }
 0x663   : > { %4114 = vmatprep.subr.bf16.mxu1 %v8659_v60  ;;  %2387 = vmatpush1.bf16.msra.mxu0 %v8660_v62  ;;  %v8689_v60 = vld [vmem:[#allocation64_spill] sm:$0xff] }
 0x664   : > { %2388 = vmatprep.subr.bf16.mxu0 %v8661_v1 }
 0x666   : > { %4115 = vmatpush3.bf16.msra.mxu1 %v8662_v47  ;;  %v8690_v47 = vld [vmem:[#allocation65_spill] sm:$0xff] }
 0x667   : > { %4116 = vmatprep.subr.bf16.mxu1 %v8663_v61  ;;  %2389 = vmatpush1.bf16.msra.mxu0 %v8664_v17  ;;  %v8691_v61 = vld [vmem:[#allocation66_spill] sm:$0xff] }
 0x668   : > { %2390 = vmatprep.subr.bf16.mxu0 %v8665_v0 }
 0x66a   : > { %4117 = vmatpush3.bf16.msra.mxu1 %v8666_v15  ;;  %v8692_v15 = vld [vmem:[#allocation67_spill] sm:$0xff] }
 0x66b   : > { %4118 = vmatprep.subr.bf16.mxu1 %v8667_v18  ;;  %2391 = vmatpush1.bf16.msra.mxu0 %v8668_v22  ;;  %v8693_v18 = vld [vmem:[#allocation68_spill] sm:$0xff] }
 0x66c   : > { %2392 = vmatprep.subr.bf16.mxu0 %v8669_v11 }
 0x66e   : > { %4119 = vmatpush3.bf16.msra.mxu1 %v8670_v5  ;;  %v8694_v5 = vld [vmem:[#allocation69_spill] sm:$0xff] }
 0x66f   : > { %2419 = vmatprep.subr.bf16.mxu1 %v8671_v57  ;;  %2393 = vmatpush1.bf16.msra.mxu0 %v8672_v51 }
 0x670   : > { %2394 = vmatprep.subr.bf16.mxu0 %v8673_v19 }
 0x671   : > { %2322 = vmatmul.mubr.bf16.vlgmr.msra.gmra.mrb[44].mxu1 %v6433_v24  ;;  %v8684_v24 = vld [vmem:[#allocation59_spill] sm:$0xff] }
 0x672   : > { %2420 = vmatpush1.bf16.msra.mxu1 %v8674_v21 }
 0x673   : > { %2421 = vmatprep.subr.bf16.mxu1 %v8675_v23  ;;  %2395 = vmatpush1.bf16.msra.mxu0 %v8676_v20  ;;  %v6643_v20 = vld [vmem:[#allocation7 + $0x2] ss:$0 sm:$0xff] }
 0x674   : > { %2396 = vmatprep.subr.bf16.mxu0 %v8677_v54  ;;  %8724 = vst [vmem:[#allocation104_spill] sm:$0xff] %v6643_v20 }
 0x676   : > { %2422 = vmatpush1.bf16.msra.mxu1 %v8678_v8 }
 0x677   : > { %2423 = vmatprep.subr.bf16.mxu1 %v8679_v10  ;;  %2397 = vmatpush1.bf16.msra.mxu0 %v8680_v2 }
 0x678   : > { %2398 = vmatprep.subr.bf16.mxu0 %v8681_v4  ;;  %v8723_v4 = vld [vmem:[#allocation46_spill] sm:$0xff] }
 0x67a   : > { %2424 = vmatpush1.bf16.msra.mxu1 %v8682_v33 }
 0x67b   : > { %2425 = vmatprep.subr.bf16.mxu1 %v8683_v39  ;;  %2399 = vmatpush1.bf16.msra.mxu0 %v8684_v24  ;;  %v8695_v24 = vld [vmem:[#allocation70_spill] sm:$0xff]  ;;  %v8722_v39 = vld [vmem:[#allocation44_spill] sm:$0xff] }
 0x67c   : > { %2400 = vmatprep.subr.bf16.mxu0 %v8685_v40  ;;  %v8696_v40 = vld [vmem:[#allocation71_spill] sm:$0xff] }
 0x67e   : > { %2426 = vmatpush1.bf16.msra.mxu1 %v8686_v43  ;;  %v8697_v43 = vld [vmem:[#allocation72_spill] sm:$0xff] }
 0x67f   : > { %2427 = vmatprep.subr.bf16.mxu1 %v8687_v44  ;;  %2401 = vmatpush1.bf16.msra.mxu0 %v8688_v58  ;;  %v8698_v44 = vld [vmem:[#allocation73_spill] sm:$0xff]  ;;  %v8699_v58 = vld [vmem:[#allocation74_spill] sm:$0xff] }
 0x680   : > { %2402 = vmatprep.subr.bf16.mxu0 %v8689_v60  ;;  %v8700_v60 = vld [vmem:[#allocation75_spill] sm:$0xff] }
 0x682   : > { %2428 = vmatpush1.bf16.msra.mxu1 %v8690_v47  ;;  %v8701_v47 = vld [vmem:[#allocation76_spill] sm:$0xff] }
 0x683   : > { %2429 = vmatprep.subr.bf16.mxu1 %v8691_v61  ;;  %2403 = vmatpush1.bf16.msra.mxu0 %v8692_v15  ;;  %v8702_v61 = vld [vmem:[#allocation77_spill] sm:$0xff]  ;;  %v8703_v15 = vld [vmem:[#allocation78_spill] sm:$0xff] }
 0x684   : > { %2404 = vmatprep.subr.bf16.mxu0 %v8693_v18  ;;  %v8704_v18 = vld [vmem:[#allocation79_spill] sm:$0xff] }
 0x686   : > { %2430 = vmatpush1.bf16.msra.mxu1 %v8694_v5  ;;  %v8705_v5 = vld [vmem:[#allocation80_spill] sm:$0xff] }
 0x687   : > { %2431 = vmatprep.subr.bf16.mxu1 %v8695_v24  ;;  %2405 = vmatpush1.bf16.msra.mxu0 %v8696_v40  ;;  %v8706_v24 = vld [vmem:[#allocation81_spill] sm:$0xff]  ;;  %v8707_v40 = vld [vmem:[#allocation82_spill] sm:$0xff] }
 0x688   : > { %2406 = vmatprep.subr.bf16.mxu0 %v8697_v43  ;;  %v8708_v43 = vld [vmem:[#allocation83_spill] sm:$0xff] }
 0x68a   : > { %2432 = vmatpush1.bf16.msra.mxu1 %v8698_v44  ;;  %v8709_v44 = vld [vmem:[#allocation84_spill] sm:$0xff] }
 0x68b   : > { %2433 = vmatprep.subr.bf16.mxu1 %v8699_v58  ;;  %2407 = vmatpush1.bf16.msra.mxu0 %v8700_v60  ;;  %v8710_v58 = vld [vmem:[#allocation85_spill] sm:$0xff]  ;;  %v8711_v60 = vld [vmem:[#allocation86_spill] sm:$0xff] }
 0x68c   : > { %2408 = vmatprep.subr.bf16.mxu0 %v8701_v47  ;;  %v8712_v47 = vld [vmem:[#allocation87_spill] sm:$0xff] }
 0x68e   : > { %2434 = vmatpush1.bf16.msra.mxu1 %v8702_v61  ;;  %v8713_v61 = vld [vmem:[#allocation88_spill] sm:$0xff] }
 0x68f   : > { %2435 = vmatprep.subr.bf16.mxu1 %v8703_v15  ;;  %2409 = vmatpush1.bf16.msra.mxu0 %v8704_v18  ;;  %v8714_v15 = vld [vmem:[#allocation89_spill] sm:$0xff]  ;;  %v8715_v18 = vld [vmem:[#allocation90_spill] sm:$0xff] }
 0x690   : > { %2460 = vmatprep.subr.bf16.mxu0 %v8705_v5  ;;  %v8716_v5 = vld [vmem:[#allocation91_spill] sm:$0xff] }
 0x692   : > { %2436 = vmatpush1.bf16.msra.mxu1 %v8706_v24  ;;  %v8717_v24 = vld [vmem:[#allocation92_spill] sm:$0xff] }
 0x693   : > { %2437 = vmatprep.subr.bf16.mxu1 %v8707_v40  ;;  %v8718_v40 = vld [vmem:[#allocation93_spill] sm:$0xff] }
 0x696   : > { %2438 = vmatpush1.bf16.msra.mxu1 %v8708_v43  ;;  %v8719_v43 = vld [vmem:[#allocation94_spill] sm:$0xff] }
 0x697   : > { %2439 = vmatprep.subr.bf16.mxu1 %v8709_v44  ;;  %v8720_v44 = vld [vmem:[#allocation95_spill] sm:$0xff] }
 0x69a   : > { %2440 = vmatpush1.bf16.msra.mxu1 %v8710_v58  ;;  %v8721_v58 = vld [vmem:[#allocation96_spill] sm:$0xff] }
 0x69b   : > { %2441 = vmatprep.subr.bf16.mxu1 %v8711_v60 }
 0x69e   : > { %2442 = vmatpush1.bf16.msra.mxu1 %v8712_v47 }
 0x69f   : > { %2443 = vmatprep.subr.bf16.mxu1 %v8713_v61 }
 0x6a2   : > { %2444 = vmatpush1.bf16.msra.mxu1 %v8714_v15 }
 0x6a3   : > { %2445 = vmatprep.subr.bf16.mxu1 %v8715_v18 }
 0x6a6   : > { %2446 = vmatpush1.bf16.msra.mxu1 %v8716_v5 }
 0x6a7   : > { %2447 = vmatprep.subr.bf16.mxu1 %v8717_v24 }
 0x6aa   : > { %2448 = vmatpush1.bf16.msra.mxu1 %v8718_v40 }
 0x6ab   : > { %2449 = vmatprep.subr.bf16.mxu1 %v8719_v43 }
 0x6ae   : > { %2450 = vmatpush1.bf16.msra.mxu1 %v8720_v44 }
 0x6af   : > { %2501 = vmatprep.subr.bf16.mxu1 %v8721_v58 }
 0x6e4   : > { %v2159_v60 = vpop.f32.mrb[36].mxu1  ;;  %v2200_v47 = vpop.f32.mrb[36].mxu0 }
 0x6e5   : > { %v2354_v61 = vadd.f32 %v2159_v60, %v8722_v39  ;;  %v2161_v33 = vpop.f32.mrb[37].mxu1  ;;  %v2202_v15 = vpop.f32.mrb[37].mxu0  ;;  %v2368_v39 = vadd.f32 %v6643_v20, %v2200_v47 }
 0x6e6   : > { %v2355_v18 = vadd.f32 %v2161_v33, %v8723_v4  ;;  %v2163_v2 = vpop.f32.mrb[38].mxu1  ;;  %v2204_v5 = vpop.f32.mrb[38].mxu0 }
 0x6e7   : > { %v4014_v10 = vmul.f32 -1.442695, %v2354_v61  ;;  %v2164_v24 = vpop.f32.mrb[39].mxu1  ;;  %v2205_v8 = vpop.f32.mrb[39].mxu0  ;;  %v8725_v2 = vld [vmem:[#allocation39_spill] sm:$0xff] }
 0x6e8   : > { %v4015_v40 = vmul.f32 -1.442695, %v2355_v18 }
 0x6e9   : > { %4674 = vpow2.f32 %v4014_v10 }
 0x6ea   : > { %4676 = vpow2.f32 %v4015_v40 }
 0x6f3   : > { %v4675_v43 = vpop.eup %4674 }
 0x6f4   : > { %v2362_v44 = vadd.f32 1.0, %v4675_v43  ;;  %v4677_v58 = vpop.eup %4676 }
 0x6f5   : > { %v2363_v54 = vadd.f32 1.0, %v4677_v58 }
 0x6f6   : > { %4678 = vrcp.f32 %v2362_v44  ;;  %v2329_v44 = vadd.f32 %v2202_v15, %v6101_v50 }
 0x6f7   : > { %4680 = vrcp.f32 %v2363_v54 }
 0x700   : > { %v4679_v60 = vpop.eup %4678 }
 0x701   : > { %v2369_v23 = vmul.f32 %v4679_v60, %v2368_v39  ;;  %v4681_v33 = vpop.eup %4680 }
 0x702   : > { %v2372_v8 = vsub.f32 1.0, %v4681_v33  ;;  %v2374_v24 = vmul.f32 %v4681_v33, %v6418_v53 }
 0x703   : > { %v2370_v4 = vadd.f32 %v2369_v23, %v8725_v2 }
 0x705   : > { %4682 = vtanh.f32 %v2370_v4 }
 0x70f   : > { %v4683_v10 = vpop.eup %4682 }
 0x710   : > { %v2373_v40 = vmul.f32 %v4683_v10, %v2372_v8 }
 0x712   : > { %v6648_v43 = vadd.f32 %v2374_v24, %v2373_v40 }
 0x724   : > { %v2241_v58 = vpop.f32.mrb[40].mxu1  ;;  %v2282_v61 = vpop.f32.mrb[40].mxu0 }
 0x725   : > { %v2330_v47 = vadd.f32 %v2241_v58, %v6105_v56  ;;  %v2332_v18 = vadd.f32 %v2329_v44, %v2282_v61  ;;  %v2243_v5 = vpop.f32.mrb[41].mxu1  ;;  %v2284_v54 = vpop.f32.mrb[41].mxu0 }
 0x726   : > { %v2245_v39 = vpop.f32.mrb[42].mxu1  ;;  %v2286_v23 = vpop.f32.mrb[42].mxu0 }
 0x727   : > { %v2333_v60 = vadd.f32 %v2330_v47, %v2284_v54  ;;  %v2246_v2 = vpop.f32.mrb[43].mxu1  ;;  %v2287_v4 = vpop.f32.mrb[43].mxu0  ;;  %v4012_v20 = vmul.f32 -1.442695, %v2332_v18  ;;  %v2331_v47 = vadd.f32 %v2243_v5, %v6113_v37  ;;  %v8727_v5 = vld [vmem:[#allocation98_spill] sm:$0xff] }
 0x729   : > { %4684 = vpow2.f32 %v4012_v20  ;;  %v4013_v53 = vmul.f32 -1.442695, %v2333_v60 }
 0x72b   : > { %4686 = vpow2.f32 %v4013_v53 }
 0x733   : > { %v4685_v33 = vpop.eup %4684 }
 0x734   : > { %v2340_v8 = vadd.f32 1.0, %v4685_v33 }
 0x735   : > { %v4687_v15 = vpop.eup %4686 }
 0x736   : > { %4688 = vrcp.f32 %v2340_v8  ;;  %v2341_v40 = vadd.f32 1.0, %v4687_v15  ;;  %v8728_v15 = vld [vmem:[#allocation99_spill] sm:$0xff] }
 0x738   : > { %4690 = vrcp.f32 %v2341_v40  ;;  %v8731_v40 = vld [vmem:[#allocation102_spill] sm:$0xff] }
 0x740   : > { %v4689_v23 = vpop.eup %4688 }
 0x742   : > { %v4691_v54 = vpop.eup %4690 }
 0x743   : > { %v2350_v60 = vsub.f32 1.0, %v4691_v54  ;;  %v2352_v4 = vmul.f32 %v4691_v54, %v6425_v45  ;;  %v8726_v45 = vld [vmem:[#allocation97_spill] sm:$0xff] }
 0x744   : > { %v4120_v10 = vpop.f32.mrb[44].mxu1  ;;  %v6718_v54 = vld [vmem:[#allocation4 + $0x258] ss:$36 sps:$4 sm:$0xff]  }
 0x745   : > { %v4121_v24 = vpop.f32.mrb[45].mxu1  ;;  %8734 = vst [vmem:[#allocation106_spill] sm:$0xff] %v6718_v54 }
 0x746   : > { %v4122_v58 = vadd.f32 %v4121_v24, %v4120_v10  ;;  %v4123_v44 = vpop.f32.mrb[46].mxu1  ;;  %v8729_v10 = vld [vmem:[#allocation100_spill] sm:$0xff]  ;;  %v8730_v24 = vld [vmem:[#allocation101_spill] sm:$0xff] }
 0x747   : > { %v4124_v61 = vpop.f32.mrb[47].mxu1  ;;  %v6697_v44 = vld [vmem:[#allocation4 + $0x20c] ss:$36 sps:$4 sm:$0xff]  }
 0x748   : > { %v2346_v39 = vadd.f32 %v4122_v58, %v6109_v31  ;;  %v6663_v31 = vpack.c.bf16 %v6648_v43, %v6648_v43  ;;  %v8732_v58 = vld [vmem:[#allocation103_spill] sm:$0xff]  ;;  %v6700_v61 = vld [vmem:[#allocation4 + $0x214] ss:$36 sps:$4 sm:$0xff]  }
 0x74a   : > { %v2347_v18 = vmul.f32 %v4689_v23, %v2346_v39  ;;  %v6703_v39 = vld [vmem:[#allocation4 + $0x208] ss:$36 sps:$4 sm:$0xff]   ;;  %v6706_v23 = vld [vmem:[#allocation4 + $0x210] ss:$36 sps:$4 sm:$0xff]  }
 0x74c   : > { %v2348_v20 = vadd.f32 %v2347_v18, %v2331_v47  ;;  %v6709_v47 = vld [vmem:[#allocation4 + $0x254] ss:$36 sps:$4 sm:$0xff]   ;;  %v6712_v18 = vld [vmem:[#allocation4 + $0x25c] ss:$36 sps:$4 sm:$0xff]  }
 0x74e   : > { %4692 = vtanh.f32 %v2348_v20  ;;  %v6715_v20 = vld [vmem:[#allocation4 + $0x250] ss:$36 sps:$4 sm:$0xff]  }
 0x74f   : > { %8733 = vst [vmem:[#allocation105_spill] sm:$0xff] %v6715_v20 }
 0x758   : > { %v4693_v2 = vpop.eup %4692 }
 0x759   : > { %v2351_v53 = vmul.f32 %v4693_v2, %v2350_v60  ;;  %v6721_v60 = vld [vmem:[#allocation4 + $0x29c] ss:$36 sps:$4 sm:$0xff]   ;;  %v6724_v2 = vld [vmem:[#allocation4 + $0x2a4] ss:$36 sps:$4 sm:$0xff]  }
 0x75a   : > { %8735 = vst [vmem:[#allocation107_spill] sm:$0xff] %v6721_v60  ;;  %8736 = vst [vmem:[#allocation41_spill] sm:$0xff] %v6724_v2 }
 0x75b   : > { %v6655_v33 = vadd.f32 %v2352_v4, %v2351_v53  ;;  %v6727_v4 = vld [vmem:[#allocation4 + $0x298] ss:$36 sps:$4 sm:$0xff]   ;;  %v6730_v53 = vld [vmem:[#allocation4 + $0x2a0] ss:$36 sps:$4 sm:$0xff]  }
 0x75c   : > { %8737 = vst [vmem:[#allocation42_spill] sm:$0xff] %v6727_v4  ;;  %8738 = vst [vmem:[#allocation36_spill] sm:$0xff] %v6730_v53 }
 0x75d   : > { %v6659_v8 = vpack.c.bf16 %v6655_v33, %v6655_v33 }
 0x75f   : > { %2410 = vmatprep.mubr.bf16.mxu0 %v6659_v8  ;;  %2451 = vmatprep.mubr.bf16.mxu1 %v6659_v8 }
 0x760   : > { %2411 = vmatmul.mubr.bf16.vlgmr.msra.gmra.mrb[44].mxu0 %v6663_v31  ;;  %2452 = vmatmul.mubr.bf16.vlgmr.msra.gmra.mrb[48].mxu1 %v6663_v31 }
 0x761   : > { %2461 = vmatpush1.bf16.msra.mxu0 %v6439_v46  ;;  %2502 = vmatpush1.bf16.msra.mxu1 %v6442_v6 }
 0x762   : > { %2492 = vmatprep.mubr.bf16.mxu0 %v6659_v8  ;;  %2533 = vmatprep.mubr.bf16.mxu1 %v6659_v8 }
 0x763   : > { %2462 = vmatprep.subr.bf16.mxu0 %v6447_v27  ;;  %2503 = vmatprep.subr.bf16.mxu1 %v6450_v7 }
 0x765   : > { %2463 = vmatpush1.bf16.msra.mxu0 %v6453_v16  ;;  %2504 = vmatpush1.bf16.msra.mxu1 %v6456_v55 }
 0x766   : > { %2464 = vmatprep.subr.bf16.mxu0 %v6459_v49  ;;  %2505 = vmatprep.subr.bf16.mxu1 %v6462_v63 }
 0x769   : > { %2465 = vmatpush1.bf16.msra.mxu0 %v6465_v29  ;;  %2506 = vmatpush1.bf16.msra.mxu1 %v6468_v36 }
 0x76a   : > { %2466 = vmatprep.subr.bf16.mxu0 %v6471_v13  ;;  %2507 = vmatprep.subr.bf16.mxu1 %v6474_v59 }
 0x76d   : > { %2467 = vmatpush1.bf16.msra.mxu0 %v6477_v32  ;;  %2508 = vmatpush1.bf16.msra.mxu1 %v8726_v45 }
 0x76e   : > { %2468 = vmatprep.subr.bf16.mxu0 %v8727_v5  ;;  %2509 = vmatprep.subr.bf16.mxu1 %v8728_v15 }
 0x771   : > { %2469 = vmatpush1.bf16.msra.mxu0 %v8729_v10  ;;  %2510 = vmatpush1.bf16.msra.mxu1 %v8730_v24 }
 0x772   : > { %2470 = vmatprep.subr.bf16.mxu0 %v8731_v40  ;;  %2511 = vmatprep.subr.bf16.mxu1 %v8732_v58 }
 0x775   : > { %2471 = vmatpush1.bf16.msra.mxu0 %v6501_v14  ;;  %2512 = vmatpush1.bf16.msra.mxu1 %v6504_v26 }
 0x776   : > { %2472 = vmatprep.subr.bf16.mxu0 %v6507_v12  ;;  %2513 = vmatprep.subr.bf16.mxu1 %v6510_v34 }
 0x779   : > { %2473 = vmatpush1.bf16.msra.mxu0 %v6513_v3  ;;  %2514 = vmatpush1.bf16.msra.mxu1 %v6516_v30 }
 0x77a   : > { %2474 = vmatprep.subr.bf16.mxu0 %v6697_v44  ;;  %2515 = vmatprep.subr.bf16.mxu1 %v6700_v61 }
 0x77d   : > { %2475 = vmatpush1.bf16.msra.mxu0 %v6703_v39  ;;  %2516 = vmatpush1.bf16.msra.mxu1 %v6706_v23 }
 0x77e   : > { %2476 = vmatprep.subr.bf16.mxu0 %v6709_v47  ;;  %2517 = vmatprep.subr.bf16.mxu1 %v6712_v18 }
 0x781   : > { %2477 = vmatpush1.bf16.msra.mxu0 %v6715_v20  ;;  %2518 = vmatpush1.bf16.msra.mxu1 %v6718_v54  ;;  %v6733_v20 = vld [vmem:[#allocation4 + $0x2e4] ss:$36 sps:$4 sm:$0xff]   ;;  %v6736_v54 = vld [vmem:[#allocation4 + $0x2ec] ss:$36 sps:$4 sm:$0xff]  }
 0x782   : > { %2478 = vmatprep.subr.bf16.mxu0 %v6721_v60  ;;  %2519 = vmatprep.subr.bf16.mxu1 %v6724_v2  ;;  %8739 = vst [vmem:[#allocation27_spill] sm:$0xff] %v6733_v20  ;;  %8740 = vst [vmem:[#allocation108_spill] sm:$0xff] %v6736_v54  ;;  %v6739_v60 = vld [vmem:[#allocation4 + $0x2e0] ss:$36 sps:$4 sm:$0xff]   ;;  %v6742_v2 = vld [vmem:[#allocation4 + $0x2e8] ss:$36 sps:$4 sm:$0xff]  }
 0x783   : > { %8741 = vst [vmem:[#allocation109_spill] sm:$0xff] %v6739_v60  ;;  %8742 = vst [vmem:[#allocation29_spill] sm:$0xff] %v6742_v2 }
 0x785   : > { %2479 = vmatpush1.bf16.msra.mxu0 %v6727_v4  ;;  %2520 = vmatpush1.bf16.msra.mxu1 %v6730_v53  ;;  %v6745_v4 = vld [vmem:[#allocation4 + $0x32c] ss:$36 sps:$4 sm:$0xff]   ;;  %v6748_v53 = vld [vmem:[#allocation4 + $0x334] ss:$36 sps:$4 sm:$0xff]  }
 0x786   : > { %2480 = vmatprep.subr.bf16.mxu0 %v6733_v20  ;;  %2521 = vmatprep.subr.bf16.mxu1 %v6736_v54  ;;  %8743 = vst [vmem:[#allocation13_spill] sm:$0xff] %v6745_v4  ;;  %8744 = vst [vmem:[#allocation110_spill] sm:$0xff] %v6748_v53  ;;  %v6751_v20 = vld [vmem:[#allocation4 + $0x328] ss:$36 sps:$4 sm:$0xff]   ;;  %v6754_v54 = vld [vmem:[#allocation4 + $0x330] ss:$36 sps:$4 sm:$0xff]  }
 0x787   : > { %8745 = vst [vmem:[#allocation111_spill] sm:$0xff] %v6751_v20  ;;  %8746 = vst [vmem:[#allocation14_spill] sm:$0xff] %v6754_v54 }
 0x789   : > { %2481 = vmatpush1.bf16.msra.mxu0 %v6739_v60  ;;  %2522 = vmatpush1.bf16.msra.mxu1 %v6742_v2  ;;  %v6757_v60 = vld [vmem:[#allocation4 + $0x374] ss:$36 sps:$4 sm:$0xff]   ;;  %v6760_v2 = vld [vmem:[#allocation4 + $0x37c] ss:$36 sps:$4 sm:$0xff]  }
 0x78a   : > { %2482 = vmatprep.subr.bf16.mxu0 %v6745_v4  ;;  %2523 = vmatprep.subr.bf16.mxu1 %v6748_v53  ;;  %8747 = vst [vmem:[#allocation31_spill] sm:$0xff] %v6757_v60  ;;  %8748 = vst [vmem:[#allocation112_spill] sm:$0xff] %v6760_v2  ;;  %v6763_v4 = vld [vmem:[#allocation4 + $0x370] ss:$36 sps:$4 sm:$0xff]   ;;  %v6766_v53 = vld [vmem:[#allocation4 + $0x378] ss:$36 sps:$4 sm:$0xff]  }
 0x78b   : > { %8749 = vst [vmem:[#allocation113_spill] sm:$0xff] %v6763_v4  ;;  %8750 = vst [vmem:[#allocation33_spill] sm:$0xff] %v6766_v53 }
 0x78d   : > { %2483 = vmatpush1.bf16.msra.mxu0 %v6751_v20  ;;  %2524 = vmatpush1.bf16.msra.mxu1 %v6754_v54  ;;  %v6769_v20 = vld [vmem:[#allocation4 + $0x3bc] ss:$36 sps:$4 sm:$0xff]   ;;  %v6772_v54 = vld [vmem:[#allocation4 + $0x3c4] ss:$36 sps:$4 sm:$0xff]  }
 0x78e   : > { %2484 = vmatprep.subr.bf16.mxu0 %v6757_v60  ;;  %2525 = vmatprep.subr.bf16.mxu1 %v6760_v2  ;;  %8751 = vst [vmem:[#allocation15_spill] sm:$0xff] %v6769_v20  ;;  %8752 = vst [vmem:[#allocation114_spill] sm:$0xff] %v6772_v54  ;;  %v6775_v60 = vld [vmem:[#allocation4 + $0x3b8] ss:$36 sps:$4 sm:$0xff]   ;;  %v6778_v2 = vld [vmem:[#allocation4 + $0x3c0] ss:$36 sps:$4 sm:$0xff]  }
 0x78f   : > { %8753 = vst [vmem:[#allocation115_spill] sm:$0xff] %v6775_v60  ;;  %8754 = vst [vmem:[#allocation16_spill] sm:$0xff] %v6778_v2 }
 0x791   : > { %2485 = vmatpush1.bf16.msra.mxu0 %v6763_v4  ;;  %2526 = vmatpush1.bf16.msra.mxu1 %v6766_v53  ;;  %v6781_v4 = vld [vmem:[#allocation4 + $0x404] ss:$36 sps:$4 sm:$0xff]   ;;  %v6784_v53 = vld [vmem:[#allocation4 + $0x40c] ss:$36 sps:$4 sm:$0xff]  }
 0x792   : > { %2486 = vmatprep.subr.bf16.mxu0 %v6769_v20  ;;  %2527 = vmatprep.subr.bf16.mxu1 %v6772_v54  ;;  %8755 = vst [vmem:[#allocation17_spill] sm:$0xff] %v6781_v4  ;;  %8756 = vst [vmem:[#allocation116_spill] sm:$0xff] %v6784_v53  ;;  %v6787_v20 = vld [vmem:[#allocation4 + $0x400] ss:$36 sps:$4 sm:$0xff]   ;;  %v6790_v54 = vld [vmem:[#allocation4 + $0x408] ss:$36 sps:$4 sm:$0xff]  }
 0x793   : > { %8757 = vst [vmem:[#allocation117_spill] sm:$0xff] %v6787_v20 }
 0x795   : > { %2487 = vmatpush1.bf16.msra.mxu0 %v6775_v60  ;;  %2528 = vmatpush1.bf16.msra.mxu1 %v6778_v2  ;;  %v6793_v60 = vld [vmem:[#allocation4 + $0x44c] ss:$36 sps:$4 sm:$0xff]   ;;  %v6796_v2 = vld [vmem:[#allocation4 + $0x454] ss:$36 sps:$4 sm:$0xff]  }
 0x796   : > { %2488 = vmatprep.subr.bf16.mxu0 %v6781_v4  ;;  %2529 = vmatprep.subr.bf16.mxu1 %v6784_v53  ;;  %8758 = vst [vmem:[#allocation18_spill] sm:$0xff] %v6793_v60  ;;  %v6799_v4 = vld [vmem:[#allocation4 + $0x448] ss:$36 sps:$4 sm:$0xff]   ;;  %v6802_v53 = vld [vmem:[#allocation4 + $0x450] ss:$36 sps:$4 sm:$0xff]  }
 0x797   : > { %8759 = vst [vmem:[#allocation19_spill] sm:$0xff] %v6799_v4 }
 0x799   : > { %2489 = vmatpush1.bf16.msra.mxu0 %v6787_v20  ;;  %2530 = vmatpush1.bf16.msra.mxu1 %v6790_v54  ;;  %v6805_v20 = vld [vmem:[#allocation4 + $0x260] ss:$36 sps:$4 sm:$0xff]  }
 0x79a   : > { %2490 = vmatprep.subr.bf16.mxu0 %v6793_v60  ;;  %2531 = vmatprep.subr.bf16.mxu1 %v6796_v2  ;;  %8760 = vst [vmem:[#allocation118_spill] sm:$0xff] %v6805_v20  ;;  %v6811_v60 = vld [vmem:[#allocation4 + $0x20] ss:$36 sps:$4 sm:$0xff]  }
 0x79b   : > { %8761 = vst [vmem:[#allocation119_spill] sm:$0xff] %v6811_v60 }
 0x79d   : > { %2491 = vmatpush1.bf16.msra.mxu0 %v6799_v4  ;;  %2532 = vmatpush1.bf16.msra.mxu1 %v6802_v53  ;;  %v6815_v4 = vld [vmem:[#allocation4 + $0x2a8] ss:$36 sps:$4 sm:$0xff]  }
 0x79e   : > { %4126 = vmatprep.subr.bf16.mxu0 %v6805_v20  ;;  %2631 = vmatprep.subr.bf16.mxu1 %v8641_v9  ;;  %8762 = vst [vmem:[#allocation20_spill] sm:$0xff] %v6815_v4  ;;  %v6820_v20 = vld [vmem:[#allocation4 + $0x68] ss:$36 sps:$4 sm:$0xff]   ;;  %v6823_v9 = vld [vmem:[#allocation4 + $0x2f0] ss:$36 sps:$4 sm:$0xff]  }
 0x79f   : > { %8763 = vst [vmem:[#allocation21_spill] sm:$0xff] %v6820_v20  ;;  %8764 = vst [vmem:[#allocation120_spill] sm:$0xff] %v6823_v9 }
 0x7a0   : > { %2493 = vmatmul.mubr.bf16.vlgmr.msra.gmra.mrb[48].mxu0 %v6663_v31  ;;  %2534 = vmatmul.mubr.bf16.vlgmr.msra.gmra.mrb[52].mxu1 %v6663_v31 }
 0x7a1   : > { %4127 = vmatpush3.bf16.msra.mxu0 %v6811_v60  ;;  %2574 = vmatprep.mubr.bf16.mxu0 %v6659_v8  ;;  %v6828_v8 = vld [vmem:[#allocation4 + $0xb0] ss:$36 sps:$4 sm:$0xff]  }
 0x7a2   : > { %4128 = vmatprep.subr.bf16.mxu0 %v6815_v4  ;;  %2632 = vmatpush1.bf16.msra.mxu1 %v8644_v25  ;;  %8765 = vst [vmem:[#allocation121_spill] sm:$0xff] %v6828_v8  ;;  %v6831_v4 = vld [vmem:[#allocation4 + $0x338] ss:$36 sps:$4 sm:$0xff]  }
 0x7a3   : > { %2633 = vmatprep.subr.bf16.mxu1 %v8645_v28  ;;  %8766 = vst [vmem:[#allocation22_spill] sm:$0xff] %v6831_v4  ;;  %v6836_v25 = vld [vmem:[#allocation4 + $0xf8] ss:$36 sps:$4 sm:$0xff]   ;;  %v6839_v28 = vld [vmem:[#allocation4 + $0x380] ss:$36 sps:$4 sm:$0xff]  }
 0x7a4   : > { %8767 = vst [vmem:[#allocation23_spill] sm:$0xff] %v6836_v25  ;;  %8768 = vst [vmem:[#allocation122_spill] sm:$0xff] %v6839_v28 }
 0x7a5   : > { %4129 = vmatpush3.bf16.msra.mxu0 %v6820_v20 }
 0x7a6   : > { %4130 = vmatprep.subr.bf16.mxu0 %v6823_v9  ;;  %2634 = vmatpush1.bf16.msra.mxu1 %v8648_v35  ;;  %v6844_v35 = vld [vmem:[#allocation4 + $0x140] ss:$36 sps:$4 sm:$0xff]  }
 0x7a7   : > { %2635 = vmatprep.subr.bf16.mxu1 %v8649_v38  ;;  %8769 = vst [vmem:[#allocation24_spill] sm:$0xff] %v6844_v35  ;;  %v6847_v38 = vld [vmem:[#allocation4 + $0x3c8] ss:$36 sps:$4 sm:$0xff]  }
 0x7a8   : > { %8770 = vst [vmem:[#allocation25_spill] sm:$0xff] %v6847_v38 }
 0x7a9   : > { %4131 = vmatpush3.bf16.msra.mxu0 %v6828_v8  ;;  %v8826_v8 = vld [vmem:[#allocation45_spill] sm:$0xff] }
 0x7aa   : > { %4132 = vmatprep.subr.bf16.mxu0 %v6831_v4  ;;  %2636 = vmatpush1.bf16.msra.mxu1 %v8652_v41  ;;  %v6852_v41 = vld [vmem:[#allocation4 + $0x188] ss:$36 sps:$4 sm:$0xff]  }
 0x7ab   : > { %2637 = vmatprep.subr.bf16.mxu1 %v8653_v42  ;;  %8771 = vst [vmem:[#allocation26_spill] sm:$0xff] %v6852_v41  ;;  %v6855_v42 = vld [vmem:[#allocation4 + $0x410] ss:$36 sps:$4 sm:$0xff]  }
 0x7ac   : > { %8772 = vst [vmem:[#allocation28_spill] sm:$0xff] %v6855_v42 }
 0x7ad   : > { %4133 = vmatpush3.bf16.msra.mxu0 %v6836_v25  ;;  %v8825_v25 = vld [vmem:[#allocation104_spill] sm:$0xff] }
 0x7ae   : > { %4134 = vmatprep.subr.bf16.mxu0 %v6839_v28  ;;  %2638 = vmatpush1.bf16.msra.mxu1 %v8656_v48  ;;  %v6860_v48 = vld [vmem:[#allocation4 + $0x1d0] ss:$36 sps:$4 sm:$0xff]  }
 0x7af   : > { %2639 = vmatprep.subr.bf16.mxu1 %v8657_v52  ;;  %8773 = vst [vmem:[#allocation44_spill] sm:$0xff] %v6860_v48  ;;  %v6863_v52 = vld [vmem:[#allocation4 + $0x458] ss:$36 sps:$4 sm:$0xff]  }
 0x7b0   : > { %8774 = vst [vmem:[#allocation46_spill] sm:$0xff] %v6863_v52 }
 0x7b1   : > { %4135 = vmatpush3.bf16.msra.mxu0 %v6844_v35 }
 0x7b2   : > { %4136 = vmatprep.subr.bf16.mxu0 %v6847_v38  ;;  %2640 = vmatpush1.bf16.msra.mxu1 %v8660_v62  ;;  %v6868_v62 = vld [vmem:[#allocation4 + $0x218] ss:$36 sps:$4 sm:$0xff]  }
 0x7b3   : > { %2641 = vmatprep.subr.bf16.mxu1 %v8661_v1  ;;  %8775 = vst [vmem:[#allocation39_spill] sm:$0xff] %v6868_v62  ;;  %v8776_v1 = vld [vmem:[#allocation30_spill] sm:$0xff] }
 0x7b5   : > { %4137 = vmatpush3.bf16.msra.mxu0 %v6852_v41 }
 0x7b6   : > { %4138 = vmatprep.subr.bf16.mxu0 %v6855_v42  ;;  %2642 = vmatpush1.bf16.msra.mxu1 %v8664_v17  ;;  %v8777_v17 = vld [vmem:[#allocation32_spill] sm:$0xff]  ;;  %v8824_v42 = vld [vmem:[#allocation50_spill] sm:$0xff] }
 0x7b7   : > { %2643 = vmatprep.subr.bf16.mxu1 %v8665_v0  ;;  %v8778_v0 = vld [vmem:[#allocation34_spill] sm:$0xff] }
 0x7b9   : > { %4139 = vmatpush3.bf16.msra.mxu0 %v6860_v48 }
 0x7ba   : > { %4140 = vmatprep.subr.bf16.mxu0 %v6863_v52  ;;  %2644 = vmatpush1.bf16.msra.mxu1 %v8668_v22  ;;  %v8779_v22 = vld [vmem:[#allocation37_spill] sm:$0xff] }
 0x7bb   : > { %2645 = vmatprep.subr.bf16.mxu1 %v8669_v11  ;;  %v8780_v11 = vld [vmem:[#allocation38_spill] sm:$0xff]  ;;  %v8823_v52 = vld [vmem:[#allocation49_spill] sm:$0xff] }
 0x7bd   : > { %4141 = vmatpush3.bf16.msra.mxu0 %v6868_v62  ;;  %v8781_v62 = vld [vmem:[#allocation40_spill] sm:$0xff] }
 0x7be   : > { %2672 = vmatprep.subr.bf16.mxu0 %v8671_v57  ;;  %2646 = vmatpush1.bf16.msra.mxu1 %v8672_v51  ;;  %v8782_v57 = vld [vmem:[#allocation35_spill] sm:$0xff]  ;;  %v8783_v51 = vld [vmem:[#allocation57_spill] sm:$0xff] }
 0x7bf   : > { %2647 = vmatprep.subr.bf16.mxu1 %v8673_v19  ;;  %v8784_v19 = vld [vmem:[#allocation58_spill] sm:$0xff] }
 0x7c0   : > { %2575 = vmatmul.mubr.bf16.vlgmr.msra.gmra.mrb[52].mxu0 %v6663_v31  ;;  %v8785_v31 = vld [vmem:[#allocation59_spill] sm:$0xff] }
 0x7c1   : > { %2673 = vmatpush1.bf16.msra.mxu0 %v8674_v21  ;;  %v8786_v21 = vld [vmem:[#allocation60_spill] sm:$0xff] }
 0x7c2   : > { %2674 = vmatprep.subr.bf16.mxu0 %v8776_v1  ;;  %2648 = vmatpush1.bf16.msra.mxu1 %v8777_v17  ;;  %v8787_v1 = vld [vmem:[#allocation61_spill] sm:$0xff]  ;;  %v8788_v17 = vld [vmem:[#allocation62_spill] sm:$0xff] }
 0x7c3   : > { %2649 = vmatprep.subr.bf16.mxu1 %v8778_v0  ;;  %v8789_v0 = vld [vmem:[#allocation63_spill] sm:$0xff] }
 0x7c5   : > { %2675 = vmatpush1.bf16.msra.mxu0 %v8779_v22  ;;  %v8790_v22 = vld [vmem:[#allocation64_spill] sm:$0xff] }
 0x7c6   : > { %2676 = vmatprep.subr.bf16.mxu0 %v8780_v11  ;;  %2650 = vmatpush1.bf16.msra.mxu1 %v8781_v62  ;;  %v8791_v11 = vld [vmem:[#allocation65_spill] sm:$0xff]  ;;  %v8792_v62 = vld [vmem:[#allocation66_spill] sm:$0xff] }
 0x7c7   : > { %2651 = vmatprep.subr.bf16.mxu1 %v8782_v57  ;;  %v8793_v57 = vld [vmem:[#allocation67_spill] sm:$0xff] }
 0x7c9   : > { %2677 = vmatpush1.bf16.msra.mxu0 %v8783_v51  ;;  %v8794_v51 = vld [vmem:[#allocation68_spill] sm:$0xff] }
 0x7ca   : > { %2678 = vmatprep.subr.bf16.mxu0 %v8784_v19  ;;  %2652 = vmatpush1.bf16.msra.mxu1 %v8785_v31  ;;  %v8795_v19 = vld [vmem:[#allocation69_spill] sm:$0xff]  ;;  %v8796_v31 = vld [vmem:[#allocation70_spill] sm:$0xff] }
 0x7cb   : > { %2653 = vmatprep.subr.bf16.mxu1 %v8786_v21  ;;  %v8797_v21 = vld [vmem:[#allocation71_spill] sm:$0xff] }
 0x7cd   : > { %2679 = vmatpush1.bf16.msra.mxu0 %v8787_v1  ;;  %v8798_v1 = vld [vmem:[#allocation72_spill] sm:$0xff] }
 0x7ce   : > { %2680 = vmatprep.subr.bf16.mxu0 %v8788_v17  ;;  %2654 = vmatpush1.bf16.msra.mxu1 %v8789_v0  ;;  %v8799_v17 = vld [vmem:[#allocation73_spill] sm:$0xff]  ;;  %v8800_v0 = vld [vmem:[#allocation74_spill] sm:$0xff] }
 0x7cf   : > { %2655 = vmatprep.subr.bf16.mxu1 %v8790_v22  ;;  %v8801_v22 = vld [vmem:[#allocation75_spill] sm:$0xff] }
 0x7d1   : > { %2681 = vmatpush1.bf16.msra.mxu0 %v8791_v11  ;;  %v8802_v11 = vld [vmem:[#allocation76_spill] sm:$0xff] }
 0x7d2   : > { %2682 = vmatprep.subr.bf16.mxu0 %v8792_v62  ;;  %2656 = vmatpush1.bf16.msra.mxu1 %v8793_v57  ;;  %v8803_v62 = vld [vmem:[#allocation77_spill] sm:$0xff]  ;;  %v8804_v57 = vld [vmem:[#allocation78_spill] sm:$0xff] }
 0x7d3   : > { %2657 = vmatprep.subr.bf16.mxu1 %v8794_v51  ;;  %v8805_v51 = vld [vmem:[#allocation79_spill] sm:$0xff] }
 0x7d5   : > { %2683 = vmatpush1.bf16.msra.mxu0 %v8795_v19  ;;  %v8806_v19 = vld [vmem:[#allocation80_spill] sm:$0xff] }
 0x7d6   : > { %2684 = vmatprep.subr.bf16.mxu0 %v8796_v31  ;;  %2658 = vmatpush1.bf16.msra.mxu1 %v8797_v21  ;;  %v8807_v31 = vld [vmem:[#allocation81_spill] sm:$0xff]  ;;  %v8808_v21 = vld [vmem:[#allocation82_spill] sm:$0xff] }
 0x7d7   : > { %2659 = vmatprep.subr.bf16.mxu1 %v8798_v1  ;;  %v8809_v1 = vld [vmem:[#allocation83_spill] sm:$0xff] }
 0x7d9   : > { %2685 = vmatpush1.bf16.msra.mxu0 %v8799_v17  ;;  %v8810_v17 = vld [vmem:[#allocation84_spill] sm:$0xff] }
 0x7da   : > { %2686 = vmatprep.subr.bf16.mxu0 %v8800_v0  ;;  %2660 = vmatpush1.bf16.msra.mxu1 %v8801_v22  ;;  %v8811_v0 = vld [vmem:[#allocation85_spill] sm:$0xff]  ;;  %v8812_v22 = vld [vmem:[#allocation86_spill] sm:$0xff] }
 0x7db   : > { %2661 = vmatprep.subr.bf16.mxu1 %v8802_v11  ;;  %v8813_v11 = vld [vmem:[#allocation87_spill] sm:$0xff] }
 0x7dd   : > { %2687 = vmatpush1.bf16.msra.mxu0 %v8803_v62  ;;  %v8814_v62 = vld [vmem:[#allocation88_spill] sm:$0xff] }
 0x7de   : > { %2688 = vmatprep.subr.bf16.mxu0 %v8804_v57  ;;  %2662 = vmatpush1.bf16.msra.mxu1 %v8805_v51  ;;  %v8815_v57 = vld [vmem:[#allocation89_spill] sm:$0xff]  ;;  %v8816_v51 = vld [vmem:[#allocation90_spill] sm:$0xff] }
 0x7df   : > { %2713 = vmatprep.subr.bf16.mxu1 %v8806_v19  ;;  %v8817_v19 = vld [vmem:[#allocation91_spill] sm:$0xff] }
 0x7e1   : > { %2689 = vmatpush1.bf16.msra.mxu0 %v8807_v31  ;;  %v8818_v31 = vld [vmem:[#allocation92_spill] sm:$0xff] }
 0x7e2   : > { %2690 = vmatprep.subr.bf16.mxu0 %v8808_v21  ;;  %v8819_v21 = vld [vmem:[#allocation93_spill] sm:$0xff] }
 0x7e5   : > { %2691 = vmatpush1.bf16.msra.mxu0 %v8809_v1  ;;  %v8820_v1 = vld [vmem:[#allocation94_spill] sm:$0xff] }
 0x7e6   : > { %2692 = vmatprep.subr.bf16.mxu0 %v8810_v17  ;;  %v8821_v17 = vld [vmem:[#allocation95_spill] sm:$0xff] }
 0x7e9   : > { %2693 = vmatpush1.bf16.msra.mxu0 %v8811_v0  ;;  %v8822_v0 = vld [vmem:[#allocation96_spill] sm:$0xff] }
 0x7ea   : > { %2694 = vmatprep.subr.bf16.mxu0 %v8812_v22 }
 0x7ed   : > { %2695 = vmatpush1.bf16.msra.mxu0 %v8813_v11 }
 0x7ee   : > { %2696 = vmatprep.subr.bf16.mxu0 %v8814_v62 }
 0x7f1   : > { %2697 = vmatpush1.bf16.msra.mxu0 %v8815_v57 }
 0x7f2   : > { %2698 = vmatprep.subr.bf16.mxu0 %v8816_v51 }
 0x7f5   : > { %2699 = vmatpush1.bf16.msra.mxu0 %v8817_v19 }
 0x7f6   : > { %2700 = vmatprep.subr.bf16.mxu0 %v8818_v31 }
 0x7f9   : > { %2701 = vmatpush1.bf16.msra.mxu0 %v8819_v21 }
 0x7fa   : > { %2702 = vmatprep.subr.bf16.mxu0 %v8820_v1 }
 0x7fd   : > { %2703 = vmatpush1.bf16.msra.mxu0 %v8821_v17 }
 0x7fe   : > { %2754 = vmatprep.subr.bf16.mxu0 %v8822_v0 }
 0x833   : > { %v2412_v22 = vpop.f32.mrb[44].mxu0  ;;  %v2453_v11 = vpop.f32.mrb[48].mxu1 }
 0x834   : > { %v2607_v62 = vadd.f32 %v2412_v22, %v8823_v52  ;;  %v2414_v48 = vpop.f32.mrb[45].mxu0  ;;  %v2455_v57 = vpop.f32.mrb[49].mxu1  ;;  %v2621_v4 = vadd.f32 %v8825_v25, %v2453_v11 }
 0x835   : > { %v2608_v51 = vadd.f32 %v2414_v48, %v8824_v42  ;;  %v2416_v41 = vpop.f32.mrb[46].mxu0  ;;  %v2457_v19 = vpop.f32.mrb[50].mxu1 }
 0x836   : > { %v4018_v38 = vmul.f32 -1.442695, %v2607_v62  ;;  %v2417_v31 = vpop.f32.mrb[47].mxu0  ;;  %v2458_v35 = vpop.f32.mrb[51].mxu1  ;;  %v2582_v19 = vadd.f32 %v2455_v57, %v6101_v50 }
 0x837   : > { %v4019_v21 = vmul.f32 -1.442695, %v2608_v51 }
 0x838   : > { %4694 = vpow2.f32 %v4018_v38 }
 0x839   : > { %4696 = vpow2.f32 %v4019_v21 }
 0x842   : > { %v4695_v1 = vpop.eup %4694 }
 0x843   : > { %v2615_v17 = vadd.f32 1.0, %v4695_v1  ;;  %v4697_v0 = vpop.eup %4696 }
 0x844   : > { %v2616_v28 = vadd.f32 1.0, %v4697_v0 }
 0x845   : > { %4698 = vrcp.f32 %v2615_v17 }
 0x846   : > { %4700 = vrcp.f32 %v2616_v28 }
 0x84f   : > { %v4699_v52 = vpop.eup %4698 }
 0x850   : > { %v2622_v22 = vmul.f32 %v4699_v52, %v2621_v4  ;;  %v4701_v41 = vpop.eup %4700 }
 0x851   : > { %v2625_v48 = vsub.f32 1.0, %v4701_v41  ;;  %v2627_v35 = vmul.f32 %v4701_v41, %v6648_v43 }
 0x852   : > { %v2623_v42 = vadd.f32 %v2622_v22, %v8826_v8 }
 0x854   : > { %4702 = vtanh.f32 %v2623_v42 }
 0x85e   : > { %v4703_v62 = vpop.eup %4702 }
 0x85f   : > { %v2626_v38 = vmul.f32 %v4703_v62, %v2625_v48 }
 0x861   : > { %v6928_v51 = vadd.f32 %v2627_v35, %v2626_v38 }
 0x873   : > { %v2494_v31 = vpop.f32.mrb[48].mxu0  ;;  %v2535_v21 = vpop.f32.mrb[52].mxu1 }
 0x874   : > { %v2583_v11 = vadd.f32 %v2494_v31, %v6105_v56  ;;  %v2585_v1 = vadd.f32 %v2582_v19, %v2535_v21  ;;  %v2496_v4 = vpop.f32.mrb[49].mxu0  ;;  %v2537_v28 = vpop.f32.mrb[53].mxu1  ;;  %v6932_v56 = vld [vmem:[#allocation7 + $0x3] ss:$0 sm:$0xff] }
 0x875   : > { %v2498_v17 = vpop.f32.mrb[50].mxu0  ;;  %v2539_v8 = vpop.f32.mrb[54].mxu1 }
 0x876   : > { %v2586_v0 = vadd.f32 %v2583_v11, %v2537_v28  ;;  %v2499_v52 = vpop.f32.mrb[51].mxu0  ;;  %v2540_v22 = vpop.f32.mrb[55].mxu1  ;;  %v4016_v42 = vmul.f32 -1.442695, %v2585_v1  ;;  %v2584_v1 = vadd.f32 %v2496_v4, %v6113_v37  ;;  %v8854_v4 = vld [vmem:[#allocation118_spill] sm:$0xff] }
 0x878   : > { %4704 = vpow2.f32 %v4016_v42  ;;  %v4017_v43 = vmul.f32 -1.442695, %v2586_v0 }
 0x87a   : > { %4706 = vpow2.f32 %v4017_v43 }
 0x882   : > { %v4705_v41 = vpop.eup %4704 }
 0x883   : > { %v2593_v48 = vadd.f32 1.0, %v4705_v41 }
 0x884   : > { %v4707_v57 = vpop.eup %4706 }
 0x885   : > { %4708 = vrcp.f32 %v2593_v48  ;;  %v2594_v38 = vadd.f32 1.0, %v4707_v57  ;;  %v6945_v57 = vpack.c.bf16 %v6928_v51, %v6928_v51 }
 0x887   : > { %4710 = vrcp.f32 %v2594_v38  ;;  %v7024_v38 = vld [vmem:[#allocation4] ss:$36 sps:$4 sm:$0xff]  }
 0x888   : > { %8856 = vst [vmem:[#allocation97_spill] sm:$0xff] %v7024_v38 }
 0x88f   : > { %v4709_v28 = vpop.eup %4708 }
 0x891   : > { %v4711_v0 = vpop.eup %4710 }
 0x892   : > { %v2603_v52 = vsub.f32 1.0, %v4711_v0  ;;  %v2605_v42 = vmul.f32 %v4711_v0, %v6655_v33  ;;  %v8846_v33 = vld [vmem:[#allocation114_spill] sm:$0xff] }
 0x893   : > { %v4142_v62 = vpop.f32.mrb[52].mxu0  ;;  %v8865_v0 = vld [vmem:[#allocation122_spill] sm:$0xff] }
 0x894   : > { %v4143_v35 = vpop.f32.mrb[53].mxu0 }
 0x895   : > { %v4144_v31 = vadd.f32 %v4143_v35, %v4142_v62  ;;  %v4145_v19 = vpop.f32.mrb[54].mxu0  ;;  %v7016_v62 = vld [vmem:[#allocation4 + $0x4] ss:$36 sps:$4 sm:$0xff]   ;;  %v8855_v35 = vld [vmem:[#allocation20_spill] sm:$0xff] }
 0x896   : > { %v4146_v21 = vpop.f32.mrb[55].mxu0  ;;  %v7032_v19 = vld [vmem:[#allocation4 + $0x48] ss:$36 sps:$4 sm:$0xff]  }
 0x897   : > { %v2599_v11 = vadd.f32 %v6932_v56, %v4144_v31  ;;  %v7027_v31 = vld [vmem:[#allocation4 + $0x4c] ss:$36 sps:$4 sm:$0xff]   ;;  %8858 = vst [vmem:[#allocation99_spill] sm:$0xff] %v7032_v19  ;;  %v7035_v21 = vld [vmem:[#allocation4 + $0x94] ss:$36 sps:$4 sm:$0xff]  }
 0x898   : > { %8857 = vst [vmem:[#allocation98_spill] sm:$0xff] %v7027_v31  ;;  %8859 = vst [vmem:[#allocation100_spill] sm:$0xff] %v7035_v21 }
 0x899   : > { %v2600_v17 = vmul.f32 %v4709_v28, %v2599_v11  ;;  %v8860_v11 = vld [vmem:[#allocation121_spill] sm:$0xff]  ;;  %v8861_v28 = vld [vmem:[#allocation22_spill] sm:$0xff] }
 0x89b   : > { %v2601_v8 = vadd.f32 %v2600_v17, %v2584_v1  ;;  %v7040_v1 = vld [vmem:[#allocation4 + $0x90] ss:$36 sps:$4 sm:$0xff]   ;;  %v7043_v17 = vld [vmem:[#allocation4 + $0xdc] ss:$36 sps:$4 sm:$0xff]  }
 0x89c   : > { %8862 = vst [vmem:[#allocation101_spill] sm:$0xff] %v7040_v1  ;;  %8863 = vst [vmem:[#allocation102_spill] sm:$0xff] %v7043_v17 }
 0x89d   : > { %4712 = vtanh.f32 %v2601_v8  ;;  %v8864_v8 = vld [vmem:[#allocation23_spill] sm:$0xff] }
 0x8a7   : > { %v4713_v22 = vpop.eup %4712 }
 0x8a8   : > { %v2604_v43 = vmul.f32 %v4713_v22, %v2603_v52  ;;  %v7048_v52 = vld [vmem:[#allocation4 + $0xd8] ss:$36 sps:$4 sm:$0xff]   ;;  %v7051_v22 = vld [vmem:[#allocation4 + $0x124] ss:$36 sps:$4 sm:$0xff]  }
 0x8a9   : > { %8866 = vst [vmem:[#allocation103_spill] sm:$0xff] %v7048_v52  ;;  %8867 = vst [vmem:[#allocation30_spill] sm:$0xff] %v7051_v22 }
 0x8aa   : > { %v6937_v41 = vadd.f32 %v2605_v42, %v2604_v43  ;;  %v8868_v42 = vld [vmem:[#allocation24_spill] sm:$0xff]  ;;  %v8869_v43 = vld [vmem:[#allocation25_spill] sm:$0xff] }
 0x8ac   : > { %v6941_v48 = vpack.c.bf16 %v6937_v41, %v6937_v41 }
 0x8ae   : > { %2663 = vmatprep.mubr.bf16.mxu1 %v6941_v48  ;;  %2704 = vmatprep.mubr.bf16.mxu0 %v6941_v48 }
 0x8af   : > { %2664 = vmatmul.mubr.bf16.vlgmr.msra.gmra.mrb[56].mxu1 %v6945_v57  ;;  %2705 = vmatmul.mubr.bf16.vlgmr.msra.gmra.mrb[56].mxu0 %v6945_v57 }
 0x8b0   : > { %2714 = vmatpush1.bf16.msra.mxu1 %v6439_v46  ;;  %2755 = vmatpush1.bf16.msra.mxu0 %v6442_v6  ;;  %v8827_v46 = vld [vmem:[#allocation105_spill] sm:$0xff]  ;;  %v8828_v6 = vld [vmem:[#allocation106_spill] sm:$0xff] }
 0x8b1   : > { %2745 = vmatprep.mubr.bf16.mxu1 %v6941_v48  ;;  %2786 = vmatprep.mubr.bf16.mxu0 %v6941_v48 }
 0x8b2   : > { %2715 = vmatprep.subr.bf16.mxu1 %v6447_v27  ;;  %2756 = vmatprep.subr.bf16.mxu0 %v6450_v7  ;;  %v8829_v27 = vld [vmem:[#allocation107_spill] sm:$0xff]  ;;  %v8830_v7 = vld [vmem:[#allocation41_spill] sm:$0xff] }
 0x8b4   : > { %2716 = vmatpush1.bf16.msra.mxu1 %v6453_v16  ;;  %2757 = vmatpush1.bf16.msra.mxu0 %v6456_v55  ;;  %v8831_v16 = vld [vmem:[#allocation42_spill] sm:$0xff]  ;;  %v8832_v55 = vld [vmem:[#allocation36_spill] sm:$0xff] }
 0x8b5   : > { %2717 = vmatprep.subr.bf16.mxu1 %v6459_v49  ;;  %2758 = vmatprep.subr.bf16.mxu0 %v6462_v63  ;;  %v8833_v49 = vld [vmem:[#allocation27_spill] sm:$0xff]  ;;  %v8834_v63 = vld [vmem:[#allocation108_spill] sm:$0xff] }
 0x8b8   : > { %2718 = vmatpush1.bf16.msra.mxu1 %v6465_v29  ;;  %2759 = vmatpush1.bf16.msra.mxu0 %v6468_v36  ;;  %v8835_v29 = vld [vmem:[#allocation109_spill] sm:$0xff] }
 0x8b9   : > { %2719 = vmatprep.subr.bf16.mxu1 %v6471_v13  ;;  %2760 = vmatprep.subr.bf16.mxu0 %v6474_v59  ;;  %v8836_v36 = vld [vmem:[#allocation29_spill] sm:$0xff]  ;;  %v8838_v59 = vld [vmem:[#allocation110_spill] sm:$0xff] }
 0x8ba   : > { %v8837_v13 = vld [vmem:[#allocation13_spill] sm:$0xff] }
 0x8bc   : > { %2720 = vmatpush1.bf16.msra.mxu1 %v6477_v32  ;;  %2761 = vmatpush1.bf16.msra.mxu0 %v8726_v45  ;;  %v8839_v32 = vld [vmem:[#allocation111_spill] sm:$0xff] }
 0x8bd   : > { %2721 = vmatprep.subr.bf16.mxu1 %v8727_v5  ;;  %2762 = vmatprep.subr.bf16.mxu0 %v8728_v15  ;;  %v8847_v45 = vld [vmem:[#allocation115_spill] sm:$0xff]  ;;  %v8848_v5 = vld [vmem:[#allocation16_spill] sm:$0xff]  ;;  %v8849_v15 = vld [vmem:[#allocation17_spill] sm:$0xff] }
 0x8c0   : > { %2722 = vmatpush1.bf16.msra.mxu1 %v8729_v10  ;;  %2763 = vmatpush1.bf16.msra.mxu0 %v8730_v24  ;;  %v8850_v10 = vld [vmem:[#allocation116_spill] sm:$0xff]  ;;  %v8851_v24 = vld [vmem:[#allocation117_spill] sm:$0xff] }
 0x8c1   : > { %2723 = vmatprep.subr.bf16.mxu1 %v8731_v40  ;;  %2764 = vmatprep.subr.bf16.mxu0 %v8732_v58  ;;  %v8852_v40 = vld [vmem:[#allocation18_spill] sm:$0xff]  ;;  %v8853_v58 = vld [vmem:[#allocation19_spill] sm:$0xff] }
 0x8c4   : > { %2724 = vmatpush1.bf16.msra.mxu1 %v6501_v14  ;;  %2765 = vmatpush1.bf16.msra.mxu0 %v6504_v26  ;;  %v8841_v14 = vld [vmem:[#allocation31_spill] sm:$0xff]  ;;  %v8842_v26 = vld [vmem:[#allocation112_spill] sm:$0xff] }
 0x8c5   : > { %2725 = vmatprep.subr.bf16.mxu1 %v6507_v12  ;;  %2766 = vmatprep.subr.bf16.mxu0 %v6510_v34  ;;  %v8843_v12 = vld [vmem:[#allocation113_spill] sm:$0xff] }
 0x8c6   : > { %v8844_v34 = vld [vmem:[#allocation33_spill] sm:$0xff] }
 0x8c8   : > { %2726 = vmatpush1.bf16.msra.mxu1 %v6513_v3  ;;  %2767 = vmatpush1.bf16.msra.mxu0 %v6516_v30  ;;  %v8840_v30 = vld [vmem:[#allocation14_spill] sm:$0xff]  ;;  %v8845_v3 = vld [vmem:[#allocation15_spill] sm:$0xff] }
 0x8c9   : > { %2727 = vmatprep.subr.bf16.mxu1 %v6697_v44  ;;  %2768 = vmatprep.subr.bf16.mxu0 %v6700_v61 }
 0x8cc   : > { %2728 = vmatpush1.bf16.msra.mxu1 %v6703_v39  ;;  %2769 = vmatpush1.bf16.msra.mxu0 %v6706_v23 }
 0x8cd   : > { %2729 = vmatprep.subr.bf16.mxu1 %v6709_v47  ;;  %2770 = vmatprep.subr.bf16.mxu0 %v6712_v18 }
 0x8d0   : > { %2730 = vmatpush1.bf16.msra.mxu1 %v8827_v46  ;;  %2771 = vmatpush1.bf16.msra.mxu0 %v8828_v6 }
 0x8d1   : > { %2731 = vmatprep.subr.bf16.mxu1 %v8829_v27  ;;  %2772 = vmatprep.subr.bf16.mxu0 %v8830_v7 }
 0x8d4   : > { %2732 = vmatpush1.bf16.msra.mxu1 %v8831_v16  ;;  %2773 = vmatpush1.bf16.msra.mxu0 %v8832_v55 }
 0x8d5   : > { %2733 = vmatprep.subr.bf16.mxu1 %v8833_v49  ;;  %2774 = vmatprep.subr.bf16.mxu0 %v8834_v63 }
 0x8d8   : > { %2734 = vmatpush1.bf16.msra.mxu1 %v8835_v29  ;;  %2775 = vmatpush1.bf16.msra.mxu0 %v8836_v36 }
 0x8d9   : > { %2735 = vmatprep.subr.bf16.mxu1 %v8837_v13  ;;  %2776 = vmatprep.subr.bf16.mxu0 %v8838_v59 }
 0x8dc   : > { %2736 = vmatpush1.bf16.msra.mxu1 %v8839_v32  ;;  %2777 = vmatpush1.bf16.msra.mxu0 %v8840_v30 }
 0x8dd   : > { %2737 = vmatprep.subr.bf16.mxu1 %v8841_v14  ;;  %2778 = vmatprep.subr.bf16.mxu0 %v8842_v26 }
 0x8e0   : > { %2738 = vmatpush1.bf16.msra.mxu1 %v8843_v12  ;;  %2779 = vmatpush1.bf16.msra.mxu0 %v8844_v34 }
 0x8e1   : > { %2739 = vmatprep.subr.bf16.mxu1 %v8845_v3  ;;  %2780 = vmatprep.subr.bf16.mxu0 %v8846_v33 }
 0x8e4   : > { %2740 = vmatpush1.bf16.msra.mxu1 %v8847_v45  ;;  %2781 = vmatpush1.bf16.msra.mxu0 %v8848_v5 }
 0x8e5   : > { %2741 = vmatprep.subr.bf16.mxu1 %v8849_v15  ;;  %2782 = vmatprep.subr.bf16.mxu0 %v8850_v10 }
 0x8e8   : > { %2742 = vmatpush1.bf16.msra.mxu1 %v8851_v24  ;;  %2783 = vmatpush1.bf16.msra.mxu0 %v6790_v54 }
 0x8e9   : > { %2743 = vmatprep.subr.bf16.mxu1 %v8852_v40  ;;  %2784 = vmatprep.subr.bf16.mxu0 %v6796_v2 }
 0x8ec   : > { %2744 = vmatpush1.bf16.msra.mxu1 %v8853_v58  ;;  %2785 = vmatpush1.bf16.msra.mxu0 %v6802_v53 }
 0x8ed   : > { %4148 = vmatprep.subr.bf16.mxu1 %v8854_v4  ;;  %2884 = vmatprep.subr.bf16.mxu0 %v7016_v62 }
 0x8ef   : > { %2746 = vmatmul.mubr.bf16.vlgmr.msra.gmra.mrb[60].mxu1 %v6945_v57  ;;  %2787 = vmatmul.mubr.bf16.vlgmr.msra.gmra.mrb[60].mxu0 %v6945_v57 }
 0x8f0   : > { %4149 = vmatpush3.bf16.msra.mxu1 %v6811_v60  ;;  %2827 = vmatprep.mubr.bf16.mxu1 %v6941_v48  ;;  %v7056_v48 = vld [vmem:[#allocation4 + $0x120] ss:$36 sps:$4 sm:$0xff]   ;;  %v8934_v60 = vld [vmem:[#allocation48_spill] sm:$0xff] }
 0x8f1   : > { %4150 = vmatprep.subr.bf16.mxu1 %v8855_v35  ;;  %2885 = vmatpush1.bf16.msra.mxu0 %v7024_v38  ;;  %8870 = vst [vmem:[#allocation32_spill] sm:$0xff] %v7056_v48 }
 0x8f2   : > { %2886 = vmatprep.subr.bf16.mxu0 %v7027_v31 }
 0x8f4   : > { %4151 = vmatpush3.bf16.msra.mxu1 %v6820_v20 }
 0x8f5   : > { %4152 = vmatprep.subr.bf16.mxu1 %v6823_v9  ;;  %2887 = vmatpush1.bf16.msra.mxu0 %v7032_v19 }
 0x8f6   : > { %2888 = vmatprep.subr.bf16.mxu0 %v7035_v21 }
 0x8f8   : > { %4153 = vmatpush3.bf16.msra.mxu1 %v8860_v11 }
 0x8f9   : > { %4154 = vmatprep.subr.bf16.mxu1 %v8861_v28  ;;  %2889 = vmatpush1.bf16.msra.mxu0 %v7040_v1  ;;  %v8933_v28 = vld [vmem:[#allocation52_spill] sm:$0xff] }
 0x8fa   : > { %2890 = vmatprep.subr.bf16.mxu0 %v7043_v17  ;;  %v7059_v17 = vld [vmem:[#allocation4 + $0x16c] ss:$36 sps:$4 sm:$0xff]  }
 0x8fb   : > { %8871 = vst [vmem:[#allocation34_spill] sm:$0xff] %v7059_v17 }
 0x8fc   : > { %4155 = vmatpush3.bf16.msra.mxu1 %v8864_v8  ;;  %v8873_v8 = vld [vmem:[#allocation28_spill] sm:$0xff] }
 0x8fd   : > { %4156 = vmatprep.subr.bf16.mxu1 %v8865_v0  ;;  %2891 = vmatpush1.bf16.msra.mxu0 %v7048_v52  ;;  %v8872_v0 = vld [vmem:[#allocation26_spill] sm:$0xff]  ;;  %v7064_v52 = vld [vmem:[#allocation4 + $0x168] ss:$36 sps:$4 sm:$0xff]  }
 0x8fe   : > { %2892 = vmatprep.subr.bf16.mxu0 %v7051_v22  ;;  %8874 = vst [vmem:[#allocation37_spill] sm:$0xff] %v7064_v52  ;;  %v7067_v22 = vld [vmem:[#allocation4 + $0x1b4] ss:$36 sps:$4 sm:$0xff]  }
 0x8ff   : > { %8875 = vst [vmem:[#allocation38_spill] sm:$0xff] %v7067_v22 }
 0x900   : > { %4157 = vmatpush3.bf16.msra.mxu1 %v8868_v42  ;;  %v8877_v42 = vld [vmem:[#allocation46_spill] sm:$0xff] }
 0x901   : > { %4158 = vmatprep.subr.bf16.mxu1 %v8869_v43  ;;  %2893 = vmatpush1.bf16.msra.mxu0 %v7056_v48  ;;  %v8876_v43 = vld [vmem:[#allocation44_spill] sm:$0xff] }
 0x902   : > { %2894 = vmatprep.subr.bf16.mxu0 %v7059_v17  ;;  %v7072_v48 = vld [vmem:[#allocation4 + $0x1b0] ss:$36 sps:$4 sm:$0xff]   ;;  %v7075_v17 = vld [vmem:[#allocation4 + $0x1fc] ss:$36 sps:$4 sm:$0xff]  }
 0x903   : > { %8878 = vst [vmem:[#allocation40_spill] sm:$0xff] %v7072_v48  ;;  %8879 = vst [vmem:[#allocation35_spill] sm:$0xff] %v7075_v17 }
 0x904   : > { %4159 = vmatpush3.bf16.msra.mxu1 %v8872_v0  ;;  %v7079_v0 = vld [vmem:[#allocation4 + $0xc] ss:$36 sps:$4 sm:$0xff]  }
 0x905   : > { %4160 = vmatprep.subr.bf16.mxu1 %v8873_v8  ;;  %2895 = vmatpush1.bf16.msra.mxu0 %v7064_v52  ;;  %v8880_v8 = vld [vmem:[#allocation39_spill] sm:$0xff]  ;;  %8881 = vst [vmem:[#allocation57_spill] sm:$0xff] %v7079_v0  ;;  %v7082_v52 = vld [vmem:[#allocation4 + $0x1f8] ss:$36 sps:$4 sm:$0xff]  }
 0x906   : > { %2896 = vmatprep.subr.bf16.mxu0 %v7067_v22  ;;  %8882 = vst [vmem:[#allocation58_spill] sm:$0xff] %v7082_v52 }
 0x908   : > { %4161 = vmatpush3.bf16.msra.mxu1 %v8876_v43  ;;  %v7085_v43 = vld [vmem:[#allocation4 + $0x244] ss:$36 sps:$4 sm:$0xff]  }
 0x909   : > { %4162 = vmatprep.subr.bf16.mxu1 %v8877_v42  ;;  %2897 = vmatpush1.bf16.msra.mxu0 %v7072_v48  ;;  %8883 = vst [vmem:[#allocation59_spill] sm:$0xff] %v7085_v43  ;;  %v7089_v48 = vld [vmem:[#allocation4 + $0x8] ss:$36 sps:$4 sm:$0xff]  }
 0x90a   : > { %2898 = vmatprep.subr.bf16.mxu0 %v7075_v17  ;;  %8884 = vst [vmem:[#allocation60_spill] sm:$0xff] %v7089_v48  ;;  %v7092_v17 = vld [vmem:[#allocation4 + $0x54] ss:$36 sps:$4 sm:$0xff]   ;;  %v8932_v42 = vld [vmem:[#allocation51_spill] sm:$0xff] }
 0x90b   : > { %8885 = vst [vmem:[#allocation61_spill] sm:$0xff] %v7092_v17 }
 0x90c   : > { %4163 = vmatpush3.bf16.msra.mxu1 %v8880_v8  ;;  %v7095_v8 = vld [vmem:[#allocation4 + $0x240] ss:$36 sps:$4 sm:$0xff]  }
 0x90d   : > { %2925 = vmatprep.subr.bf16.mxu1 %v7079_v0  ;;  %2899 = vmatpush1.bf16.msra.mxu0 %v7082_v52  ;;  %8886 = vst [vmem:[#allocation62_spill] sm:$0xff] %v7095_v8  ;;  %v7098_v0 = vld [vmem:[#allocation4 + $0x28c] ss:$36 sps:$4 sm:$0xff]  }
 0x90e   : > { %2900 = vmatprep.subr.bf16.mxu0 %v7085_v43  ;;  %8887 = vst [vmem:[#allocation63_spill] sm:$0xff] %v7098_v0  ;;  %v7101_v52 = vld [vmem:[#allocation4 + $0x50] ss:$36 sps:$4 sm:$0xff]  }
 0x90f   : > { %2828 = vmatmul.mubr.bf16.vlgmr.msra.gmra.mrb[64].mxu1 %v6945_v57  ;;  %8888 = vst [vmem:[#allocation64_spill] sm:$0xff] %v7101_v52  ;;  %v7104_v57 = vld [vmem:[#allocation4 + $0x9c] ss:$36 sps:$4 sm:$0xff]  }
 0x910   : > { %2926 = vmatpush1.bf16.msra.mxu1 %v7089_v48  ;;  %8889 = vst [vmem:[#allocation65_spill] sm:$0xff] %v7104_v57  ;;  %v7107_v48 = vld [vmem:[#allocation4 + $0x288] ss:$36 sps:$4 sm:$0xff]  }
 0x911   : > { %2927 = vmatprep.subr.bf16.mxu1 %v7092_v17  ;;  %2901 = vmatpush1.bf16.msra.mxu0 %v7095_v8  ;;  %8890 = vst [vmem:[#allocation66_spill] sm:$0xff] %v7107_v48  ;;  %v7110_v17 = vld [vmem:[#allocation4 + $0x2d4] ss:$36 sps:$4 sm:$0xff]  }
 0x912   : > { %2902 = vmatprep.subr.bf16.mxu0 %v7098_v0  ;;  %8891 = vst [vmem:[#allocation67_spill] sm:$0xff] %v7110_v17  ;;  %v7113_v8 = vld [vmem:[#allocation4 + $0x98] ss:$36 sps:$4 sm:$0xff]   ;;  %v7116_v0 = vld [vmem:[#allocation4 + $0xe4] ss:$36 sps:$4 sm:$0xff]  }
 0x913   : > { %8892 = vst [vmem:[#allocation68_spill] sm:$0xff] %v7113_v8  ;;  %8893 = vst [vmem:[#allocation69_spill] sm:$0xff] %v7116_v0 }
 0x914   : > { %2928 = vmatpush1.bf16.msra.mxu1 %v7101_v52  ;;  %v7119_v52 = vld [vmem:[#allocation4 + $0x2d0] ss:$36 sps:$4 sm:$0xff]  }
 0x915   : > { %2929 = vmatprep.subr.bf16.mxu1 %v7104_v57  ;;  %2903 = vmatpush1.bf16.msra.mxu0 %v7107_v48  ;;  %8894 = vst [vmem:[#allocation70_spill] sm:$0xff] %v7119_v52  ;;  %v7122_v57 = vld [vmem:[#allocation4 + $0x31c] ss:$36 sps:$4 sm:$0xff]  }
 0x916   : > { %2904 = vmatprep.subr.bf16.mxu0 %v7110_v17  ;;  %8895 = vst [vmem:[#allocation71_spill] sm:$0xff] %v7122_v57  ;;  %v7125_v48 = vld [vmem:[#allocation4 + $0xe0] ss:$36 sps:$4 sm:$0xff]   ;;  %v7128_v17 = vld [vmem:[#allocation4 + $0x12c] ss:$36 sps:$4 sm:$0xff]  }
 0x917   : > { %8896 = vst [vmem:[#allocation72_spill] sm:$0xff] %v7125_v48  ;;  %8897 = vst [vmem:[#allocation73_spill] sm:$0xff] %v7128_v17 }
 0x918   : > { %2930 = vmatpush1.bf16.msra.mxu1 %v7113_v8  ;;  %v7131_v8 = vld [vmem:[#allocation4 + $0x318] ss:$36 sps:$4 sm:$0xff]  }
 0x919   : > { %2931 = vmatprep.subr.bf16.mxu1 %v7116_v0  ;;  %2905 = vmatpush1.bf16.msra.mxu0 %v7119_v52  ;;  %8898 = vst [vmem:[#allocation74_spill] sm:$0xff] %v7131_v8  ;;  %v7134_v0 = vld [vmem:[#allocation4 + $0x364] ss:$36 sps:$4 sm:$0xff]  }
 0x91a   : > { %2906 = vmatprep.subr.bf16.mxu0 %v7122_v57  ;;  %8899 = vst [vmem:[#allocation75_spill] sm:$0xff] %v7134_v0  ;;  %v7137_v52 = vld [vmem:[#allocation4 + $0x128] ss:$36 sps:$4 sm:$0xff]   ;;  %v7140_v57 = vld [vmem:[#allocation4 + $0x174] ss:$36 sps:$4 sm:$0xff]  }
 0x91b   : > { %8900 = vst [vmem:[#allocation76_spill] sm:$0xff] %v7137_v52  ;;  %8901 = vst [vmem:[#allocation77_spill] sm:$0xff] %v7140_v57 }
 0x91c   : > { %2932 = vmatpush1.bf16.msra.mxu1 %v7125_v48  ;;  %v7143_v48 = vld [vmem:[#allocation4 + $0x360] ss:$36 sps:$4 sm:$0xff]  }
 0x91d   : > { %2933 = vmatprep.subr.bf16.mxu1 %v7128_v17  ;;  %2907 = vmatpush1.bf16.msra.mxu0 %v7131_v8  ;;  %8902 = vst [vmem:[#allocation78_spill] sm:$0xff] %v7143_v48  ;;  %v7146_v17 = vld [vmem:[#allocation4 + $0x3ac] ss:$36 sps:$4 sm:$0xff]  }
 0x91e   : > { %2908 = vmatprep.subr.bf16.mxu0 %v7134_v0  ;;  %8903 = vst [vmem:[#allocation79_spill] sm:$0xff] %v7146_v17  ;;  %v7149_v8 = vld [vmem:[#allocation4 + $0x170] ss:$36 sps:$4 sm:$0xff]   ;;  %v7152_v0 = vld [vmem:[#allocation4 + $0x1bc] ss:$36 sps:$4 sm:$0xff]  }
 0x91f   : > { %8904 = vst [vmem:[#allocation80_spill] sm:$0xff] %v7149_v8  ;;  %8905 = vst [vmem:[#allocation81_spill] sm:$0xff] %v7152_v0 }
 0x920   : > { %2934 = vmatpush1.bf16.msra.mxu1 %v7137_v52  ;;  %v7155_v52 = vld [vmem:[#allocation4 + $0x3a8] ss:$36 sps:$4 sm:$0xff]  }
 0x921   : > { %2935 = vmatprep.subr.bf16.mxu1 %v7140_v57  ;;  %2909 = vmatpush1.bf16.msra.mxu0 %v7143_v48  ;;  %8906 = vst [vmem:[#allocation82_spill] sm:$0xff] %v7155_v52  ;;  %v7158_v57 = vld [vmem:[#allocation4 + $0x3f4] ss:$36 sps:$4 sm:$0xff]  }
 0x922   : > { %2910 = vmatprep.subr.bf16.mxu0 %v7146_v17  ;;  %8907 = vst [vmem:[#allocation83_spill] sm:$0xff] %v7158_v57  ;;  %v7161_v48 = vld [vmem:[#allocation4 + $0x1b8] ss:$36 sps:$4 sm:$0xff]   ;;  %v7164_v17 = vld [vmem:[#allocation4 + $0x204] ss:$36 sps:$4 sm:$0xff]  }
 0x923   : > { %8908 = vst [vmem:[#allocation84_spill] sm:$0xff] %v7161_v48  ;;  %8909 = vst [vmem:[#allocation85_spill] sm:$0xff] %v7164_v17 }
 0x924   : > { %2936 = vmatpush1.bf16.msra.mxu1 %v7149_v8  ;;  %v7167_v8 = vld [vmem:[#allocation4 + $0x3f0] ss:$36 sps:$4 sm:$0xff]  }
 0x925   : > { %2937 = vmatprep.subr.bf16.mxu1 %v7152_v0  ;;  %2911 = vmatpush1.bf16.msra.mxu0 %v7155_v52  ;;  %8910 = vst [vmem:[#allocation86_spill] sm:$0xff] %v7167_v8  ;;  %v7170_v0 = vld [vmem:[#allocation4 + $0x43c] ss:$36 sps:$4 sm:$0xff]  }
 0x926   : > { %2912 = vmatprep.subr.bf16.mxu0 %v7158_v57  ;;  %8911 = vst [vmem:[#allocation87_spill] sm:$0xff] %v7170_v0  ;;  %v7173_v52 = vld [vmem:[#allocation4 + $0x200] ss:$36 sps:$4 sm:$0xff]   ;;  %v7176_v57 = vld [vmem:[#allocation4 + $0x24c] ss:$36 sps:$4 sm:$0xff]  }
 0x927   : > { %8912 = vst [vmem:[#allocation88_spill] sm:$0xff] %v7173_v52  ;;  %8913 = vst [vmem:[#allocation89_spill] sm:$0xff] %v7176_v57 }
 0x928   : > { %2938 = vmatpush1.bf16.msra.mxu1 %v7161_v48  ;;  %v7179_v48 = vld [vmem:[#allocation4 + $0x438] ss:$36 sps:$4 sm:$0xff]  }
 0x929   : > { %2939 = vmatprep.subr.bf16.mxu1 %v7164_v17  ;;  %2913 = vmatpush1.bf16.msra.mxu0 %v7167_v8  ;;  %8914 = vst [vmem:[#allocation90_spill] sm:$0xff] %v7179_v48  ;;  %v7182_v17 = vld [vmem:[#allocation4 + $0x14] ss:$36 sps:$4 sm:$0xff]   ;;  %v7185_v8 = vld [vmem:[#allocation4 + $0x248] ss:$36 sps:$4 sm:$0xff]  }
 0x92a   : > { %2914 = vmatprep.subr.bf16.mxu0 %v7170_v0  ;;  %8915 = vst [vmem:[#allocation91_spill] sm:$0xff] %v7182_v17  ;;  %8916 = vst [vmem:[#allocation92_spill] sm:$0xff] %v7185_v8  ;;  %v7188_v0 = vld [vmem:[#allocation4 + $0x294] ss:$36 sps:$4 sm:$0xff]  }
 0x92b   : > { %8917 = vst [vmem:[#allocation93_spill] sm:$0xff] %v7188_v0 }
 0x92c   : > { %2940 = vmatpush1.bf16.msra.mxu1 %v7173_v52  ;;  %v7191_v52 = vld [vmem:[#allocation4 + $0x290] ss:$36 sps:$4 sm:$0xff]  }
 0x92d   : > { %2941 = vmatprep.subr.bf16.mxu1 %v7176_v57  ;;  %2915 = vmatpush1.bf16.msra.mxu0 %v7179_v48  ;;  %8918 = vst [vmem:[#allocation94_spill] sm:$0xff] %v7191_v52  ;;  %v7194_v57 = vld [vmem:[#allocation4 + $0x2dc] ss:$36 sps:$4 sm:$0xff]  }
 0x92e   : > { %2966 = vmatprep.subr.bf16.mxu0 %v7182_v17  ;;  %8919 = vst [vmem:[#allocation95_spill] sm:$0xff] %v7194_v57  ;;  %v7197_v48 = vld [vmem:[#allocation4 + $0x2d8] ss:$36 sps:$4 sm:$0xff]   ;;  %v7200_v17 = vld [vmem:[#allocation4 + $0x324] ss:$36 sps:$4 sm:$0xff]  }
 0x92f   : > { %8920 = vst [vmem:[#allocation96_spill] sm:$0xff] %v7197_v48  ;;  %8921 = vst [vmem:[#allocation49_spill] sm:$0xff] %v7200_v17 }
 0x930   : > { %2942 = vmatpush1.bf16.msra.mxu1 %v7185_v8  ;;  %v7203_v8 = vld [vmem:[#allocation4 + $0x320] ss:$36 sps:$4 sm:$0xff]  }
 0x931   : > { %2943 = vmatprep.subr.bf16.mxu1 %v7188_v0  ;;  %8922 = vst [vmem:[#allocation50_spill] sm:$0xff] %v7203_v8  ;;  %v7206_v0 = vld [vmem:[#allocation4 + $0x36c] ss:$36 sps:$4 sm:$0xff]  }
 0x932   : > { %8923 = vst [vmem:[#allocation104_spill] sm:$0xff] %v7206_v0 }
 0x934   : > { %2944 = vmatpush1.bf16.msra.mxu1 %v7191_v52  ;;  %v7209_v52 = vld [vmem:[#allocation4 + $0x368] ss:$36 sps:$4 sm:$0xff]  }
 0x935   : > { %2945 = vmatprep.subr.bf16.mxu1 %v7194_v57  ;;  %8924 = vst [vmem:[#allocation45_spill] sm:$0xff] %v7209_v52  ;;  %v7212_v57 = vld [vmem:[#allocation4 + $0x3b4] ss:$36 sps:$4 sm:$0xff]  }
 0x936   : > { %8925 = vst [vmem:[#allocation105_spill] sm:$0xff] %v7212_v57 }
 0x938   : > { %2946 = vmatpush1.bf16.msra.mxu1 %v7197_v48  ;;  %v7215_v48 = vld [vmem:[#allocation4 + $0x3b0] ss:$36 sps:$4 sm:$0xff]  }
 0x939   : > { %2947 = vmatprep.subr.bf16.mxu1 %v7200_v17  ;;  %8926 = vst [vmem:[#allocation106_spill] sm:$0xff] %v7215_v48  ;;  %v7218_v17 = vld [vmem:[#allocation4 + $0x3fc] ss:$36 sps:$4 sm:$0xff]  }
 0x93a   : > { %8927 = vst [vmem:[#allocation107_spill] sm:$0xff] %v7218_v17 }
 0x93c   : > { %2948 = vmatpush1.bf16.msra.mxu1 %v7203_v8  ;;  %v7221_v8 = vld [vmem:[#allocation4 + $0x3f8] ss:$36 sps:$4 sm:$0xff]  }
 0x93d   : > { %2949 = vmatprep.subr.bf16.mxu1 %v7206_v0  ;;  %8928 = vst [vmem:[#allocation41_spill] sm:$0xff] %v7221_v8  ;;  %v7224_v0 = vld [vmem:[#allocation4 + $0x444] ss:$36 sps:$4 sm:$0xff]  }
 0x93e   : > { %8929 = vst [vmem:[#allocation42_spill] sm:$0xff] %v7224_v0 }
 0x940   : > { %2950 = vmatpush1.bf16.msra.mxu1 %v7209_v52  ;;  %v7227_v52 = vld [vmem:[#allocation4 + $0x440] ss:$36 sps:$4 sm:$0xff]  }
 0x941   : > { %2951 = vmatprep.subr.bf16.mxu1 %v7212_v57  ;;  %8930 = vst [vmem:[#allocation36_spill] sm:$0xff] %v7227_v52  ;;  %v7230_v57 = vld [vmem:[#allocation4 + $0x1c] ss:$36 sps:$4 sm:$0xff]  }
 0x942   : > { %8931 = vst [vmem:[#allocation27_spill] sm:$0xff] %v7230_v57 }
 0x944   : > { %2952 = vmatpush1.bf16.msra.mxu1 %v7215_v48 }
 0x945   : > { %2953 = vmatprep.subr.bf16.mxu1 %v7218_v17 }
 0x948   : > { %2954 = vmatpush1.bf16.msra.mxu1 %v7221_v8 }
 0x949   : > { %2955 = vmatprep.subr.bf16.mxu1 %v7224_v0 }
 0x94c   : > { %2956 = vmatpush1.bf16.msra.mxu1 %v7227_v52 }
 0x94d   : > { %3007 = vmatprep.subr.bf16.mxu1 %v7230_v57 }
 0x982   : > { %v2665_v48 = vpop.f32.mrb[56].mxu1  ;;  %v2706_v43 = vpop.f32.mrb[56].mxu0 }
 0x983   : > { %v2860_v17 = vadd.f32 %v2665_v48, %v8932_v42  ;;  %v2667_v22 = vpop.f32.mrb[57].mxu1  ;;  %v2708_v1 = vpop.f32.mrb[57].mxu0  ;;  %v2874_v35 = vadd.f32 %v8825_v25, %v2706_v43 }
 0x984   : > { %v2861_v8 = vadd.f32 %v2667_v22, %v8933_v28  ;;  %v2669_v11 = vpop.f32.mrb[58].mxu1  ;;  %v2710_v21 = vpop.f32.mrb[58].mxu0 }
 0x985   : > { %v4022_v19 = vmul.f32 -1.442695, %v2860_v17  ;;  %v2670_v0 = vpop.f32.mrb[59].mxu1  ;;  %v2711_v9 = vpop.f32.mrb[59].mxu0 }
 0x986   : > { %v4023_v20 = vmul.f32 -1.442695, %v2861_v8 }
 0x987   : > { %4714 = vpow2.f32 %v4022_v19 }
 0x988   : > { %4716 = vpow2.f32 %v4023_v20 }
 0x991   : > { %v4715_v52 = vpop.eup %4714 }
 0x992   : > { %v2868_v31 = vadd.f32 1.0, %v4715_v52  ;;  %v4717_v57 = vpop.eup %4716  ;;  %v8935_v52 = vld [vmem:[#allocation12_spill] sm:$0xff] }
 0x993   : > { %v2869_v38 = vadd.f32 1.0, %v4717_v57 }
 0x994   : > { %4718 = vrcp.f32 %v2868_v31  ;;  %v2835_v31 = vadd.f32 %v2708_v1, %v6101_v50 }
 0x995   : > { %4720 = vrcp.f32 %v2869_v38 }
 0x99e   : > { %v4719_v42 = vpop.eup %4718 }
 0x99f   : > { %v2875_v48 = vmul.f32 %v4719_v42, %v2874_v35  ;;  %v4721_v21 = vpop.eup %4720 }
 0x9a0   : > { %v2878_v11 = vsub.f32 1.0, %v4721_v21  ;;  %v2880_v9 = vmul.f32 %v4721_v21, %v6928_v51 }
 0x9a1   : > { %v2876_v28 = vadd.f32 %v2875_v48, %v8934_v60 }
 0x9a3   : > { %4722 = vtanh.f32 %v2876_v28 }
 0x9ad   : > { %v4723_v17 = vpop.eup %4722 }
 0x9ae   : > { %v2879_v19 = vmul.f32 %v4723_v17, %v2878_v11 }
 0x9b0   : > { %v7238_v20 = vadd.f32 %v2880_v9, %v2879_v19 }
 0x9c2   : > { %v2747_v8 = vpop.f32.mrb[60].mxu1  ;;  %v2788_v0 = vpop.f32.mrb[60].mxu0 }
 0x9c3   : > { %v2836_v25 = vadd.f32 %v2747_v8, %v8935_v52  ;;  %v2838_v22 = vadd.f32 %v2835_v31, %v2788_v0  ;;  %v2749_v35 = vpop.f32.mrb[61].mxu1  ;;  %v2790_v38 = vpop.f32.mrb[61].mxu0 }
 0x9c4   : > { %v2751_v43 = vpop.f32.mrb[62].mxu1  ;;  %v2792_v60 = vpop.f32.mrb[62].mxu0 }
 0x9c5   : > { %v2839_v57 = vadd.f32 %v2836_v25, %v2790_v38  ;;  %v2752_v42 = vpop.f32.mrb[63].mxu1  ;;  %v2793_v48 = vpop.f32.mrb[63].mxu0  ;;  %v4020_v28 = vmul.f32 -1.442695, %v2838_v22  ;;  %v2837_v25 = vadd.f32 %v2749_v35, %v6113_v37  ;;  %v7262_v35 = vld [vmem:[#allocation4 + $0x18] ss:$36 sps:$4 sm:$0xff]  }
 0x9c7   : > { %4724 = vpow2.f32 %v4020_v28  ;;  %v4021_v51 = vmul.f32 -1.442695, %v2839_v57 }
 0x9c9   : > { %4726 = vpow2.f32 %v4021_v51 }
 0x9d1   : > { %v4725_v21 = vpop.eup %4724 }
 0x9d2   : > { %v2846_v11 = vadd.f32 1.0, %v4725_v21 }
 0x9d3   : > { %v4727_v1 = vpop.eup %4726 }
 0x9d4   : > { %4728 = vrcp.f32 %v2846_v11  ;;  %v2847_v19 = vadd.f32 1.0, %v4727_v1  ;;  %v7253_v1 = vpack.c.bf16 %v7238_v20, %v7238_v20 }
 0x9d6   : > { %4730 = vrcp.f32 %v2847_v19  ;;  %v7273_v19 = vld [vmem:[#allocation4 + $0x58] ss:$36 sps:$4 sm:$0xff]  }
 0x9de   : > { %v4729_v60 = vpop.eup %4728 }
 0x9e0   : > { %v4731_v57 = vpop.eup %4730 }
 0x9e1   : > { %v2856_v42 = vsub.f32 1.0, %v4731_v57  ;;  %v2858_v28 = vmul.f32 %v4731_v57, %v6937_v41  ;;  %v7259_v41 = vld [vmem:[#allocation4 + $0x10] ss:$36 sps:$4 sm:$0xff]  }
 0x9e2   : > { %v4164_v17 = vpop.f32.mrb[64].mxu1  ;;  %v7300_v57 = vld [vmem:[#allocation4 + $0xf0] ss:$36 sps:$4 sm:$0xff]  }
 0x9e3   : > { %v4165_v9 = vpop.f32.mrb[65].mxu1  ;;  %8941 = vst [vmem:[#allocation111_spill] sm:$0xff] %v7300_v57 }
 0x9e4   : > { %v4166_v8 = vadd.f32 %v4165_v9, %v4164_v17  ;;  %v4167_v31 = vpop.f32.mrb[66].mxu1  ;;  %v7267_v17 = vld [vmem:[#allocation4 + $0x5c] ss:$36 sps:$4 sm:$0xff]   ;;  %v7270_v9 = vld [vmem:[#allocation4 + $0x64] ss:$36 sps:$4 sm:$0xff]  }
 0x9e5   : > { %v4168_v0 = vpop.f32.mrb[67].mxu1  ;;  %v7279_v31 = vld [vmem:[#allocation4 + $0xa4] ss:$36 sps:$4 sm:$0xff]  }
 0x9e6   : > { %v2852_v43 = vadd.f32 %v6932_v56, %v4166_v8  ;;  %v7276_v8 = vld [vmem:[#allocation4 + $0x60] ss:$36 sps:$4 sm:$0xff]   ;;  %v7282_v0 = vld [vmem:[#allocation4 + $0xac] ss:$36 sps:$4 sm:$0xff]  }
 0x9e7   : > { %8936 = vst [vmem:[#allocation108_spill] sm:$0xff] %v7276_v8  ;;  %8937 = vst [vmem:[#allocation109_spill] sm:$0xff] %v7282_v0 }
 0x9e8   : > { %v2853_v22 = vmul.f32 %v4729_v60, %v2852_v43  ;;  %v7285_v43 = vld [vmem:[#allocation4 + $0xa0] ss:$36 sps:$4 sm:$0xff]   ;;  %v7288_v60 = vld [vmem:[#allocation4 + $0xa8] ss:$36 sps:$4 sm:$0xff]  }
 0x9e9   : > { %8938 = vst [vmem:[#allocation29_spill] sm:$0xff] %v7288_v60 }
 0x9ea   : > { %v2854_v38 = vadd.f32 %v2853_v22, %v2837_v25  ;;  %v7291_v25 = vld [vmem:[#allocation4 + $0xec] ss:$36 sps:$4 sm:$0xff]   ;;  %v7294_v22 = vld [vmem:[#allocation4 + $0xf4] ss:$36 sps:$4 sm:$0xff]  }
 0x9eb   : > { %8939 = vst [vmem:[#allocation13_spill] sm:$0xff] %v7294_v22 }
 0x9ec   : > { %4732 = vtanh.f32 %v2854_v38  ;;  %v7297_v38 = vld [vmem:[#allocation4 + $0xe8] ss:$36 sps:$4 sm:$0xff]  }
 0x9ed   : > { %8940 = vst [vmem:[#allocation110_spill] sm:$0xff] %v7297_v38 }
 0x9f6   : > { %v4733_v48 = vpop.eup %4732 }
 0x9f7   : > { %v2857_v51 = vmul.f32 %v4733_v48, %v2856_v42  ;;  %v7303_v42 = vld [vmem:[#allocation4 + $0x134] ss:$36 sps:$4 sm:$0xff]   ;;  %v7306_v48 = vld [vmem:[#allocation4 + $0x13c] ss:$36 sps:$4 sm:$0xff]  }
 0x9f8   : > { %8942 = vst [vmem:[#allocation14_spill] sm:$0xff] %v7303_v42  ;;  %8943 = vst [vmem:[#allocation31_spill] sm:$0xff] %v7306_v48 }
 0x9f9   : > { %v7245_v21 = vadd.f32 %v2858_v28, %v2857_v51  ;;  %v7309_v28 = vld [vmem:[#allocation4 + $0x130] ss:$36 sps:$4 sm:$0xff]   ;;  %v7312_v51 = vld [vmem:[#allocation4 + $0x138] ss:$36 sps:$4 sm:$0xff]  }
 0x9fa   : > { %8944 = vst [vmem:[#allocation112_spill] sm:$0xff] %v7309_v28  ;;  %8945 = vst [vmem:[#allocation113_spill] sm:$0xff] %v7312_v51 }
 0x9fb   : > { %v7249_v11 = vpack.c.bf16 %v7245_v21, %v7245_v21 }
 0x9fd   : > { %2916 = vmatprep.mubr.bf16.mxu0 %v7249_v11  ;;  %2957 = vmatprep.mubr.bf16.mxu1 %v7249_v11 }
 0x9fe   : > { %2917 = vmatmul.mubr.bf16.vlgmr.msra.gmra.mrb[64].mxu0 %v7253_v1  ;;  %2958 = vmatmul.mubr.bf16.vlgmr.msra.gmra.mrb[68].mxu1 %v7253_v1 }
 0x9ff   : > { %2967 = vmatpush1.bf16.msra.mxu0 %v7259_v41  ;;  %3008 = vmatpush1.bf16.msra.mxu1 %v7262_v35 }
 0xa00   : > { %2998 = vmatprep.mubr.bf16.mxu0 %v7249_v11  ;;  %3039 = vmatprep.mubr.bf16.mxu1 %v7249_v11 }
 0xa01   : > { %2968 = vmatprep.subr.bf16.mxu0 %v7267_v17  ;;  %3009 = vmatprep.subr.bf16.mxu1 %v7270_v9 }
 0xa03   : > { %2969 = vmatpush1.bf16.msra.mxu0 %v7273_v19  ;;  %3010 = vmatpush1.bf16.msra.mxu1 %v7276_v8 }
 0xa04   : > { %2970 = vmatprep.subr.bf16.mxu0 %v7279_v31  ;;  %3011 = vmatprep.subr.bf16.mxu1 %v7282_v0 }
 0xa07   : > { %2971 = vmatpush1.bf16.msra.mxu0 %v7285_v43  ;;  %3012 = vmatpush1.bf16.msra.mxu1 %v7288_v60 }
 0xa08   : > { %2972 = vmatprep.subr.bf16.mxu0 %v7291_v25  ;;  %3013 = vmatprep.subr.bf16.mxu1 %v7294_v22 }
 0xa0b   : > { %2973 = vmatpush1.bf16.msra.mxu0 %v7297_v38  ;;  %3014 = vmatpush1.bf16.msra.mxu1 %v7300_v57  ;;  %v7315_v38 = vld [vmem:[#allocation4 + $0x17c] ss:$36 sps:$4 sm:$0xff]   ;;  %v7318_v57 = vld [vmem:[#allocation4 + $0x184] ss:$36 sps:$4 sm:$0xff]  }
 0xa0c   : > { %2974 = vmatprep.subr.bf16.mxu0 %v7303_v42  ;;  %3015 = vmatprep.subr.bf16.mxu1 %v7306_v48  ;;  %8946 = vst [vmem:[#allocation33_spill] sm:$0xff] %v7315_v38  ;;  %8947 = vst [vmem:[#allocation15_spill] sm:$0xff] %v7318_v57  ;;  %v7321_v42 = vld [vmem:[#allocation4 + $0x178] ss:$36 sps:$4 sm:$0xff]   ;;  %v7324_v48 = vld [vmem:[#allocation4 + $0x180] ss:$36 sps:$4 sm:$0xff]  }
 0xa0d   : > { %8948 = vst [vmem:[#allocation114_spill] sm:$0xff] %v7324_v48 }
 0xa0f   : > { %2975 = vmatpush1.bf16.msra.mxu0 %v7309_v28  ;;  %3016 = vmatpush1.bf16.msra.mxu1 %v7312_v51  ;;  %v7327_v28 = vld [vmem:[#allocation4 + $0x1c4] ss:$36 sps:$4 sm:$0xff]   ;;  %v7330_v51 = vld [vmem:[#allocation4 + $0x1cc] ss:$36 sps:$4 sm:$0xff]  }
 0xa10   : > { %2976 = vmatprep.subr.bf16.mxu0 %v7315_v38  ;;  %3017 = vmatprep.subr.bf16.mxu1 %v7318_v57  ;;  %8949 = vst [vmem:[#allocation115_spill] sm:$0xff] %v7330_v51  ;;  %v7333_v38 = vld [vmem:[#allocation4 + $0x1c0] ss:$36 sps:$4 sm:$0xff]   ;;  %v7336_v57 = vld [vmem:[#allocation4 + $0x1c8] ss:$36 sps:$4 sm:$0xff]  }
 0xa11   : > { %8950 = vst [vmem:[#allocation16_spill] sm:$0xff] %v7336_v57 }
 0xa13   : > { %2977 = vmatpush1.bf16.msra.mxu0 %v7321_v42  ;;  %3018 = vmatpush1.bf16.msra.mxu1 %v7324_v48 }
 0xa14   : > { %2978 = vmatprep.subr.bf16.mxu0 %v7327_v28  ;;  %3019 = vmatprep.subr.bf16.mxu1 %v7330_v51 }
 0xa17   : > { %2979 = vmatpush1.bf16.msra.mxu0 %v7333_v38  ;;  %3020 = vmatpush1.bf16.msra.mxu1 %v7336_v57 }
 0xa18   : > { %2980 = vmatprep.subr.bf16.mxu0 %v6697_v44  ;;  %3021 = vmatprep.subr.bf16.mxu1 %v6700_v61  ;;  %v8951_v44 = vld [vmem:[#allocation119_spill] sm:$0xff]  ;;  %v8952_v61 = vld [vmem:[#allocation20_spill] sm:$0xff] }
 0xa1b   : > { %2981 = vmatpush1.bf16.msra.mxu0 %v6703_v39  ;;  %3022 = vmatpush1.bf16.msra.mxu1 %v6706_v23  ;;  %v8953_v39 = vld [vmem:[#allocation97_spill] sm:$0xff]  ;;  %v8954_v23 = vld [vmem:[#allocation98_spill] sm:$0xff] }
 0xa1c   : > { %2982 = vmatprep.subr.bf16.mxu0 %v6709_v47  ;;  %3023 = vmatprep.subr.bf16.mxu1 %v6712_v18  ;;  %v8955_v47 = vld [vmem:[#allocation21_spill] sm:$0xff]  ;;  %v8956_v18 = vld [vmem:[#allocation120_spill] sm:$0xff] }
 0xa1f   : > { %2983 = vmatpush1.bf16.msra.mxu0 %v8827_v46  ;;  %3024 = vmatpush1.bf16.msra.mxu1 %v8828_v6  ;;  %v8960_v46 = vld [vmem:[#allocation22_spill] sm:$0xff]  ;;  %v8961_v6 = vld [vmem:[#allocation101_spill] sm:$0xff] }
 0xa20   : > { %2984 = vmatprep.subr.bf16.mxu0 %v8829_v27  ;;  %3025 = vmatprep.subr.bf16.mxu1 %v8830_v7  ;;  %v8962_v27 = vld [vmem:[#allocation102_spill] sm:$0xff]  ;;  %v8963_v7 = vld [vmem:[#allocation23_spill] sm:$0xff] }
 0xa23   : > { %2985 = vmatpush1.bf16.msra.mxu0 %v8831_v16  ;;  %3026 = vmatpush1.bf16.msra.mxu1 %v8832_v55  ;;  %v8964_v16 = vld [vmem:[#allocation122_spill] sm:$0xff]  ;;  %v8965_v55 = vld [vmem:[#allocation103_spill] sm:$0xff] }
 0xa24   : > { %2986 = vmatprep.subr.bf16.mxu0 %v8833_v49  ;;  %3027 = vmatprep.subr.bf16.mxu1 %v8834_v63  ;;  %v8966_v49 = vld [vmem:[#allocation30_spill] sm:$0xff]  ;;  %v8967_v63 = vld [vmem:[#allocation24_spill] sm:$0xff] }
 0xa27   : > { %2987 = vmatpush1.bf16.msra.mxu0 %v8835_v29  ;;  %3028 = vmatpush1.bf16.msra.mxu1 %v8836_v36  ;;  %v8968_v29 = vld [vmem:[#allocation25_spill] sm:$0xff]  ;;  %v8969_v36 = vld [vmem:[#allocation32_spill] sm:$0xff] }
 0xa28   : > { %2988 = vmatprep.subr.bf16.mxu0 %v8837_v13  ;;  %3029 = vmatprep.subr.bf16.mxu1 %v8838_v59  ;;  %v8970_v13 = vld [vmem:[#allocation34_spill] sm:$0xff] }
 0xa29   : > { %v8971_v59 = vld [vmem:[#allocation26_spill] sm:$0xff] }
 0xa2b   : > { %2989 = vmatpush1.bf16.msra.mxu0 %v8839_v32  ;;  %3030 = vmatpush1.bf16.msra.mxu1 %v8840_v30  ;;  %v8972_v32 = vld [vmem:[#allocation28_spill] sm:$0xff]  ;;  %v8973_v30 = vld [vmem:[#allocation37_spill] sm:$0xff] }
 0xa2c   : > { %2990 = vmatprep.subr.bf16.mxu0 %v8841_v14  ;;  %3031 = vmatprep.subr.bf16.mxu1 %v8842_v26  ;;  %v8974_v14 = vld [vmem:[#allocation38_spill] sm:$0xff]  ;;  %v8975_v26 = vld [vmem:[#allocation44_spill] sm:$0xff] }
 0xa2f   : > { %2991 = vmatpush1.bf16.msra.mxu0 %v8843_v12  ;;  %3032 = vmatpush1.bf16.msra.mxu1 %v8844_v34  ;;  %v8976_v12 = vld [vmem:[#allocation46_spill] sm:$0xff]  ;;  %v8977_v34 = vld [vmem:[#allocation40_spill] sm:$0xff] }
 0xa30   : > { %2992 = vmatprep.subr.bf16.mxu0 %v8845_v3  ;;  %3033 = vmatprep.subr.bf16.mxu1 %v8846_v33  ;;  %v8978_v3 = vld [vmem:[#allocation35_spill] sm:$0xff] }
 0xa31   : > { %v8979_v33 = vld [vmem:[#allocation39_spill] sm:$0xff] }
 0xa33   : > { %2993 = vmatpush1.bf16.msra.mxu0 %v8847_v45  ;;  %3034 = vmatpush1.bf16.msra.mxu1 %v8848_v5  ;;  %v8980_v45 = vld [vmem:[#allocation57_spill] sm:$0xff]  ;;  %v8981_v5 = vld [vmem:[#allocation58_spill] sm:$0xff] }
 0xa34   : > { %2994 = vmatprep.subr.bf16.mxu0 %v8849_v15  ;;  %3035 = vmatprep.subr.bf16.mxu1 %v8850_v10  ;;  %v8982_v15 = vld [vmem:[#allocation59_spill] sm:$0xff]  ;;  %v8983_v10 = vld [vmem:[#allocation60_spill] sm:$0xff] }
 0xa37   : > { %2995 = vmatpush1.bf16.msra.mxu0 %v8851_v24  ;;  %3036 = vmatpush1.bf16.msra.mxu1 %v6790_v54  ;;  %v8957_v54 = vld [vmem:[#allocation99_spill] sm:$0xff]  ;;  %v8984_v24 = vld [vmem:[#allocation61_spill] sm:$0xff] }
 0xa38   : > { %2996 = vmatprep.subr.bf16.mxu0 %v8852_v40  ;;  %3037 = vmatprep.subr.bf16.mxu1 %v6796_v2  ;;  %v8958_v2 = vld [vmem:[#allocation100_spill] sm:$0xff]  ;;  %v8985_v40 = vld [vmem:[#allocation62_spill] sm:$0xff] }
 0xa3b   : > { %2997 = vmatpush1.bf16.msra.mxu0 %v8853_v58  ;;  %3038 = vmatpush1.bf16.msra.mxu1 %v6802_v53  ;;  %v8959_v53 = vld [vmem:[#allocation121_spill] sm:$0xff]  ;;  %v8986_v58 = vld [vmem:[#allocation63_spill] sm:$0xff] }
 0xa3c   : > { %4170 = vmatprep.subr.bf16.mxu0 %v8854_v4  ;;  %3137 = vmatprep.subr.bf16.mxu1 %v7016_v62  ;;  %v8987_v4 = vld [vmem:[#allocation64_spill] sm:$0xff]  ;;  %v8988_v62 = vld [vmem:[#allocation65_spill] sm:$0xff] }
 0xa3e   : > { %2999 = vmatmul.mubr.bf16.vlgmr.msra.gmra.mrb[68].mxu0 %v7253_v1  ;;  %3040 = vmatmul.mubr.bf16.vlgmr.msra.gmra.mrb[72].mxu1 %v7253_v1 }
 0xa3f   : > { %4171 = vmatpush3.bf16.msra.mxu0 %v8951_v44  ;;  %3080 = vmatprep.mubr.bf16.mxu0 %v7249_v11  ;;  %v8989_v11 = vld [vmem:[#allocation66_spill] sm:$0xff]  ;;  %v8990_v44 = vld [vmem:[#allocation67_spill] sm:$0xff] }
 0xa40   : > { %4172 = vmatprep.subr.bf16.mxu0 %v8952_v61  ;;  %3138 = vmatpush1.bf16.msra.mxu1 %v8953_v39  ;;  %v8991_v61 = vld [vmem:[#allocation68_spill] sm:$0xff]  ;;  %v8992_v39 = vld [vmem:[#allocation69_spill] sm:$0xff] }
 0xa41   : > { %3139 = vmatprep.subr.bf16.mxu1 %v8954_v23  ;;  %v8994_v23 = vld [vmem:[#allocation71_spill] sm:$0xff] }
 0xa43   : > { %4173 = vmatpush3.bf16.msra.mxu0 %v8955_v47  ;;  %v8995_v47 = vld [vmem:[#allocation72_spill] sm:$0xff] }
 0xa44   : > { %4174 = vmatprep.subr.bf16.mxu0 %v8956_v18  ;;  %3140 = vmatpush1.bf16.msra.mxu1 %v8957_v54  ;;  %v8996_v18 = vld [vmem:[#allocation73_spill] sm:$0xff]  ;;  %v8997_v54 = vld [vmem:[#allocation74_spill] sm:$0xff] }
 0xa45   : > { %3141 = vmatprep.subr.bf16.mxu1 %v8958_v2  ;;  %v8998_v2 = vld [vmem:[#allocation75_spill] sm:$0xff] }
 0xa47   : > { %4175 = vmatpush3.bf16.msra.mxu0 %v8959_v53  ;;  %v8999_v53 = vld [vmem:[#allocation76_spill] sm:$0xff] }
 0xa48   : > { %4176 = vmatprep.subr.bf16.mxu0 %v8960_v46  ;;  %3142 = vmatpush1.bf16.msra.mxu1 %v8961_v6  ;;  %v9000_v46 = vld [vmem:[#allocation77_spill] sm:$0xff]  ;;  %v9001_v6 = vld [vmem:[#allocation78_spill] sm:$0xff] }
 0xa49   : > { %3143 = vmatprep.subr.bf16.mxu1 %v8962_v27  ;;  %v9002_v27 = vld [vmem:[#allocation79_spill] sm:$0xff] }
 0xa4b   : > { %4177 = vmatpush3.bf16.msra.mxu0 %v8963_v7  ;;  %v9003_v7 = vld [vmem:[#allocation80_spill] sm:$0xff] }
 0xa4c   : > { %4178 = vmatprep.subr.bf16.mxu0 %v8964_v16  ;;  %3144 = vmatpush1.bf16.msra.mxu1 %v8965_v55  ;;  %v9004_v16 = vld [vmem:[#allocation81_spill] sm:$0xff]  ;;  %v9005_v55 = vld [vmem:[#allocation82_spill] sm:$0xff] }
 0xa4d   : > { %3145 = vmatprep.subr.bf16.mxu1 %v8966_v49  ;;  %v9006_v49 = vld [vmem:[#allocation83_spill] sm:$0xff] }
 0xa4f   : > { %4179 = vmatpush3.bf16.msra.mxu0 %v8967_v63  ;;  %v9007_v63 = vld [vmem:[#allocation84_spill] sm:$0xff] }
 0xa50   : > { %4180 = vmatprep.subr.bf16.mxu0 %v8968_v29  ;;  %3146 = vmatpush1.bf16.msra.mxu1 %v8969_v36  ;;  %v9008_v29 = vld [vmem:[#allocation85_spill] sm:$0xff]  ;;  %v9009_v36 = vld [vmem:[#allocation86_spill] sm:$0xff] }
 0xa51   : > { %3147 = vmatprep.subr.bf16.mxu1 %v8970_v13  ;;  %v9010_v13 = vld [vmem:[#allocation87_spill] sm:$0xff] }
 0xa53   : > { %4181 = vmatpush3.bf16.msra.mxu0 %v8971_v59  ;;  %v9011_v59 = vld [vmem:[#allocation88_spill] sm:$0xff] }
 0xa54   : > { %4182 = vmatprep.subr.bf16.mxu0 %v8972_v32  ;;  %3148 = vmatpush1.bf16.msra.mxu1 %v8973_v30  ;;  %v9012_v32 = vld [vmem:[#allocation89_spill] sm:$0xff]  ;;  %v9013_v30 = vld [vmem:[#allocation90_spill] sm:$0xff] }
 0xa55   : > { %3149 = vmatprep.subr.bf16.mxu1 %v8974_v14  ;;  %v9014_v14 = vld [vmem:[#allocation91_spill] sm:$0xff] }
 0xa57   : > { %4183 = vmatpush3.bf16.msra.mxu0 %v8975_v26  ;;  %v9015_v26 = vld [vmem:[#allocation92_spill] sm:$0xff] }
 0xa58   : > { %4184 = vmatprep.subr.bf16.mxu0 %v8976_v12  ;;  %3150 = vmatpush1.bf16.msra.mxu1 %v8977_v34  ;;  %v9016_v12 = vld [vmem:[#allocation93_spill] sm:$0xff]  ;;  %v9017_v34 = vld [vmem:[#allocation94_spill] sm:$0xff] }
 0xa59   : > { %3151 = vmatprep.subr.bf16.mxu1 %v8978_v3  ;;  %v9018_v3 = vld [vmem:[#allocation95_spill] sm:$0xff] }
 0xa5b   : > { %4185 = vmatpush3.bf16.msra.mxu0 %v8979_v33  ;;  %v9019_v33 = vld [vmem:[#allocation96_spill] sm:$0xff] }
 0xa5c   : > { %3178 = vmatprep.subr.bf16.mxu0 %v8980_v45  ;;  %3152 = vmatpush1.bf16.msra.mxu1 %v8981_v5  ;;  %v9020_v5 = vld [vmem:[#allocation49_spill] sm:$0xff] }
 0xa5d   : > { %3153 = vmatprep.subr.bf16.mxu1 %v8982_v15  ;;  %v9021_v15 = vld [vmem:[#allocation50_spill] sm:$0xff] }
 0xa5e   : > { %3081 = vmatmul.mubr.bf16.vlgmr.msra.gmra.mrb[72].mxu0 %v7253_v1  ;;  %v8993_v1 = vld [vmem:[#allocation70_spill] sm:$0xff] }
 0xa5f   : > { %3179 = vmatpush1.bf16.msra.mxu0 %v8983_v10 }
 0xa60   : > { %3180 = vmatprep.subr.bf16.mxu0 %v8984_v24  ;;  %3154 = vmatpush1.bf16.msra.mxu1 %v8985_v40  ;;  %v9022_v40 = vld [vmem:[#allocation104_spill] sm:$0xff] }
 0xa61   : > { %3155 = vmatprep.subr.bf16.mxu1 %v8986_v58  ;;  %v9023_v58 = vld [vmem:[#allocation45_spill] sm:$0xff] }
 0xa63   : > { %3181 = vmatpush1.bf16.msra.mxu0 %v8987_v4 }
 0xa64   : > { %3182 = vmatprep.subr.bf16.mxu0 %v8988_v62  ;;  %3156 = vmatpush1.bf16.msra.mxu1 %v8989_v11  ;;  %v9024_v11 = vld [vmem:[#allocation105_spill] sm:$0xff] }
 0xa65   : > { %3157 = vmatprep.subr.bf16.mxu1 %v8990_v44  ;;  %v9025_v44 = vld [vmem:[#allocation106_spill] sm:$0xff] }
 0xa67   : > { %3183 = vmatpush1.bf16.msra.mxu0 %v8991_v61 }
 0xa68   : > { %3184 = vmatprep.subr.bf16.mxu0 %v8992_v39  ;;  %3158 = vmatpush1.bf16.msra.mxu1 %v8993_v1  ;;  %v9026_v1 = vld [vmem:[#allocation107_spill] sm:$0xff] }
 0xa69   : > { %3159 = vmatprep.subr.bf16.mxu1 %v8994_v23  ;;  %v9027_v23 = vld [vmem:[#allocation41_spill] sm:$0xff] }
 0xa6b   : > { %3185 = vmatpush1.bf16.msra.mxu0 %v8995_v47 }
 0xa6c   : > { %3186 = vmatprep.subr.bf16.mxu0 %v8996_v18  ;;  %3160 = vmatpush1.bf16.msra.mxu1 %v8997_v54  ;;  %v9028_v54 = vld [vmem:[#allocation42_spill] sm:$0xff] }
 0xa6d   : > { %3161 = vmatprep.subr.bf16.mxu1 %v8998_v2  ;;  %v9029_v2 = vld [vmem:[#allocation36_spill] sm:$0xff] }
 0xa6f   : > { %3187 = vmatpush1.bf16.msra.mxu0 %v8999_v53 }
 0xa70   : > { %3188 = vmatprep.subr.bf16.mxu0 %v9000_v46  ;;  %3162 = vmatpush1.bf16.msra.mxu1 %v9001_v6  ;;  %v9030_v6 = vld [vmem:[#allocation27_spill] sm:$0xff] }
 0xa71   : > { %3163 = vmatprep.subr.bf16.mxu1 %v9002_v27 }
 0xa73   : > { %3189 = vmatpush1.bf16.msra.mxu0 %v9003_v7 }
 0xa74   : > { %3190 = vmatprep.subr.bf16.mxu0 %v9004_v16  ;;  %3164 = vmatpush1.bf16.msra.mxu1 %v9005_v55 }
 0xa75   : > { %3165 = vmatprep.subr.bf16.mxu1 %v9006_v49  ;;  %v9031_v49 = vld [vmem:[#allocation53_spill] sm:$0xff] }
 0xa77   : > { %3191 = vmatpush1.bf16.msra.mxu0 %v9007_v63 }
 0xa78   : > { %3192 = vmatprep.subr.bf16.mxu0 %v9008_v29  ;;  %3166 = vmatpush1.bf16.msra.mxu1 %v9009_v36 }
 0xa79   : > { %3167 = vmatprep.subr.bf16.mxu1 %v9010_v13 }
 0xa7b   : > { %3193 = vmatpush1.bf16.msra.mxu0 %v9011_v59 }
 0xa7c   : > { %3194 = vmatprep.subr.bf16.mxu0 %v9012_v32  ;;  %3168 = vmatpush1.bf16.msra.mxu1 %v9013_v30 }
 0xa7d   : > { %3219 = vmatprep.subr.bf16.mxu1 %v9014_v14 }
 0xa7f   : > { %3195 = vmatpush1.bf16.msra.mxu0 %v9015_v26 }
 0xa80   : > { %3196 = vmatprep.subr.bf16.mxu0 %v9016_v12 }
 0xa83   : > { %3197 = vmatpush1.bf16.msra.mxu0 %v9017_v34 }
 0xa84   : > { %3198 = vmatprep.subr.bf16.mxu0 %v9018_v3  ;;  %v7463_v3 = vld [vmem:[#allocation7 + $0x2] ss:$0 sm:$0xff] }
 0xa85   : > { %9033 = vst [vmem:[#allocation17_spill] sm:$0xff] %v7463_v3 }
 0xa87   : > { %3199 = vmatpush1.bf16.msra.mxu0 %v9019_v33 }
 0xa88   : > { %3200 = vmatprep.subr.bf16.mxu0 %v9020_v5 }
 0xa8b   : > { %3201 = vmatpush1.bf16.msra.mxu0 %v9021_v15 }
 0xa8c   : > { %3202 = vmatprep.subr.bf16.mxu0 %v9022_v40 }
 0xa8f   : > { %3203 = vmatpush1.bf16.msra.mxu0 %v9023_v58  ;;  %v9032_v58 = vld [vmem:[#allocation54_spill] sm:$0xff] }
 0xa90   : > { %3204 = vmatprep.subr.bf16.mxu0 %v9024_v11 }
 0xa93   : > { %3205 = vmatpush1.bf16.msra.mxu0 %v9025_v44 }
 0xa94   : > { %3206 = vmatprep.subr.bf16.mxu0 %v9026_v1 }
 0xa97   : > { %3207 = vmatpush1.bf16.msra.mxu0 %v9027_v23 }
 0xa98   : > { %3208 = vmatprep.subr.bf16.mxu0 %v9028_v54 }
 0xa9b   : > { %3209 = vmatpush1.bf16.msra.mxu0 %v9029_v2 }
 0xa9c   : > { %3260 = vmatprep.subr.bf16.mxu0 %v9030_v6 }
 0xad1   : > { %v2918_v27 = vpop.f32.mrb[64].mxu0  ;;  %v2959_v55 = vpop.f32.mrb[68].mxu1 }
 0xad2   : > { %v3113_v36 = vadd.f32 %v2918_v27, %v9031_v49  ;;  %v2920_v13 = vpop.f32.mrb[65].mxu0  ;;  %v2961_v30 = vpop.f32.mrb[69].mxu1  ;;  %v3127_v27 = vadd.f32 %v7463_v3, %v2959_v55 }
 0xad3   : > { %v3114_v11 = vadd.f32 %v2920_v13, %v9032_v58  ;;  %v2922_v40 = vpop.f32.mrb[66].mxu0  ;;  %v2963_v44 = vpop.f32.mrb[70].mxu1 }
 0xad4   : > { %v4026_v15 = vmul.f32 -1.442695, %v3113_v36  ;;  %v2923_v1 = vpop.f32.mrb[67].mxu0  ;;  %v2964_v5 = vpop.f32.mrb[71].mxu1  ;;  %v9034_v40 = vld [vmem:[#allocation43_spill] sm:$0xff] }
 0xad5   : > { %v4027_v23 = vmul.f32 -1.442695, %v3114_v11 }
 0xad6   : > { %4734 = vpow2.f32 %v4026_v15 }
 0xad7   : > { %4736 = vpow2.f32 %v4027_v23 }
 0xae0   : > { %v4735_v54 = vpop.eup %4734 }
 0xae1   : > { %v3121_v2 = vadd.f32 1.0, %v4735_v54  ;;  %v4737_v6 = vpop.eup %4736  ;;  %v3088_v54 = vadd.f32 %v2961_v30, %v6101_v50 }
 0xae2   : > { %v3122_v33 = vadd.f32 1.0, %v4737_v6 }
 0xae3   : > { %4738 = vrcp.f32 %v3121_v2 }
 0xae4   : > { %4740 = vrcp.f32 %v3122_v33 }
 0xaed   : > { %v4739_v49 = vpop.eup %4738 }
 0xaee   : > { %v3128_v34 = vmul.f32 %v4739_v49, %v3127_v27  ;;  %v4741_v44 = vpop.eup %4740 }
 0xaef   : > { %v3131_v5 = vsub.f32 1.0, %v4741_v44  ;;  %v3133_v11 = vmul.f32 %v4741_v44, %v7238_v20 }
 0xaf0   : > { %v3129_v58 = vadd.f32 %v3128_v34, %v9034_v40 }
 0xaf2   : > { %4742 = vtanh.f32 %v3129_v58 }
 0xafc   : > { %v4743_v15 = vpop.eup %4742 }
 0xafd   : > { %v3132_v1 = vmul.f32 %v4743_v15, %v3131_v5 }
 0xaff   : > { %v7468_v23 = vadd.f32 %v3133_v11, %v3132_v1 }
 0xb11   : > { %v3000_v2 = vpop.f32.mrb[68].mxu0  ;;  %v3041_v6 = vpop.f32.mrb[72].mxu1 }
 0xb12   : > { %v3089_v55 = vadd.f32 %v3000_v2, %v8935_v52  ;;  %v3091_v36 = vadd.f32 %v3088_v54, %v3041_v6  ;;  %v3002_v13 = vpop.f32.mrb[69].mxu0  ;;  %v3043_v33 = vpop.f32.mrb[73].mxu1 }
 0xb13   : > { %v3004_v27 = vpop.f32.mrb[70].mxu0  ;;  %v3045_v34 = vpop.f32.mrb[74].mxu1 }
 0xb14   : > { %v3092_v49 = vadd.f32 %v3089_v55, %v3043_v33  ;;  %v3005_v40 = vpop.f32.mrb[71].mxu0  ;;  %v3046_v58 = vpop.f32.mrb[75].mxu1  ;;  %v4024_v3 = vmul.f32 -1.442695, %v3091_v36  ;;  %v3090_v55 = vadd.f32 %v3002_v13, %v6113_v37  ;;  %v9036_v13 = vld [vmem:[#allocation111_spill] sm:$0xff] }
 0xb16   : > { %4744 = vpow2.f32 %v4024_v3  ;;  %v4025_v20 = vmul.f32 -1.442695, %v3092_v49 }
 0xb18   : > { %4746 = vpow2.f32 %v4025_v20 }
 0xb20   : > { %v4745_v44 = vpop.eup %4744 }
 0xb21   : > { %v3099_v5 = vadd.f32 1.0, %v4745_v44 }
 0xb22   : > { %v4747_v30 = vpop.eup %4746 }
 0xb23   : > { %4748 = vrcp.f32 %v3099_v5  ;;  %v3100_v1 = vadd.f32 1.0, %v4747_v30  ;;  %v9037_v30 = vld [vmem:[#allocation14_spill] sm:$0xff] }
 0xb25   : > { %4750 = vrcp.f32 %v3100_v1  ;;  %v9040_v1 = vld [vmem:[#allocation113_spill] sm:$0xff] }
 0xb2d   : > { %v4749_v34 = vpop.eup %4748 }
 0xb2f   : > { %v4751_v33 = vpop.eup %4750 }
 0xb30   : > { %v3109_v49 = vsub.f32 1.0, %v4751_v33  ;;  %v3111_v58 = vmul.f32 %v4751_v33, %v7245_v21  ;;  %v9035_v21 = vld [vmem:[#allocation110_spill] sm:$0xff]  ;;  %v7535_v33 = vld [vmem:[#allocation4 + $0x250] ss:$36 sps:$4 sm:$0xff]  }
 0xb31   : > { %v4186_v15 = vpop.f32.mrb[72].mxu0 }
 0xb32   : > { %v4187_v11 = vpop.f32.mrb[73].mxu0 }
 0xb33   : > { %v4188_v2 = vadd.f32 %v4187_v11, %v4186_v15  ;;  %v4189_v54 = vpop.f32.mrb[74].mxu0  ;;  %v9038_v15 = vld [vmem:[#allocation31_spill] sm:$0xff]  ;;  %v9039_v11 = vld [vmem:[#allocation112_spill] sm:$0xff] }
 0xb34   : > { %v4190_v6 = vpop.f32.mrb[75].mxu0  ;;  %v9042_v54 = vld [vmem:[#allocation15_spill] sm:$0xff] }
 0xb35   : > { %v3105_v27 = vadd.f32 %v6932_v56, %v4188_v2  ;;  %v7483_v56 = vpack.c.bf16 %v7468_v23, %v7468_v23  ;;  %v9041_v2 = vld [vmem:[#allocation33_spill] sm:$0xff]  ;;  %v7517_v6 = vld [vmem:[#allocation4 + $0x20c] ss:$36 sps:$4 sm:$0xff]  }
 0xb37   : > { %v3106_v36 = vmul.f32 %v4749_v34, %v3105_v27  ;;  %v7520_v27 = vld [vmem:[#allocation4 + $0x214] ss:$36 sps:$4 sm:$0xff]   ;;  %v7523_v34 = vld [vmem:[#allocation4 + $0x208] ss:$36 sps:$4 sm:$0xff]  }
 0xb38   : > { %9043 = vst [vmem:[#allocation116_spill] sm:$0xff] %v7520_v27 }
 0xb39   : > { %v3107_v3 = vadd.f32 %v3106_v36, %v3090_v55  ;;  %v7526_v55 = vld [vmem:[#allocation4 + $0x210] ss:$36 sps:$4 sm:$0xff]  }
 0xb3a   : > { %9044 = vst [vmem:[#allocation117_spill] sm:$0xff] %v7526_v55  ;;  %v7529_v36 = vld [vmem:[#allocation4 + $0x254] ss:$36 sps:$4 sm:$0xff]  }
 0xb3b   : > { %4752 = vtanh.f32 %v3107_v3  ;;  %v7532_v3 = vld [vmem:[#allocation4 + $0x25c] ss:$36 sps:$4 sm:$0xff]  }
 0xb3c   : > { %9045 = vst [vmem:[#allocation18_spill] sm:$0xff] %v7532_v3 }
 0xb45   : > { %v4753_v40 = vpop.eup %4752 }
 0xb46   : > { %v3110_v20 = vmul.f32 %v4753_v40, %v3109_v49  ;;  %v7538_v49 = vld [vmem:[#allocation4 + $0x258] ss:$36 sps:$4 sm:$0xff]  }
 0xb47   : > { %9046 = vst [vmem:[#allocation19_spill] sm:$0xff] %v7538_v49  ;;  %v7541_v40 = vld [vmem:[#allocation4 + $0x29c] ss:$36 sps:$4 sm:$0xff]  }
 0xb48   : > { %v7475_v44 = vadd.f32 %v3111_v58, %v3110_v20  ;;  %v7544_v58 = vld [vmem:[#allocation4 + $0x2a4] ss:$36 sps:$4 sm:$0xff]   ;;  %v7547_v20 = vld [vmem:[#allocation4 + $0x298] ss:$36 sps:$4 sm:$0xff]  }
 0xb49   : > { %9047 = vst [vmem:[#allocation118_spill] sm:$0xff] %v7544_v58 }
 0xb4a   : > { %v7479_v5 = vpack.c.bf16 %v7475_v44, %v7475_v44 }
 0xb4c   : > { %3169 = vmatprep.mubr.bf16.mxu1 %v7479_v5  ;;  %3210 = vmatprep.mubr.bf16.mxu0 %v7479_v5 }
 0xb4d   : > { %3170 = vmatmul.mubr.bf16.vlgmr.msra.gmra.mrb[76].mxu1 %v7483_v56  ;;  %3211 = vmatmul.mubr.bf16.vlgmr.msra.gmra.mrb[76].mxu0 %v7483_v56 }
 0xb4e   : > { %3220 = vmatpush1.bf16.msra.mxu1 %v7259_v41  ;;  %3261 = vmatpush1.bf16.msra.mxu0 %v7262_v35 }
 0xb4f   : > { %3251 = vmatprep.mubr.bf16.mxu1 %v7479_v5  ;;  %3292 = vmatprep.mubr.bf16.mxu0 %v7479_v5 }
 0xb50   : > { %3221 = vmatprep.subr.bf16.mxu1 %v7267_v17  ;;  %3262 = vmatprep.subr.bf16.mxu0 %v7270_v9 }
 0xb52   : > { %3222 = vmatpush1.bf16.msra.mxu1 %v7273_v19  ;;  %3263 = vmatpush1.bf16.msra.mxu0 %v7276_v8  ;;  %v7625_v8 = vld [vmem:[#allocation4 + $0x260] ss:$36 sps:$4 sm:$0xff]  }
 0xb53   : > { %3223 = vmatprep.subr.bf16.mxu1 %v7279_v31  ;;  %3264 = vmatprep.subr.bf16.mxu0 %v7282_v0  ;;  %v7619_v0 = vld [vmem:[#allocation4 + $0x448] ss:$36 sps:$4 sm:$0xff]  }
 0xb56   : > { %3224 = vmatpush1.bf16.msra.mxu1 %v7285_v43  ;;  %3265 = vmatpush1.bf16.msra.mxu0 %v7288_v60  ;;  %v7613_v60 = vld [vmem:[#allocation4 + $0x44c] ss:$36 sps:$4 sm:$0xff]  }
 0xb57   : > { %3225 = vmatprep.subr.bf16.mxu1 %v7291_v25  ;;  %3266 = vmatprep.subr.bf16.mxu0 %v7294_v22  ;;  %v7607_v22 = vld [vmem:[#allocation4 + $0x400] ss:$36 sps:$4 sm:$0xff]  }
 0xb5a   : > { %3226 = vmatpush1.bf16.msra.mxu1 %v9035_v21  ;;  %3267 = vmatpush1.bf16.msra.mxu0 %v9036_v13  ;;  %v7601_v13 = vld [vmem:[#allocation4 + $0x404] ss:$36 sps:$4 sm:$0xff]  }
 0xb5b   : > { %3227 = vmatprep.subr.bf16.mxu1 %v9037_v30  ;;  %3268 = vmatprep.subr.bf16.mxu0 %v9038_v15  ;;  %v7595_v15 = vld [vmem:[#allocation4 + $0x3b8] ss:$36 sps:$4 sm:$0xff]  }
 0xb5e   : > { %3228 = vmatpush1.bf16.msra.mxu1 %v9039_v11  ;;  %3269 = vmatpush1.bf16.msra.mxu0 %v9040_v1  ;;  %v7589_v1 = vld [vmem:[#allocation4 + $0x3bc] ss:$36 sps:$4 sm:$0xff]  }
 0xb5f   : > { %3229 = vmatprep.subr.bf16.mxu1 %v9041_v2  ;;  %3270 = vmatprep.subr.bf16.mxu0 %v9042_v54  ;;  %v7583_v54 = vld [vmem:[#allocation4 + $0x370] ss:$36 sps:$4 sm:$0xff]  }
 0xb62   : > { %3230 = vmatpush1.bf16.msra.mxu1 %v7321_v42  ;;  %3271 = vmatpush1.bf16.msra.mxu0 %v7324_v48  ;;  %v7577_v48 = vld [vmem:[#allocation4 + $0x374] ss:$36 sps:$4 sm:$0xff]  }
 0xb63   : > { %3231 = vmatprep.subr.bf16.mxu1 %v7327_v28  ;;  %3272 = vmatprep.subr.bf16.mxu0 %v7330_v51  ;;  %v7571_v51 = vld [vmem:[#allocation4 + $0x328] ss:$36 sps:$4 sm:$0xff]  }
 0xb66   : > { %3232 = vmatpush1.bf16.msra.mxu1 %v7333_v38  ;;  %3273 = vmatpush1.bf16.msra.mxu0 %v7336_v57  ;;  %v7565_v57 = vld [vmem:[#allocation4 + $0x32c] ss:$36 sps:$4 sm:$0xff]  }
 0xb67   : > { %3233 = vmatprep.subr.bf16.mxu1 %v7517_v6  ;;  %3274 = vmatprep.subr.bf16.mxu0 %v7520_v27  ;;  %v7559_v27 = vld [vmem:[#allocation4 + $0x2e0] ss:$36 sps:$4 sm:$0xff]  }
 0xb6a   : > { %3234 = vmatpush1.bf16.msra.mxu1 %v7523_v34  ;;  %3275 = vmatpush1.bf16.msra.mxu0 %v7526_v55  ;;  %v7553_v55 = vld [vmem:[#allocation4 + $0x2e4] ss:$36 sps:$4 sm:$0xff]  }
 0xb6b   : > { %3235 = vmatprep.subr.bf16.mxu1 %v7529_v36  ;;  %3276 = vmatprep.subr.bf16.mxu0 %v7532_v3  ;;  %v7550_v3 = vld [vmem:[#allocation4 + $0x2a0] ss:$36 sps:$4 sm:$0xff]  }
 0xb6c   : > { %9048 = vst [vmem:[#allocation51_spill] sm:$0xff] %v7550_v3 }
 0xb6e   : > { %3236 = vmatpush1.bf16.msra.mxu1 %v7535_v33  ;;  %3277 = vmatpush1.bf16.msra.mxu0 %v7538_v49  ;;  %v7556_v49 = vld [vmem:[#allocation4 + $0x2ec] ss:$36 sps:$4 sm:$0xff]  }
 0xb6f   : > { %3237 = vmatprep.subr.bf16.mxu1 %v7541_v40  ;;  %3278 = vmatprep.subr.bf16.mxu0 %v7544_v58  ;;  %9049 = vst [vmem:[#allocation52_spill] sm:$0xff] %v7556_v49  ;;  %v7562_v58 = vld [vmem:[#allocation4 + $0x2e8] ss:$36 sps:$4 sm:$0xff]  }
 0xb70   : > { %9050 = vst [vmem:[#allocation48_spill] sm:$0xff] %v7562_v58 }
 0xb72   : > { %3238 = vmatpush1.bf16.msra.mxu1 %v7547_v20  ;;  %3279 = vmatpush1.bf16.msra.mxu0 %v7550_v3  ;;  %v7568_v3 = vld [vmem:[#allocation4 + $0x334] ss:$36 sps:$4 sm:$0xff]  }
 0xb73   : > { %3239 = vmatprep.subr.bf16.mxu1 %v7553_v55  ;;  %3280 = vmatprep.subr.bf16.mxu0 %v7556_v49  ;;  %9051 = vst [vmem:[#allocation12_spill] sm:$0xff] %v7568_v3  ;;  %v7574_v49 = vld [vmem:[#allocation4 + $0x330] ss:$36 sps:$4 sm:$0xff]  }
 0xb74   : > { %9052 = vst [vmem:[#allocation119_spill] sm:$0xff] %v7574_v49 }
 0xb76   : > { %3240 = vmatpush1.bf16.msra.mxu1 %v7559_v27  ;;  %3281 = vmatpush1.bf16.msra.mxu0 %v7562_v58  ;;  %v7580_v58 = vld [vmem:[#allocation4 + $0x37c] ss:$36 sps:$4 sm:$0xff]  }
 0xb77   : > { %3241 = vmatprep.subr.bf16.mxu1 %v7565_v57  ;;  %3282 = vmatprep.subr.bf16.mxu0 %v7568_v3  ;;  %9053 = vst [vmem:[#allocation20_spill] sm:$0xff] %v7580_v58  ;;  %v7586_v3 = vld [vmem:[#allocation4 + $0x378] ss:$36 sps:$4 sm:$0xff]  }
 0xb78   : > { %9054 = vst [vmem:[#allocation97_spill] sm:$0xff] %v7586_v3 }
 0xb7a   : > { %3242 = vmatpush1.bf16.msra.mxu1 %v7571_v51  ;;  %3283 = vmatpush1.bf16.msra.mxu0 %v7574_v49  ;;  %v7592_v49 = vld [vmem:[#allocation4 + $0x3c4] ss:$36 sps:$4 sm:$0xff]  }
 0xb7b   : > { %3243 = vmatprep.subr.bf16.mxu1 %v7577_v48  ;;  %3284 = vmatprep.subr.bf16.mxu0 %v7580_v58  ;;  %9055 = vst [vmem:[#allocation98_spill] sm:$0xff] %v7592_v49  ;;  %v7598_v58 = vld [vmem:[#allocation4 + $0x3c0] ss:$36 sps:$4 sm:$0xff]  }
 0xb7c   : > { %9056 = vst [vmem:[#allocation21_spill] sm:$0xff] %v7598_v58 }
 0xb7e   : > { %3244 = vmatpush1.bf16.msra.mxu1 %v7583_v54  ;;  %3285 = vmatpush1.bf16.msra.mxu0 %v7586_v3  ;;  %v7604_v3 = vld [vmem:[#allocation4 + $0x40c] ss:$36 sps:$4 sm:$0xff]  }
 0xb7f   : > { %3245 = vmatprep.subr.bf16.mxu1 %v7589_v1  ;;  %3286 = vmatprep.subr.bf16.mxu0 %v7592_v49  ;;  %9057 = vst [vmem:[#allocation120_spill] sm:$0xff] %v7604_v3  ;;  %v7610_v49 = vld [vmem:[#allocation4 + $0x408] ss:$36 sps:$4 sm:$0xff]  }
 0xb80   : > { %9058 = vst [vmem:[#allocation99_spill] sm:$0xff] %v7610_v49 }
 0xb82   : > { %3246 = vmatpush1.bf16.msra.mxu1 %v7595_v15  ;;  %3287 = vmatpush1.bf16.msra.mxu0 %v7598_v58  ;;  %v7616_v58 = vld [vmem:[#allocation4 + $0x454] ss:$36 sps:$4 sm:$0xff]  }
 0xb83   : > { %3247 = vmatprep.subr.bf16.mxu1 %v7601_v13  ;;  %3288 = vmatprep.subr.bf16.mxu0 %v7604_v3  ;;  %9059 = vst [vmem:[#allocation100_spill] sm:$0xff] %v7616_v58  ;;  %v7622_v3 = vld [vmem:[#allocation4 + $0x450] ss:$36 sps:$4 sm:$0xff]  }
 0xb84   : > { %9060 = vst [vmem:[#allocation121_spill] sm:$0xff] %v7622_v3 }
 0xb86   : > { %3248 = vmatpush1.bf16.msra.mxu1 %v7607_v22  ;;  %3289 = vmatpush1.bf16.msra.mxu0 %v7610_v49  ;;  %v7631_v49 = vld [vmem:[#allocation4 + $0x20] ss:$36 sps:$4 sm:$0xff]  }
 0xb87   : > { %3249 = vmatprep.subr.bf16.mxu1 %v7613_v60  ;;  %3290 = vmatprep.subr.bf16.mxu0 %v7616_v58  ;;  %v7635_v58 = vld [vmem:[#allocation4 + $0x2a8] ss:$36 sps:$4 sm:$0xff]  }
 0xb88   : > { %9061 = vst [vmem:[#allocation22_spill] sm:$0xff] %v7635_v58 }
 0xb8a   : > { %3250 = vmatpush1.bf16.msra.mxu1 %v7619_v0  ;;  %3291 = vmatpush1.bf16.msra.mxu0 %v7622_v3  ;;  %v7640_v3 = vld [vmem:[#allocation4 + $0x68] ss:$36 sps:$4 sm:$0xff]  }
 0xb8b   : > { %4192 = vmatprep.subr.bf16.mxu1 %v7625_v8  ;;  %3390 = vmatprep.subr.bf16.mxu0 %v8980_v45  ;;  %v7643_v45 = vld [vmem:[#allocation4 + $0x2f0] ss:$36 sps:$4 sm:$0xff]  }
 0xb8d   : > { %3252 = vmatmul.mubr.bf16.vlgmr.msra.gmra.mrb[80].mxu1 %v7483_v56  ;;  %3293 = vmatmul.mubr.bf16.vlgmr.msra.gmra.mrb[80].mxu0 %v7483_v56 }
 0xb8e   : > { %4193 = vmatpush3.bf16.msra.mxu1 %v7631_v49  ;;  %3333 = vmatprep.mubr.bf16.mxu1 %v7479_v5  ;;  %v7648_v5 = vld [vmem:[#allocation4 + $0xb0] ss:$36 sps:$4 sm:$0xff]  }
 0xb8f   : > { %4194 = vmatprep.subr.bf16.mxu1 %v7635_v58  ;;  %3391 = vmatpush1.bf16.msra.mxu0 %v8983_v10  ;;  %v7651_v58 = vld [vmem:[#allocation4 + $0x338] ss:$36 sps:$4 sm:$0xff]  }
 0xb90   : > { %3392 = vmatprep.subr.bf16.mxu0 %v8984_v24  ;;  %v7656_v10 = vld [vmem:[#allocation4 + $0xf8] ss:$36 sps:$4 sm:$0xff]   ;;  %v7659_v24 = vld [vmem:[#allocation4 + $0x380] ss:$36 sps:$4 sm:$0xff]  }
 0xb92   : > { %4195 = vmatpush3.bf16.msra.mxu1 %v7640_v3 }
 0xb93   : > { %4196 = vmatprep.subr.bf16.mxu1 %v7643_v45  ;;  %3393 = vmatpush1.bf16.msra.mxu0 %v8987_v4  ;;  %v7664_v4 = vld [vmem:[#allocation4 + $0x140] ss:$36 sps:$4 sm:$0xff]  }
 0xb94   : > { %3394 = vmatprep.subr.bf16.mxu0 %v8988_v62  ;;  %v7667_v62 = vld [vmem:[#allocation4 + $0x3c8] ss:$36 sps:$4 sm:$0xff]  }
 0xb96   : > { %4197 = vmatpush3.bf16.msra.mxu1 %v7648_v5 }
 0xb97   : > { %4198 = vmatprep.subr.bf16.mxu1 %v7651_v58  ;;  %3395 = vmatpush1.bf16.msra.mxu0 %v8991_v61  ;;  %v7672_v61 = vld [vmem:[#allocation4 + $0x188] ss:$36 sps:$4 sm:$0xff]  }
 0xb98   : > { %3396 = vmatprep.subr.bf16.mxu0 %v8992_v39  ;;  %v7675_v39 = vld [vmem:[#allocation4 + $0x410] ss:$36 sps:$4 sm:$0xff]  }
 0xb9a   : > { %4199 = vmatpush3.bf16.msra.mxu1 %v7656_v10 }
 0xb9b   : > { %4200 = vmatprep.subr.bf16.mxu1 %v7659_v24  ;;  %3397 = vmatpush1.bf16.msra.mxu0 %v8995_v47  ;;  %v7680_v47 = vld [vmem:[#allocation4 + $0x1d0] ss:$36 sps:$4 sm:$0xff]  }
 0xb9c   : > { %3398 = vmatprep.subr.bf16.mxu0 %v8996_v18  ;;  %v7683_v18 = vld [vmem:[#allocation4 + $0x458] ss:$36 sps:$4 sm:$0xff]  }
 0xb9e   : > { %4201 = vmatpush3.bf16.msra.mxu1 %v7664_v4 }
 0xb9f   : > { %4202 = vmatprep.subr.bf16.mxu1 %v7667_v62  ;;  %3399 = vmatpush1.bf16.msra.mxu0 %v8999_v53  ;;  %v7688_v53 = vld [vmem:[#allocation4 + $0x218] ss:$36 sps:$4 sm:$0xff]  }
 0xba0   : > { %3400 = vmatprep.subr.bf16.mxu0 %v9000_v46  ;;  %v9062_v46 = vld [vmem:[#allocation94_spill] sm:$0xff] }
 0xba2   : > { %4203 = vmatpush3.bf16.msra.mxu1 %v7672_v61 }
 0xba3   : > { %4204 = vmatprep.subr.bf16.mxu1 %v7675_v39  ;;  %3401 = vmatpush1.bf16.msra.mxu0 %v9003_v7  ;;  %v9063_v7 = vld [vmem:[#allocation95_spill] sm:$0xff] }
 0xba4   : > { %3402 = vmatprep.subr.bf16.mxu0 %v9004_v16  ;;  %v9064_v16 = vld [vmem:[#allocation96_spill] sm:$0xff] }
 0xba6   : > { %4205 = vmatpush3.bf16.msra.mxu1 %v7680_v47 }
 0xba7   : > { %4206 = vmatprep.subr.bf16.mxu1 %v7683_v18  ;;  %3403 = vmatpush1.bf16.msra.mxu0 %v9007_v63  ;;  %v9071_v63 = vld [vmem:[#allocation107_spill] sm:$0xff] }
 0xba8   : > { %3404 = vmatprep.subr.bf16.mxu0 %v9008_v29  ;;  %v9072_v29 = vld [vmem:[#allocation41_spill] sm:$0xff] }
 0xbaa   : > { %4207 = vmatpush3.bf16.msra.mxu1 %v7688_v53 }
 0xbab   : > { %3430 = vmatprep.subr.bf16.mxu1 %v9014_v14  ;;  %3405 = vmatpush1.bf16.msra.mxu0 %v9011_v59  ;;  %v9073_v59 = vld [vmem:[#allocation42_spill] sm:$0xff] }
 0xbac   : > { %3406 = vmatprep.subr.bf16.mxu0 %v9012_v32  ;;  %v9074_v32 = vld [vmem:[#allocation36_spill] sm:$0xff] }
 0xbad   : > { %3334 = vmatmul.mubr.bf16.vlgmr.msra.gmra.mrb[84].mxu1 %v7483_v56 }
 0xbae   : > { %3431 = vmatpush1.bf16.msra.mxu1 %v7259_v41  ;;  %v9065_v41 = vld [vmem:[#allocation49_spill] sm:$0xff] }
 0xbaf   : > { %3432 = vmatprep.subr.bf16.mxu1 %v7267_v17  ;;  %3407 = vmatpush1.bf16.msra.mxu0 %v9015_v26  ;;  %v9066_v17 = vld [vmem:[#allocation50_spill] sm:$0xff]  ;;  %v9077_v26 = vld [vmem:[#allocation56_spill] sm:$0xff] }
 0xbb0   : > { %3408 = vmatprep.subr.bf16.mxu0 %v9016_v12 }
 0xbb2   : > { %3433 = vmatpush1.bf16.msra.mxu1 %v7273_v19  ;;  %v9067_v19 = vld [vmem:[#allocation104_spill] sm:$0xff] }
 0xbb3   : > { %3434 = vmatprep.subr.bf16.mxu1 %v7279_v31  ;;  %3409 = vmatpush1.bf16.msra.mxu0 %v9062_v46  ;;  %v9068_v31 = vld [vmem:[#allocation45_spill] sm:$0xff] }
 0xbb4   : > { %3410 = vmatprep.subr.bf16.mxu0 %v9063_v7 }
 0xbb6   : > { %3435 = vmatpush1.bf16.msra.mxu1 %v7285_v43  ;;  %v9069_v43 = vld [vmem:[#allocation105_spill] sm:$0xff] }
 0xbb7   : > { %3436 = vmatprep.subr.bf16.mxu1 %v7291_v25  ;;  %3411 = vmatpush1.bf16.msra.mxu0 %v9064_v16  ;;  %v9070_v25 = vld [vmem:[#allocation106_spill] sm:$0xff] }
 0xbb8   : > { %3412 = vmatprep.subr.bf16.mxu0 %v9065_v41 }
 0xbba   : > { %3437 = vmatpush1.bf16.msra.mxu1 %v9035_v21 }
 0xbbb   : > { %3438 = vmatprep.subr.bf16.mxu1 %v9037_v30  ;;  %3413 = vmatpush1.bf16.msra.mxu0 %v9066_v17 }
 0xbbc   : > { %3414 = vmatprep.subr.bf16.mxu0 %v9067_v19 }
 0xbbe   : > { %3439 = vmatpush1.bf16.msra.mxu1 %v9039_v11 }
 0xbbf   : > { %3440 = vmatprep.subr.bf16.mxu1 %v9041_v2  ;;  %3415 = vmatpush1.bf16.msra.mxu0 %v9068_v31 }
 0xbc0   : > { %3416 = vmatprep.subr.bf16.mxu0 %v9069_v43 }
 0xbc2   : > { %3441 = vmatpush1.bf16.msra.mxu1 %v7321_v42  ;;  %v9075_v42 = vld [vmem:[#allocation27_spill] sm:$0xff] }
 0xbc3   : > { %3442 = vmatprep.subr.bf16.mxu1 %v7327_v28  ;;  %3417 = vmatpush1.bf16.msra.mxu0 %v9070_v25  ;;  %v9076_v28 = vld [vmem:[#allocation55_spill] sm:$0xff] }
 0xbc4   : > { %3418 = vmatprep.subr.bf16.mxu0 %v9071_v63 }
 0xbc6   : > { %3443 = vmatpush1.bf16.msra.mxu1 %v7333_v38 }
 0xbc7   : > { %3444 = vmatprep.subr.bf16.mxu1 %v7517_v6  ;;  %3419 = vmatpush1.bf16.msra.mxu0 %v9072_v29 }
 0xbc8   : > { %3420 = vmatprep.subr.bf16.mxu0 %v9073_v59 }
 0xbca   : > { %3445 = vmatpush1.bf16.msra.mxu1 %v7523_v34 }
 0xbcb   : > { %3446 = vmatprep.subr.bf16.mxu1 %v7529_v36  ;;  %3421 = vmatpush1.bf16.msra.mxu0 %v9074_v32 }
 0xbcc   : > { %3471 = vmatprep.subr.bf16.mxu0 %v9075_v42 }
 0xbce   : > { %3447 = vmatpush1.bf16.msra.mxu1 %v7535_v33 }
 0xbcf   : > { %3448 = vmatprep.subr.bf16.mxu1 %v7541_v40 }
 0xbd2   : > { %3449 = vmatpush1.bf16.msra.mxu1 %v7547_v20 }
 0xbd3   : > { %3450 = vmatprep.subr.bf16.mxu1 %v7553_v55 }
 0xbd6   : > { %3451 = vmatpush1.bf16.msra.mxu1 %v7559_v27  ;;  %v9079_v27 = vld [vmem:[#allocation47_spill] sm:$0xff] }
 0xbd7   : > { %3452 = vmatprep.subr.bf16.mxu1 %v7565_v57 }
 0xbda   : > { %3453 = vmatpush1.bf16.msra.mxu1 %v7571_v51 }
 0xbdb   : > { %3454 = vmatprep.subr.bf16.mxu1 %v7577_v48 }
 0xbde   : > { %3455 = vmatpush1.bf16.msra.mxu1 %v7583_v54 }
 0xbdf   : > { %3456 = vmatprep.subr.bf16.mxu1 %v7589_v1  ;;  %v9078_v1 = vld [vmem:[#allocation17_spill] sm:$0xff] }
 0xbe2   : > { %3457 = vmatpush1.bf16.msra.mxu1 %v7595_v15 }
 0xbe3   : > { %3458 = vmatprep.subr.bf16.mxu1 %v7601_v13 }
 0xbe6   : > { %3459 = vmatpush1.bf16.msra.mxu1 %v7607_v22 }
 0xbe7   : > { %3460 = vmatprep.subr.bf16.mxu1 %v7613_v60 }
 0xbea   : > { %3461 = vmatpush1.bf16.msra.mxu1 %v7619_v0 }
 0xbeb   : > { %4214 = vmatprep.subr.bf16.mxu1 %v7625_v8 }
 0xc20   : > { %v3171_v38 = vpop.f32.mrb[76].mxu1  ;;  %v3212_v57 = vpop.f32.mrb[76].mxu0 }
 0xc21   : > { %v3366_v48 = vadd.f32 %v3171_v38, %v9076_v28  ;;  %v3173_v51 = vpop.f32.mrb[77].mxu1  ;;  %v3214_v14 = vpop.f32.mrb[77].mxu0  ;;  %v3380_v2 = vadd.f32 %v9078_v1, %v3212_v57 }
 0xc22   : > { %v3367_v12 = vadd.f32 %v3173_v51, %v9077_v26  ;;  %v3175_v56 = vpop.f32.mrb[78].mxu1  ;;  %v3216_v21 = vpop.f32.mrb[78].mxu0  ;;  %v3341_v7 = vadd.f32 %v3214_v14, %v6101_v50 }
 0xc23   : > { %v4030_v30 = vmul.f32 -1.442695, %v3366_v48  ;;  %v3176_v13 = vpop.f32.mrb[79].mxu1  ;;  %v3217_v15 = vpop.f32.mrb[79].mxu0  ;;  %v7750_v21 = vld [vmem:[#allocation7 + $0x3] ss:$0 sm:$0xff] }
 0xc24   : > { %v4031_v22 = vmul.f32 -1.442695, %v3367_v12 }
 0xc25   : > { %4754 = vpow2.f32 %v4030_v30 }
 0xc26   : > { %4756 = vpow2.f32 %v4031_v22 }
 0xc2f   : > { %v4755_v60 = vpop.eup %4754 }
 0xc30   : > { %v3374_v0 = vadd.f32 1.0, %v4755_v60  ;;  %v4757_v8 = vpop.eup %4756 }
 0xc31   : > { %v3375_v11 = vadd.f32 1.0, %v4757_v8 }
 0xc32   : > { %4758 = vrcp.f32 %v3374_v0 }
 0xc33   : > { %4760 = vrcp.f32 %v3375_v11 }
 0xc3c   : > { %v4759_v54 = vpop.eup %4758 }
 0xc3d   : > { %v3381_v6 = vmul.f32 %v4759_v54, %v3380_v2  ;;  %v4761_v55 = vpop.eup %4760 }
 0xc3e   : > { %v3384_v36 = vsub.f32 1.0, %v4761_v55  ;;  %v3386_v20 = vmul.f32 %v4761_v55, %v7468_v23  ;;  %v9082_v55 = vld [vmem:[#allocation109_spill] sm:$0xff] }
 0xc3f   : > { %v3382_v34 = vadd.f32 %v3381_v6, %v9079_v27 }
 0xc41   : > { %4762 = vtanh.f32 %v3382_v34  ;;  %v9080_v34 = vld [vmem:[#allocation22_spill] sm:$0xff] }
 0xc4b   : > { %v4763_v33 = vpop.eup %4762 }
 0xc4c   : > { %v3385_v40 = vmul.f32 %v4763_v33, %v3384_v36  ;;  %v9083_v36 = vld [vmem:[#allocation29_spill] sm:$0xff]  ;;  %v9095_v33 = vmov 0.0  }
 0xc4e   : > { %v3387_v46 = vadd.f32 %v3386_v20, %v3385_v40  ;;  %v9099_v40 = vld [vmem:[#allocation52_spill] sm:$0xff] }
 0xc4f   : > { %v9101_v20 = vld [vmem:[#allocation12_spill] sm:$0xff] }
 0xc50   : > { %v3388_v27 = vpack.c.bf16 %v3387_v46, %v3387_v46  ;;  %v9103_v46 = vld [vmem:[#allocation20_spill] sm:$0xff] }
 0xc60   : > { %v3253_v16 = vpop.f32.mrb[80].mxu1  ;;  %v3294_v41 = vpop.f32.mrb[80].mxu0 }
 0xc61   : > { %v3342_v17 = vadd.f32 %v3253_v16, %v8935_v52  ;;  %v3344_v19 = vadd.f32 %v3341_v7, %v3294_v41  ;;  %v3255_v31 = vpop.f32.mrb[81].mxu1  ;;  %v3296_v43 = vpop.f32.mrb[81].mxu0  ;;  %v9104_v7 = vld [vmem:[#allocation97_spill] sm:$0xff]  ;;  %v9105_v16 = vld [vmem:[#allocation98_spill] sm:$0xff] }
 0xc62   : > { %v3257_v25 = vpop.f32.mrb[82].mxu1  ;;  %v3298_v63 = vpop.f32.mrb[82].mxu0  ;;  %v3343_v15 = vadd.f32 %v3255_v31, %v6113_v37  ;;  %v9106_v41 = vld [vmem:[#allocation21_spill] sm:$0xff]  ;;  %v9109_v31 = vld [vmem:[#allocation100_spill] sm:$0xff] }
 0xc63   : > { %v3345_v29 = vadd.f32 %v3342_v17, %v3296_v43  ;;  %v3258_v59 = vpop.f32.mrb[83].mxu1  ;;  %v3299_v32 = vpop.f32.mrb[83].mxu0  ;;  %v4028_v42 = vmul.f32 -1.442695, %v3344_v19  ;;  %v9107_v17 = vld [vmem:[#allocation120_spill] sm:$0xff]  ;;  %v9108_v19 = vld [vmem:[#allocation99_spill] sm:$0xff] }
 0xc64   : > { %v9110_v43 = vld [vmem:[#allocation121_spill] sm:$0xff]  ;;  %v4610_v25 = vld [vmem:[#allocation6 + $0x48] ss:$12 sps:$4 sm:$0xff]   ;;  %v4611_v63 = vld [vmem:[#allocation6 + $0x60] ss:$12 sps:$4 sm:$0xff]  }
 0xc65   : > { %4764 = vpow2.f32 %v4028_v42  ;;  %v4029_v38 = vmul.f32 -1.442695, %v3345_v29  ;;  %v4612_v29 = vld [vmem:[#allocation6 + $0x78] ss:$12 sps:$4 sm:$0xff]   ;;  %v4613_v59 = vld [vmem:[#allocation6 + $0x90] ss:$12 sps:$4 sm:$0xff]  }
 0xc66   : > { %v4614_v32 = vld [vmem:[#allocation6 + $0xa8] ss:$12 sps:$4 sm:$0xff]   ;;  %v4615_v42 = vld [vmem:[#allocation6 + $0xc0] ss:$12 sps:$4 sm:$0xff]  }
 0xc67   : > { %4766 = vpow2.f32 %v4029_v38  ;;  %v4616_v38 = vld [vmem:[#allocation6 + $0xd8] ss:$12 sps:$4 sm:$0xff]  }
 0xc6f   : > { %v4765_v57 = vpop.eup %4764 }
 0xc70   : > { %v3352_v23 = vadd.f32 1.0, %v4765_v57  ;;  %v4617_v57 = vld [vmem:[#allocation6 + $0xf0] ss:$12 sps:$4 sm:$0xff]  }
 0xc71   : > { %v4767_v28 = vpop.eup %4766 }
 0xc72   : > { %4768 = vrcp.f32 %v3352_v23  ;;  %v3353_v14 = vadd.f32 1.0, %v4767_v28  ;;  %v4618_v23 = vld [vmem:[#allocation6 + $0x108] ss:$12 sps:$4 sm:$0xff]  }
 0xc74   : > { %4770 = vrcp.f32 %v3353_v14 }
 0xc7c   : > { %v4769_v13 = vpop.eup %4768 }
 0xc7e   : > { %v4771_v0 = vpop.eup %4770 }
 0xc7f   : > { %v3362_v8 = vsub.f32 1.0, %v4771_v0  ;;  %v3364_v2 = vmul.f32 %v4771_v0, %v7475_v44  ;;  %v9081_v44 = vld [vmem:[#allocation108_spill] sm:$0xff] }
 0xc80   : > { %v4208_v48 = vpop.f32.mrb[84].mxu1 }
 0xc81   : > { %v4209_v51 = vpop.f32.mrb[85].mxu1 }
 0xc82   : > { %v4210_v26 = vadd.f32 %v4209_v51, %v4208_v48  ;;  %v4211_v12 = vpop.f32.mrb[86].mxu1 }
 0xc83   : > { %v4212_v56 = vpop.f32.mrb[87].mxu1 }
 0xc84   : > { %v3358_v30 = vadd.f32 %v7750_v21, %v4210_v26 }
 0xc86   : > { %v3359_v22 = vmul.f32 %v4769_v13, %v3358_v30 }
 0xc88   : > { %v3360_v60 = vadd.f32 %v3359_v22, %v3343_v15 }
 0xc8a   : > { %4772 = vtanh.f32 %v3360_v60 }
 0xc94   : > { %v4773_v11 = vpop.eup %4772 }
 0xc95   : > { %v3363_v1 = vmul.f32 %v4773_v11, %v3362_v8 }
 0xc97   : > { %v7755_v54 = vadd.f32 %v3364_v2, %v3363_v1 }
 0xc99   : > { %v3389_v6 = vpack.c.bf16 %v7755_v54, %v7755_v54 }
 0xc9b   : > { %3422 = vmatprep.mubr.bf16.mxu0 %v3389_v6  ;;  %3462 = vmatprep.mubr.bf16.mxu1 %v3389_v6 }
 0xc9c   : > { %3423 = vmatmul.mubr.bf16.vlgmr.msra.gmra.mrb[84].mxu0 %v3388_v27  ;;  %3463 = vmatmul.mubr.bf16.vlgmr.msra.gmra.mrb[88].mxu1 %v3388_v27 }
 0xc9d   : > { %3472 = vmatpush1.bf16.msra.mxu0 %v7262_v35  ;;  %4215 = vmatpush3.bf16.msra.mxu1 %v7631_v49  ;;  %v9084_v35 = vld [vmem:[#allocation13_spill] sm:$0xff]  ;;  %v9085_v49 = vld [vmem:[#allocation111_spill] sm:$0xff] }
 0xc9e   : > { %3503 = vmatprep.mubr.bf16.mxu0 %v3389_v6  ;;  %3544 = vmatprep.mubr.bf16.mxu1 %v3389_v6 }
 0xc9f   : > { %3473 = vmatprep.subr.bf16.mxu0 %v7270_v9  ;;  %4216 = vmatprep.subr.bf16.mxu1 %v9080_v34  ;;  %v9086_v9 = vld [vmem:[#allocation31_spill] sm:$0xff] }
 0xca1   : > { %3474 = vmatpush1.bf16.msra.mxu0 %v9081_v44  ;;  %4217 = vmatpush3.bf16.msra.mxu1 %v7640_v3  ;;  %v9087_v3 = vld [vmem:[#allocation113_spill] sm:$0xff] }
 0xca2   : > { %3475 = vmatprep.subr.bf16.mxu0 %v9082_v55  ;;  %4218 = vmatprep.subr.bf16.mxu1 %v7643_v45  ;;  %v9088_v45 = vld [vmem:[#allocation15_spill] sm:$0xff] }
 0xca5   : > { %3476 = vmatpush1.bf16.msra.mxu0 %v9083_v36  ;;  %4219 = vmatpush3.bf16.msra.mxu1 %v7648_v5  ;;  %v9089_v5 = vld [vmem:[#allocation114_spill] sm:$0xff] }
 0xca6   : > { %3477 = vmatprep.subr.bf16.mxu0 %v9084_v35  ;;  %4220 = vmatprep.subr.bf16.mxu1 %v7651_v58  ;;  %v9090_v58 = vld [vmem:[#allocation115_spill] sm:$0xff] }
 0xca9   : > { %3478 = vmatpush1.bf16.msra.mxu0 %v9085_v49  ;;  %4221 = vmatpush3.bf16.msra.mxu1 %v7656_v10  ;;  %v9091_v10 = vld [vmem:[#allocation16_spill] sm:$0xff] }
 0xcaa   : > { %3479 = vmatprep.subr.bf16.mxu0 %v9086_v9  ;;  %4222 = vmatprep.subr.bf16.mxu1 %v7659_v24  ;;  %v9092_v24 = vld [vmem:[#allocation116_spill] sm:$0xff] }
 0xcad   : > { %3480 = vmatpush1.bf16.msra.mxu0 %v9087_v3  ;;  %4223 = vmatpush3.bf16.msra.mxu1 %v7664_v4  ;;  %v9093_v4 = vld [vmem:[#allocation117_spill] sm:$0xff] }
 0xcae   : > { %3481 = vmatprep.subr.bf16.mxu0 %v9088_v45  ;;  %4224 = vmatprep.subr.bf16.mxu1 %v7667_v62  ;;  %v9094_v62 = vld [vmem:[#allocation18_spill] sm:$0xff] }
 0xcb1   : > { %3482 = vmatpush1.bf16.msra.mxu0 %v9089_v5  ;;  %4225 = vmatpush3.bf16.msra.mxu1 %v7672_v61  ;;  %v9096_v61 = vld [vmem:[#allocation19_spill] sm:$0xff] }
 0xcb2   : > { %3483 = vmatprep.subr.bf16.mxu0 %v9090_v58  ;;  %4226 = vmatprep.subr.bf16.mxu1 %v7675_v39  ;;  %v9097_v39 = vld [vmem:[#allocation118_spill] sm:$0xff] }
 0xcb5   : > { %3484 = vmatpush1.bf16.msra.mxu0 %v9091_v10  ;;  %4227 = vmatpush3.bf16.msra.mxu1 %v7680_v47  ;;  %v9098_v47 = vld [vmem:[#allocation51_spill] sm:$0xff] }
 0xcb6   : > { %3485 = vmatprep.subr.bf16.mxu0 %v9092_v24  ;;  %4228 = vmatprep.subr.bf16.mxu1 %v7683_v18  ;;  %v9100_v18 = vld [vmem:[#allocation48_spill] sm:$0xff] }
 0xcb9   : > { %3486 = vmatpush1.bf16.msra.mxu0 %v9093_v4  ;;  %4229 = vmatpush3.bf16.msra.mxu1 %v7688_v53  ;;  %v9102_v53 = vld [vmem:[#allocation119_spill] sm:$0xff] }
 0xcba   : > { %3487 = vmatprep.subr.bf16.mxu0 %v9094_v62  ;;  %4278 = vmatprep.subr.bf16.mxu1 %v9095_v33 }
 0xcbc   : > { %3545 = vmatmul.mubr.bf16.vlgmr.msra.gmra.mrb[92].mxu1 %v3388_v27 }
 0xcbd   : > { %3488 = vmatpush1.bf16.msra.mxu0 %v9096_v61  ;;  %4294 = vmatprep.mubr.msk.bf16.mxu1 %vm5246_vm0, %v9095_v33 }
 0xcbe   : > { %3489 = vmatprep.subr.bf16.mxu0 %v9097_v39  ;;  %4279 = vmatpush3.bf16.msra.mxu1 %v4610_v25 }
 0xcbf   : > { %4280 = vmatprep.subr.bf16.mxu1 %v9095_v33 }
 0xcc1   : > { %3490 = vmatpush1.bf16.msra.mxu0 %v9098_v47  ;;  %v4619_v47 = vld [vmem:[#allocation6 + $0x120] ss:$12 sps:$4 sm:$0xff]  }
 0xcc2   : > { %3491 = vmatprep.subr.bf16.mxu0 %v9099_v40  ;;  %4281 = vmatpush3.bf16.msra.mxu1 %v4611_v63 }
 0xcc3   : > { %4282 = vmatprep.subr.bf16.mxu1 %v9095_v33 }
 0xcc5   : > { %3492 = vmatpush1.bf16.msra.mxu0 %v9100_v18 }
 0xcc6   : > { %3493 = vmatprep.subr.bf16.mxu0 %v9101_v20  ;;  %4283 = vmatpush3.bf16.msra.mxu1 %v4612_v29 }
 0xcc7   : > { %4284 = vmatprep.subr.bf16.mxu1 %v9095_v33 }
 0xcc9   : > { %3494 = vmatpush1.bf16.msra.mxu0 %v9102_v53 }
 0xcca   : > { %3495 = vmatprep.subr.bf16.mxu0 %v9103_v46  ;;  %4285 = vmatpush3.bf16.msra.mxu1 %v4613_v59 }
 0xccb   : > { %4286 = vmatprep.subr.bf16.mxu1 %v9095_v33 }
 0xccd   : > { %3496 = vmatpush1.bf16.msra.mxu0 %v9104_v7 }
 0xcce   : > { %3497 = vmatprep.subr.bf16.mxu0 %v9105_v16  ;;  %4287 = vmatpush3.bf16.msra.mxu1 %v4614_v32 }
 0xccf   : > { %4288 = vmatprep.subr.bf16.mxu1 %v9095_v33 }
 0xcd1   : > { %3498 = vmatpush1.bf16.msra.mxu0 %v9106_v41 }
 0xcd2   : > { %3499 = vmatprep.subr.bf16.mxu0 %v9107_v17  ;;  %4289 = vmatpush3.bf16.msra.mxu1 %v4615_v42 }
 0xcd3   : > { %4290 = vmatprep.subr.bf16.mxu1 %v9095_v33 }
 0xcd5   : > { %3500 = vmatpush1.bf16.msra.mxu0 %v9108_v19 }
 0xcd6   : > { %3501 = vmatprep.subr.bf16.mxu0 %v9109_v31  ;;  %4291 = vmatpush3.bf16.msra.mxu1 %v4616_v38 }
 0xcd7   : > { %4292 = vmatprep.subr.bf16.mxu1 %v9095_v33 }
 0xcd9   : > { %3502 = vmatpush1.bf16.msra.mxu0 %v9110_v43 }
 0xcda   : > { %4298 = vmatprep.subr.bf16.mxu0 %v9095_v33  ;;  %4293 = vmatpush3.bf16.msra.mxu1 %v4617_v57 }
 0xcdc   : > { %3504 = vmatmul.mubr.bf16.vlgmr.msra.gmra.mrb[88].mxu0 %v3388_v27 }
 0xcdd   : > { %4302 = vmatprep.mubr.msk.bf16.mxu0 %vm5246_vm0, %v9095_v33  ;;  %4299 = vmatpush3.bf16.msra.mxu0 %v4618_v23 }
 0xcde   : > { %4300 = vmatprep.subr.bf16.mxu0 %v9095_v33 }
 0xce1   : > { %4301 = vmatpush3.bf16.msra.mxu0 %v4619_v47 }
 0xd6f   : > { %v3424_v28 = vpop.f32.mrb[84].mxu0  ;;  %v3464_v48 = vpop.f32.mrb[88].mxu1 }
 0xd70   : > { %v3425_v51 = vpop.f32.mrb[85].mxu0  ;;  %v3466_v14 = vpop.f32.mrb[89].mxu1  ;;  %v3553_v11 = vadd.f32 %v3464_v48, %v8935_v52 }
 0xd71   : > { %v3427_v26 = vpop.f32.mrb[86].mxu0  ;;  %v3468_v12 = vpop.f32.mrb[90].mxu1  ;;  %v3552_v8 = vadd.f32 %v3425_v51, %v6101_v50  ;;  %v3554_v52 = vadd.f32 %v3466_v14, %v6113_v37 }
 0xd72   : > { %v3428_v56 = vpop.f32.mrb[87].mxu0  ;;  %v3469_v30 = vpop.f32.mrb[91].mxu1 }
 0xd8f   : > { %v4230_v13 = vpop.f32.mrb[92].mxu1 }
 0xd90   : > { %v4231_v15 = vpop.f32.mrb[93].mxu1 }
 0xd91   : > { %v4232_v22 = vadd.f32 %v4231_v15, %v4230_v13  ;;  %v4233_v60 = vpop.f32.mrb[94].mxu1 }
 0xd92   : > { %v4234_v0 = vpop.f32.mrb[95].mxu1 }
 0xd93   : > { %v3569_v45 = vadd.f32 %v7750_v21, %v4232_v22  ;;  %v469_v21 = vld [vmem:[#allocation7 + $0x6] ss:$0 sm:$0xff] }
 0xdaf   : > { %v3505_v1 = vpop.f32.mrb[88].mxu0 }
 0xdb0   : > { %v3555_v2 = vadd.f32 %v3552_v8, %v3505_v1  ;;  %v3507_v6 = vpop.f32.mrb[89].mxu0 }
 0xdb1   : > { %v3556_v27 = vadd.f32 %v3553_v11, %v3507_v6  ;;  %v3509_v34 = vpop.f32.mrb[90].mxu0 }
 0xdb2   : > { %v4032_v44 = vmul.f32 -1.442695, %v3555_v2  ;;  %v3510_v55 = vpop.f32.mrb[91].mxu0 }
 0xdb3   : > { %v4033_v36 = vmul.f32 -1.442695, %v3556_v27 }
 0xdb4   : > { %4774 = vpow2.f32 %v4032_v44 }
 0xdb5   : > { %4776 = vpow2.f32 %v4033_v36 }
 0xdbe   : > { %v4775_v35 = vpop.eup %4774 }
 0xdbf   : > { %v3563_v49 = vadd.f32 1.0, %v4775_v35  ;;  %v4777_v9 = vpop.eup %4776 }
 0xdc0   : > { %v3564_v3 = vadd.f32 1.0, %v4777_v9 }
 0xdc1   : > { %4778 = vrcp.f32 %v3563_v49 }
 0xdc2   : > { %4780 = vrcp.f32 %v3564_v3 }
 0xdcb   : > { %v4779_v50 = vpop.eup %4778 }
 0xdcc   : > { %v3570_v5 = vmul.f32 %v4779_v50, %v3569_v45  ;;  %v4781_v10 = vpop.eup %4780 }
 0xdcd   : > { %v3573_v24 = vsub.f32 1.0, %v4781_v10  ;;  %v3575_v33 = vmul.f32 %v4781_v10, %v7755_v54  ;;  %v470_v54 = vld [vmem:[#allocation7 + $0x7] ss:$0 sm:$0xff] }
 0xdce   : > { %v3571_v58 = vadd.f32 %v3570_v5, %v3554_v52 }
 0xdd0   : > { %4782 = vtanh.f32 %v3571_v58 }
 0xdda   : > { %v4783_v4 = vpop.eup %4782 }
 0xddb   : > { %v3574_v62 = vmul.f32 %v4783_v4, %v3573_v24 }
 0xddd   : > { %v3576_v61 = vadd.f32 %v3575_v33, %v3574_v62 }
 0xddf   : > { %v3577_v39 = vpack.c.bf16 %v3576_v61, %v3576_v61 }
 0xde1   : > { %4295 = vmatmul.mubr.bf16.vlgmr.msra.gmra.mrb[96].mxu1 %v3577_v39 }
 0xeb4   : > { %v3660_v40 = vpop.f32.mrb[96].mxu1 }
 0xeb5   : > { %v3661_v37 = vadd.f32 %v3660_v40, %v469_v21  ;;  %v4296_v18 = vpop.f32.mrb[97].mxu1 }
 0xeb6   : > { %v3663_v20 = vpop.f32.mrb[98].mxu1 }
 0xeb7   : > { %v3666_v53 = vmax.f32 %v3661_v37, 0.0  ;;  %v4297_v46 = vpop.f32.mrb[99].mxu1 }
 0xeb9   : > { %v3667_v7 = vpack.c.bf16 %v3666_v53, %v3666_v53 }
 0xebb   : > { %4303 = vmatmul.mubr.msk.bf16.vlgmr.msra.gmra.mrb[92].mxu0 %vm3680_vm5, %v3667_v7 }
 0xf8e   : > { %v3718_v16 = vpop.f32.mrb[92].mxu0 }
 0xf8f   : > { %v3719_v41 = vadd.f32 %v3718_v16, %v470_v54  ;;  %v4304_v17 = vpop.f32.mrb[93].mxu0 }
 0xf90   : > { %v3721_v19 = vpop.f32.mrb[94].mxu0 }
 0xf91   : > { %3725 = vst.msk [vmem:[%s256_s9] sm:$0xff] %vm3724_vm6, %v3719_v41  ;;  %v4305_v31 = vpop.f32.mrb[95].mxu0 }
 0xf92 PF: > { %p16_p7 = scmp.ge.s32.totalorder %s5296_s20, 4   ;;  %s9111_s15 = smov %s5224_s16 }
 0xf93   : > { %s9112_s16 = smov %s5228_s17  ;;  %s9113_s17 = smov %s5306_s23 }
 0xf94   : > { %s9114_s18 = smov %s5296_s20  ;;  %18 = sbr.rel (!%p16_p7) target bundleno = 7 (0x7), region = 89 }
 0xf9b   :  { %3745 = vsyncpa [#allocation3], 1 }
 0xf9c   :  { %3747 = vsyncpa [#allocation3 + $0x1], 1 }
 0xf9d   :  { %3748 = vsyncpa [#allocation5], 1 }
 0xf9e   :  { %3749 = vsyncpa [#allocation8], 1 }

</bundles_post_ra>
